<compile_context>
chip_gen: v6e
topology: v6e:2x2x1
jax: 0.10.0
libtpu: 0.0.40
codegen_flags: <defaults>
</compile_context>

<pallas_src>
import math
import functools

import jax
import jax.numpy as jnp
from jax.experimental import pallas as pl
from jax.experimental.pallas import tpu as pltpu

_NEG_PAD = -1e30  # padded rows/cols: softplus(1 * -1e30) == 0 exactly


def _default_num_cores():
    """2-wide 'parallel' core axis only where the chip has 2 TensorCores (v7x);
    v5e/v6e are single-TC, where an extra grid axis is pure serial overhead."""
    try:
        kind = jax.devices()[0].device_kind.lower()
    except Exception:
        return 1
    return 2 if "v7" in kind else 1


def _pol2vec_kernel(times_ref, zcolsT_ref, gcols_ref, grows_ref, events_ref,
                    zrows_ref, out_ref, acc_ref, *, D, V):
    j = pl.program_id(1)

    @pl.when(j == 0)
    def _init():
        acc_ref[...] = jnp.zeros_like(acc_ref)

    shape = acc_ref.shape                                    # (R, ct)
    # Hoist the sublane-broadcast of t once (JAX does not CSE broadcasts).
    t = jnp.broadcast_to(times_ref[...], shape)              # (R, ct)
    zcT = zcolsT_ref[...]                                    # (D, ct)

    # dist^2[r, c] = sum_d (pos_d[r, c] - z_cols[c, d])^2 with only (R, ct)
    # values live: pos_d is a Horner evaluation of the order polynomial using
    # pre-scaled coefficients z_rows[o, r, d] / o!   (pure VPU, no MXU, no
    # (D*R, ct) staging buffer).
    dist2 = jnp.zeros(shape, jnp.float32)
    for d in range(D):
        coeff = zrows_ref[d]                                 # (R, V)
        pos = coeff[:, V - 1:V]                              # (R, 1)
        for o in range(V - 2, -1, -1):
            pos = pos * t + coeff[:, o:o + 1]                # (R, ct)
        diff = pos - zcT[d:d + 1, :]
        dist2 = dist2 + diff * diff
    dist = jnp.sqrt(dist2)
    # TODO(synk): if this kernel is ever differentiated, add an epsilon to the
    # sqrt (NaN gradient at dist2 == 0) or provide a custom VJP.

    logits = grows_ref[...] + gcols_ref[...] - dist          # (R,1)+(1,ct)-(R,ct)
    sgn = 1.0 - 2.0 * events_ref[...].astype(jnp.float32)    # in-kernel {+1,-1}
    y = sgn * logits

    # -log(p_mat) = softplus((1-2e)*logits), stable: max(y,0)+log(1+exp(-|y|))
    nll = jnp.maximum(y, 0.0) + jnp.log(1.0 + jnp.exp(-jnp.abs(y)))
    acc_ref[...] += nll

    @pl.when(j == pl.num_programs(1) - 1)
    def _fin():
        out_ref[...] = jnp.broadcast_to(jnp.sum(acc_ref[...]), out_ref.shape)


def pol2vec_forward(events, col_times, gamma_rows, gamma_cols, z_cols, z_rows,
                    *, col_tile=None, num_cores=None):
    """events: (R, C) int {0,1}, col_times: (C,), gamma_rows: (R,),
    gamma_cols: (C,), z_cols: (C, D), z_rows: (V, R, D)."""
    R, C = events.shape
    V, R2, D = z_rows.shape
    assert R2 == R

    f32 = jnp.float32

    if num_cores is None:
        num_cores = _default_num_cores()
    if C < num_cores * 128:
        num_cores = 1

    # --- tile sizing --------------------------------------------------------
    R_pad = max(8, -(-R // 8) * 8)
    cols_per_core = -(-C // num_cores)
    if col_tile is None:
        # Keep the per-step working set a few MiB: events(int8, x2 dbuf) +
        # f32 acc + ~5 live f32 (R, ct) intermediates + small per-column rows.
        bytes_per_col = R_pad * (2 * 1 + 4 + 5 * 4) + 2 * (D + 2) * 4
        col_tile = (4 << 20) // bytes_per_col
    ct = max(128, min(int(col_tile), cols_per_core + 127) // 128 * 128)
    nj = -(-cols_per_core // ct)
    C_pad = num_cores * nj * ct                 # padded cols contribute exactly 0
    pr, pc = R_pad - R, C_pad - C

    # --- (small) wrapper-side layout prep; no full R x C pass when aligned ---
    events_p = events
    if pr or pc:
        events_p = jnp.pad(events, ((0, pr), (0, pc)))            # event=0 pad

    times_p = col_times.astype(f32).reshape(1, C)
    gcols_p = gamma_cols.astype(f32).reshape(1, C)
    zcT = z_cols.astype(f32).T                                    # (D, C)
    if pc:
        times_p = jnp.pad(times_p, ((0, 0), (0, pc)))
        gcols_p = jnp.pad(gcols_p, ((0, 0), (0, pc)), constant_values=_NEG_PAD)
        zcT = jnp.pad(zcT, ((0, 0), (0, pc)))

    grows_p = gamma_rows.astype(f32).reshape(R, 1)
    fact = jnp.array([math.factorial(o) for o in range(V)], f32)
    zs = jnp.transpose(z_rows.astype(f32), (2, 1, 0)) / fact       # (D, R, V)
    if pr:
        grows_p = jnp.pad(grows_p, ((0, pr), (0, 0)), constant_values=_NEG_PAD)
        zs = jnp.pad(zs, ((0, 0), (0, pr), (0, 0)))

    col_idx = lambda c, j: (0, c * nj + j)
    kernel = functools.partial(_pol2vec_kernel, D=D, V=V)

    out = pl.pallas_call(
        kernel,
        out_shape=jax.ShapeDtypeStruct((num_cores, 1, 128), f32),
        grid_spec=pltpu.PrefetchScalarGridSpec(
            num_scalar_prefetch=0,
            grid=(num_cores, nj),
            in_specs=[
                pl.BlockSpec((1, ct), col_idx),                       # col times
                pl.BlockSpec((D, ct), col_idx),                       # z_cols^T
                pl.BlockSpec((1, ct), col_idx),                       # gamma_cols
                pl.BlockSpec((R_pad, 1), lambda c, j: (0, 0)),        # gamma_rows
                pl.BlockSpec((R_pad, ct), col_idx),                   # events int8
                pl.BlockSpec((D, R_pad, V), lambda c, j: (0, 0, 0)),  # z_rows/o!
            ],
            out_specs=pl.BlockSpec((1, 1, 128), lambda c, j: (c, 0, 0)),
            scratch_shapes=[pltpu.VMEM((R_pad, ct), jnp.float32)],
        ),
        compiler_params=pltpu.CompilerParams(
            dimension_semantics=("parallel", "arbitrary")),
    )(times_p, zcT, gcols_p, grows_p, events_p, zs)

    # Each core's partial total is broadcast across its (1, 128) output row.
    return jnp.sum(out[:, 0, 0])


def pol2vec_forward_ref(events, col_times, gamma_rows, gamma_cols, z_cols, z_rows):
    """Plain-JAX reference mirroring the PyTorch forward()."""
    V, R, D = z_rows.shape
    f32 = jnp.float32
    fact = jnp.array([math.factorial(o) for o in range(V)], f32)
    tpow = (col_times.astype(f32)[None, :]
            ** jnp.arange(V, dtype=f32)[:, None]) / fact[:, None]             # (V, C)
    pos = jnp.einsum('vrd,vc->rdc', z_rows.astype(f32), tpow,
                     precision=jax.lax.Precision.HIGHEST)                     # (R, D, C)
    diff = pos - z_cols.astype(f32).T[None, :, :]                             # (R, D, C)
    dist = jnp.sqrt(jnp.sum(diff * diff, axis=1))                             # (R, C)
    logits = gamma_rows.astype(f32)[:, None] + gamma_cols.astype(f32)[None, :] - dist
    p = jax.nn.sigmoid(logits)
    e = events.astype(f32)
    p_mat = 1.0 - e - (1.0 - 2.0 * e) * p
    return -jnp.sum(jnp.log(p_mat))


# TODO(synk): the learn()/Adam training loop and the per-sample helper methods
# (get_variable_at, compute_likelihood_for, ...) are host-side orchestration,
# not part of forward(); only forward() is kernelized.

if __name__ == "__main__":
    key = jax.random.PRNGKey(0)
    R, C, D, ORDER = 16, 2048, 8, 2     # rows, columns, latent dim, polynomial order
    V = ORDER + 1

    k = jax.random.split(key, 6)
    events = (jax.random.uniform(k[0], (R, C)) < 0.3).astype(jnp.int8)   # train events
    col_times = jax.random.uniform(k[1], (C,), dtype=jnp.float32)        # event times
    gamma_rows = jax.random.uniform(k[2], (R,), dtype=jnp.float32)
    gamma_cols = jax.random.uniform(k[3], (C,), dtype=jnp.float32)
    z_cols = jax.random.uniform(k[4], (C, D), dtype=jnp.float32)
    z_rows = jax.random.uniform(k[5], (V, R, D), dtype=jnp.float32)

    out = jax.block_until_ready(
        pol2vec_forward(events, col_times, gamma_rows, gamma_cols, z_cols, z_rows))
    ref = jax.block_until_ready(
        pol2vec_forward_ref(events, col_times, gamma_rows, gamma_cols, z_cols, z_rows))

    assert jnp.allclose(out, ref, rtol=5e-4, atol=1e-2), (out, ref)
    print("KERNEL_OK")
</pallas_src>

<mosaic_0001>
module attributes {stable_mosaic.version = 11 : i64} {
  func.func @_pol2vec_kernel(%arg0: i32, %arg1: i32, %arg2: memref<1x2048xf32, #tpu.memory_space<vmem>>, %arg3: memref<8x2048xf32, #tpu.memory_space<vmem>>, %arg4: memref<1x2048xf32, #tpu.memory_space<vmem>>, %arg5: memref<16x1xf32, #tpu.memory_space<vmem>>, %arg6: memref<16x2048xi8, #tpu.memory_space<vmem>>, %arg7: memref<8x16x3xf32, #tpu.memory_space<vmem>>, %arg8: memref<1x1x128xf32, #tpu.memory_space<vmem>>, %arg9: memref<16x2048xf32, #tpu.memory_space<vmem>>) attributes {dimension_semantics = [#tpu.dimension_semantics<parallel>, #tpu.dimension_semantics<arbitrary>], iteration_bounds = array<i64: 1, 1>, scalar_prefetch = 0 : i64, scratch_operands = 1 : i64, tpu.core_type = #tpu.core_type<tc>, window_params = [{transform_indices = @transform_0, window_bounds = array<i64: 1, 2048>}, {transform_indices = @transform_1, window_bounds = array<i64: 8, 2048>}, {transform_indices = @transform_2, window_bounds = array<i64: 1, 2048>}, {pipeline_mode = #tpu.pipeline_mode<synchronous>, transform_indices = @transform_3, window_bounds = array<i64: 16, 1>}, {transform_indices = @transform_4, window_bounds = array<i64: 16, 2048>}, {pipeline_mode = #tpu.pipeline_mode<synchronous>, transform_indices = @transform_5, window_bounds = array<i64: 8, 16, 3>}, {transform_indices = @transform_6, window_bounds = array<i64: 1, 1, 128>}]} {
    %c0_i32 = arith.constant 0 : i32
    %0 = arith.cmpi eq, %arg1, %c0_i32 : i32
    %1 = arith.extui %0 : i1 to i32
    %c0_i32_0 = arith.constant 0 : i32
    %2 = arith.cmpi ne, %1, %c0_i32_0 : i32
    scf.if %2 {
      %cst_38 = arith.constant 0.000000e+00 : f32
      %174 = vector.broadcast %cst_38 : f32 to vector<16x2048xf32>
      %c0_39 = arith.constant 0 : index
      %c0_40 = arith.constant 0 : index
      %175 = vector.load %arg9[%c0_39, %c0_40] : memref<16x2048xf32, #tpu.memory_space<vmem>>, vector<16x2048xf32>
      tpu.vector_store %arg9[%c0_39, %c0_40], %174 {strides = array<i32>} : memref<16x2048xf32, #tpu.memory_space<vmem>>, vector<16x2048xf32>,
    } else {
    }
    %c0 = arith.constant 0 : index
    %c0_1 = arith.constant 0 : index
    %3 = vector.load %arg2[%c0, %c0_1] : memref<1x2048xf32, #tpu.memory_space<vmem>>, vector<1x2048xf32>
    %4 = vector.shape_cast %3 : vector<1x2048xf32> to vector<1x2048xf32>
    %5 = vector.broadcast %4 : vector<1x2048xf32> to vector<16x2048xf32>
    %c0_2 = arith.constant 0 : index
    %c0_3 = arith.constant 0 : index
    %6 = vector.load %arg3[%c0_2, %c0_3] : memref<8x2048xf32, #tpu.memory_space<vmem>>, vector<8x2048xf32>
    %cst = arith.constant 0.000000e+00 : f32
    %7 = vector.broadcast %cst : f32 to vector<16x2048xf32>
    %c0_4 = arith.constant 0 : index
    %c0_5 = arith.constant 0 : index
    %c0_6 = arith.constant 0 : index
    %8 = vector.load %arg7[%c0_4, %c0_5, %c0_6] : memref<8x16x3xf32, #tpu.memory_space<vmem>>, vector<1x16x3xf32>
    %9 = vector.shape_cast %8 : vector<1x16x3xf32> to vector<16x3xf32>
    %10 = vector.extract_strided_slice %9 {offsets = [0, 2], sizes = [16, 1], strides = [1, 1]} : vector<16x3xf32> to vector<16x1xf32>
    %11 = vector.broadcast %10 : vector<16x1xf32> to vector<16x2048xf32>
    %12 = arith.mulf %11, %5 : vector<16x2048xf32>
    %13 = vector.extract_strided_slice %9 {offsets = [0, 1], sizes = [16, 1], strides = [1, 1]} : vector<16x3xf32> to vector<16x1xf32>
    %14 = vector.broadcast %13 : vector<16x1xf32> to vector<16x2048xf32>
    %15 = arith.addf %12, %14 : vector<16x2048xf32>
    %16 = arith.mulf %15, %5 : vector<16x2048xf32>
    %17 = vector.extract_strided_slice %9 {offsets = [0, 0], sizes = [16, 1], strides = [1, 1]} : vector<16x3xf32> to vector<16x1xf32>
    %18 = vector.broadcast %17 : vector<16x1xf32> to vector<16x2048xf32>
    %19 = arith.addf %16, %18 : vector<16x2048xf32>
    %20 = vector.extract_strided_slice %6 {offsets = [0, 0], sizes = [1, 2048], strides = [1, 1]} : vector<8x2048xf32> to vector<1x2048xf32>
    %21 = vector.broadcast %20 : vector<1x2048xf32> to vector<16x2048xf32>
    %22 = arith.subf %19, %21 : vector<16x2048xf32>
    %23 = arith.mulf %22, %22 : vector<16x2048xf32>
    %24 = arith.addf %7, %23 : vector<16x2048xf32>
    %c1 = arith.constant 1 : index
    %c0_7 = arith.constant 0 : index
    %c0_8 = arith.constant 0 : index
    %25 = vector.load %arg7[%c1, %c0_7, %c0_8] : memref<8x16x3xf32, #tpu.memory_space<vmem>>, vector<1x16x3xf32>
    %26 = vector.shape_cast %25 : vector<1x16x3xf32> to vector<16x3xf32>
    %27 = vector.extract_strided_slice %26 {offsets = [0, 2], sizes = [16, 1], strides = [1, 1]} : vector<16x3xf32> to vector<16x1xf32>
    %28 = vector.broadcast %27 : vector<16x1xf32> to vector<16x2048xf32>
    %29 = arith.mulf %28, %5 : vector<16x2048xf32>
    %30 = vector.extract_strided_slice %26 {offsets = [0, 1], sizes = [16, 1], strides = [1, 1]} : vector<16x3xf32> to vector<16x1xf32>
    %31 = vector.broadcast %30 : vector<16x1xf32> to vector<16x2048xf32>
    %32 = arith.addf %29, %31 : vector<16x2048xf32>
    %33 = arith.mulf %32, %5 : vector<16x2048xf32>
    %34 = vector.extract_strided_slice %26 {offsets = [0, 0], sizes = [16, 1], strides = [1, 1]} : vector<16x3xf32> to vector<16x1xf32>
    %35 = vector.broadcast %34 : vector<16x1xf32> to vector<16x2048xf32>
    %36 = arith.addf %33, %35 : vector<16x2048xf32>
    %37 = vector.extract_strided_slice %6 {offsets = [1, 0], sizes = [1, 2048], strides = [1, 1]} : vector<8x2048xf32> to vector<1x2048xf32>
    %38 = vector.broadcast %37 : vector<1x2048xf32> to vector<16x2048xf32>
    %39 = arith.subf %36, %38 : vector<16x2048xf32>
    %40 = arith.mulf %39, %39 : vector<16x2048xf32>
    %41 = arith.addf %24, %40 : vector<16x2048xf32>
    %c2 = arith.constant 2 : index
    %c0_9 = arith.constant 0 : index
    %c0_10 = arith.constant 0 : index
    %42 = vector.load %arg7[%c2, %c0_9, %c0_10] : memref<8x16x3xf32, #tpu.memory_space<vmem>>, vector<1x16x3xf32>
    %43 = vector.shape_cast %42 : vector<1x16x3xf32> to vector<16x3xf32>
    %44 = vector.extract_strided_slice %43 {offsets = [0, 2], sizes = [16, 1], strides = [1, 1]} : vector<16x3xf32> to vector<16x1xf32>
    %45 = vector.broadcast %44 : vector<16x1xf32> to vector<16x2048xf32>
    %46 = arith.mulf %45, %5 : vector<16x2048xf32>
    %47 = vector.extract_strided_slice %43 {offsets = [0, 1], sizes = [16, 1], strides = [1, 1]} : vector<16x3xf32> to vector<16x1xf32>
    %48 = vector.broadcast %47 : vector<16x1xf32> to vector<16x2048xf32>
    %49 = arith.addf %46, %48 : vector<16x2048xf32>
    %50 = arith.mulf %49, %5 : vector<16x2048xf32>
    %51 = vector.extract_strided_slice %43 {offsets = [0, 0], sizes = [16, 1], strides = [1, 1]} : vector<16x3xf32> to vector<16x1xf32>
    %52 = vector.broadcast %51 : vector<16x1xf32> to vector<16x2048xf32>
    %53 = arith.addf %50, %52 : vector<16x2048xf32>
    %54 = vector.extract_strided_slice %6 {offsets = [2, 0], sizes = [1, 2048], strides = [1, 1]} : vector<8x2048xf32> to vector<1x2048xf32>
    %55 = vector.broadcast %54 : vector<1x2048xf32> to vector<16x2048xf32>
    %56 = arith.subf %53, %55 : vector<16x2048xf32>
    %57 = arith.mulf %56, %56 : vector<16x2048xf32>
    %58 = arith.addf %41, %57 : vector<16x2048xf32>
    %c3 = arith.constant 3 : index
    %c0_11 = arith.constant 0 : index
    %c0_12 = arith.constant 0 : index
    %59 = vector.load %arg7[%c3, %c0_11, %c0_12] : memref<8x16x3xf32, #tpu.memory_space<vmem>>, vector<1x16x3xf32>
    %60 = vector.shape_cast %59 : vector<1x16x3xf32> to vector<16x3xf32>
    %61 = vector.extract_strided_slice %60 {offsets = [0, 2], sizes = [16, 1], strides = [1, 1]} : vector<16x3xf32> to vector<16x1xf32>
    %62 = vector.broadcast %61 : vector<16x1xf32> to vector<16x2048xf32>
    %63 = arith.mulf %62, %5 : vector<16x2048xf32>
    %64 = vector.extract_strided_slice %60 {offsets = [0, 1], sizes = [16, 1], strides = [1, 1]} : vector<16x3xf32> to vector<16x1xf32>
    %65 = vector.broadcast %64 : vector<16x1xf32> to vector<16x2048xf32>
    %66 = arith.addf %63, %65 : vector<16x2048xf32>
    %67 = arith.mulf %66, %5 : vector<16x2048xf32>
    %68 = vector.extract_strided_slice %60 {offsets = [0, 0], sizes = [16, 1], strides = [1, 1]} : vector<16x3xf32> to vector<16x1xf32>
    %69 = vector.broadcast %68 : vector<16x1xf32> to vector<16x2048xf32>
    %70 = arith.addf %67, %69 : vector<16x2048xf32>
    %71 = vector.extract_strided_slice %6 {offsets = [3, 0], sizes = [1, 2048], strides = [1, 1]} : vector<8x2048xf32> to vector<1x2048xf32>
    %72 = vector.broadcast %71 : vector<1x2048xf32> to vector<16x2048xf32>
    %73 = arith.subf %70, %72 : vector<16x2048xf32>
    %74 = arith.mulf %73, %73 : vector<16x2048xf32>
    %75 = arith.addf %58, %74 : vector<16x2048xf32>
    %c4 = arith.constant 4 : index
    %c0_13 = arith.constant 0 : index
    %c0_14 = arith.constant 0 : index
    %76 = vector.load %arg7[%c4, %c0_13, %c0_14] : memref<8x16x3xf32, #tpu.memory_space<vmem>>, vector<1x16x3xf32>
    %77 = vector.shape_cast %76 : vector<1x16x3xf32> to vector<16x3xf32>
    %78 = vector.extract_strided_slice %77 {offsets = [0, 2], sizes = [16, 1], strides = [1, 1]} : vector<16x3xf32> to vector<16x1xf32>
    %79 = vector.broadcast %78 : vector<16x1xf32> to vector<16x2048xf32>
    %80 = arith.mulf %79, %5 : vector<16x2048xf32>
    %81 = vector.extract_strided_slice %77 {offsets = [0, 1], sizes = [16, 1], strides = [1, 1]} : vector<16x3xf32> to vector<16x1xf32>
    %82 = vector.broadcast %81 : vector<16x1xf32> to vector<16x2048xf32>
    %83 = arith.addf %80, %82 : vector<16x2048xf32>
    %84 = arith.mulf %83, %5 : vector<16x2048xf32>
    %85 = vector.extract_strided_slice %77 {offsets = [0, 0], sizes = [16, 1], strides = [1, 1]} : vector<16x3xf32> to vector<16x1xf32>
    %86 = vector.broadcast %85 : vector<16x1xf32> to vector<16x2048xf32>
    %87 = arith.addf %84, %86 : vector<16x2048xf32>
    %88 = vector.extract_strided_slice %6 {offsets = [4, 0], sizes = [1, 2048], strides = [1, 1]} : vector<8x2048xf32> to vector<1x2048xf32>
    %89 = vector.broadcast %88 : vector<1x2048xf32> to vector<16x2048xf32>
    %90 = arith.subf %87, %89 : vector<16x2048xf32>
    %91 = arith.mulf %90, %90 : vector<16x2048xf32>
    %92 = arith.addf %75, %91 : vector<16x2048xf32>
    %c5 = arith.constant 5 : index
    %c0_15 = arith.constant 0 : index
    %c0_16 = arith.constant 0 : index
    %93 = vector.load %arg7[%c5, %c0_15, %c0_16] : memref<8x16x3xf32, #tpu.memory_space<vmem>>, vector<1x16x3xf32>
    %94 = vector.shape_cast %93 : vector<1x16x3xf32> to vector<16x3xf32>
    %95 = vector.extract_strided_slice %94 {offsets = [0, 2], sizes = [16, 1], strides = [1, 1]} : vector<16x3xf32> to vector<16x1xf32>
    %96 = vector.broadcast %95 : vector<16x1xf32> to vector<16x2048xf32>
    %97 = arith.mulf %96, %5 : vector<16x2048xf32>
    %98 = vector.extract_strided_slice %94 {offsets = [0, 1], sizes = [16, 1], strides = [1, 1]} : vector<16x3xf32> to vector<16x1xf32>
    %99 = vector.broadcast %98 : vector<16x1xf32> to vector<16x2048xf32>
    %100 = arith.addf %97, %99 : vector<16x2048xf32>
    %101 = arith.mulf %100, %5 : vector<16x2048xf32>
    %102 = vector.extract_strided_slice %94 {offsets = [0, 0], sizes = [16, 1], strides = [1, 1]} : vector<16x3xf32> to vector<16x1xf32>
    %103 = vector.broadcast %102 : vector<16x1xf32> to vector<16x2048xf32>
    %104 = arith.addf %101, %103 : vector<16x2048xf32>
    %105 = vector.extract_strided_slice %6 {offsets = [5, 0], sizes = [1, 2048], strides = [1, 1]} : vector<8x2048xf32> to vector<1x2048xf32>
    %106 = vector.broadcast %105 : vector<1x2048xf32> to vector<16x2048xf32>
    %107 = arith.subf %104, %106 : vector<16x2048xf32>
    %108 = arith.mulf %107, %107 : vector<16x2048xf32>
    %109 = arith.addf %92, %108 : vector<16x2048xf32>
    %c6 = arith.constant 6 : index
    %c0_17 = arith.constant 0 : index
    %c0_18 = arith.constant 0 : index
    %110 = vector.load %arg7[%c6, %c0_17, %c0_18] : memref<8x16x3xf32, #tpu.memory_space<vmem>>, vector<1x16x3xf32>
    %111 = vector.shape_cast %110 : vector<1x16x3xf32> to vector<16x3xf32>
    %112 = vector.extract_strided_slice %111 {offsets = [0, 2], sizes = [16, 1], strides = [1, 1]} : vector<16x3xf32> to vector<16x1xf32>
    %113 = vector.broadcast %112 : vector<16x1xf32> to vector<16x2048xf32>
    %114 = arith.mulf %113, %5 : vector<16x2048xf32>
    %115 = vector.extract_strided_slice %111 {offsets = [0, 1], sizes = [16, 1], strides = [1, 1]} : vector<16x3xf32> to vector<16x1xf32>
    %116 = vector.broadcast %115 : vector<16x1xf32> to vector<16x2048xf32>
    %117 = arith.addf %114, %116 : vector<16x2048xf32>
    %118 = arith.mulf %117, %5 : vector<16x2048xf32>
    %119 = vector.extract_strided_slice %111 {offsets = [0, 0], sizes = [16, 1], strides = [1, 1]} : vector<16x3xf32> to vector<16x1xf32>
    %120 = vector.broadcast %119 : vector<16x1xf32> to vector<16x2048xf32>
    %121 = arith.addf %118, %120 : vector<16x2048xf32>
    %122 = vector.extract_strided_slice %6 {offsets = [6, 0], sizes = [1, 2048], strides = [1, 1]} : vector<8x2048xf32> to vector<1x2048xf32>
    %123 = vector.broadcast %122 : vector<1x2048xf32> to vector<16x2048xf32>
    %124 = arith.subf %121, %123 : vector<16x2048xf32>
    %125 = arith.mulf %124, %124 : vector<16x2048xf32>
    %126 = arith.addf %109, %125 : vector<16x2048xf32>
    %c7 = arith.constant 7 : index
    %c0_19 = arith.constant 0 : index
    %c0_20 = arith.constant 0 : index
    %127 = vector.load %arg7[%c7, %c0_19, %c0_20] : memref<8x16x3xf32, #tpu.memory_space<vmem>>, vector<1x16x3xf32>
    %128 = vector.shape_cast %127 : vector<1x16x3xf32> to vector<16x3xf32>
    %129 = vector.extract_strided_slice %128 {offsets = [0, 2], sizes = [16, 1], strides = [1, 1]} : vector<16x3xf32> to vector<16x1xf32>
    %130 = vector.broadcast %129 : vector<16x1xf32> to vector<16x2048xf32>
    %131 = arith.mulf %130, %5 : vector<16x2048xf32>
    %132 = vector.extract_strided_slice %128 {offsets = [0, 1], sizes = [16, 1], strides = [1, 1]} : vector<16x3xf32> to vector<16x1xf32>
    %133 = vector.broadcast %132 : vector<16x1xf32> to vector<16x2048xf32>
    %134 = arith.addf %131, %133 : vector<16x2048xf32>
    %135 = arith.mulf %134, %5 : vector<16x2048xf32>
    %136 = vector.extract_strided_slice %128 {offsets = [0, 0], sizes = [16, 1], strides = [1, 1]} : vector<16x3xf32> to vector<16x1xf32>
    %137 = vector.broadcast %136 : vector<16x1xf32> to vector<16x2048xf32>
    %138 = arith.addf %135, %137 : vector<16x2048xf32>
    %139 = vector.extract_strided_slice %6 {offsets = [7, 0], sizes = [1, 2048], strides = [1, 1]} : vector<8x2048xf32> to vector<1x2048xf32>
    %140 = vector.broadcast %139 : vector<1x2048xf32> to vector<16x2048xf32>
    %141 = arith.subf %138, %140 : vector<16x2048xf32>
    %142 = arith.mulf %141, %141 : vector<16x2048xf32>
    %143 = arith.addf %126, %142 : vector<16x2048xf32>
    %144 = math.sqrt %143 : vector<16x2048xf32>
    %c0_21 = arith.constant 0 : index
    %c0_22 = arith.constant 0 : index
    %145 = vector.load %arg5[%c0_21, %c0_22] : memref<16x1xf32, #tpu.memory_space<vmem>>, vector<16x1xf32>
    %c0_23 = arith.constant 0 : index
    %c0_24 = arith.constant 0 : index
    %146 = vector.load %arg4[%c0_23, %c0_24] : memref<1x2048xf32, #tpu.memory_space<vmem>>, vector<1x2048xf32>
    %147 = vector.broadcast %145 : vector<16x1xf32> to vector<16x2048xf32>
    %148 = vector.broadcast %146 : vector<1x2048xf32> to vector<16x2048xf32>
    %149 = arith.addf %147, %148 : vector<16x2048xf32>
    %150 = arith.subf %149, %144 : vector<16x2048xf32>
    %c0_25 = arith.constant 0 : index
    %c0_26 = arith.constant 0 : index
    %151 = vector.load %arg6[%c0_25, %c0_26] : memref<16x2048xi8, #tpu.memory_space<vmem>>, vector<16x2048xi8>
    %152 = arith.sitofp %151 : vector<16x2048xi8> to vector<16x2048xf32>
    %cst_27 = arith.constant 2.000000e+00 : f32
    %153 = vector.broadcast %cst_27 : f32 to vector<16x2048xf32>
    %154 = arith.mulf %153, %152 : vector<16x2048xf32>
    %cst_28 = arith.constant 1.000000e+00 : f32
    %155 = vector.broadcast %cst_28 : f32 to vector<16x2048xf32>
    %156 = arith.subf %155, %154 : vector<16x2048xf32>
    %157 = arith.mulf %156, %150 : vector<16x2048xf32>
    %cst_29 = arith.constant 0.000000e+00 : f32
    %158 = vector.broadcast %cst_29 : f32 to vector<16x2048xf32>
    %159 = arith.maximumf %157, %158 : vector<16x2048xf32>
    %160 = math.absf %157 : vector<16x2048xf32>
    %cst_30 = arith.constant 0.000000e+00 : f32
    %161 = vector.broadcast %cst_30 : f32 to vector<16x2048xf32>
    %162 = arith.subf %161, %160 : vector<16x2048xf32>
    %163 = math.exp %162 : vector<16x2048xf32>
    %cst_31 = arith.constant 1.000000e+00 : f32
    %164 = vector.broadcast %cst_31 : f32 to vector<16x2048xf32>
    %165 = arith.addf %164, %163 : vector<16x2048xf32>
    %166 = math.log %165 : vector<16x2048xf32>
    %167 = arith.addf %159, %166 : vector<16x2048xf32>
    %c0_32 = arith.constant 0 : index
    %c0_33 = arith.constant 0 : index
    %168 = vector.load %arg9[%c0_32, %c0_33] : memref<16x2048xf32, #tpu.memory_space<vmem>>, vector<16x2048xf32>
    %169 = arith.addf %168, %167 : vector<16x2048xf32>
    %c0_34 = arith.constant 0 : index
    %c0_35 = arith.constant 0 : index
    %170 = vector.load %arg9[%c0_34, %c0_35] : memref<16x2048xf32, #tpu.memory_space<vmem>>, vector<16x2048xf32>
    tpu.vector_store %arg9[%c0_34, %c0_35], %169 {strides = array<i32>} : memref<16x2048xf32, #tpu.memory_space<vmem>>, vector<16x2048xf32>,
    %c0_i32_36 = arith.constant 0 : i32
    %171 = arith.cmpi eq, %arg1, %c0_i32_36 : i32
    %172 = arith.extui %171 : i1 to i32
    %c0_i32_37 = arith.constant 0 : i32
    %173 = arith.cmpi ne, %172, %c0_i32_37 : i32
    scf.if %173 {
      %c0_38 = arith.constant 0 : index
      %c0_39 = arith.constant 0 : index
      %174 = vector.load %arg9[%c0_38, %c0_39] : memref<16x2048xf32, #tpu.memory_space<vmem>>, vector<16x2048xf32>
      %175 = vector.shape_cast %174 : vector<16x2048xf32> to vector<1x16x2048xf32>
      %cst_40 = arith.constant dense<0.000000e+00> : vector<1xf32>
      %176 = vector.multi_reduction <add>, %175, %cst_40 [1, 2] : vector<1x16x2048xf32> to vector<1xf32>
      %177 = vector.shape_cast %176 : vector<1xf32> to vector<1x1x1xf32>
      %178 = vector.extract %177[0, 0, 0] : f32 from vector<1x1x1xf32>
      %179 = vector.broadcast %178 : f32 to vector<1x1x128xf32>
      %c0_41 = arith.constant 0 : index
      %c0_42 = arith.constant 0 : index
      %c0_43 = arith.constant 0 : index
      %180 = vector.load %arg8[%c0_41, %c0_42, %c0_43] : memref<1x1x128xf32, #tpu.memory_space<vmem>>, vector<1x1x128xf32>
      tpu.vector_store %arg8[%c0_41, %c0_42, %c0_43], %179 {strides = array<i32>} : memref<1x1x128xf32, #tpu.memory_space<vmem>>, vector<1x1x128xf32>,
    } else {
    }
    return
  }
  func.func @transform_0(%arg0: i32, %arg1: i32) -> (i32, i32) {
    %c1_i32 = arith.constant 1 : i32
    %0 = arith.muli %arg0, %c1_i32 : i32
    %1 = arith.addi %0, %arg1 : i32
    %c0_i32 = arith.constant 0 : i32
    %c0_i32_0 = arith.constant 0 : i32
    return %c0_i32, %1 : i32, i32
  }
  func.func @transform_1(%arg0: i32, %arg1: i32) -> (i32, i32) {
    %c1_i32 = arith.constant 1 : i32
    %0 = arith.muli %arg0, %c1_i32 : i32
    %1 = arith.addi %0, %arg1 : i32
    %c0_i32 = arith.constant 0 : i32
    %c0_i32_0 = arith.constant 0 : i32
    return %c0_i32, %1 : i32, i32
  }
  func.func @transform_2(%arg0: i32, %arg1: i32) -> (i32, i32) {
    %c1_i32 = arith.constant 1 : i32
    %0 = arith.muli %arg0, %c1_i32 : i32
    %1 = arith.addi %0, %arg1 : i32
    %c0_i32 = arith.constant 0 : i32
    %c0_i32_0 = arith.constant 0 : i32
    return %c0_i32, %1 : i32, i32
  }
  func.func @transform_3(%arg0: i32, %arg1: i32) -> (i32, i32) {
    %c0_i32 = arith.constant 0 : i32
    %c0_i32_0 = arith.constant 0 : i32
    %c0_i32_1 = arith.constant 0 : i32
    return %c0_i32, %c0_i32_0 : i32, i32
  }
  func.func @transform_4(%arg0: i32, %arg1: i32) -> (i32, i32) {
    %c1_i32 = arith.constant 1 : i32
    %0 = arith.muli %arg0, %c1_i32 : i32
    %1 = arith.addi %0, %arg1 : i32
    %c0_i32 = arith.constant 0 : i32
    %c0_i32_0 = arith.constant 0 : i32
    return %c0_i32, %1 : i32, i32
  }
  func.func @transform_5(%arg0: i32, %arg1: i32) -> (i32, i32, i32) {
    %c0_i32 = arith.constant 0 : i32
    %c0_i32_0 = arith.constant 0 : i32
    %c0_i32_1 = arith.constant 0 : i32
    %c0_i32_2 = arith.constant 0 : i32
    return %c0_i32, %c0_i32_0, %c0_i32_1 : i32, i32, i32
  }
  func.func @transform_6(%arg0: i32, %arg1: i32) -> (i32, i32, i32) {
    %c0_i32 = arith.constant 0 : i32
    %c0_i32_0 = arith.constant 0 : i32
    %c0_i32_1 = arith.constant 0 : i32
    return %arg0, %c0_i32, %c0_i32_0 : i32, i32, i32
  }
}

</mosaic_0001>

<bundles_post_ra>
// kernel: tpu_custom_call.1
= control target key start
LH: loop header
LB: loop body
LE: loop exit
PB: predicated region body
PF: predicated region fallthrough
CT: control target
= control target key end

     0   :  { %11 = vsyncpa [#allocation4], 0  ;;  %s8300_s0 = inlined_call_operand.vmem [shape: f32[1,2048], index: 0, kind: input, shape index: {}]   ;;  %s8301_s1 = inlined_call_operand.vmem [shape: f32[8,2048], index: 1, kind: input, shape index: {}]   ;;  %s8302_s2 = inlined_call_operand.hbm [shape: f32[1,2048], index: 2, kind: input, shape index: {}]   ;;  %s8303_s3 = inlined_call_operand.vmem [shape: f32[16,1], index: 3, kind: input, shape index: {}]   ;;  %s8304_s4 = inlined_call_operand.hbm [shape: s8[16,2048], index: 4, kind: input, shape index: {}]   ;;  %s8305_s5 = inlined_call_operand.vmem [shape: f32[8,16,3], index: 5, kind: input, shape index: {}]   ;;  %s8306_s6 = inlined_call_operand.hbm [shape: f32[1,1,128], index: 6, kind: output, shape index: {}]  }
   0x1   :  { %12 = vsyncpa [#allocation7], 0 }
   0x2   :  { %13 = vsyncpa [#allocation5], 0  ;;  %s4155_s21 = smov [#allocation3]   ;;  %s4156_s23 = smov [#allocation6]  }
   0x3   :  { %s43_s22 = sshll.u32 %s4155_s21, 4  ;;  %s58_s24 = sshll.u32 %s4156_s23, 4  ;;  %s44_s22 = int_to_ptr.vmem [resolvable:$true] %s43_s22  ;;  %s59_s24 = int_to_ptr.vmem [resolvable:$true] %s58_s24 }
   0x4   :  { %s4097_s25 = scalar_lea.vmem %s44_s22, 256  ;;  %p4102_p1 = scmp.lt.s32.totalorder %s44_s22, %s44_s22 }
   0x5   :  { %p4098_p0 = scmp.ne.s32.totalorder %s44_s22, %s4097_s25  ;;  %p4103_p2 = scmp.lt.s32.totalorder %s4097_s25, %s4097_s25 }
   0x7   :  { %p4104_p3 = por %p4103_p2, %p4102_p1 }
   0x9   :  { %p4105_p4 = pnand %p4104_p3, %p4098_p0 }
   0xb   :  { %4108 = shalt.err (!%p4105_p4)
}
   0xc   :  { %46 = dma.hbm_to_vmem [thread:$0]  %s8302_s2, 256, %s44_s22, [#allocation4]  }
   0xd   :  { %s4117_s28 = scalar_lea.vmem %s59_s24, 1024  ;;  %p4122_p6 = scmp.lt.s32.totalorder %s59_s24, %s59_s24 }
   0xe   :  { %p4118_p5 = scmp.ne.s32.totalorder %s59_s24, %s4117_s28  ;;  %p4123_p7 = scmp.lt.s32.totalorder %s4117_s28, %s4117_s28 }
  0x10   :  { %p4124_p8 = por %p4123_p7, %p4122_p6 }
  0x12   :  { %p4125_p9 = pnand %p4124_p8, %p4118_p5 }
  0x14   :  { %4128 = shalt.err (!%p4125_p9)
}
  0x15   :  { %s4157_s29 = smov 512   ;;  %s4158_s30 = smov 32  }
  0x16   :  { %64 = dma.hbm_to_vmem [thread:$0]  %s8304_s4, 1024, %s59_s24, [#allocation7], %s4157_s29, %s4157_s29, %s4158_s30  }
  0x17   :  { %4149 = dma.done.wait [#allocation4], 256  }
  0x18   :  { %4150 = vsyncadd [#allocation4], 4294967040 }
  0x19   :  { %4151 = dma.done.wait [#allocation7], 1024  }
  0x1a   :  { %4152 = vsyncadd [#allocation7], 4294966272  ;;  %v4159_v0 = vmov 1   ;;  %v3822_v1 = vld [vmem:[%s8305_s5 + $0x60] sm:$0xff]  ;;  %v3824_v3 = vld [vmem:[%s8305_s5 + $0x70] sm:$0xff]  ;;  %v4160_v6 = vmov 0   ;;  %v143_v34 = vlaneseq }
  0x1b   :  { %3844 = vset.pattern.permute.xlu0 %v4159_v0  ;;  %3836 = vset.pattern.permute.xlu1 %v4159_v0  ;;  %v239_v2 = vld [vmem:[%s8305_s5] sm:$0xff]  ;;  %v3812_v4 = vld [vmem:[%s8305_s5 + $0x10] sm:$0xff]  ;;  %v240_v8 = vld [vmem:[%s8305_s5 + $0x8] sm:$0xff]  ;;  %v4161_v10 = vmov 2  }
  0x1c   :  { %2186 = vperm.xlu0 %3844, %v3822_v1   ;;  %284 = vperm.xlu1 %3836, %v239_v2   ;;  %v3814_v5 = vld [vmem:[%s8305_s5 + $0x20] sm:$0xff]  ;;  %v3816_v7 = vld [vmem:[%s8305_s5 + $0x30] sm:$0xff]  ;;  %v3819_v12 = vld [vmem:[%s8305_s5 + $0x48] sm:$0xff]  ;;  %v144_v36 = vshrl.u32 %v143_v34, 7 }
  0x1d   :  { %v3818_v9 = vld [vmem:[%s8305_s5 + $0x40] sm:$0xff]  ;;  %v3820_v11 = vld [vmem:[%s8305_s5 + $0x50] sm:$0xff]  ;;  %v3821_v13 = vld [vmem:[%s8305_s5 + $0x58] sm:$0xff] }
  0x1e   :  { %v3815_v14 = vld [vmem:[%s8305_s5 + $0x28] sm:$0xff]  ;;  %v3813_v15 = vld [vmem:[%s8305_s5 + $0x18] sm:$0xff]  ;;  %v2998_v17 = vld [vmem:[%s8303_s3] sm:$0xff]  ;;  %v4319_v39 = vsub.s32 4, %v144_v36  ;;  %v4321_v40 = vsub.s32 5, %v144_v36  ;;  %v4323_v41 = vsub.s32 0, %v144_v36 }
  0x1f   :  { %v3823_v16 = vld [vmem:[%s8305_s5 + $0x68] sm:$0xff]  ;;  %v3817_v18 = vld [vmem:[%s8305_s5 + $0x38] sm:$0xff]  ;;  %v4328_v42 = vld [vmem:[%s8300_s0] sm:$0xff]  ;;  %v4330_v43 = vsub.s32 6, %v144_v36  ;;  %v4332_v44 = vsub.s32 7, %v144_v36  ;;  %v4334_v45 = vsub.s32 1, %v144_v36 }
  0x20   :  { %2503 = vperm.xlu0 %3844, %v3824_v3   ;;  %601 = vperm.xlu1 %3836, %v3812_v4   ;;  %v2999_v19 = vld [vmem:[%s8303_s3 + $0x8] sm:$0xff]  ;;  %v3825_v20 = vld [vmem:[%s8305_s5 + $0x78] sm:$0xff]  ;;  %8664 = vst [vmem:[#allocation25_spill] sm:$0xff] %v4319_v39  ;;  %8665 = vst [vmem:[#allocation26_spill] sm:$0xff] %v4321_v40  ;;  %v4336_v46 = vsub.s32 2, %v144_v36  ;;  %v4343_v49 = vsub.s32 3, %v144_v36  ;;  %v4347_v50 = vrot.slane %v4328_v42, %v4319_v39 }
  0x21   :  { %8666 = vst [vmem:[#allocation27_spill] sm:$0xff] %v4323_v41  ;;  %8667 = vst [vmem:[#allocation28_spill] sm:$0xff] %v4330_v43  ;;  %v140_v48 = vld [vmem:[%s8300_s0 + $0x8] sm:$0xff]  ;;  %v4351_v51 = vrot.slane %v4328_v42, %v4321_v40  ;;  %v4357_v53 = vrot.slane %v4328_v42, %v4330_v43  ;;  %v4361_v54 = vrot.slane %v4328_v42, %v4332_v44 }
  0x22   :  { %8668 = vst [vmem:[#allocation29_spill] sm:$0xff] %v4332_v44  ;;  %8669 = vst [vmem:[#allocation30_spill] sm:$0xff] %v4334_v45  ;;  %v4364_v55 = vrot.slane %v140_v48, %v4323_v41  ;;  %v4371_v58 = vrot.slane %v140_v48, %v4334_v45  ;;  %v4374_v59 = vrot.slane %v140_v48, %v4336_v46 }
  0x23   :  { %8670 = vst [vmem:[#allocation31_spill] sm:$0xff] %v4336_v46  ;;  %8672 = vst [vmem:[#allocation33_spill] sm:$0xff] %v4343_v49  ;;  %v4381_v62 = vrot.slane %v140_v48, %v4343_v49  ;;  %v4384_v63 = vrot.slane %v140_v48, %v4319_v39 }
  0x24   :  { %3847 = vset.pattern.permute.xlu0 %v4160_v6  ;;  %918 = vperm.xlu1 %3836, %v3814_v5   ;;  %8673 = vst [vmem:[#allocation34_spill] sm:$0xff] %v4347_v50  ;;  %8674 = vst [vmem:[#allocation35_spill] sm:$0xff] %v4351_v51 }
  0x25   :  { %673 = vperm.xlu0 %3847, %v3812_v4   ;;  %8676 = vst [vmem:[#allocation37_spill] sm:$0xff] %v4357_v53  ;;  %8677 = vst [vmem:[#allocation38_spill] sm:$0xff] %v4361_v54 }
  0x26   :  { %8678 = vst [vmem:[#allocation39_spill] sm:$0xff] %v4364_v55  ;;  %8679 = vst [vmem:[#allocation40_spill] sm:$0xff] %v4371_v58 }
  0x27   :  { %8680 = vst [vmem:[#allocation41_spill] sm:$0xff] %v4374_v59  ;;  %8681 = vst [vmem:[#allocation42_spill] sm:$0xff] %v4381_v62 }
  0x28   :  { %3837 = vset.pattern.permute.xlu1 %v4160_v6  ;;  %8682 = vst [vmem:[#allocation43_spill] sm:$0xff] %v4384_v63 }
  0x29   :  { %990 = vperm.xlu0 %3847, %v3814_v5   ;;  %356 = vperm.xlu1 %3837, %v239_v2  }
  0x2d   :  { %2575 = vperm.xlu0 %3847, %v3824_v3   ;;  %3838 = vset.pattern.permute.xlu1 %v4159_v0 }
  0x2e   :  { %1235 = vperm.xlu1 %3838, %v3816_v7  }
  0x31   :  { %360 = vperm.xlu0 %3847, %v240_v8  }
  0x32   :  { %3839 = vset.pattern.permute.xlu1 %v4161_v10 }
  0x33   :  { %1511 = vperm.xlu1 %3839, %v3818_v9  }
  0x35   :  { %3851 = vset.pattern.permute.xlu0 %v4161_v10 }
  0x36   :  { %243 = vperm.xlu0 %3851, %v239_v2   ;;  %v4392_v2 = vrot.slane %v140_v48, %v4330_v43 }
  0x37   :  { %3840 = vset.pattern.permute.xlu1 %v4159_v0 }
  0x38   :  { %1552 = vperm.xlu1 %3840, %v3818_v9   ;;  %8685 = vst [vmem:[#allocation46_spill] sm:$0xff] %v4392_v2 }
  0x3a   :  { %560 = vperm.xlu0 %3851, %v3812_v4  }
  0x3c   :  { %3841 = vset.pattern.permute.xlu1 %v4160_v6 }
  0x3d   :  { %1307 = vperm.xlu1 %3841, %v3816_v7  }
  0x3e   :  { %877 = vperm.xlu0 %3851, %v3814_v5   ;;  %v4399_v5 = vrot.slane %v140_v48, %v4332_v44 }
  0x40   :  { %8686 = vst [vmem:[#allocation47_spill] sm:$0xff] %v4399_v5 }
  0x41   :  { %3842 = vset.pattern.permute.xlu1 %v4159_v0 }
  0x42   :  { %1194 = vperm.xlu0 %3851, %v3816_v7   ;;  %1869 = vperm.xlu1 %3842, %v3820_v11  }
  0x46   :  { %1828 = vperm.xlu0 %3851, %v3820_v11   ;;  %3843 = vset.pattern.permute.xlu1 %v4160_v6 }
  0x47   :  { %1624 = vperm.xlu1 %3843, %v3818_v9  }
  0x4a   :  { %2145 = vperm.xlu0 %3851, %v3822_v1  }
  0x4b   :  { %3845 = vset.pattern.permute.xlu1 %v4161_v10 }
  0x4c   :  { %2462 = vperm.xlu1 %3845, %v3824_v3  }
  0x4e   :  { %1516 = vperm.xlu0 %3851, %v3819_v12  }
  0x50   :  { %3846 = vset.pattern.permute.xlu1 %v4160_v6 }
  0x51   :  { %1941 = vperm.xlu1 %3846, %v3820_v11  }
  0x52   :  { %1833 = vperm.xlu0 %3851, %v3821_v13  }
  0x55   :  { %2258 = vperm.xlu1 %3846, %v3822_v1   ;;  %v4389_v1 = vrot.slane %v140_v48, %v4321_v40 }
  0x56   :  { %3856 = vset.pattern.permute.xlu0 %v4159_v0 }
  0x57   :  { %288 = vperm.xlu0 %3856, %v240_v8   ;;  %8684 = vst [vmem:[#allocation45_spill] sm:$0xff] %v4389_v1 }
  0x59   :  { %3848 = vset.pattern.permute.xlu1 %v4161_v10 }
  0x5a   :  { %248 = vperm.xlu1 %3848, %v240_v8  }
  0x5b   :  { %922 = vperm.xlu0 %3856, %v3815_v14  }
  0x5e   :  { %565 = vperm.xlu1 %3848, %v3813_v15  }
  0x5f   :  { %1873 = vperm.xlu0 %3856, %v3821_v13  }
  0x62   :  { %3849 = vset.pattern.permute.xlu1 %v4159_v0 }
  0x63   :  { %605 = vperm.xlu1 %3849, %v3813_v15   ;;  %2190 = vperm.xlu0 %3856, %v3823_v16  }
  0x67   :  { %3850 = vset.pattern.permute.xlu1 %v4161_v10  ;;  %3861 = vset.pattern.permute.xlu0 %v4160_v6 }
  0x68   :  { %882 = vperm.xlu1 %3850, %v3815_v14   ;;  %3004 = vperm.xlu0 %3861, %v2998_v17  }
  0x6c   :  { %1199 = vperm.xlu1 %3850, %v3817_v18   ;;  %2262 = vperm.xlu0 %3861, %v3823_v16  }
  0x70   :  { %3852 = vset.pattern.permute.xlu1 %v4160_v6  ;;  %3009 = vperm.xlu0 %3861, %v2999_v19  }
  0x71   :  { %677 = vperm.xlu1 %3852, %v3813_v15  }
  0x75   :  { %3853 = vset.pattern.permute.xlu1 %v4159_v0 }
  0x76   :  { %1239 = vperm.xlu1 %3853, %v3817_v18  }
  0x7a   :  { %3854 = vset.pattern.permute.xlu1 %v4160_v6 }
  0x7b   :  { %994 = vperm.xlu1 %3854, %v3815_v14  }
  0x7f   :  { %3855 = vset.pattern.permute.xlu1 %v4159_v0 }
  0x80   :  { %1556 = vperm.xlu1 %3855, %v3819_v12  }
  0x84   :  { %3857 = vset.pattern.permute.xlu1 %v4160_v6 }
  0x85   :  { %1311 = vperm.xlu1 %3857, %v3817_v18  }
  0x89   :  { %3858 = vset.pattern.permute.xlu1 %v4161_v10 }
  0x8a   :  { %2150 = vperm.xlu1 %3858, %v3823_v16  }
  0x8e   :  { %3859 = vset.pattern.permute.xlu1 %v4160_v6 }
  0x8f   :  { %1628 = vperm.xlu1 %3859, %v3819_v12  }
  0x93   :  { %3860 = vset.pattern.permute.xlu1 %v4161_v10 }
  0x94   :  { %2467 = vperm.xlu1 %3860, %v3825_v20  }
  0x97   :  { %v4284_v21 = vpop.permute.xlu1 %284  ;;  %v4286_v22 = vpop.permute.xlu0 %2186 }
  0x98   :  { %8651 = vst [vmem:[#allocation12_spill] sm:$0xff] %v4286_v22  ;;  %3862 = vset.pattern.permute.xlu1 %v4160_v6 }
  0x99   :  { %1945 = vperm.xlu1 %3862, %v3821_v13  }
  0x9b   :  { %v4289_v23 = vpop.permute.xlu1 %601  ;;  %v4291_v24 = vpop.permute.xlu0 %2503 }
  0x9c   :  { %8652 = vst [vmem:[#allocation13_spill] sm:$0xff] %v4289_v23  ;;  %8653 = vst [vmem:[#allocation14_spill] sm:$0xff] %v4291_v24 }
  0x9d   :  { %3863 = vset.pattern.permute.xlu1 %v4159_v0 }
  0x9e   :  { %2507 = vperm.xlu1 %3863, %v3825_v20  }
  0x9f   :  { %v4294_v25 = vpop.permute.xlu1 %918 }
  0xa0   :  { %8654 = vst [vmem:[#allocation15_spill] sm:$0xff] %v4294_v25  ;;  %v4296_v26 = vpop.permute.xlu0 %673 }
  0xa1   :  { %8655 = vst [vmem:[#allocation16_spill] sm:$0xff] %v4296_v26 }
  0xa2   :  { %3864 = vset.pattern.permute.xlu1 %v4160_v6 }
  0xa3   :  { %2579 = vperm.xlu1 %3864, %v3825_v20  }
  0xa4   :  { %v4299_v27 = vpop.permute.xlu1 %356  ;;  %v4301_v28 = vpop.permute.xlu0 %990 }
  0xa5   :  { %8656 = vst [vmem:[#allocation17_spill] sm:$0xff] %v4301_v28 }
  0xa8   :  { %v4303_v29 = vpop.permute.xlu0 %2575 }
  0xa9   :  { %8657 = vst [vmem:[#allocation18_spill] sm:$0xff] %v4303_v29  ;;  %v4305_v30 = vpop.permute.xlu1 %1235 }
  0xaa   :  { %8658 = vst [vmem:[#allocation19_spill] sm:$0xff] %v4305_v30 }
  0xac   :  { %v4307_v31 = vpop.permute.xlu0 %360 }
  0xad   :  { %8659 = vst [vmem:[#allocation20_spill] sm:$0xff] %v4307_v31 }
  0xae   :  { %v4309_v32 = vpop.permute.xlu1 %1511 }
  0xaf   :  { %8660 = vst [vmem:[#allocation21_spill] sm:$0xff] %v4309_v32 }
  0xb1   :  { %v4313_v35 = vpop.permute.xlu0 %243 }
  0xb2   :  { %v255_v56 = vmul.f32 %v4313_v35, %v4347_v50  ;;  %v256_v57 = vmul.f32 %v4313_v35, %v4351_v51  ;;  %v257_v60 = vmul.f32 %v4313_v35, %v4357_v53  ;;  %v258_v61 = vmul.f32 %v4313_v35, %v4361_v54 }
  0xb3   :  { %v4311_v33 = vpop.permute.xlu1 %1552  ;;  %v259_v3 = vmul.f32 %v4313_v35, %v4364_v55  ;;  %v260_v4 = vmul.f32 %v4313_v35, %v4371_v58  ;;  %v261_v6 = vmul.f32 %v4313_v35, %v4374_v59  ;;  %v262_v7 = vmul.f32 %v4313_v35, %v4381_v62 }
  0xb4   :  { %8661 = vst [vmem:[#allocation22_spill] sm:$0xff] %v4311_v33  ;;  %v263_v8 = vmul.f32 %v4313_v35, %v4384_v63  ;;  %v295_v9 = vadd.f32 %v4284_v21, %v255_v56  ;;  %v296_v10 = vadd.f32 %v4284_v21, %v256_v57  ;;  %v264_v12 = vmul.f32 %v4313_v35, %v4389_v1 }
  0xb5   :  { %v4317_v38 = vpop.permute.xlu0 %560  ;;  %v265_v13 = vmul.f32 %v4313_v35, %v4392_v2  ;;  %v266_v14 = vmul.f32 %v4313_v35, %v4399_v5  ;;  %v297_v15 = vadd.f32 %v4284_v21, %v257_v60  ;;  %v298_v16 = vadd.f32 %v4284_v21, %v258_v61 }
  0xb6   :  { %8663 = vst [vmem:[#allocation24_spill] sm:$0xff] %v4317_v38  ;;  %v299_v17 = vadd.f32 %v4284_v21, %v259_v3  ;;  %v300_v18 = vadd.f32 %v4284_v21, %v260_v4  ;;  %v301_v19 = vadd.f32 %v4284_v21, %v261_v6  ;;  %v302_v20 = vadd.f32 %v4284_v21, %v262_v7 }
  0xb7   :  { %v303_v34 = vadd.f32 %v4284_v21, %v263_v8  ;;  %v304_v36 = vadd.f32 %v4284_v21, %v264_v12  ;;  %v305_v48 = vadd.f32 %v4284_v21, %v265_v13  ;;  %v306_v57 = vadd.f32 %v4284_v21, %v266_v14 }
  0xb8   :  { %v4315_v37 = vpop.permute.xlu1 %1307  ;;  %v327_v60 = vmul.f32 %v295_v9, %v4347_v50  ;;  %v328_v61 = vmul.f32 %v296_v10, %v4351_v51  ;;  %v329_v3 = vmul.f32 %v297_v15, %v4357_v53  ;;  %v330_v4 = vmul.f32 %v298_v16, %v4361_v54 }
  0xb9   :  { %8662 = vst [vmem:[#allocation23_spill] sm:$0xff] %v4315_v37  ;;  %v4353_v52 = vpop.permute.xlu0 %877  ;;  %v331_v7 = vmul.f32 %v299_v17, %v4364_v55  ;;  %v332_v8 = vmul.f32 %v300_v18, %v4371_v58  ;;  %v333_v12 = vmul.f32 %v301_v19, %v4374_v59  ;;  %v334_v13 = vmul.f32 %v302_v20, %v4381_v62  ;;  %v238_v55 = vld [vmem:[%s8301_s1 + $0x78] sm:$0xff] }
  0xba   :  { %8675 = vst [vmem:[#allocation36_spill] sm:$0xff] %v4353_v52  ;;  %v335_v14 = vmul.f32 %v303_v34, %v4384_v63  ;;  %v336_v9 = vmul.f32 %v304_v36, %v4389_v1  ;;  %v337_v10 = vmul.f32 %v305_v48, %v4392_v2  ;;  %v338_v15 = vmul.f32 %v306_v57, %v4399_v5 }
  0xbb   :  { %v4444_v16 = vadd.f32 %v4299_v27, %v327_v60  ;;  %v4447_v44 = vadd.f32 %v4299_v27, %v328_v61  ;;  %v4450_v17 = vadd.f32 %v4299_v27, %v329_v3  ;;  %v4453_v18 = vadd.f32 %v4299_v27, %v330_v4 }
  0xbc   :  { %v4460_v34 = vadd.f32 %v4299_v27, %v331_v7  ;;  %v4463_v36 = vadd.f32 %v4299_v27, %v332_v8  ;;  %v4466_v48 = vadd.f32 %v4299_v27, %v333_v12  ;;  %v4469_v57 = vadd.f32 %v4299_v27, %v334_v13 }
  0xbd   :  { %v4338_v47 = vpop.permute.xlu1 %1869  ;;  %v4409_v11 = vpop.permute.xlu0 %1194  ;;  %8690 = vst [vmem:[#allocation51_spill] sm:$0xff] %v4450_v17  ;;  %8691 = vst [vmem:[#allocation52_spill] sm:$0xff] %v4453_v18  ;;  %v4472_v60 = vadd.f32 %v4299_v27, %v335_v14  ;;  %v4475_v61 = vadd.f32 %v4299_v27, %v336_v9  ;;  %v4478_v3 = vadd.f32 %v4299_v27, %v337_v10 }
  0xbe   :  { %8671 = vst [vmem:[#allocation32_spill] sm:$0xff] %v4338_v47  ;;  %8687 = vst [vmem:[#allocation48_spill] sm:$0xff] %v4409_v11  ;;  %v4481_v4 = vadd.f32 %v4299_v27, %v338_v15 }
  0xbf   :  { %8694 = vst [vmem:[#allocation55_spill] sm:$0xff] %v4460_v34  ;;  %8695 = vst [vmem:[#allocation56_spill] sm:$0xff] %v4463_v36 }
  0xc0   :  { %8696 = vst [vmem:[#allocation57_spill] sm:$0xff] %v4466_v48  ;;  %8697 = vst [vmem:[#allocation58_spill] sm:$0xff] %v4469_v57 }
  0xc1   :  { %v4433_v6 = vpop.permute.xlu0 %1828  ;;  %8698 = vst [vmem:[#allocation59_spill] sm:$0xff] %v4472_v60  ;;  %8699 = vst [vmem:[#allocation60_spill] sm:$0xff] %v4475_v61 }
  0xc2   :  { %v4386_v0 = vpop.permute.xlu1 %1624  ;;  %8689 = vst [vmem:[#allocation50_spill] sm:$0xff] %v4433_v6  ;;  %8700 = vst [vmem:[#allocation61_spill] sm:$0xff] %v4478_v3 }
  0xc3   :  { %8683 = vst [vmem:[#allocation44_spill] sm:$0xff] %v4386_v0  ;;  %8701 = vst [vmem:[#allocation62_spill] sm:$0xff] %v4481_v4 }
  0xc5   :  { %v4455_v19 = vpop.permute.xlu0 %2145 }
  0xc6   :  { %8692 = vst [vmem:[#allocation53_spill] sm:$0xff] %v4455_v19 }
  0xc7   :  { %v4426_v56 = vpop.permute.xlu1 %2462 }
  0xc8   :  { %8688 = vst [vmem:[#allocation49_spill] sm:$0xff] %v4426_v56 }
  0xc9   :  { %v4483_v7 = vpop.permute.xlu0 %1516 }
  0xca   :  { %8702 = vst [vmem:[#allocation63_spill] sm:$0xff] %v4483_v7 }
  0xcc   :  { %v4457_v20 = vpop.permute.xlu1 %1941 }
  0xcd   :  { %8693 = vst [vmem:[#allocation54_spill] sm:$0xff] %v4457_v20  ;;  %v4487_v12 = vpop.permute.xlu0 %1833 }
  0xce   :  { %8704 = vst [vmem:[#allocation65_spill] sm:$0xff] %v4487_v12 }
  0xd0   :  { %v4485_v8 = vpop.permute.xlu1 %2258 }
  0xd1   :  { %8703 = vst [vmem:[#allocation64_spill] sm:$0xff] %v4485_v8 }
  0xd2   :  { %v4495_v29 = vpop.permute.xlu0 %288 }
  0xd3   :  { %8705 = vst [vmem:[#allocation66_spill] sm:$0xff] %v4495_v29 }
  0xd5   :  { %v4489_v13 = vpop.permute.xlu1 %248 }
  0xd6   :  { %v278_v14 = vmul.f32 %v4489_v13, %v4381_v62  ;;  %v279_v9 = vmul.f32 %v4489_v13, %v4384_v63  ;;  %v280_v10 = vmul.f32 %v4489_v13, %v4389_v1  ;;  %v281_v15 = vmul.f32 %v4489_v13, %v4392_v2 }
  0xd7   :  { %v282_v43 = vmul.f32 %v4489_v13, %v4399_v5 }
  0xd8   :  { %v318_v24 = vadd.f32 %v4495_v29, %v278_v14  ;;  %v319_v8 = vadd.f32 %v4495_v29, %v279_v9  ;;  %v320_v22 = vadd.f32 %v4495_v29, %v280_v10  ;;  %v321_v40 = vadd.f32 %v4495_v29, %v281_v15  ;;  %v223_v14 = vld [vmem:[%s8301_s1] sm:$0xff]  ;;  %v224_v9 = vld [vmem:[%s8301_s1 + $0x8] sm:$0xff]  ;;  %v229_v15 = vld [vmem:[%s8301_s1 + $0x30] sm:$0xff] }
  0xd9   :  { %v322_v20 = vadd.f32 %v4495_v29, %v282_v43  ;;  %v228_v10 = vld [vmem:[%s8301_s1 + $0x28] sm:$0xff]  ;;  %v4611_v29 = vrot.slane %v229_v15, %v4323_v41 }
  0xda   :  { %v350_v39 = vmul.f32 %v318_v24, %v4381_v62  ;;  %v351_v37 = vmul.f32 %v319_v8, %v4384_v63  ;;  %v352_v28 = vmul.f32 %v320_v22, %v4389_v1  ;;  %v353_v59 = vmul.f32 %v321_v40, %v4392_v2  ;;  %v225_v22 = vld [vmem:[%s8301_s1 + $0x10] sm:$0xff]  ;;  %v226_v40 = vld [vmem:[%s8301_s1 + $0x18] sm:$0xff]  ;;  %v231_v62 = vld [vmem:[%s8301_s1 + $0x40] sm:$0xff] }
  0xdb   :  { %v354_v58 = vmul.f32 %v322_v20, %v4399_v5  ;;  %v227_v20 = vld [vmem:[%s8301_s1 + $0x20] sm:$0xff]  ;;  %v230_v63 = vld [vmem:[%s8301_s1 + $0x38] sm:$0xff]  ;;  %v4590_v1 = vrot.slane %v224_v9, %v4323_v41  ;;  %v4602_v4 = vrot.slane %v226_v40, %v4323_v41  ;;  %v4608_v61 = vrot.slane %v228_v10, %v4323_v41  ;;  %8715 = vst [vmem:[#allocation76_spill] sm:$0xff] %v4611_v29 }
  0xdc   :  { %v4520_v43 = vadd.f32 %v4307_v31, %v350_v39  ;;  %v4523_v24 = vadd.f32 %v4307_v31, %v351_v37  ;;  %v4535_v8 = vadd.f32 %v4307_v31, %v352_v28  ;;  %v4538_v39 = vadd.f32 %v4307_v31, %v353_v59 }
  0xdd   :  { %v4541_v37 = vadd.f32 %v4307_v31, %v354_v58  ;;  %v4554_v28 = vrot.slane %v4328_v42, %v4323_v41  ;;  %v4558_v58 = vrot.slane %v4328_v42, %v4334_v45  ;;  %v4562_v59 = vrot.slane %v4328_v42, %v4336_v46  ;;  %v234_v46 = vld [vmem:[%s8301_s1 + $0x58] sm:$0xff] }
  0xde   :  { %8706 = vst [vmem:[#allocation67_spill] sm:$0xff] %v4520_v43  ;;  %8707 = vst [vmem:[#allocation68_spill] sm:$0xff] %v4523_v24  ;;  %v232_v24 = vld [vmem:[%s8301_s1 + $0x48] sm:$0xff]  ;;  %v233_v43 = vld [vmem:[%s8301_s1 + $0x50] sm:$0xff]  ;;  %v4587_v31 = vrot.slane %v223_v14, %v4323_v41  ;;  %v4605_v3 = vrot.slane %v227_v20, %v4323_v41  ;;  %v4614_v60 = vrot.slane %v230_v63, %v4323_v41 }
  0xdf   :  { %8708 = vst [vmem:[#allocation69_spill] sm:$0xff] %v4535_v8  ;;  %8709 = vst [vmem:[#allocation70_spill] sm:$0xff] %v4538_v39  ;;  %v235_v39 = vld [vmem:[%s8301_s1 + $0x60] sm:$0xff]  ;;  %v236_v8 = vld [vmem:[%s8301_s1 + $0x68] sm:$0xff]  ;;  %v4617_v57 = vrot.slane %v231_v62, %v4323_v41  ;;  %v4620_v48 = vrot.slane %v232_v24, %v4323_v41  ;;  %v4623_v36 = vrot.slane %v233_v43, %v4323_v41 }
  0xe0   :  { %8710 = vst [vmem:[#allocation71_spill] sm:$0xff] %v4541_v37  ;;  %8711 = vst [vmem:[#allocation72_spill] sm:$0xff] %v4554_v28  ;;  %v4575_v37 = vrot.slane %v4328_v42, %v4343_v49  ;;  %v4593_v42 = vrot.slane %v225_v22, %v4323_v41  ;;  %v237_v49 = vld [vmem:[%s8301_s1 + $0x70] sm:$0xff]  ;;  %v252_v34 = vmul.f32 %v4313_v35, %v4558_v58 }
  0xe1   :  { %8712 = vst [vmem:[#allocation73_spill] sm:$0xff] %v4558_v58  ;;  %8713 = vst [vmem:[#allocation74_spill] sm:$0xff] %v4562_v59  ;;  %v4628_v18 = vrot.slane %v234_v46, %v4323_v41  ;;  %v4631_v17 = vrot.slane %v235_v39, %v4323_v41  ;;  %v4646_v29 = vrot.slane %v224_v9, %v4334_v45 }
  0xe2   :  { %8714 = vst [vmem:[#allocation75_spill] sm:$0xff] %v4575_v37  ;;  %8716 = vst [vmem:[#allocation77_spill] sm:$0xff] %v4614_v60  ;;  %v4634_v60 = vrot.slane %v236_v8, %v4323_v41  ;;  %v4664_v9 = vrot.slane %v228_v10, %v4334_v45  ;;  %v4686_v10 = vrot.slane %v235_v39, %v4334_v45 }
  0xe3   :  { %8717 = vst [vmem:[#allocation78_spill] sm:$0xff] %v4617_v57  ;;  %8718 = vst [vmem:[#allocation79_spill] sm:$0xff] %v4620_v48  ;;  %v4637_v57 = vrot.slane %v237_v49, %v4323_v41  ;;  %v4640_v48 = vrot.slane %v238_v55, %v4323_v41  ;;  %v253_v41 = vmul.f32 %v4313_v35, %v4562_v59 }
  0xe4   :  { %8719 = vst [vmem:[#allocation80_spill] sm:$0xff] %v4623_v36  ;;  %8720 = vst [vmem:[#allocation81_spill] sm:$0xff] %v4628_v18  ;;  %v4643_v36 = vrot.slane %v223_v14, %v4334_v45  ;;  %v251_v18 = vmul.f32 %v4313_v35, %v4554_v28  ;;  %v254_v14 = vmul.f32 %v4313_v35, %v4575_v37 }
  0xe5   :  { %8721 = vst [vmem:[#allocation82_spill] sm:$0xff] %v4631_v17  ;;  %8722 = vst [vmem:[#allocation83_spill] sm:$0xff] %v4634_v60  ;;  %v4651_v17 = vrot.slane %v225_v22, %v4334_v45  ;;  %v4654_v60 = vrot.slane %v226_v40, %v4334_v45  ;;  %v292_v22 = vadd.f32 %v4284_v21, %v252_v34 }
  0xe6   :  { %8723 = vst [vmem:[#allocation84_spill] sm:$0xff] %v4637_v57  ;;  %8724 = vst [vmem:[#allocation85_spill] sm:$0xff] %v4643_v36  ;;  %v4657_v57 = vrot.slane %v227_v20, %v4334_v45  ;;  %v4671_v40 = vrot.slane %v230_v63, %v4334_v45  ;;  %v4674_v20 = vrot.slane %v231_v62, %v4334_v45 }
  0xe7   :  { %8725 = vst [vmem:[#allocation86_spill] sm:$0xff] %v4646_v29  ;;  %8726 = vst [vmem:[#allocation87_spill] sm:$0xff] %v4651_v17  ;;  %v4667_v29 = vrot.slane %v229_v15, %v4334_v45  ;;  %v4683_v35 = vrot.slane %v234_v46, %v4334_v45  ;;  %v4689_v34 = vrot.slane %v236_v8, %v4334_v45 }
  0xe8   :  { %8727 = vst [vmem:[#allocation88_spill] sm:$0xff] %v4654_v60  ;;  %8728 = vst [vmem:[#allocation89_spill] sm:$0xff] %v4657_v57  ;;  %v4677_v57 = vrot.slane %v232_v24, %v4334_v45  ;;  %v4680_v60 = vrot.slane %v233_v43, %v4334_v45  ;;  %v1519_v63 = vmul.f32 %v4309_v32, %v4554_v28 }
  0xe9   :  { %8729 = vst [vmem:[#allocation90_spill] sm:$0xff] %v4664_v9  ;;  %8730 = vst [vmem:[#allocation91_spill] sm:$0xff] %v4667_v29  ;;  %v291_v62 = vadd.f32 %v4284_v21, %v251_v18  ;;  %v4695_v24 = vrot.slane %v237_v49, %v4334_v45  ;;  %v4698_v43 = vrot.slane %v238_v55, %v4334_v45 }
  0xea   :  { %8731 = vst [vmem:[#allocation92_spill] sm:$0xff] %v4671_v40  ;;  %8732 = vst [vmem:[#allocation93_spill] sm:$0xff] %v4674_v20  ;;  %v293_v46 = vadd.f32 %v4284_v21, %v253_v41  ;;  %v294_v15 = vadd.f32 %v4284_v21, %v254_v14  ;;  %v568_v39 = vmul.f32 %v4317_v38, %v4554_v28 }
  0xeb   :  { %8733 = vst [vmem:[#allocation94_spill] sm:$0xff] %v4677_v57  ;;  %8734 = vst [vmem:[#allocation95_spill] sm:$0xff] %v4680_v60  ;;  %v569_v8 = vmul.f32 %v4317_v38, %v4558_v58  ;;  %v1521_v49 = vmul.f32 %v4309_v32, %v4562_v59  ;;  %v1522_v55 = vmul.f32 %v4309_v32, %v4575_v37 }
  0xec   :  { %8735 = vst [vmem:[#allocation96_spill] sm:$0xff] %v4683_v35  ;;  %8736 = vst [vmem:[#allocation97_spill] sm:$0xff] %v4686_v10  ;;  %v1520_v10 = vmul.f32 %v4309_v32, %v4558_v58  ;;  %v324_v18 = vmul.f32 %v292_v22, %v4558_v58  ;;  %v4715_v21 = vmul.f32 %v4309_v32, %v4347_v50  ;;  %v4724_v35 = vpop.permute.xlu1 %565 }
  0xed   :  { %8737 = vst [vmem:[#allocation98_spill] sm:$0xff] %v4698_v43  ;;  %v4718_v41 = vadd.f32 %v4311_v33, %v1519_v63  ;;  %v570_v14 = vmul.f32 %v4317_v38, %v4562_v59  ;;  %v571_v45 = vmul.f32 %v4317_v38, %v4575_v37  ;;  %8740 = vst [vmem:[#allocation101_spill] sm:$0xff] %v4724_v35 }
  0xee   :  { %8738 = vst [vmem:[#allocation99_spill] sm:$0xff] %v4715_v21  ;;  %v323_v60 = vmul.f32 %v291_v62, %v4554_v28  ;;  %v1560_v57 = vadd.f32 %v4311_v33, %v1520_v10  ;;  %v572_v22 = vmul.f32 %v4317_v38, %v4347_v50  ;;  %v573_v21 = vmul.f32 %v4317_v38, %v4351_v51 }
  0xef   :  { %8739 = vst [vmem:[#allocation100_spill] sm:$0xff] %v4718_v41  ;;  %v325_v63 = vmul.f32 %v293_v46, %v4562_v59  ;;  %v326_v41 = vmul.f32 %v294_v15, %v4575_v37  ;;  %v608_v32 = vadd.f32 %v4289_v23, %v568_v39  ;;  %v609_v20 = vadd.f32 %v4289_v23, %v569_v8 }
  0xf0   :  { %v4737_v40 = vadd.f32 %v4299_v27, %v324_v18  ;;  %v4740_v62 = vadd.f32 %v4311_v33, %v1521_v49  ;;  %v4743_v10 = vadd.f32 %v4311_v33, %v1522_v55  ;;  %v885_v29 = vmul.f32 %v4353_v52, %v4554_v28  ;;  %v4775_v9 = vpop.permute.xlu1 %605 }
  0xf1   :  { %v610_v46 = vadd.f32 %v4289_v23, %v570_v14  ;;  %v611_v15 = vadd.f32 %v4289_v23, %v571_v45  ;;  %v886_v39 = vmul.f32 %v4353_v52, %v4558_v58  ;;  %v887_v8 = vmul.f32 %v4353_v52, %v4562_v59  ;;  %8748 = vst [vmem:[#allocation109_spill] sm:$0xff] %v4775_v9 }
  0xf2   :  { %8741 = vst [vmem:[#allocation102_spill] sm:$0xff] %v4740_v62  ;;  %8742 = vst [vmem:[#allocation103_spill] sm:$0xff] %v4743_v10  ;;  %v4755_v49 = vmul.f32 %v4317_v38, %v4357_v53  ;;  %v4759_v55 = vmul.f32 %v4317_v38, %v4361_v54  ;;  %v4762_v18 = vadd.f32 %v4289_v23, %v572_v22 }
  0xf3   :  { %v4765_v14 = vadd.f32 %v4289_v23, %v573_v21  ;;  %v4768_v45 = vmul.f32 %v608_v32, %v4554_v28  ;;  %v641_v10 = vmul.f32 %v609_v20, %v4558_v58  ;;  %v888_v62 = vmul.f32 %v4353_v52, %v4575_v37 }
  0xf4   :  { %8743 = vst [vmem:[#allocation104_spill] sm:$0xff] %v4755_v49  ;;  %8744 = vst [vmem:[#allocation105_spill] sm:$0xff] %v4759_v55  ;;  %v889_v33 = vmul.f32 %v4353_v52, %v4347_v50  ;;  %v925_v17 = vadd.f32 %v4294_v25, %v885_v29  ;;  %v1203_v22 = vmul.f32 %v4409_v11, %v4558_v58  ;;  %v8811_v49 = vld [vmem:[#allocation61_spill] sm:$0xff] }
  0xf5   :  { %8745 = vst [vmem:[#allocation106_spill] sm:$0xff] %v4762_v18  ;;  %8746 = vst [vmem:[#allocation107_spill] sm:$0xff] %v4765_v14  ;;  %v598_v21 = vmul.f32 %v4724_v35, %v4392_v2  ;;  %v599_v32 = vmul.f32 %v4724_v35, %v4399_v5  ;;  %v4785_v20 = vmul.f32 %v610_v46, %v4562_v59 }
  0xf6   :  { %8747 = vst [vmem:[#allocation108_spill] sm:$0xff] %v4768_v45  ;;  %v4788_v36 = vmul.f32 %v611_v15, %v4575_v37  ;;  %v926_v45 = vadd.f32 %v4294_v25, %v886_v39  ;;  %v927_v14 = vadd.f32 %v4294_v25, %v887_v8  ;;  %v1202_v29 = vmul.f32 %v4409_v11, %v4554_v28 }
  0xf7   :  { %8749 = vst [vmem:[#allocation110_spill] sm:$0xff] %v4785_v20  ;;  %v1204_v18 = vmul.f32 %v4409_v11, %v4562_v59  ;;  %v4797_v55 = vadd.f32 %v4775_v9, %v598_v21  ;;  %v4800_v23 = vadd.f32 %v4775_v9, %v599_v32  ;;  %v4803_v46 = vadd.f32 %v4296_v26, %v641_v10  ;;  %v8808_v20 = vld [vmem:[#allocation60_spill] sm:$0xff] }
  0xf8   :  { %8750 = vst [vmem:[#allocation111_spill] sm:$0xff] %v4788_v36  ;;  %v4807_v15 = vmul.f32 %v4353_v52, %v4351_v51  ;;  %v4811_v39 = vmul.f32 %v4353_v52, %v4357_v53  ;;  %v1205_v8 = vmul.f32 %v4409_v11, %v4575_v37  ;;  %v4816_v21 = vadd.f32 %v4294_v25, %v888_v62  ;;  %v8807_v36 = vld [vmem:[#allocation83_spill] sm:$0xff]  ;;  %v8810_v26 = vld [vmem:[#allocation84_spill] sm:$0xff] }
  0xf9   :  { %8751 = vst [vmem:[#allocation112_spill] sm:$0xff] %v4803_v46  ;;  %v4819_v32 = vadd.f32 %v4294_v25, %v889_v33  ;;  %v4822_v10 = vmul.f32 %v925_v17, %v4554_v28  ;;  %v1243_v46 = vadd.f32 %v4305_v30, %v1203_v22  ;;  %v4829_v52 = vmul.f32 %v927_v14, %v4562_v59 }
  0xfa   :  { %8752 = vst [vmem:[#allocation113_spill] sm:$0xff] %v4807_v15  ;;  %8753 = vst [vmem:[#allocation114_spill] sm:$0xff] %v4811_v39  ;;  %v4826_v15 = vmul.f32 %v926_v45, %v4558_v58  ;;  %v4833_v39 = vmul.f32 %v4409_v11, %v4347_v50  ;;  %v1837_v62 = vmul.f32 %v4433_v6, %v4558_v58 }
  0xfb   :  { %8754 = vst [vmem:[#allocation115_spill] sm:$0xff] %v4816_v21  ;;  %8755 = vst [vmem:[#allocation116_spill] sm:$0xff] %v4819_v32  ;;  %v4839_v33 = vmul.f32 %v4409_v11, %v4351_v51  ;;  %v4842_v17 = vadd.f32 %v4305_v30, %v1202_v29  ;;  %v4845_v45 = vadd.f32 %v4305_v30, %v1204_v18  ;;  %v8804_v32 = vld [vmem:[#allocation59_spill] sm:$0xff]  ;;  %v8806_v21 = vld [vmem:[#allocation66_spill] sm:$0xff] }
  0xfc   :  { %8756 = vst [vmem:[#allocation117_spill] sm:$0xff] %v4822_v10  ;;  %8757 = vst [vmem:[#allocation118_spill] sm:$0xff] %v4826_v15  ;;  %v4849_v14 = vmul.f32 %v4433_v6, %v4554_v28  ;;  %v4852_v22 = vadd.f32 %v4305_v30, %v1205_v8  ;;  %v1592_v11 = vmul.f32 %v1560_v57, %v4558_v58  ;;  %v8800_v30 = vld [vmem:[#allocation81_spill] sm:$0xff]  ;;  %v8803_v10 = vld [vmem:[#allocation82_spill] sm:$0xff] }
  0xfd   :  { %8758 = vst [vmem:[#allocation119_spill] sm:$0xff] %v4829_v52  ;;  %8759 = vst [vmem:[#allocation120_spill] sm:$0xff] %v4833_v39  ;;  %v4856_v39 = vmul.f32 %v4433_v6, %v4562_v59  ;;  %v4861_v29 = vmul.f32 %v1243_v46, %v4558_v58  ;;  %v4865_v18 = vmul.f32 %v4433_v6, %v4575_v37  ;;  %v8788_v6 = vld [vmem:[#allocation77_spill] sm:$0xff]  ;;  %v8801_v52 = vld [vmem:[#allocation58_spill] sm:$0xff] }
  0xfe   :  { %8760 = vst [vmem:[#allocation121_spill] sm:$0xff] %v4839_v33  ;;  %8761 = vst [vmem:[#allocation122_spill] sm:$0xff] %v4842_v17  ;;  %v363_v33 = vadd.f32 %v4299_v27, %v323_v60  ;;  %v366_v8 = vadd.f32 %v4299_v27, %v326_v41  ;;  %v4877_v57 = vmul.f32 %v4455_v19, %v4554_v28 }
  0xff   :  { %8762 = vst [vmem:[#allocation123_spill] sm:$0xff] %v4845_v45  ;;  %8763 = vst [vmem:[#allocation124_spill] sm:$0xff] %v4849_v14  ;;  %v365_v14 = vadd.f32 %v4299_v27, %v325_v63  ;;  %v4881_v60 = vmul.f32 %v4455_v19, %v4558_v58  ;;  %v4885_v46 = vmul.f32 %v4426_v56, %v4558_v58  ;;  %v8798_v45 = vld [vmem:[#allocation57_spill] sm:$0xff] }
 0x100   :  { %8764 = vst [vmem:[#allocation125_spill] sm:$0xff] %v4852_v22  ;;  %8765 = vst [vmem:[#allocation126_spill] sm:$0xff] %v4856_v39  ;;  %v4870_v22 = vadd.f32 %v4338_v47, %v1837_v62  ;;  %v4873_v39 = vadd.f32 %v4386_v0, %v1592_v11  ;;  %v4889_v27 = vmul.f32 %v4455_v19, %v4562_v59  ;;  %v8786_v47 = vld [vmem:[#allocation51_spill] sm:$0xff] }
 0x101   :  { %8766 = vst [vmem:[#allocation127_spill] sm:$0xff] %v4861_v29  ;;  %8767 = vst [vmem:[#allocation128_spill] sm:$0xff] %v4865_v18  ;;  %v4893_v11 = vmul.f32 %v4483_v7, %v4554_v28  ;;  %v4897_v41 = vmul.f32 %v4483_v7, %v4558_v58  ;;  %v4901_v63 = vmul.f32 %v4483_v7, %v4562_v59  ;;  %v8785_v18 = vld [vmem:[#allocation76_spill] sm:$0xff] }
 0x102   :  { %8768 = vst [vmem:[#allocation129_spill] sm:$0xff] %v4870_v22  ;;  %8769 = vst [vmem:[#allocation130_spill] sm:$0xff] %v4873_v39  ;;  %v4905_v62 = vmul.f32 %v4487_v12, %v4558_v58  ;;  %v4912_v56 = vsub.f32 %v4737_v40, %v4590_v1  ;;  %v4921_v19 = vsub.f32 %v365_v14, %v4593_v42  ;;  %v8789_v39 = vld [vmem:[#allocation52_spill] sm:$0xff] }
 0x103   :  { %8770 = vst [vmem:[#allocation131_spill] sm:$0xff] %v4877_v57  ;;  %8771 = vst [vmem:[#allocation132_spill] sm:$0xff] %v4881_v60  ;;  %v268_v60 = vmul.f32 %v4489_v13, %v4558_v58  ;;  %v4918_v57 = vpop.permute.xlu1 %882  ;;  %v4924_v22 = vsub.f32 %v366_v8, %v4602_v4  ;;  %v4930_v40 = vsub.f32 %v4444_v16, %v4605_v3  ;;  %v8791_v16 = vld [vmem:[#allocation78_spill] sm:$0xff]  ;;  %v8795_v7 = vld [vmem:[#allocation56_spill] sm:$0xff] }
 0x104   :  { %8772 = vst [vmem:[#allocation133_spill] sm:$0xff] %v4885_v46  ;;  %8773 = vst [vmem:[#allocation134_spill] sm:$0xff] %v4889_v27  ;;  %v4908_v46 = vsub.f32 %v363_v33, %v4587_v31  ;;  %v267_v27 = vmul.f32 %v4489_v13, %v4554_v28  ;;  %v269_v33 = vmul.f32 %v4489_v13, %v4562_v59 }
 0x105   :  { %8774 = vst [vmem:[#allocation135_spill] sm:$0xff] %v4893_v11  ;;  %8775 = vst [vmem:[#allocation136_spill] sm:$0xff] %v4897_v41  ;;  %v4938_v12 = vsub.f32 %v8786_v47, %v8785_v18  ;;  %v270_v14 = vmul.f32 %v4489_v13, %v4575_v37  ;;  %v271_v8 = vmul.f32 %v4489_v13, %v4347_v50  ;;  %v8797_v47 = vld [vmem:[#allocation80_spill] sm:$0xff] }
 0x106   :  { %8776 = vst [vmem:[#allocation137_spill] sm:$0xff] %v4901_v63  ;;  %8777 = vst [vmem:[#allocation138_spill] sm:$0xff] %v4905_v62  ;;  %v4934_v62 = vsub.f32 %v4447_v44, %v4608_v61  ;;  %v4946_v0 = vsub.f32 %v8789_v39, %v8788_v6  ;;  %v8792_v63 = vld [vmem:[#allocation55_spill] sm:$0xff]  ;;  %v4958_v17 = vsub.f32 %v8798_v45, %v8797_v47 }
 0x107   :  { %8778 = vst [vmem:[#allocation139_spill] sm:$0xff] %v4908_v46  ;;  %8779 = vst [vmem:[#allocation140_spill] sm:$0xff] %v4912_v56  ;;  %v4950_v11 = vsub.f32 %v8792_v63, %v8791_v16  ;;  %v8794_v44 = vld [vmem:[#allocation79_spill] sm:$0xff]  ;;  %v4962_v15 = vsub.f32 %v8801_v52, %v8800_v30  ;;  %v4966_v39 = vsub.f32 %v8804_v32, %v8803_v10 }
 0x108   :  { %8780 = vst [vmem:[#allocation141_spill] sm:$0xff] %v4918_v57  ;;  %8781 = vst [vmem:[#allocation142_spill] sm:$0xff] %v4921_v19  ;;  %v4954_v29 = vsub.f32 %v8795_v7, %v8794_v44  ;;  %v307_v25 = vadd.f32 %v8806_v21, %v267_v27  ;;  %v308_v63 = vadd.f32 %v8806_v21, %v268_v60  ;;  %v8813_v27 = vld [vmem:[#allocation62_spill] sm:$0xff] }
 0x109   :  { %8782 = vst [vmem:[#allocation143_spill] sm:$0xff] %v4924_v22  ;;  %8783 = vst [vmem:[#allocation144_spill] sm:$0xff] %v4930_v40  ;;  %v4972_v7 = vsub.f32 %v8808_v20, %v8807_v36  ;;  %v4976_v45 = vsub.f32 %v8811_v49, %v8810_v26  ;;  %v272_v52 = vmul.f32 %v4489_v13, %v4351_v51 }
 0x10a   :  { %8784 = vst [vmem:[#allocation145_spill] sm:$0xff] %v4934_v62  ;;  %8787 = vst [vmem:[#allocation76_spill] sm:$0xff] %v4938_v12  ;;  %v309_v41 = vadd.f32 %v8806_v21, %v269_v33  ;;  %v273_v32 = vmul.f32 %v4489_v13, %v4357_v53  ;;  %v4985_v38 = vsub.f32 %v8813_v27, %v4640_v48  ;;  %v8818_v27 = vld [vmem:[#allocation41_spill] sm:$0xff] }
 0x10b   :  { %8790 = vst [vmem:[#allocation51_spill] sm:$0xff] %v4946_v0  ;;  %8793 = vst [vmem:[#allocation77_spill] sm:$0xff] %v4950_v11  ;;  %v310_v60 = vadd.f32 %v8806_v21, %v270_v14  ;;  %v311_v20 = vadd.f32 %v8806_v21, %v271_v8  ;;  %v274_v49 = vmul.f32 %v4489_v13, %v4361_v54  ;;  %v8819_v14 = vld [vmem:[#allocation45_spill] sm:$0xff] }
 0x10c   :  { %8796 = vst [vmem:[#allocation52_spill] sm:$0xff] %v4954_v29  ;;  %8799 = vst [vmem:[#allocation78_spill] sm:$0xff] %v4958_v17  ;;  %v584_v33 = vmul.f32 %v4724_v35, %v4554_v28  ;;  %v597_v8 = vmul.f32 %v4724_v35, %v8819_v14  ;;  %v339_v29 = vmul.f32 %v307_v25, %v4554_v28 }
 0x10d   :  { %8802 = vst [vmem:[#allocation55_spill] sm:$0xff] %v4962_v15  ;;  %8805 = vst [vmem:[#allocation79_spill] sm:$0xff] %v4966_v39  ;;  %v8817_v15 = vld [vmem:[#allocation40_spill] sm:$0xff]  ;;  %v340_v11 = vmul.f32 %v308_v63, %v4558_v58  ;;  %v585_v0 = vmul.f32 %v4724_v35, %v4558_v58  ;;  %v586_v12 = vmul.f32 %v4724_v35, %v4562_v59 }
 0x10e   :  { %8809 = vst [vmem:[#allocation56_spill] sm:$0xff] %v4972_v7  ;;  %8812 = vst [vmem:[#allocation80_spill] sm:$0xff] %v4976_v45  ;;  %v4989_v7 = vpop.permute.xlu1 %1199  ;;  %v8816_v45 = vld [vmem:[#allocation39_spill] sm:$0xff]  ;;  %v276_v17 = vmul.f32 %v4489_v13, %v8817_v15  ;;  %v341_v62 = vmul.f32 %v309_v41, %v4562_v59  ;;  %v587_v40 = vmul.f32 %v4724_v35, %v4575_v37 }
 0x10f   :  { %8814 = vst [vmem:[#allocation57_spill] sm:$0xff] %v4985_v38  ;;  %8815 = vst [vmem:[#allocation58_spill] sm:$0xff] %v4989_v7  ;;  %v275_v39 = vmul.f32 %v4489_v13, %v8816_v45  ;;  %v277_v38 = vmul.f32 %v4489_v13, %v8818_v27  ;;  %v624_v13 = vadd.f32 %v4775_v9, %v584_v33 }
 0x110   :  { %v637_v22 = vadd.f32 %v4775_v9, %v597_v8  ;;  %v588_v25 = vmul.f32 %v4724_v35, %v4347_v50  ;;  %v5018_v63 = vmul.f32 %v4724_v35, %v4351_v51  ;;  %v625_v19 = vadd.f32 %v4775_v9, %v585_v0 }
 0x111   :  { %v626_v56 = vadd.f32 %v4775_v9, %v586_v12  ;;  %v312_v41 = vadd.f32 %v8806_v21, %v272_v52  ;;  %v313_v46 = vadd.f32 %v8806_v21, %v273_v32  ;;  %v314_v10 = vadd.f32 %v8806_v21, %v274_v49 }
 0x112   :  { %v315_v33 = vadd.f32 %v8806_v21, %v275_v39  ;;  %v5027_v8 = vadd.f32 %v4775_v9, %v587_v40  ;;  %v5030_v30 = vadd.f32 %v4775_v9, %v588_v25  ;;  %v5032_v35 = vpop.permute.xlu1 %677  ;;  %v316_v0 = vadd.f32 %v8806_v21, %v276_v17 }
 0x113   :  { %v317_v12 = vadd.f32 %v8806_v21, %v277_v38  ;;  %v656_v52 = vmul.f32 %v624_v13, %v4554_v28  ;;  %v669_v32 = vmul.f32 %v637_v22, %v8819_v14  ;;  %v670_v49 = vmul.f32 %v4797_v55, %v4392_v2 }
 0x114   :  { %8820 = vst [vmem:[#allocation59_spill] sm:$0xff] %v5027_v8  ;;  %8821 = vst [vmem:[#allocation66_spill] sm:$0xff] %v5030_v30  ;;  %v671_v40 = vmul.f32 %v4800_v23, %v4399_v5  ;;  %v901_v39 = vmul.f32 %v4918_v57, %v4554_v28  ;;  %v902_v25 = vmul.f32 %v4918_v57, %v4558_v58 }
 0x115   :  { %v657_v17 = vmul.f32 %v625_v19, %v4558_v58  ;;  %v658_v38 = vmul.f32 %v626_v56, %v4562_v59  ;;  %v903_v21 = vmul.f32 %v4918_v57, %v4562_v59  ;;  %v709_v22 = vadd.f32 %v5032_v35, %v669_v32  ;;  %v5057_v19 = vpop.permute.xlu0 %922 }
 0x116   :  { %v710_v55 = vadd.f32 %v5032_v35, %v670_v49  ;;  %v711_v13 = vadd.f32 %v5032_v35, %v671_v40  ;;  %v342_v23 = vmul.f32 %v310_v60, %v4575_v37  ;;  %v343_v30 = vmul.f32 %v311_v20, %v4347_v50  ;;  %8822 = vst [vmem:[#allocation83_spill] sm:$0xff] %v5057_v19 }
 0x117   :  { %v344_v8 = vmul.f32 %v312_v41, %v4351_v51  ;;  %v345_v9 = vmul.f32 %v313_v46, %v4357_v53  ;;  %v5061_v56 = vmul.f32 %v4918_v57, %v4575_v37  ;;  %v346_v32 = vmul.f32 %v314_v10, %v4361_v54 }
 0x118   :  { %v347_v49 = vmul.f32 %v315_v33, %v8816_v45  ;;  %v348_v40 = vmul.f32 %v316_v0, %v8817_v15  ;;  %v5068_v60 = vmul.f32 %v4918_v57, %v4347_v50  ;;  %v5071_v20 = vadd.f32 %v5057_v19, %v901_v39 }
 0x119   :  { %8823 = vst [vmem:[#allocation60_spill] sm:$0xff] %v5061_v56  ;;  %v942_v46 = vadd.f32 %v5057_v19, %v902_v25  ;;  %v349_v41 = vmul.f32 %v317_v12, %v8818_v27  ;;  %v5076_v51 = vadd.f32 %v5057_v19, %v903_v21  ;;  %v805_v10 = vsub.f32 %v709_v22, %v4689_v34  ;;  %v8828_v21 = vld [vmem:[#allocation69_spill] sm:$0xff] }
 0x11a   :  { %8824 = vst [vmem:[#allocation84_spill] sm:$0xff] %v5068_v60  ;;  %8825 = vst [vmem:[#allocation61_spill] sm:$0xff] %v5071_v20  ;;  %v806_v33 = vsub.f32 %v710_v55, %v4695_v24  ;;  %v807_v0 = vsub.f32 %v711_v13, %v4698_v43  ;;  %v1218_v56 = vmul.f32 %v4989_v7, %v4554_v28  ;;  %v8827_v20 = vld [vmem:[#allocation20_spill] sm:$0xff]  ;;  %v8829_v55 = vld [vmem:[#allocation70_spill] sm:$0xff] }
 0x11b   :  { %8826 = vst [vmem:[#allocation62_spill] sm:$0xff] %v5076_v51  ;;  %v1219_v39 = vmul.f32 %v4989_v7, %v4558_v58  ;;  %v379_v60 = vadd.f32 %v8827_v20, %v339_v29  ;;  %v380_v25 = vadd.f32 %v8827_v20, %v340_v11  ;;  %v1220_v12 = vmul.f32 %v4989_v7, %v4562_v59  ;;  %v8830_v13 = vld [vmem:[#allocation71_spill] sm:$0xff] }
 0x11c   :  { %v488_v22 = vsub.f32 %v8828_v21, %v8807_v36  ;;  %v489_v51 = vsub.f32 %v8829_v55, %v8810_v26  ;;  %v490_v19 = vsub.f32 %v8830_v13, %v4640_v48  ;;  %v5097_v28 = vmul.f32 %v4989_v7, %v4575_v37 }
 0x11d   :  { %v974_v29 = vmul.f32 %v942_v46, %v4558_v58  ;;  %v381_v11 = vadd.f32 %v8827_v20, %v341_v62  ;;  %v382_v57 = vadd.f32 %v8827_v20, %v342_v23  ;;  %v383_v59 = vadd.f32 %v8827_v20, %v343_v30 }
 0x11e   :  { %8831 = vst [vmem:[#allocation20_spill] sm:$0xff] %v5097_v28  ;;  %v837_v43 = vmul.f32 %v805_v10, %v805_v10  ;;  %v838_v36 = vmul.f32 %v806_v33, %v806_v33  ;;  %v839_v21 = vmul.f32 %v807_v0, %v807_v0  ;;  %v384_v26 = vadd.f32 %v8827_v20, %v344_v8  ;;  %v5107_v28 = vpop.permute.xlu1 %1239 }
 0x11f   :  { %v385_v55 = vadd.f32 %v8827_v20, %v345_v9  ;;  %v386_v48 = vadd.f32 %v8827_v20, %v346_v32  ;;  %v387_v13 = vadd.f32 %v8827_v20, %v347_v49  ;;  %8832 = vst [vmem:[#allocation69_spill] sm:$0xff] %v5107_v28  ;;  %v388_v46 = vadd.f32 %v8827_v20, %v348_v40 }
 0x120   :  { %v520_v62 = vmul.f32 %v488_v22, %v488_v22  ;;  %v521_v58 = vmul.f32 %v489_v51, %v489_v51  ;;  %v522_v23 = vmul.f32 %v490_v19, %v490_v19  ;;  %v5111_v30 = vadd.f32 %v5032_v35, %v656_v52  ;;  %v8847_v22 = vld [vmem:[#allocation143_spill] sm:$0xff] }
 0x121   :  { %v5114_v10 = vadd.f32 %v5032_v35, %v657_v17  ;;  %v389_v8 = vadd.f32 %v8827_v20, %v349_v41  ;;  %v475_v9 = vsub.f32 %v379_v60, %v4587_v31  ;;  %v5119_v32 = vadd.f32 %v5032_v35, %v658_v38  ;;  %v8836_v41 = vld [vmem:[#allocation81_spill] sm:$0xff] }
 0x122   :  { %v5121_v49 = vadd.f32 %v837_v43, %v520_v62  ;;  %v5123_v33 = vadd.f32 %v838_v36, %v521_v58  ;;  %v5125_v40 = vadd.f32 %v839_v21, %v522_v23  ;;  %v476_v51 = vsub.f32 %v380_v25, %v4590_v1  ;;  %v8837_v1 = vld [vmem:[#allocation67_spill] sm:$0xff]  ;;  %v8839_v25 = vld [vmem:[#allocation68_spill] sm:$0xff]  ;;  %v8849_v21 = vld [vmem:[#allocation145_spill] sm:$0xff] }
 0x123   :  { %v477_v52 = vsub.f32 %v381_v11, %v4593_v42  ;;  %v478_v17 = vsub.f32 %v382_v57, %v4602_v4  ;;  %v479_v19 = vsub.f32 %v383_v59, %v4605_v3  ;;  %v480_v20 = vsub.f32 %v384_v26, %v4608_v61  ;;  %v8838_v42 = vld [vmem:[#allocation82_spill] sm:$0xff]  ;;  %v5147_v59 = vpop.permute.xlu1 %994  ;;  %v8844_v57 = vld [vmem:[#allocation140_spill] sm:$0xff] }
 0x124   :  { %8833 = vst [vmem:[#allocation70_spill] sm:$0xff] %v5121_v49  ;;  %8834 = vst [vmem:[#allocation71_spill] sm:$0xff] %v5123_v33  ;;  %v481_v31 = vsub.f32 %v385_v55, %v8785_v18  ;;  %v482_v38 = vsub.f32 %v386_v48, %v8788_v6  ;;  %v483_v43 = vsub.f32 %v387_v13, %v8791_v16  ;;  %v8843_v6 = vld [vmem:[#allocation139_spill] sm:$0xff]  ;;  %v8848_v11 = vld [vmem:[#allocation144_spill] sm:$0xff] }
 0x125   :  { %8835 = vst [vmem:[#allocation146_spill] sm:$0xff] %v5125_v40  ;;  %v484_v58 = vsub.f32 %v388_v46, %v8794_v44  ;;  %v485_v60 = vsub.f32 %v389_v8, %v8797_v47  ;;  %v486_v0 = vsub.f32 %v8837_v1, %v8836_v41  ;;  %v487_v4 = vsub.f32 %v8839_v25, %v8838_v42  ;;  %v8846_v47 = vld [vmem:[#allocation142_spill] sm:$0xff]  ;;  %v8850_v55 = vld [vmem:[#allocation76_spill] sm:$0xff]  ;;  %v8851_v48 = vld [vmem:[#allocation51_spill] sm:$0xff] }
 0x126   :  { %v5142_v3 = vadd.f32 %v5107_v28, %v1218_v56  ;;  %v5145_v61 = vadd.f32 %v5107_v28, %v1219_v39  ;;  %8842 = vst [vmem:[#allocation82_spill] sm:$0xff] %v5147_v59  ;;  %v5151_v18 = vmul.f32 %v8843_v6, %v8843_v6  ;;  %v5155_v16 = vmul.f32 %v8844_v57, %v8844_v57  ;;  %v8852_v46 = vld [vmem:[#allocation77_spill] sm:$0xff]  ;;  %v8853_v23 = vld [vmem:[#allocation52_spill] sm:$0xff]  ;;  %v8855_v41 = vld [vmem:[#allocation78_spill] sm:$0xff] }
 0x127   :  { %v5158_v44 = vadd.f32 %v5107_v28, %v1220_v12  ;;  %v5162_v56 = vmul.f32 %v8846_v47, %v8846_v47  ;;  %v5166_v39 = vmul.f32 %v8847_v22, %v8847_v22  ;;  %v5170_v36 = vmul.f32 %v8848_v11, %v8848_v11  ;;  %v8857_v42 = vld [vmem:[#allocation55_spill] sm:$0xff]  ;;  %v8861_v47 = vld [vmem:[#allocation56_spill] sm:$0xff]  ;;  %v8887_v33 = vld [vmem:[#allocation101_spill] sm:$0xff] }
 0x128   :  { %8840 = vst [vmem:[#allocation81_spill] sm:$0xff] %v5142_v3  ;;  %8841 = vst [vmem:[#allocation67_spill] sm:$0xff] %v5145_v61  ;;  %v5174_v26 = vmul.f32 %v8849_v21, %v8849_v21  ;;  %v5178_v12 = vmul.f32 %v8850_v55, %v8850_v55  ;;  %v5182_v13 = vmul.f32 %v8851_v48, %v8851_v48  ;;  %v8859_v6 = vld [vmem:[#allocation79_spill] sm:$0xff]  ;;  %v8863_v11 = vld [vmem:[#allocation80_spill] sm:$0xff] }
 0x129   :  { %8845 = vst [vmem:[#allocation68_spill] sm:$0xff] %v5158_v44  ;;  %v5186_v62 = vmul.f32 %v8852_v46, %v8852_v46  ;;  %v5190_v8 = vmul.f32 %v8853_v23, %v8853_v23  ;;  %v5194_v1 = vmul.f32 %v8855_v41, %v8855_v41  ;;  %v5198_v25 = vmul.f32 %v8857_v42, %v8857_v42  ;;  %v8865_v55 = vld [vmem:[#allocation57_spill] sm:$0xff]  ;;  %v8882_v3 = vld [vmem:[#allocation24_spill] sm:$0xff] }
 0x12a   :  { %v5202_v57 = vmul.f32 %v8859_v6, %v8859_v6  ;;  %v5206_v22 = vmul.f32 %v8861_v47, %v8861_v47  ;;  %v5210_v21 = vmul.f32 %v8863_v11, %v8863_v11  ;;  %v5214_v48 = vmul.f32 %v8865_v55, %v8865_v55  ;;  %v5227_v47 = vpop.permute.xlu1 %1556 }
 0x12b   :  { %8854 = vst [vmem:[#allocation139_spill] sm:$0xff] %v5190_v8  ;;  %8856 = vst [vmem:[#allocation140_spill] sm:$0xff] %v5194_v1  ;;  %v5216_v46 = vmul.f32 %v475_v9, %v475_v9  ;;  %v5219_v23 = vadd.f32 %v5147_v59, %v974_v29  ;;  %v5221_v41 = vmul.f32 %v476_v51, %v476_v51  ;;  %v8914_v1 = vld [vmem:[#allocation97_spill] sm:$0xff]  ;;  %v8915_v8 = vld [vmem:[#allocation98_spill] sm:$0xff] }
 0x12c   :  { %8858 = vst [vmem:[#allocation142_spill] sm:$0xff] %v5198_v25  ;;  %8860 = vst [vmem:[#allocation143_spill] sm:$0xff] %v5202_v57  ;;  %v5223_v42 = vmul.f32 %v477_v52, %v477_v52  ;;  %v5225_v6 = vmul.f32 %v478_v17, %v478_v17  ;;  %v5229_v44 = vmul.f32 %v479_v19, %v479_v19  ;;  %v8913_v25 = vld [vmem:[#allocation96_spill] sm:$0xff] }
 0x12d   :  { %8862 = vst [vmem:[#allocation144_spill] sm:$0xff] %v5206_v22  ;;  %8864 = vst [vmem:[#allocation145_spill] sm:$0xff] %v5210_v21  ;;  %v5231_v11 = vmul.f32 %v480_v20, %v480_v20  ;;  %v5233_v61 = vmul.f32 %v481_v31, %v481_v31  ;;  %v5235_v55 = vmul.f32 %v482_v38, %v482_v38  ;;  %v8883_v38 = vld [vmem:[#allocation136_spill] sm:$0xff] }
 0x12e   :  { %8866 = vst [vmem:[#allocation76_spill] sm:$0xff] %v5214_v48  ;;  %8867 = vst [vmem:[#allocation51_spill] sm:$0xff] %v5216_v46  ;;  %v5237_v9 = vmul.f32 %v483_v43, %v483_v43  ;;  %v5239_v29 = vmul.f32 %v484_v58, %v484_v58  ;;  %v5241_v51 = vmul.f32 %v485_v60, %v485_v60  ;;  %v8885_v58 = vld [vmem:[#allocation42_spill] sm:$0xff]  ;;  %v8894_v48 = vld [vmem:[#allocation107_spill] sm:$0xff] }
 0x12f   :  { %8868 = vst [vmem:[#allocation77_spill] sm:$0xff] %v5219_v23  ;;  %8869 = vst [vmem:[#allocation52_spill] sm:$0xff] %v5221_v41  ;;  %v5243_v52 = vmul.f32 %v486_v0, %v486_v0  ;;  %v5245_v17 = vmul.f32 %v487_v4, %v487_v4  ;;  %v576_v19 = vmul.f32 %v8882_v3, %v8816_v45  ;;  %v8886_v0 = vld [vmem:[#allocation43_spill] sm:$0xff] }
 0x130   :  { %8870 = vst [vmem:[#allocation78_spill] sm:$0xff] %v5223_v42  ;;  %8871 = vst [vmem:[#allocation55_spill] sm:$0xff] %v5225_v6  ;;  %v577_v20 = vmul.f32 %v8882_v3, %v8817_v15  ;;  %v578_v31 = vmul.f32 %v8882_v3, %v8818_v27  ;;  %v5255_v43 = vadd.f32 %v5227_v47, %v8883_v38 }
 0x131   :  { %8872 = vst [vmem:[#allocation79_spill] sm:$0xff] %v5227_v47  ;;  %8873 = vst [vmem:[#allocation56_spill] sm:$0xff] %v5229_v44  ;;  %v579_v60 = vmul.f32 %v8882_v3, %v8885_v58  ;;  %v580_v4 = vmul.f32 %v8882_v3, %v8886_v0  ;;  %v581_v28 = vmul.f32 %v8882_v3, %v8819_v14 }
 0x132   :  { %8874 = vst [vmem:[#allocation80_spill] sm:$0xff] %v5231_v11  ;;  %8875 = vst [vmem:[#allocation57_spill] sm:$0xff] %v5233_v61  ;;  %v582_v7 = vmul.f32 %v8882_v3, %v4392_v2  ;;  %v583_v40 = vmul.f32 %v8882_v3, %v4399_v5  ;;  %v590_v49 = vmul.f32 %v8887_v33, %v4357_v53 }
 0x133   :  { %8876 = vst [vmem:[#allocation147_spill] sm:$0xff] %v5235_v55  ;;  %8877 = vst [vmem:[#allocation148_spill] sm:$0xff] %v5237_v9  ;;  %v591_v38 = vmul.f32 %v8887_v33, %v4361_v54  ;;  %v593_v47 = vmul.f32 %v8887_v33, %v8817_v15  ;;  %v594_v23 = vmul.f32 %v8887_v33, %v8818_v27 }
 0x134   :  { %8878 = vst [vmem:[#allocation149_spill] sm:$0xff] %v5239_v29  ;;  %8879 = vst [vmem:[#allocation150_spill] sm:$0xff] %v5241_v51  ;;  %v595_v59 = vmul.f32 %v8887_v33, %v8885_v58  ;;  %v596_v3 = vmul.f32 %v8887_v33, %v8886_v0  ;;  %v8890_v29 = vld [vmem:[#allocation105_spill] sm:$0xff] }
 0x135   :  { %8880 = vst [vmem:[#allocation151_spill] sm:$0xff] %v5243_v52  ;;  %8881 = vst [vmem:[#allocation152_spill] sm:$0xff] %v5245_v17  ;;  %v8888_v17 = vld [vmem:[#allocation104_spill] sm:$0xff]  ;;  %v8889_v52 = vld [vmem:[#allocation13_spill] sm:$0xff] }
 0x136   :  { %8884 = vst [vmem:[#allocation24_spill] sm:$0xff] %v5255_v43  ;;  %v592_v43 = vmul.f32 %v8887_v33, %v8816_v45  ;;  %v614_v51 = vadd.f32 %v8889_v52, %v8888_v17  ;;  %v615_v9 = vadd.f32 %v8889_v52, %v8890_v29  ;;  %v616_v55 = vadd.f32 %v8889_v52, %v576_v19  ;;  %v8891_v17 = vld [vmem:[#allocation109_spill] sm:$0xff] }
 0x137   :  { %v617_v61 = vadd.f32 %v8889_v52, %v577_v20  ;;  %v618_v11 = vadd.f32 %v8889_v52, %v578_v31  ;;  %v619_v44 = vadd.f32 %v8889_v52, %v579_v60  ;;  %v620_v6 = vadd.f32 %v8889_v52, %v580_v4 }
 0x138   :  { %v621_v42 = vadd.f32 %v8889_v52, %v581_v28  ;;  %v622_v33 = vadd.f32 %v8889_v52, %v582_v7  ;;  %v623_v41 = vadd.f32 %v8889_v52, %v583_v40  ;;  %v629_v46 = vadd.f32 %v8891_v17, %v5018_v63  ;;  %v8892_v7 = vld [vmem:[#allocation106_spill] sm:$0xff]  ;;  %v8893_v52 = vld [vmem:[#allocation35_spill] sm:$0xff] }
 0x139   :  { %v630_v29 = vadd.f32 %v8891_v17, %v590_v49  ;;  %v631_v19 = vadd.f32 %v8891_v17, %v591_v38  ;;  %v632_v20 = vadd.f32 %v8891_v17, %v592_v43  ;;  %v633_v31 = vadd.f32 %v8891_v17, %v593_v47 }
 0x13a   :  { %v634_v60 = vadd.f32 %v8891_v17, %v594_v23  ;;  %v635_v4 = vadd.f32 %v8891_v17, %v595_v59  ;;  %v636_v28 = vadd.f32 %v8891_v17, %v596_v3  ;;  %v644_v40 = vmul.f32 %v8892_v7, %v4347_v50 }
 0x13b   :  { %v645_v63 = vmul.f32 %v8894_v48, %v8893_v52  ;;  %v646_v49 = vmul.f32 %v614_v51, %v4357_v53  ;;  %v647_v38 = vmul.f32 %v615_v9, %v4361_v54  ;;  %v648_v43 = vmul.f32 %v616_v55, %v8816_v45  ;;  %v8895_v51 = vld [vmem:[#allocation59_spill] sm:$0xff]  ;;  %v8896_v9 = vld [vmem:[#allocation66_spill] sm:$0xff] }
 0x13c   :  { %v649_v47 = vmul.f32 %v617_v61, %v8817_v15  ;;  %v650_v23 = vmul.f32 %v618_v11, %v8818_v27  ;;  %v651_v59 = vmul.f32 %v619_v44, %v8885_v58  ;;  %v652_v3 = vmul.f32 %v620_v6, %v8886_v0 }
 0x13d   :  { %v653_v17 = vmul.f32 %v621_v42, %v8819_v14  ;;  %v654_v7 = vmul.f32 %v622_v33, %v4392_v2  ;;  %v655_v48 = vmul.f32 %v623_v41, %v4399_v5  ;;  %v659_v21 = vmul.f32 %v8895_v51, %v4575_v37  ;;  %v8897_v51 = vld [vmem:[#allocation108_spill] sm:$0xff] }
 0x13e   :  { %v660_v55 = vmul.f32 %v8896_v9, %v4347_v50  ;;  %v661_v61 = vmul.f32 %v629_v46, %v8893_v52  ;;  %v662_v11 = vmul.f32 %v630_v29, %v4357_v53  ;;  %v663_v44 = vmul.f32 %v631_v19, %v4361_v54  ;;  %v8898_v37 = vld [vmem:[#allocation16_spill] sm:$0xff]  ;;  %v8899_v9 = vld [vmem:[#allocation110_spill] sm:$0xff]  ;;  %v8900_v50 = vld [vmem:[#allocation111_spill] sm:$0xff] }
 0x13f   :  { %v664_v6 = vmul.f32 %v632_v20, %v8816_v45  ;;  %v665_v42 = vmul.f32 %v633_v31, %v8817_v15  ;;  %v666_v33 = vmul.f32 %v634_v60, %v8818_v27  ;;  %v667_v41 = vmul.f32 %v635_v4, %v8885_v58  ;;  %v8902_v52 = vld [vmem:[#allocation86_spill] sm:$0xff] }
 0x140   :  { %v668_v5 = vmul.f32 %v636_v28, %v8886_v0  ;;  %v680_v2 = vadd.f32 %v8898_v37, %v8897_v51  ;;  %v682_v46 = vadd.f32 %v8898_v37, %v8899_v9  ;;  %v683_v29 = vadd.f32 %v8898_v37, %v8900_v50 }
 0x141   :  { %v684_v19 = vadd.f32 %v8898_v37, %v644_v40  ;;  %v685_v20 = vadd.f32 %v8898_v37, %v645_v63  ;;  %v686_v31 = vadd.f32 %v8898_v37, %v646_v49  ;;  %v687_v60 = vadd.f32 %v8898_v37, %v647_v38 }
 0x142   :  { %v688_v4 = vadd.f32 %v8898_v37, %v648_v43  ;;  %v689_v28 = vadd.f32 %v8898_v37, %v649_v47  ;;  %v690_v51 = vadd.f32 %v8898_v37, %v650_v23  ;;  %v691_v53 = vadd.f32 %v8898_v37, %v651_v59 }
 0x143   :  { %v692_v9 = vadd.f32 %v8898_v37, %v652_v3  ;;  %v693_v50 = vadd.f32 %v8898_v37, %v653_v17  ;;  %v694_v40 = vadd.f32 %v8898_v37, %v654_v7  ;;  %v695_v63 = vadd.f32 %v8898_v37, %v655_v48  ;;  %v8901_v48 = vld [vmem:[#allocation85_spill] sm:$0xff] }
 0x144   :  { %v699_v49 = vadd.f32 %v5032_v35, %v659_v21  ;;  %v700_v38 = vadd.f32 %v5032_v35, %v660_v55  ;;  %v701_v43 = vadd.f32 %v5032_v35, %v661_v61  ;;  %v702_v47 = vadd.f32 %v5032_v35, %v662_v11  ;;  %v8903_v55 = vld [vmem:[#allocation112_spill] sm:$0xff]  ;;  %v8904_v61 = vld [vmem:[#allocation87_spill] sm:$0xff] }
 0x145   :  { %v703_v23 = vadd.f32 %v5032_v35, %v663_v44  ;;  %v704_v59 = vadd.f32 %v5032_v35, %v664_v6  ;;  %v705_v3 = vadd.f32 %v5032_v35, %v665_v42  ;;  %v706_v17 = vadd.f32 %v5032_v35, %v666_v33  ;;  %v8905_v11 = vld [vmem:[#allocation88_spill] sm:$0xff]  ;;  %v8906_v44 = vld [vmem:[#allocation89_spill] sm:$0xff]  ;;  %v8907_v6 = vld [vmem:[#allocation90_spill] sm:$0xff] }
 0x146   :  { %v707_v7 = vadd.f32 %v5032_v35, %v667_v41  ;;  %v708_v37 = vadd.f32 %v5032_v35, %v668_v5  ;;  %v776_v21 = vsub.f32 %v680_v2, %v8901_v48  ;;  %v777_v14 = vsub.f32 %v8903_v55, %v8902_v52  ;;  %v8908_v42 = vld [vmem:[#allocation91_spill] sm:$0xff]  ;;  %v8909_v33 = vld [vmem:[#allocation92_spill] sm:$0xff]  ;;  %v8910_v41 = vld [vmem:[#allocation93_spill] sm:$0xff] }
 0x147   :  { %v778_v0 = vsub.f32 %v682_v46, %v8904_v61  ;;  %v779_v58 = vsub.f32 %v683_v29, %v8905_v11  ;;  %v780_v27 = vsub.f32 %v684_v19, %v8906_v44  ;;  %v781_v15 = vsub.f32 %v685_v20, %v8907_v6  ;;  %v8911_v5 = vld [vmem:[#allocation94_spill] sm:$0xff]  ;;  %v8912_v2 = vld [vmem:[#allocation95_spill] sm:$0xff] }
 0x148   :  { %v782_v45 = vsub.f32 %v686_v31, %v8908_v42  ;;  %v783_v54 = vsub.f32 %v687_v60, %v8909_v33  ;;  %v784_v22 = vsub.f32 %v688_v4, %v8910_v41  ;;  %v785_v35 = vsub.f32 %v689_v28, %v8911_v5 }
 0x149   :  { %v786_v57 = vsub.f32 %v690_v51, %v8912_v2  ;;  %v787_v55 = vsub.f32 %v691_v53, %v8913_v25  ;;  %v788_v46 = vsub.f32 %v692_v9, %v8914_v1  ;;  %v789_v29 = vsub.f32 %v693_v50, %v4689_v34 }
 0x14a   :  { %v790_v19 = vsub.f32 %v694_v40, %v4695_v24  ;;  %v791_v20 = vsub.f32 %v695_v63, %v8915_v8  ;;  %v792_v31 = vsub.f32 %v5111_v30, %v8901_v48  ;;  %v793_v60 = vsub.f32 %v5114_v10, %v8902_v52 }
 0x14b   :  { %v794_v4 = vsub.f32 %v5119_v32, %v8904_v61  ;;  %v795_v28 = vsub.f32 %v699_v49, %v8905_v11  ;;  %v796_v53 = vsub.f32 %v700_v38, %v8906_v44  ;;  %v797_v51 = vsub.f32 %v701_v43, %v8907_v6 }
 0x14c   :  { %v798_v34 = vsub.f32 %v702_v47, %v8908_v42  ;;  %v799_v24 = vsub.f32 %v703_v23, %v8909_v33  ;;  %v800_v8 = vsub.f32 %v704_v59, %v8910_v41  ;;  %v801_v30 = vsub.f32 %v705_v3, %v8911_v5 }
 0x14d   :  { %v802_v9 = vsub.f32 %v706_v17, %v8912_v2  ;;  %v803_v10 = vsub.f32 %v707_v7, %v8913_v25  ;;  %v804_v32 = vsub.f32 %v708_v37, %v8914_v1  ;;  %v808_v52 = vmul.f32 %v776_v21, %v776_v21 }
 0x14e   :  { %v809_v50 = vmul.f32 %v777_v14, %v777_v14  ;;  %v810_v40 = vmul.f32 %v778_v0, %v778_v0  ;;  %v811_v63 = vmul.f32 %v779_v58, %v779_v58  ;;  %v812_v49 = vmul.f32 %v780_v27, %v780_v27 }
 0x14f   :  { %v813_v38 = vmul.f32 %v781_v15, %v781_v15  ;;  %v814_v43 = vmul.f32 %v782_v45, %v782_v45  ;;  %v815_v47 = vmul.f32 %v783_v54, %v783_v54  ;;  %v816_v48 = vmul.f32 %v784_v22, %v784_v22 }
 0x150   :  { %v817_v23 = vmul.f32 %v785_v35, %v785_v35  ;;  %v818_v61 = vmul.f32 %v786_v57, %v786_v57  ;;  %v819_v59 = vmul.f32 %v787_v55, %v787_v55  ;;  %v820_v11 = vmul.f32 %v788_v46, %v788_v46 }
 0x151   :  { %v821_v3 = vmul.f32 %v789_v29, %v789_v29  ;;  %v822_v44 = vmul.f32 %v790_v19, %v790_v19  ;;  %v823_v17 = vmul.f32 %v791_v20, %v791_v20  ;;  %v824_v6 = vmul.f32 %v792_v31, %v792_v31 }
 0x152   :  { %v825_v25 = vmul.f32 %v793_v60, %v793_v60  ;;  %v826_v7 = vmul.f32 %v794_v4, %v794_v4  ;;  %v827_v1 = vmul.f32 %v795_v28, %v795_v28  ;;  %v828_v37 = vmul.f32 %v796_v53, %v796_v53  ;;  %v8933_v60 = vld [vmem:[#allocation51_spill] sm:$0xff]  ;;  %v8935_v28 = vld [vmem:[#allocation52_spill] sm:$0xff] }
 0x153   :  { %v829_v14 = vmul.f32 %v797_v51, %v797_v51  ;;  %v830_v0 = vmul.f32 %v798_v34, %v798_v34  ;;  %v831_v58 = vmul.f32 %v799_v24, %v799_v24  ;;  %v832_v27 = vmul.f32 %v800_v8, %v800_v8  ;;  %v8937_v51 = vld [vmem:[#allocation78_spill] sm:$0xff]  ;;  %v8939_v24 = vld [vmem:[#allocation55_spill] sm:$0xff] }
 0x154   :  { %v833_v15 = vmul.f32 %v801_v30, %v801_v30  ;;  %v834_v45 = vmul.f32 %v802_v9, %v802_v9  ;;  %v835_v54 = vmul.f32 %v803_v10, %v803_v10  ;;  %v836_v22 = vmul.f32 %v804_v32, %v804_v32  ;;  %v8941_v30 = vld [vmem:[#allocation56_spill] sm:$0xff] }
 0x155   :  { %v5390_v57 = vadd.f32 %v808_v52, %v5151_v18  ;;  %v5393_v21 = vadd.f32 %v809_v50, %v5155_v16  ;;  %v5396_v42 = vadd.f32 %v810_v40, %v5162_v56  ;;  %v5399_v33 = vadd.f32 %v811_v63, %v5166_v39  ;;  %v8919_v56 = vld [vmem:[#allocation139_spill] sm:$0xff]  ;;  %v8921_v39 = vld [vmem:[#allocation140_spill] sm:$0xff]  ;;  %v8945_v52 = vld [vmem:[#allocation57_spill] sm:$0xff] }
 0x156   :  { %v5402_v41 = vadd.f32 %v812_v49, %v5170_v36  ;;  %v5405_v5 = vadd.f32 %v813_v38, %v5174_v26  ;;  %v5408_v35 = vadd.f32 %v814_v43, %v5178_v12  ;;  %v5411_v18 = vadd.f32 %v815_v47, %v5182_v13  ;;  %v8923_v36 = vld [vmem:[#allocation142_spill] sm:$0xff]  ;;  %v8925_v26 = vld [vmem:[#allocation143_spill] sm:$0xff]  ;;  %v8927_v12 = vld [vmem:[#allocation144_spill] sm:$0xff] }
 0x157   :  { %v5414_v16 = vadd.f32 %v816_v48, %v5186_v62  ;;  %v5417_v2 = vadd.f32 %v817_v23, %v8919_v56  ;;  %v5420_v55 = vadd.f32 %v818_v61, %v8921_v39  ;;  %v5423_v46 = vadd.f32 %v819_v59, %v8923_v36  ;;  %v8929_v13 = vld [vmem:[#allocation145_spill] sm:$0xff]  ;;  %v8931_v62 = vld [vmem:[#allocation76_spill] sm:$0xff]  ;;  %v8947_v40 = vld [vmem:[#allocation147_spill] sm:$0xff] }
 0x158   :  { %8916 = vst [vmem:[#allocation136_spill] sm:$0xff] %v5408_v35  ;;  %8917 = vst [vmem:[#allocation101_spill] sm:$0xff] %v5411_v18  ;;  %v5426_v29 = vadd.f32 %v820_v11, %v8925_v26  ;;  %v5429_v19 = vadd.f32 %v821_v3, %v8927_v12  ;;  %v5432_v20 = vadd.f32 %v822_v44, %v8929_v13  ;;  %v8943_v10 = vld [vmem:[#allocation80_spill] sm:$0xff]  ;;  %v8951_v43 = vld [vmem:[#allocation149_spill] sm:$0xff] }
 0x159   :  { %8918 = vst [vmem:[#allocation104_spill] sm:$0xff] %v5414_v16  ;;  %8920 = vst [vmem:[#allocation13_spill] sm:$0xff] %v5417_v2  ;;  %v5435_v31 = vadd.f32 %v823_v17, %v8931_v62  ;;  %v5438_v4 = vadd.f32 %v824_v6, %v8933_v60  ;;  %v5441_v53 = vadd.f32 %v825_v25, %v8935_v28  ;;  %v8949_v49 = vld [vmem:[#allocation148_spill] sm:$0xff]  ;;  %v8953_v48 = vld [vmem:[#allocation150_spill] sm:$0xff] }
 0x15a   :  { %8922 = vst [vmem:[#allocation105_spill] sm:$0xff] %v5420_v55  ;;  %8924 = vst [vmem:[#allocation109_spill] sm:$0xff] %v5423_v46  ;;  %v5444_v34 = vadd.f32 %v826_v7, %v8937_v51  ;;  %v5447_v8 = vadd.f32 %v827_v1, %v8939_v24  ;;  %v5450_v9 = vadd.f32 %v828_v37, %v8941_v30  ;;  %v8955_v61 = vld [vmem:[#allocation151_spill] sm:$0xff]  ;;  %v8957_v11 = vld [vmem:[#allocation152_spill] sm:$0xff] }
 0x15b   :  { %8926 = vst [vmem:[#allocation106_spill] sm:$0xff] %v5426_v29  ;;  %8928 = vst [vmem:[#allocation107_spill] sm:$0xff] %v5429_v19  ;;  %v5453_v32 = vadd.f32 %v829_v14, %v8943_v10  ;;  %v5456_v50 = vadd.f32 %v830_v0, %v8945_v52  ;;  %v5459_v63 = vadd.f32 %v831_v58, %v8947_v40  ;;  %v8959_v44 = vld [vmem:[#allocation38_spill] sm:$0xff]  ;;  %v8960_v17 = vld [vmem:[#allocation36_spill] sm:$0xff] }
 0x15c   :  { %8930 = vst [vmem:[#allocation59_spill] sm:$0xff] %v5432_v20  ;;  %8932 = vst [vmem:[#allocation66_spill] sm:$0xff] %v5435_v31  ;;  %v5462_v38 = vadd.f32 %v832_v27, %v8949_v49  ;;  %v5465_v47 = vadd.f32 %v833_v15, %v8951_v43  ;;  %v5468_v23 = vadd.f32 %v834_v45, %v8953_v48  ;;  %v8961_v25 = vld [vmem:[#allocation39_spill] sm:$0xff]  ;;  %v8962_v1 = vld [vmem:[#allocation40_spill] sm:$0xff] }
 0x15d   :  { %8934 = vst [vmem:[#allocation108_spill] sm:$0xff] %v5438_v4  ;;  %8936 = vst [vmem:[#allocation16_spill] sm:$0xff] %v5441_v53  ;;  %v5471_v59 = vadd.f32 %v835_v54, %v8955_v61  ;;  %v5474_v3 = vadd.f32 %v836_v22, %v8957_v11  ;;  %v892_v6 = vmul.f32 %v8960_v17, %v8959_v44  ;;  %v8963_v14 = vld [vmem:[#allocation41_spill] sm:$0xff]  ;;  %v8964_v58 = vld [vmem:[#allocation42_spill] sm:$0xff] }
 0x15e   :  { %8938 = vst [vmem:[#allocation110_spill] sm:$0xff] %v5444_v34  ;;  %8940 = vst [vmem:[#allocation111_spill] sm:$0xff] %v5447_v8  ;;  %v893_v7 = vmul.f32 %v8960_v17, %v8961_v25  ;;  %v894_v37 = vmul.f32 %v8960_v17, %v8962_v1  ;;  %v895_v0 = vmul.f32 %v8960_v17, %v8963_v14  ;;  %v8965_v15 = vld [vmem:[#allocation43_spill] sm:$0xff]  ;;  %v8966_v54 = vld [vmem:[#allocation45_spill] sm:$0xff] }
 0x15f   :  { %8942 = vst [vmem:[#allocation85_spill] sm:$0xff] %v5450_v9  ;;  %8944 = vst [vmem:[#allocation86_spill] sm:$0xff] %v5453_v32  ;;  %v896_v27 = vmul.f32 %v8960_v17, %v8964_v58  ;;  %v897_v45 = vmul.f32 %v8960_v17, %v8965_v15  ;;  %v898_v22 = vmul.f32 %v8960_v17, %v8966_v54  ;;  %v8967_v56 = vld [vmem:[#allocation46_spill] sm:$0xff]  ;;  %v8968_v36 = vld [vmem:[#allocation47_spill] sm:$0xff] }
 0x160   :  { %8946 = vst [vmem:[#allocation112_spill] sm:$0xff] %v5456_v50  ;;  %8948 = vst [vmem:[#allocation87_spill] sm:$0xff] %v5459_v63  ;;  %v899_v39 = vmul.f32 %v8960_v17, %v8967_v56  ;;  %v900_v26 = vmul.f32 %v8960_v17, %v8968_v36  ;;  %v8969_v12 = vld [vmem:[#allocation35_spill] sm:$0xff]  ;;  %v8970_v13 = vld [vmem:[#allocation141_spill] sm:$0xff] }
 0x161   :  { %8950 = vst [vmem:[#allocation88_spill] sm:$0xff] %v5462_v38  ;;  %8952 = vst [vmem:[#allocation89_spill] sm:$0xff] %v5465_v47  ;;  %v906_v62 = vmul.f32 %v8970_v13, %v8969_v12  ;;  %v8971_v60 = vld [vmem:[#allocation37_spill] sm:$0xff]  ;;  %v908_v51 = vmul.f32 %v8970_v13, %v8959_v44  ;;  %v909_v24 = vmul.f32 %v8970_v13, %v8961_v25  ;;  %v8973_v11 = vld [vmem:[#allocation15_spill] sm:$0xff] }
 0x162   :  { %8954 = vst [vmem:[#allocation90_spill] sm:$0xff] %v5468_v23  ;;  %8956 = vst [vmem:[#allocation91_spill] sm:$0xff] %v5471_v59  ;;  %v907_v28 = vmul.f32 %v8970_v13, %v8971_v60  ;;  %v910_v30 = vmul.f32 %v8970_v13, %v8962_v1  ;;  %v911_v10 = vmul.f32 %v8970_v13, %v8963_v14  ;;  %v8972_v61 = vld [vmem:[#allocation113_spill] sm:$0xff]  ;;  %v8975_v8 = vld [vmem:[#allocation60_spill] sm:$0xff] }
 0x163   :  { %8958 = vst [vmem:[#allocation92_spill] sm:$0xff] %v5474_v3  ;;  %v912_v52 = vmul.f32 %v8970_v13, %v8964_v58  ;;  %v913_v40 = vmul.f32 %v8970_v13, %v8965_v15  ;;  %v914_v49 = vmul.f32 %v8970_v13, %v8966_v54  ;;  %v915_v43 = vmul.f32 %v8970_v13, %v8967_v56  ;;  %v8974_v3 = vld [vmem:[#allocation114_spill] sm:$0xff]  ;;  %v8978_v53 = vld [vmem:[#allocation75_spill] sm:$0xff]  ;;  %v8981_v31 = vld [vmem:[#allocation116_spill] sm:$0xff] }
 0x164   :  { %v916_v48 = vmul.f32 %v8970_v13, %v8968_v36  ;;  %v930_v17 = vadd.f32 %v8973_v11, %v8972_v61  ;;  %v931_v59 = vadd.f32 %v8973_v11, %v8974_v3  ;;  %v932_v23 = vadd.f32 %v8973_v11, %v892_v6  ;;  %v8976_v3 = vld [vmem:[#allocation83_spill] sm:$0xff]  ;;  %v8977_v6 = vld [vmem:[#allocation84_spill] sm:$0xff]  ;;  %v8985_v29 = vld [vmem:[#allocation62_spill] sm:$0xff] }
 0x165   :  { %v933_v47 = vadd.f32 %v8973_v11, %v893_v7  ;;  %v934_v38 = vadd.f32 %v8973_v11, %v894_v37  ;;  %v935_v63 = vadd.f32 %v8973_v11, %v895_v0  ;;  %v936_v50 = vadd.f32 %v8973_v11, %v896_v27  ;;  %v8982_v20 = vld [vmem:[#allocation72_spill] sm:$0xff] }
 0x166   :  { %v937_v32 = vadd.f32 %v8973_v11, %v897_v45  ;;  %v938_v13 = vadd.f32 %v8973_v11, %v898_v22  ;;  %v939_v9 = vadd.f32 %v8973_v11, %v899_v39  ;;  %v940_v61 = vadd.f32 %v8973_v11, %v900_v26 }
 0x167   :  { %v944_v34 = vadd.f32 %v8976_v3, %v8975_v8  ;;  %v945_v7 = vadd.f32 %v8976_v3, %v8977_v6  ;;  %v946_v37 = vadd.f32 %v8976_v3, %v906_v62  ;;  %v947_v0 = vadd.f32 %v8976_v3, %v907_v28  ;;  %v8979_v28 = vld [vmem:[#allocation115_spill] sm:$0xff] }
 0x168   :  { %v948_v27 = vadd.f32 %v8976_v3, %v908_v51  ;;  %v949_v45 = vadd.f32 %v8976_v3, %v909_v24  ;;  %v950_v22 = vadd.f32 %v8976_v3, %v910_v30  ;;  %v951_v39 = vadd.f32 %v8976_v3, %v911_v10  ;;  %v8980_v51 = vld [vmem:[#allocation34_spill] sm:$0xff] }
 0x169   :  { %v952_v26 = vadd.f32 %v8976_v3, %v912_v52  ;;  %v953_v11 = vadd.f32 %v8976_v3, %v913_v40  ;;  %v954_v8 = vadd.f32 %v8976_v3, %v914_v49  ;;  %v955_v6 = vadd.f32 %v8976_v3, %v915_v43 }
 0x16a   :  { %v956_v62 = vadd.f32 %v8976_v3, %v916_v48  ;;  %v960_v4 = vmul.f32 %v8979_v28, %v8978_v53  ;;  %v961_v24 = vmul.f32 %v8981_v31, %v8980_v51  ;;  %v962_v30 = vmul.f32 %v930_v17, %v8969_v12 }
 0x16b   :  { %v963_v10 = vmul.f32 %v931_v59, %v8971_v60  ;;  %v964_v52 = vmul.f32 %v932_v23, %v8959_v44  ;;  %v965_v40 = vmul.f32 %v933_v47, %v8961_v25  ;;  %v966_v49 = vmul.f32 %v934_v38, %v8962_v1  ;;  %v8983_v59 = vld [vmem:[#allocation61_spill] sm:$0xff]  ;;  %v8984_v23 = vld [vmem:[#allocation74_spill] sm:$0xff] }
 0x16c   :  { %v967_v43 = vmul.f32 %v935_v63, %v8963_v14  ;;  %v968_v48 = vmul.f32 %v936_v50, %v8964_v58  ;;  %v969_v3 = vmul.f32 %v937_v32, %v8965_v15  ;;  %v970_v28 = vmul.f32 %v938_v13, %v8966_v54 }
 0x16d   :  { %v971_v31 = vmul.f32 %v939_v9, %v8967_v56  ;;  %v972_v17 = vmul.f32 %v940_v61, %v8968_v36  ;;  %v973_v19 = vmul.f32 %v8983_v59, %v8982_v20  ;;  %v975_v47 = vmul.f32 %v8985_v29, %v8984_v23 }
 0x16e   :  { %v976_v38 = vmul.f32 %v944_v34, %v8978_v53  ;;  %v977_v63 = vmul.f32 %v945_v7, %v8980_v51  ;;  %v978_v50 = vmul.f32 %v946_v37, %v8969_v12  ;;  %v979_v32 = vmul.f32 %v947_v0, %v8971_v60  ;;  %v8986_v53 = vld [vmem:[#allocation117_spill] sm:$0xff] }
 0x16f   :  { %v980_v13 = vmul.f32 %v948_v27, %v8959_v44  ;;  %v981_v9 = vmul.f32 %v949_v45, %v8961_v25  ;;  %v982_v61 = vmul.f32 %v950_v22, %v8962_v1  ;;  %v983_v46 = vmul.f32 %v951_v39, %v8963_v14  ;;  %v8987_v0 = vld [vmem:[#allocation17_spill] sm:$0xff]  ;;  %v8988_v27 = vld [vmem:[#allocation118_spill] sm:$0xff]  ;;  %v8989_v22 = vld [vmem:[#allocation119_spill] sm:$0xff] }
 0x170   :  { %v984_v59 = vmul.f32 %v952_v26, %v8964_v58  ;;  %v985_v29 = vmul.f32 %v953_v11, %v8965_v15  ;;  %v986_v34 = vmul.f32 %v954_v8, %v8966_v54  ;;  %v987_v7 = vmul.f32 %v955_v6, %v8967_v56 }
 0x171   :  { %v988_v37 = vmul.f32 %v956_v62, %v8968_v36  ;;  %v5578_v23 = vadd.f32 %v8987_v0, %v8986_v53  ;;  %v5582_v45 = vadd.f32 %v8987_v0, %v8988_v27  ;;  %v5586_v39 = vadd.f32 %v8987_v0, %v8989_v22 }
 0x172   :  { %v5589_v26 = vadd.f32 %v8987_v0, %v960_v4  ;;  %v5592_v11 = vadd.f32 %v8987_v0, %v961_v24  ;;  %v5595_v8 = vadd.f32 %v8987_v0, %v962_v30  ;;  %v5598_v53 = vadd.f32 %v8987_v0, %v963_v10 }
 0x173   :  { %v5601_v6 = vadd.f32 %v8987_v0, %v964_v52  ;;  %v5604_v62 = vadd.f32 %v8987_v0, %v965_v40  ;;  %v5607_v27 = vadd.f32 %v8987_v0, %v966_v49  ;;  %v5610_v4 = vadd.f32 %v8987_v0, %v967_v43  ;;  %v8990_v49 = vld [vmem:[#allocation82_spill] sm:$0xff] }
 0x174   :  { %v5613_v24 = vadd.f32 %v8987_v0, %v968_v48  ;;  %v5616_v30 = vadd.f32 %v8987_v0, %v969_v3  ;;  %v5619_v10 = vadd.f32 %v8987_v0, %v970_v28  ;;  %v5622_v52 = vadd.f32 %v8987_v0, %v971_v31 }
 0x175   :  { %v5625_v40 = vadd.f32 %v8987_v0, %v972_v17  ;;  %v5628_v22 = vadd.f32 %v8990_v49, %v973_v19  ;;  %v5631_v43 = vadd.f32 %v8990_v49, %v975_v47  ;;  %v5634_v48 = vadd.f32 %v8990_v49, %v976_v38  ;;  %v5696_v0 = vld [vmem:[%s8301_s1 + $0x18] sm:$0xff] }
 0x176   :  { %v5637_v3 = vadd.f32 %v8990_v49, %v977_v63  ;;  %v5640_v28 = vadd.f32 %v8990_v49, %v978_v50  ;;  %v5643_v31 = vadd.f32 %v8990_v49, %v979_v32  ;;  %v5646_v17 = vadd.f32 %v8990_v49, %v980_v13  ;;  %8995 = vst [vmem:[#allocation96_spill] sm:$0xff] %v5696_v0 }
 0x177   :  { %v5649_v19 = vadd.f32 %v8990_v49, %v981_v9  ;;  %v5652_v47 = vadd.f32 %v8990_v49, %v982_v61  ;;  %v5655_v38 = vadd.f32 %v8990_v49, %v983_v46  ;;  %v5658_v63 = vadd.f32 %v8990_v49, %v984_v59  ;;  %v5675_v46 = vld [vmem:[%s8301_s1] sm:$0xff]  ;;  %v8992_v61 = vld [vmem:[#allocation31_spill] sm:$0xff] }
 0x178   :  { %v5661_v50 = vadd.f32 %v8990_v49, %v985_v29  ;;  %v5664_v32 = vadd.f32 %v8990_v49, %v986_v34  ;;  %v5667_v13 = vadd.f32 %v8990_v49, %v987_v7  ;;  %v5670_v9 = vadd.f32 %v8990_v49, %v988_v37  ;;  %8991 = vst [vmem:[#allocation93_spill] sm:$0xff] %v5675_v46  ;;  %v5682_v29 = vld [vmem:[%s8301_s1 + $0x8] sm:$0xff]  ;;  %v5689_v7 = vld [vmem:[%s8301_s1 + $0x10] sm:$0xff] }
 0x179   :  { %v1032_v59 = vrot.slane %v5675_v46, %v8992_v61  ;;  %8993 = vst [vmem:[#allocation94_spill] sm:$0xff] %v5682_v29  ;;  %v1036_v34 = vrot.slane %v5682_v29, %v8992_v61  ;;  %8994 = vst [vmem:[#allocation95_spill] sm:$0xff] %v5689_v7  ;;  %v1040_v37 = vrot.slane %v5689_v7, %v8992_v61  ;;  %v5703_v29 = vld [vmem:[%s8301_s1 + $0x20] sm:$0xff]  ;;  %v5710_v7 = vld [vmem:[%s8301_s1 + $0x28] sm:$0xff] }
 0x17a   :  { %v1044_v49 = vrot.slane %v5696_v0, %v8992_v61  ;;  %8996 = vst [vmem:[#allocation97_spill] sm:$0xff] %v5703_v29  ;;  %v1048_v46 = vrot.slane %v5703_v29, %v8992_v61  ;;  %8997 = vst [vmem:[#allocation98_spill] sm:$0xff] %v5710_v7  ;;  %v1052_v20 = vrot.slane %v5710_v7, %v8992_v61  ;;  %v5717_v0 = vld [vmem:[%s8301_s1 + $0x30] sm:$0xff]  ;;  %v5724_v29 = vld [vmem:[%s8301_s1 + $0x38] sm:$0xff] }
 0x17b   :  { %8998 = vst [vmem:[#allocation139_spill] sm:$0xff] %v5717_v0  ;;  %v1056_v12 = vrot.slane %v5717_v0, %v8992_v61  ;;  %8999 = vst [vmem:[#allocation140_spill] sm:$0xff] %v5724_v29  ;;  %v1060_v51 = vrot.slane %v5724_v29, %v8992_v61  ;;  %v5731_v7 = vld [vmem:[%s8301_s1 + $0x40] sm:$0xff]  ;;  %v5738_v0 = vld [vmem:[%s8301_s1 + $0x48] sm:$0xff]  ;;  %v1093_v44 = vsub.f32 %v5578_v23, %v1032_v59 }
 0x17c   :  { %9000 = vst [vmem:[#allocation142_spill] sm:$0xff] %v5731_v7  ;;  %v1064_v36 = vrot.slane %v5731_v7, %v8992_v61  ;;  %9001 = vst [vmem:[#allocation143_spill] sm:$0xff] %v5738_v0  ;;  %v1068_v56 = vrot.slane %v5738_v0, %v8992_v61  ;;  %v5745_v29 = vld [vmem:[%s8301_s1 + $0x50] sm:$0xff]  ;;  %v5752_v7 = vld [vmem:[%s8301_s1 + $0x58] sm:$0xff]  ;;  %v1095_v60 = vsub.f32 %v5586_v39, %v1040_v37 }
 0x17d   :  { %9002 = vst [vmem:[#allocation144_spill] sm:$0xff] %v5745_v29  ;;  %v1072_v54 = vrot.slane %v5745_v29, %v8992_v61  ;;  %9003 = vst [vmem:[#allocation145_spill] sm:$0xff] %v5752_v7  ;;  %v1076_v15 = vrot.slane %v5752_v7, %v8992_v61  ;;  %v5759_v0 = vld [vmem:[%s8301_s1 + $0x60] sm:$0xff]  ;;  %v5766_v29 = vld [vmem:[%s8301_s1 + $0x68] sm:$0xff]  ;;  %v1096_v55 = vsub.f32 %v5589_v26, %v1044_v49 }
 0x17e   :  { %9004 = vst [vmem:[#allocation76_spill] sm:$0xff] %v5759_v0  ;;  %v1080_v58 = vrot.slane %v5759_v0, %v8992_v61  ;;  %9005 = vst [vmem:[#allocation51_spill] sm:$0xff] %v5766_v29  ;;  %v1084_v14 = vrot.slane %v5766_v29, %v8992_v61  ;;  %v5773_v7 = vld [vmem:[%s8301_s1 + $0x70] sm:$0xff]  ;;  %v5780_v0 = vld [vmem:[%s8301_s1 + $0x78] sm:$0xff]  ;;  %v1094_v29 = vsub.f32 %v5582_v45, %v1036_v34 }
 0x17f   :  { %9006 = vst [vmem:[#allocation52_spill] sm:$0xff] %v5773_v7  ;;  %v1088_v1 = vrot.slane %v5773_v7, %v8992_v61  ;;  %9007 = vst [vmem:[#allocation78_spill] sm:$0xff] %v5780_v0  ;;  %v1092_v25 = vrot.slane %v5780_v0, %v8992_v61  ;;  %v1097_v2 = vsub.f32 %v5592_v11, %v1048_v46  ;;  %v9008_v0 = vld [vmem:[#allocation77_spill] sm:$0xff] }
 0x180   :  { %v1098_v7 = vsub.f32 %v5595_v8, %v1052_v20  ;;  %v1099_v16 = vsub.f32 %v5598_v53, %v1056_v12  ;;  %v1100_v18 = vsub.f32 %v5601_v6, %v1060_v51  ;;  %v1101_v35 = vsub.f32 %v5604_v62, %v1064_v36 }
 0x181   :  { %v1102_v61 = vsub.f32 %v5607_v27, %v1068_v56  ;;  %v1103_v23 = vsub.f32 %v5610_v4, %v1072_v54  ;;  %v1104_v45 = vsub.f32 %v5613_v24, %v1076_v15  ;;  %v1105_v39 = vsub.f32 %v5616_v30, %v1080_v58 }
 0x182   :  { %v1106_v26 = vsub.f32 %v5619_v10, %v1084_v14  ;;  %v1107_v11 = vsub.f32 %v5622_v52, %v1088_v1  ;;  %v1108_v8 = vsub.f32 %v5625_v40, %v1092_v25  ;;  %v1109_v53 = vsub.f32 %v5628_v22, %v1032_v59 }
 0x183   :  { %v1110_v6 = vsub.f32 %v9008_v0, %v1036_v34  ;;  %v1111_v62 = vsub.f32 %v5631_v43, %v1040_v37  ;;  %v1112_v27 = vsub.f32 %v5634_v48, %v1044_v49  ;;  %v1113_v4 = vsub.f32 %v5637_v3, %v1048_v46 }
 0x184   :  { %v1114_v24 = vsub.f32 %v5640_v28, %v1052_v20  ;;  %v1115_v30 = vsub.f32 %v5643_v31, %v1056_v12  ;;  %v1116_v10 = vsub.f32 %v5646_v17, %v1060_v51  ;;  %v1117_v52 = vsub.f32 %v5649_v19, %v1064_v36 }
 0x185   :  { %v1118_v40 = vsub.f32 %v5652_v47, %v1068_v56  ;;  %v1119_v22 = vsub.f32 %v5655_v38, %v1072_v54  ;;  %v1120_v59 = vsub.f32 %v5658_v63, %v1076_v15  ;;  %v1121_v43 = vsub.f32 %v5661_v50, %v1080_v58 }
 0x186   :  { %v1122_v48 = vsub.f32 %v5664_v32, %v1084_v14  ;;  %v1123_v3 = vsub.f32 %v5667_v13, %v1088_v1  ;;  %v1124_v20 = vsub.f32 %v5670_v9, %v1092_v25  ;;  %v1125_v28 = vmul.f32 %v1093_v44, %v1093_v44 }
 0x187   :  { %v1126_v12 = vmul.f32 %v1094_v29, %v1094_v29  ;;  %v1127_v31 = vmul.f32 %v1095_v60, %v1095_v60  ;;  %v1128_v51 = vmul.f32 %v1096_v55, %v1096_v55  ;;  %v1129_v17 = vmul.f32 %v1097_v2, %v1097_v2 }
 0x188   :  { %v1130_v36 = vmul.f32 %v1098_v7, %v1098_v7  ;;  %v1131_v19 = vmul.f32 %v1099_v16, %v1099_v16  ;;  %v1132_v56 = vmul.f32 %v1100_v18, %v1100_v18  ;;  %v1133_v47 = vmul.f32 %v1101_v35, %v1101_v35 }
 0x189   :  { %v1134_v54 = vmul.f32 %v1102_v61, %v1102_v61  ;;  %v1135_v38 = vmul.f32 %v1103_v23, %v1103_v23  ;;  %v1136_v15 = vmul.f32 %v1104_v45, %v1104_v45  ;;  %v1137_v63 = vmul.f32 %v1105_v39, %v1105_v39  ;;  %v9015_v39 = vld [vmem:[#allocation136_spill] sm:$0xff] }
 0x18a   :  { %v1138_v58 = vmul.f32 %v1106_v26, %v1106_v26  ;;  %v1139_v50 = vmul.f32 %v1107_v11, %v1107_v11  ;;  %v1140_v14 = vmul.f32 %v1108_v8, %v1108_v8  ;;  %v1141_v32 = vmul.f32 %v1109_v53, %v1109_v53 }
 0x18b   :  { %v1142_v1 = vmul.f32 %v1110_v6, %v1110_v6  ;;  %v1143_v13 = vmul.f32 %v1111_v62, %v1111_v62  ;;  %v1144_v25 = vmul.f32 %v1112_v27, %v1112_v27  ;;  %v1145_v44 = vmul.f32 %v1113_v4, %v1113_v4  ;;  %v9029_v4 = vld [vmem:[#allocation107_spill] sm:$0xff] }
 0x18c   :  { %v1146_v9 = vmul.f32 %v1114_v24, %v1114_v24  ;;  %v1147_v60 = vmul.f32 %v1115_v30, %v1115_v30  ;;  %v1148_v55 = vmul.f32 %v1116_v10, %v1116_v10  ;;  %v1149_v2 = vmul.f32 %v1117_v52, %v1117_v52  ;;  %v9031_v30 = vld [vmem:[#allocation59_spill] sm:$0xff]  ;;  %v9033_v52 = vld [vmem:[#allocation66_spill] sm:$0xff] }
 0x18d   :  { %v1150_v46 = vmul.f32 %v1118_v40, %v1118_v40  ;;  %v1151_v16 = vmul.f32 %v1119_v22, %v1119_v22  ;;  %v1152_v18 = vmul.f32 %v1120_v59, %v1120_v59  ;;  %v1153_v35 = vmul.f32 %v1121_v43, %v1121_v43  ;;  %v9035_v22 = vld [vmem:[#allocation108_spill] sm:$0xff] }
 0x18e   :  { %v1154_v61 = vmul.f32 %v1122_v48, %v1122_v48  ;;  %v1155_v29 = vmul.f32 %v1123_v3, %v1123_v3  ;;  %v1156_v34 = vmul.f32 %v1124_v20, %v1124_v20  ;;  %v5817_v7 = vadd.f32 %v1125_v28, %v5390_v57  ;;  %v9017_v57 = vld [vmem:[#allocation101_spill] sm:$0xff]  ;;  %v9037_v43 = vld [vmem:[#allocation16_spill] sm:$0xff]  ;;  %v9039_v3 = vld [vmem:[#allocation110_spill] sm:$0xff] }
 0x18f   :  { %v5820_v37 = vadd.f32 %v1126_v12, %v5393_v21  ;;  %v5823_v0 = vadd.f32 %v1127_v31, %v5396_v42  ;;  %v5826_v49 = vadd.f32 %v1128_v51, %v5399_v33  ;;  %v5829_v23 = vadd.f32 %v1129_v17, %v5402_v41  ;;  %v9019_v21 = vld [vmem:[#allocation104_spill] sm:$0xff]  ;;  %v9021_v42 = vld [vmem:[#allocation13_spill] sm:$0xff]  ;;  %v9041_v28 = vld [vmem:[#allocation111_spill] sm:$0xff] }
 0x190   :  { %9009 = vst [vmem:[#allocation55_spill] sm:$0xff] %v5817_v7  ;;  %v5832_v45 = vadd.f32 %v1130_v36, %v5405_v5  ;;  %v5835_v26 = vadd.f32 %v1131_v19, %v9015_v39  ;;  %v5838_v11 = vadd.f32 %v1132_v56, %v9017_v57  ;;  %v5841_v8 = vadd.f32 %v1133_v47, %v9019_v21  ;;  %v9023_v33 = vld [vmem:[#allocation105_spill] sm:$0xff]  ;;  %v9027_v5 = vld [vmem:[#allocation106_spill] sm:$0xff]  ;;  %v9047_v19 = vld [vmem:[#allocation112_spill] sm:$0xff] }
 0x191   :  { %9010 = vst [vmem:[#allocation56_spill] sm:$0xff] %v5820_v37  ;;  %9011 = vst [vmem:[#allocation80_spill] sm:$0xff] %v5823_v0  ;;  %v5844_v53 = vadd.f32 %v1134_v54, %v9021_v42  ;;  %v5847_v6 = vadd.f32 %v1135_v38, %v9023_v33  ;;  %v9025_v41 = vld [vmem:[#allocation109_spill] sm:$0xff]  ;;  %v5853_v27 = vadd.f32 %v1137_v63, %v9027_v5  ;;  %v9045_v17 = vld [vmem:[#allocation86_spill] sm:$0xff] }
 0x192   :  { %9012 = vst [vmem:[#allocation57_spill] sm:$0xff] %v5826_v49  ;;  %9013 = vst [vmem:[#allocation147_spill] sm:$0xff] %v5829_v23  ;;  %v5850_v62 = vadd.f32 %v1136_v15, %v9025_v41  ;;  %v5856_v24 = vadd.f32 %v1138_v58, %v9029_v4  ;;  %v5859_v10 = vadd.f32 %v1139_v50, %v9031_v30  ;;  %v9043_v31 = vld [vmem:[#allocation85_spill] sm:$0xff]  ;;  %v9049_v47 = vld [vmem:[#allocation87_spill] sm:$0xff] }
 0x193   :  { %9014 = vst [vmem:[#allocation148_spill] sm:$0xff] %v5832_v45  ;;  %9016 = vst [vmem:[#allocation149_spill] sm:$0xff] %v5835_v26  ;;  %v5862_v40 = vadd.f32 %v1140_v14, %v9033_v52  ;;  %v5865_v59 = vadd.f32 %v1141_v32, %v9035_v22  ;;  %v5868_v48 = vadd.f32 %v1142_v1, %v9037_v43  ;;  %v9051_v38 = vld [vmem:[#allocation88_spill] sm:$0xff]  ;;  %v9053_v63 = vld [vmem:[#allocation89_spill] sm:$0xff] }
 0x194   :  { %9018 = vst [vmem:[#allocation150_spill] sm:$0xff] %v5838_v11  ;;  %9020 = vst [vmem:[#allocation151_spill] sm:$0xff] %v5841_v8  ;;  %v5871_v20 = vadd.f32 %v1143_v13, %v9039_v3  ;;  %v5874_v12 = vadd.f32 %v1144_v25, %v9041_v28  ;;  %v5877_v51 = vadd.f32 %v1145_v44, %v9043_v31  ;;  %v9055_v50 = vld [vmem:[#allocation90_spill] sm:$0xff]  ;;  %v9057_v32 = vld [vmem:[#allocation91_spill] sm:$0xff] }
 0x195   :  { %9022 = vst [vmem:[#allocation152_spill] sm:$0xff] %v5844_v53  ;;  %9024 = vst [vmem:[#allocation36_spill] sm:$0xff] %v5847_v6  ;;  %v5880_v36 = vadd.f32 %v1146_v9, %v9045_v17  ;;  %v5883_v56 = vadd.f32 %v1147_v60, %v9047_v19  ;;  %v5886_v54 = vadd.f32 %v1148_v55, %v9049_v47  ;;  %v9059_v13 = vld [vmem:[#allocation92_spill] sm:$0xff]  ;;  %v9061_v44 = vld [vmem:[#allocation70_spill] sm:$0xff] }
 0x196   :  { %9026 = vst [vmem:[#allocation141_spill] sm:$0xff] %v5850_v62  ;;  %9028 = vst [vmem:[#allocation113_spill] sm:$0xff] %v5853_v27  ;;  %v5889_v15 = vadd.f32 %v1149_v2, %v9051_v38  ;;  %v5892_v58 = vadd.f32 %v1150_v46, %v9053_v63  ;;  %v5895_v14 = vadd.f32 %v1151_v16, %v9055_v50  ;;  %v9063_v60 = vld [vmem:[#allocation71_spill] sm:$0xff]  ;;  %v9065_v2 = vld [vmem:[#allocation146_spill] sm:$0xff] }
 0x197   :  { %9030 = vst [vmem:[#allocation15_spill] sm:$0xff] %v5856_v24  ;;  %9032 = vst [vmem:[#allocation114_spill] sm:$0xff] %v5859_v10  ;;  %v5898_v1 = vadd.f32 %v1152_v18, %v9057_v32  ;;  %v5901_v25 = vadd.f32 %v1153_v35, %v9059_v13  ;;  %v5904_v9 = vadd.f32 %v1154_v61, %v9061_v44  ;;  %v9067_v46 = vld [vmem:[#allocation37_spill] sm:$0xff]  ;;  %v9068_v57 = vld [vmem:[#allocation48_spill] sm:$0xff] }
 0x198   :  { %9034 = vst [vmem:[#allocation60_spill] sm:$0xff] %v5862_v40  ;;  %9036 = vst [vmem:[#allocation83_spill] sm:$0xff] %v5865_v59  ;;  %v5907_v55 = vadd.f32 %v1155_v29, %v9063_v60  ;;  %v5910_v39 = vadd.f32 %v1156_v34, %v9065_v2  ;;  %v1208_v21 = vmul.f32 %v9068_v57, %v9067_v46  ;;  %v9069_v16 = vld [vmem:[#allocation38_spill] sm:$0xff]  ;;  %v9070_v18 = vld [vmem:[#allocation39_spill] sm:$0xff] }
 0x199   :  { %9038 = vst [vmem:[#allocation84_spill] sm:$0xff] %v5868_v48  ;;  %9040 = vst [vmem:[#allocation115_spill] sm:$0xff] %v5871_v20  ;;  %v1209_v42 = vmul.f32 %v9068_v57, %v9069_v16  ;;  %v1210_v33 = vmul.f32 %v9068_v57, %v9070_v18  ;;  %v9071_v35 = vld [vmem:[#allocation40_spill] sm:$0xff]  ;;  %v9072_v61 = vld [vmem:[#allocation41_spill] sm:$0xff] }
 0x19a   :  { %9042 = vst [vmem:[#allocation116_spill] sm:$0xff] %v5874_v12  ;;  %9044 = vst [vmem:[#allocation61_spill] sm:$0xff] %v5877_v51  ;;  %v1211_v41 = vmul.f32 %v9068_v57, %v9071_v35  ;;  %v1212_v5 = vmul.f32 %v9068_v57, %v9072_v61  ;;  %v9073_v29 = vld [vmem:[#allocation42_spill] sm:$0xff]  ;;  %v9074_v34 = vld [vmem:[#allocation43_spill] sm:$0xff] }
 0x19b   :  { %9046 = vst [vmem:[#allocation62_spill] sm:$0xff] %v5880_v36  ;;  %9048 = vst [vmem:[#allocation117_spill] sm:$0xff] %v5883_v56  ;;  %v1213_v4 = vmul.f32 %v9068_v57, %v9073_v29  ;;  %v1214_v30 = vmul.f32 %v9068_v57, %v9074_v34  ;;  %v9075_v52 = vld [vmem:[#allocation45_spill] sm:$0xff]  ;;  %v9076_v43 = vld [vmem:[#allocation46_spill] sm:$0xff] }
 0x19c   :  { %9050 = vst [vmem:[#allocation17_spill] sm:$0xff] %v5886_v54  ;;  %9052 = vst [vmem:[#allocation118_spill] sm:$0xff] %v5889_v15  ;;  %v1215_v22 = vmul.f32 %v9068_v57, %v9075_v52  ;;  %v1216_v3 = vmul.f32 %v9068_v57, %v9076_v43  ;;  %v9077_v28 = vld [vmem:[#allocation47_spill] sm:$0xff]  ;;  %v9078_v17 = vld [vmem:[#allocation34_spill] sm:$0xff] }
 0x19d   :  { %9054 = vst [vmem:[#allocation119_spill] sm:$0xff] %v5892_v58  ;;  %9056 = vst [vmem:[#allocation82_spill] sm:$0xff] %v5895_v14  ;;  %v1217_v31 = vmul.f32 %v9068_v57, %v9077_v28  ;;  %v9079_v19 = vld [vmem:[#allocation58_spill] sm:$0xff]  ;;  %v9080_v38 = vld [vmem:[#allocation35_spill] sm:$0xff] }
 0x19e   :  { %9058 = vst [vmem:[#allocation77_spill] sm:$0xff] %v5898_v1  ;;  %9060 = vst [vmem:[#allocation136_spill] sm:$0xff] %v5901_v25  ;;  %v1222_v47 = vmul.f32 %v9079_v19, %v9078_v17  ;;  %v1223_v63 = vmul.f32 %v9079_v19, %v9080_v38  ;;  %v1224_v50 = vmul.f32 %v9079_v19, %v9067_v46  ;;  %v9081_v25 = vld [vmem:[#allocation120_spill] sm:$0xff]  ;;  %v9082_v1 = vld [vmem:[#allocation19_spill] sm:$0xff] }
 0x19f   :  { %9062 = vst [vmem:[#allocation101_spill] sm:$0xff] %v5904_v9  ;;  %9064 = vst [vmem:[#allocation104_spill] sm:$0xff] %v5907_v55  ;;  %v1225_v32 = vmul.f32 %v9079_v19, %v9069_v16  ;;  %v1226_v13 = vmul.f32 %v9079_v19, %v9070_v18  ;;  %v1227_v44 = vmul.f32 %v9079_v19, %v9071_v35  ;;  %v9083_v58 = vld [vmem:[#allocation121_spill] sm:$0xff]  ;;  %v9084_v59 = vld [vmem:[#allocation20_spill] sm:$0xff] }
 0x1a0   :  { %9066 = vst [vmem:[#allocation13_spill] sm:$0xff] %v5910_v39  ;;  %v1228_v60 = vmul.f32 %v9079_v19, %v9072_v61  ;;  %v1229_v2 = vmul.f32 %v9079_v19, %v9073_v29  ;;  %v1230_v57 = vmul.f32 %v9079_v19, %v9074_v34  ;;  %v1231_v39 = vmul.f32 %v9079_v19, %v9075_v52  ;;  %v9089_v24 = vld [vmem:[#allocation123_spill] sm:$0xff] }
 0x1a1   :  { %v1232_v55 = vmul.f32 %v9079_v19, %v9076_v43  ;;  %v1233_v9 = vmul.f32 %v9079_v19, %v9077_v28  ;;  %v1246_v14 = vadd.f32 %v9082_v1, %v9081_v25  ;;  %v1247_v15 = vadd.f32 %v9082_v1, %v9083_v58  ;;  %v9090_v27 = vld [vmem:[#allocation75_spill] sm:$0xff] }
 0x1a2   :  { %v1248_v54 = vadd.f32 %v9082_v1, %v1208_v21  ;;  %v1249_v56 = vadd.f32 %v9082_v1, %v1209_v42  ;;  %v1250_v36 = vadd.f32 %v9082_v1, %v1210_v33  ;;  %v1251_v51 = vadd.f32 %v9082_v1, %v1211_v41  ;;  %v9085_v21 = vld [vmem:[#allocation69_spill] sm:$0xff]  ;;  %v9094_v53 = vld [vmem:[#allocation67_spill] sm:$0xff] }
 0x1a3   :  { %v1252_v12 = vadd.f32 %v9082_v1, %v1212_v5  ;;  %v1253_v20 = vadd.f32 %v9082_v1, %v1213_v4  ;;  %v1254_v19 = vadd.f32 %v9082_v1, %v1214_v30  ;;  %v1255_v48 = vadd.f32 %v9082_v1, %v1215_v22 }
 0x1a4   :  { %v1256_v25 = vadd.f32 %v9082_v1, %v1216_v3  ;;  %v1257_v58 = vadd.f32 %v9082_v1, %v1217_v31  ;;  %v1261_v40 = vadd.f32 %v9085_v21, %v9084_v59  ;;  %v1262_v42 = vadd.f32 %v9085_v21, %v1222_v47 }
 0x1a5   :  { %v1263_v33 = vadd.f32 %v9085_v21, %v1223_v63  ;;  %v1264_v41 = vadd.f32 %v9085_v21, %v1224_v50  ;;  %v1265_v5 = vadd.f32 %v9085_v21, %v1225_v32  ;;  %v1266_v4 = vadd.f32 %v9085_v21, %v1226_v13  ;;  %v9086_v63 = vld [vmem:[#allocation72_spill] sm:$0xff]  ;;  %v9087_v50 = vld [vmem:[#allocation122_spill] sm:$0xff] }
 0x1a6   :  { %v1267_v30 = vadd.f32 %v9085_v21, %v1227_v44  ;;  %v1268_v22 = vadd.f32 %v9085_v21, %v1228_v60  ;;  %v1269_v3 = vadd.f32 %v9085_v21, %v1229_v2  ;;  %v1270_v1 = vadd.f32 %v9085_v21, %v1230_v57  ;;  %v9088_v32 = vld [vmem:[#allocation74_spill] sm:$0xff]  ;;  %v9091_v44 = vld [vmem:[#allocation125_spill] sm:$0xff] }
 0x1a7   :  { %v1271_v59 = vadd.f32 %v9085_v21, %v1231_v39  ;;  %v1272_v31 = vadd.f32 %v9085_v21, %v1232_v55  ;;  %v1273_v47 = vadd.f32 %v9085_v21, %v1233_v9  ;;  %v1274_v10 = vmul.f32 %v9087_v50, %v9086_v63 }
 0x1a8   :  { %v1276_v13 = vmul.f32 %v9089_v24, %v9088_v32  ;;  %v1277_v62 = vmul.f32 %v9091_v44, %v9090_v27  ;;  %v1278_v60 = vmul.f32 %v1246_v14, %v9078_v17  ;;  %v1279_v2 = vmul.f32 %v1247_v15, %v9080_v38 }
 0x1a9   :  { %v1280_v57 = vmul.f32 %v1248_v54, %v9067_v46  ;;  %v1281_v39 = vmul.f32 %v1249_v56, %v9069_v16  ;;  %v1282_v55 = vmul.f32 %v1250_v36, %v9070_v18  ;;  %v1283_v9 = vmul.f32 %v1251_v51, %v9071_v35  ;;  %v9092_v54 = vld [vmem:[#allocation81_spill] sm:$0xff]  ;;  %v9095_v51 = vld [vmem:[#allocation68_spill] sm:$0xff] }
 0x1aa   :  { %v1284_v21 = vmul.f32 %v1252_v12, %v9072_v61  ;;  %v1285_v50 = vmul.f32 %v1253_v20, %v9073_v29  ;;  %v1286_v24 = vmul.f32 %v1254_v19, %v9074_v34  ;;  %v1287_v44 = vmul.f32 %v1255_v48, %v9075_v52  ;;  %v9093_v56 = vld [vmem:[#allocation73_spill] sm:$0xff] }
 0x1ab   :  { %v1288_v14 = vmul.f32 %v1256_v25, %v9076_v43  ;;  %v1289_v15 = vmul.f32 %v1257_v58, %v9077_v28  ;;  %v1290_v6 = vmul.f32 %v9092_v54, %v9086_v63  ;;  %v1291_v36 = vmul.f32 %v9094_v53, %v9093_v56  ;;  %v9096_v56 = vld [vmem:[#allocation23_spill] sm:$0xff] }
 0x1ac   :  { %v1292_v8 = vmul.f32 %v9095_v51, %v9088_v32  ;;  %v1293_v12 = vmul.f32 %v1261_v40, %v9090_v27  ;;  %v1294_v20 = vmul.f32 %v1262_v42, %v9078_v17  ;;  %v1295_v19 = vmul.f32 %v1263_v33, %v9080_v38  ;;  %v9097_v32 = vld [vmem:[#allocation127_spill] sm:$0xff] }
 0x1ad   :  { %v1296_v48 = vmul.f32 %v1264_v41, %v9067_v46  ;;  %v1297_v25 = vmul.f32 %v1265_v5, %v9069_v16  ;;  %v1298_v58 = vmul.f32 %v1266_v4, %v9070_v18  ;;  %v1299_v54 = vmul.f32 %v1267_v30, %v9071_v35  ;;  %v1312_v4 = vpop.permute.xlu1 %1311  ;;  %v9098_v18 = vld [vmem:[#allocation33_spill] sm:$0xff] }
 0x1ae   :  { %v1300_v63 = vmul.f32 %v1268_v22, %v9072_v61  ;;  %v1301_v53 = vmul.f32 %v1269_v3, %v9073_v29  ;;  %v1302_v51 = vmul.f32 %v1270_v1, %v9074_v34  ;;  %v1303_v40 = vmul.f32 %v1271_v59, %v9075_v52 }
 0x1af   :  { %v1304_v42 = vmul.f32 %v1272_v31, %v9076_v43  ;;  %v1305_v33 = vmul.f32 %v1273_v47, %v9077_v28  ;;  %v1314_v41 = vadd.f32 %v9096_v56, %v1274_v10  ;;  %v1315_v5 = vadd.f32 %v9096_v56, %v9097_v32 }
 0x1b0   :  { %v1316_v30 = vadd.f32 %v9096_v56, %v1276_v13  ;;  %v1317_v22 = vadd.f32 %v9096_v56, %v1277_v62  ;;  %v1318_v3 = vadd.f32 %v9096_v56, %v1278_v60  ;;  %v1319_v1 = vadd.f32 %v9096_v56, %v1279_v2 }
 0x1b1   :  { %v1320_v59 = vadd.f32 %v9096_v56, %v1280_v57  ;;  %v1321_v31 = vadd.f32 %v9096_v56, %v1281_v39  ;;  %v1322_v47 = vadd.f32 %v9096_v56, %v1282_v55  ;;  %v1323_v10 = vadd.f32 %v9096_v56, %v1283_v9 }
 0x1b2   :  { %v1324_v17 = vadd.f32 %v9096_v56, %v1284_v21  ;;  %v1325_v32 = vadd.f32 %v9096_v56, %v1285_v50  ;;  %v1326_v13 = vadd.f32 %v9096_v56, %v1286_v24  ;;  %v1327_v62 = vadd.f32 %v9096_v56, %v1287_v44 }
 0x1b3   :  { %v1328_v60 = vadd.f32 %v9096_v56, %v1288_v14  ;;  %v1329_v2 = vadd.f32 %v9096_v56, %v1289_v15  ;;  %v1330_v27 = vadd.f32 %v1312_v4, %v1290_v6  ;;  %v1331_v57 = vadd.f32 %v1312_v4, %v1291_v36  ;;  %v9099_v14 = vld [vmem:[#allocation93_spill] sm:$0xff]  ;;  %v9100_v6 = vld [vmem:[#allocation94_spill] sm:$0xff]  ;;  %v9102_v36 = vld [vmem:[#allocation96_spill] sm:$0xff] }
 0x1b4   :  { %v1332_v28 = vadd.f32 %v1312_v4, %v1292_v8  ;;  %v1333_v39 = vadd.f32 %v1312_v4, %v1293_v12  ;;  %v1334_v43 = vadd.f32 %v1312_v4, %v1294_v20  ;;  %v1335_v55 = vadd.f32 %v1312_v4, %v1295_v19  ;;  %v9101_v8 = vld [vmem:[#allocation95_spill] sm:$0xff]  ;;  %v9103_v20 = vld [vmem:[#allocation97_spill] sm:$0xff]  ;;  %v9104_v19 = vld [vmem:[#allocation98_spill] sm:$0xff] }
 0x1b5   :  { %v1336_v52 = vadd.f32 %v1312_v4, %v1296_v48  ;;  %v1337_v9 = vadd.f32 %v1312_v4, %v1297_v25  ;;  %v1338_v34 = vadd.f32 %v1312_v4, %v1298_v58  ;;  %v1339_v21 = vadd.f32 %v1312_v4, %v1299_v54  ;;  %v9105_v25 = vld [vmem:[#allocation139_spill] sm:$0xff]  ;;  %v9106_v54 = vld [vmem:[#allocation140_spill] sm:$0xff] }
 0x1b6   :  { %v1340_v29 = vadd.f32 %v1312_v4, %v1300_v63  ;;  %v1341_v50 = vadd.f32 %v1312_v4, %v1301_v53  ;;  %v1342_v61 = vadd.f32 %v1312_v4, %v1302_v51  ;;  %v1343_v24 = vadd.f32 %v1312_v4, %v1303_v40  ;;  %v9107_v51 = vld [vmem:[#allocation142_spill] sm:$0xff] }
 0x1b7   :  { %v1344_v35 = vadd.f32 %v1312_v4, %v1304_v42  ;;  %v1345_v44 = vadd.f32 %v1312_v4, %v1305_v33  ;;  %v1349_v16 = vrot.slane %v9099_v14, %v9098_v18  ;;  %v1353_v15 = vrot.slane %v9100_v6, %v9098_v18  ;;  %v9108_v42 = vld [vmem:[#allocation143_spill] sm:$0xff]  ;;  %v9109_v4 = vld [vmem:[#allocation144_spill] sm:$0xff] }
 0x1b8   :  { %v1357_v56 = vrot.slane %v9101_v8, %v9098_v18  ;;  %v1361_v12 = vrot.slane %v9102_v36, %v9098_v18  ;;  %v1365_v63 = vrot.slane %v9103_v20, %v9098_v18  ;;  %v1369_v48 = vrot.slane %v9104_v19, %v9098_v18  ;;  %v9110_v20 = vld [vmem:[#allocation145_spill] sm:$0xff]  ;;  %v9111_v19 = vld [vmem:[#allocation76_spill] sm:$0xff] }
 0x1b9   :  { %v1373_v58 = vrot.slane %v9105_v25, %v9098_v18  ;;  %v1377_v53 = vrot.slane %v9106_v54, %v9098_v18  ;;  %v1381_v40 = vrot.slane %v9107_v51, %v9098_v18  ;;  %v1385_v33 = vrot.slane %v9108_v42, %v9098_v18  ;;  %v9112_v25 = vld [vmem:[#allocation51_spill] sm:$0xff]  ;;  %v9113_v54 = vld [vmem:[#allocation52_spill] sm:$0xff]  ;;  %v9114_v51 = vld [vmem:[#allocation78_spill] sm:$0xff] }
 0x1ba   :  { %v1389_v36 = vrot.slane %v9109_v4, %v9098_v18  ;;  %v1393_v8 = vrot.slane %v9110_v20, %v9098_v18  ;;  %v1397_v6 = vrot.slane %v9111_v19, %v9098_v18  ;;  %v1401_v14 = vrot.slane %v9112_v25, %v9098_v18 }
 0x1bb   :  { %v1405_v46 = vrot.slane %v9113_v54, %v9098_v18  ;;  %v1409_v38 = vrot.slane %v9114_v51, %v9098_v18  ;;  %v1410_v11 = vsub.f32 %v1314_v41, %v1349_v16  ;;  %v1411_v42 = vsub.f32 %v1315_v5, %v1353_v15 }
 0x1bc   :  { %v1412_v26 = vsub.f32 %v1316_v30, %v1357_v56  ;;  %v1413_v45 = vsub.f32 %v1317_v22, %v1361_v12  ;;  %v1414_v4 = vsub.f32 %v1318_v3, %v1365_v63  ;;  %v1415_v23 = vsub.f32 %v1319_v1, %v1369_v48 }
 0x1bd   :  { %v1416_v49 = vsub.f32 %v1320_v59, %v1373_v58  ;;  %v1417_v20 = vsub.f32 %v1321_v31, %v1377_v53  ;;  %v1418_v0 = vsub.f32 %v1322_v47, %v1381_v40  ;;  %v1419_v37 = vsub.f32 %v1323_v10, %v1385_v33 }
 0x1be   :  { %v1420_v19 = vsub.f32 %v1324_v17, %v1389_v36  ;;  %v1421_v7 = vsub.f32 %v1325_v32, %v1393_v8  ;;  %v1422_v25 = vsub.f32 %v1326_v13, %v1397_v6  ;;  %v1423_v54 = vsub.f32 %v1327_v62, %v1401_v14 }
 0x1bf   :  { %v1424_v18 = vsub.f32 %v1328_v60, %v1405_v46  ;;  %v1425_v51 = vsub.f32 %v1329_v2, %v1409_v38  ;;  %v1426_v41 = vsub.f32 %v1330_v27, %v1349_v16  ;;  %v1427_v5 = vsub.f32 %v1331_v57, %v1353_v15 }
 0x1c0   :  { %v1428_v30 = vsub.f32 %v1332_v28, %v1357_v56  ;;  %v1429_v22 = vsub.f32 %v1333_v39, %v1361_v12  ;;  %v1430_v3 = vsub.f32 %v1334_v43, %v1365_v63  ;;  %v1431_v1 = vsub.f32 %v1335_v55, %v1369_v48  ;;  %v9119_v63 = vld [vmem:[#allocation80_spill] sm:$0xff]  ;;  %v9121_v48 = vld [vmem:[#allocation57_spill] sm:$0xff] }
 0x1c1   :  { %v1432_v59 = vsub.f32 %v1336_v52, %v1373_v58  ;;  %v1433_v31 = vsub.f32 %v1337_v9, %v1377_v53  ;;  %v1434_v47 = vsub.f32 %v1338_v34, %v1381_v40  ;;  %v1435_v10 = vsub.f32 %v1339_v21, %v1385_v33  ;;  %v9123_v58 = vld [vmem:[#allocation147_spill] sm:$0xff]  ;;  %v9125_v53 = vld [vmem:[#allocation148_spill] sm:$0xff]  ;;  %v9127_v40 = vld [vmem:[#allocation149_spill] sm:$0xff] }
 0x1c2   :  { %v1436_v17 = vsub.f32 %v1340_v29, %v1389_v36  ;;  %v1437_v32 = vsub.f32 %v1341_v50, %v1393_v8  ;;  %v1438_v13 = vsub.f32 %v1342_v61, %v1397_v6  ;;  %v1439_v62 = vsub.f32 %v1343_v24, %v1401_v14  ;;  %v9115_v8 = vld [vmem:[#allocation55_spill] sm:$0xff]  ;;  %v9129_v33 = vld [vmem:[#allocation150_spill] sm:$0xff] }
 0x1c3   :  { %v1440_v60 = vsub.f32 %v1344_v35, %v1405_v46  ;;  %v1441_v2 = vsub.f32 %v1345_v44, %v1409_v38  ;;  %v1442_v16 = vmul.f32 %v1410_v11, %v1410_v11  ;;  %v1443_v27 = vmul.f32 %v1411_v42, %v1411_v42 }
 0x1c4   :  { %v1444_v15 = vmul.f32 %v1412_v26, %v1412_v26  ;;  %v1445_v57 = vmul.f32 %v1413_v45, %v1413_v45  ;;  %v1446_v28 = vmul.f32 %v1414_v4, %v1414_v4  ;;  %v1447_v56 = vmul.f32 %v1415_v23, %v1415_v23 }
 0x1c5   :  { %v1448_v12 = vmul.f32 %v1416_v49, %v1416_v49  ;;  %v1449_v39 = vmul.f32 %v1417_v20, %v1417_v20  ;;  %v1450_v43 = vmul.f32 %v1418_v0, %v1418_v0  ;;  %v1451_v55 = vmul.f32 %v1419_v37, %v1419_v37 }
 0x1c6   :  { %v1452_v52 = vmul.f32 %v1420_v19, %v1420_v19  ;;  %v1453_v9 = vmul.f32 %v1421_v7, %v1421_v7  ;;  %v1454_v34 = vmul.f32 %v1422_v25, %v1422_v25  ;;  %v1455_v21 = vmul.f32 %v1423_v54, %v1423_v54 }
 0x1c7   :  { %v1456_v29 = vmul.f32 %v1424_v18, %v1424_v18  ;;  %v1457_v50 = vmul.f32 %v1425_v51, %v1425_v51  ;;  %v1458_v61 = vmul.f32 %v1426_v41, %v1426_v41  ;;  %v1459_v24 = vmul.f32 %v1427_v5, %v1427_v5  ;;  %v9117_v18 = vld [vmem:[#allocation56_spill] sm:$0xff]  ;;  %v9131_v41 = vld [vmem:[#allocation151_spill] sm:$0xff] }
 0x1c8   :  { %v1460_v46 = vmul.f32 %v1428_v30, %v1428_v30  ;;  %v1461_v35 = vmul.f32 %v1429_v22, %v1429_v22  ;;  %v1462_v11 = vmul.f32 %v1430_v3, %v1430_v3  ;;  %v1463_v38 = vmul.f32 %v1431_v1, %v1431_v1  ;;  %v9133_v30 = vld [vmem:[#allocation152_spill] sm:$0xff] }
 0x1c9   :  { %v1464_v26 = vmul.f32 %v1432_v59, %v1432_v59  ;;  %v1465_v45 = vmul.f32 %v1433_v31, %v1433_v31  ;;  %v1466_v44 = vmul.f32 %v1434_v47, %v1434_v47  ;;  %v1467_v23 = vmul.f32 %v1435_v10, %v1435_v10  ;;  %v9135_v3 = vld [vmem:[#allocation36_spill] sm:$0xff]  ;;  %v9137_v59 = vld [vmem:[#allocation141_spill] sm:$0xff] }
 0x1ca   :  { %v1468_v49 = vmul.f32 %v1436_v17, %v1436_v17  ;;  %v1469_v14 = vmul.f32 %v1437_v32, %v1437_v32  ;;  %v1470_v0 = vmul.f32 %v1438_v13, %v1438_v13  ;;  %v1471_v37 = vmul.f32 %v1439_v62, %v1439_v62  ;;  %v9139_v47 = vld [vmem:[#allocation113_spill] sm:$0xff]  ;;  %v9141_v17 = vld [vmem:[#allocation15_spill] sm:$0xff]  ;;  %v9143_v13 = vld [vmem:[#allocation114_spill] sm:$0xff] }
 0x1cb   :  { %v1472_v6 = vmul.f32 %v1440_v60, %v1440_v60  ;;  %v1473_v7 = vmul.f32 %v1441_v2, %v1441_v2  ;;  %v6071_v36 = vadd.f32 %v1442_v16, %v9115_v8  ;;  %v6074_v20 = vadd.f32 %v1443_v27, %v9117_v18  ;;  %v9145_v60 = vld [vmem:[#allocation60_spill] sm:$0xff]  ;;  %v9147_v16 = vld [vmem:[#allocation83_spill] sm:$0xff] }
 0x1cc   :  { %v6077_v19 = vadd.f32 %v1444_v15, %v9119_v63  ;;  %v6080_v25 = vadd.f32 %v1445_v57, %v9121_v48  ;;  %v6083_v54 = vadd.f32 %v1446_v28, %v9123_v58  ;;  %v6086_v51 = vadd.f32 %v1447_v56, %v9125_v53  ;;  %v9149_v15 = vld [vmem:[#allocation84_spill] sm:$0xff]  ;;  %v9151_v28 = vld [vmem:[#allocation115_spill] sm:$0xff] }
 0x1cd   :  { %9116 = vst [vmem:[#allocation105_spill] sm:$0xff] %v6071_v36  ;;  %9118 = vst [vmem:[#allocation109_spill] sm:$0xff] %v6074_v20  ;;  %v6089_v42 = vadd.f32 %v1448_v12, %v9127_v40  ;;  %v6092_v4 = vadd.f32 %v1449_v39, %v9129_v33  ;;  %v6095_v5 = vadd.f32 %v1450_v43, %v9131_v41  ;;  %v9153_v12 = vld [vmem:[#allocation116_spill] sm:$0xff]  ;;  %v9155_v43 = vld [vmem:[#allocation61_spill] sm:$0xff] }
 0x1ce   :  { %9120 = vst [vmem:[#allocation106_spill] sm:$0xff] %v6077_v19  ;;  %9122 = vst [vmem:[#allocation107_spill] sm:$0xff] %v6080_v25  ;;  %v6098_v22 = vadd.f32 %v1451_v55, %v9133_v30  ;;  %v6101_v1 = vadd.f32 %v1452_v52, %v9135_v3  ;;  %v6104_v31 = vadd.f32 %v1453_v9, %v9137_v59  ;;  %v9157_v52 = vld [vmem:[#allocation62_spill] sm:$0xff]  ;;  %v9180_v33 = vld [vmem:[#allocation21_spill] sm:$0xff] }
 0x1cf   :  { %9124 = vst [vmem:[#allocation59_spill] sm:$0xff] %v6083_v54  ;;  %9126 = vst [vmem:[#allocation66_spill] sm:$0xff] %v6086_v51  ;;  %v6107_v10 = vadd.f32 %v1454_v34, %v9139_v47  ;;  %v6110_v32 = vadd.f32 %v1455_v21, %v9141_v17  ;;  %v6113_v62 = vadd.f32 %v1456_v29, %v9143_v13  ;;  %v9159_v34 = vld [vmem:[#allocation117_spill] sm:$0xff] }
 0x1d0   :  { %9128 = vst [vmem:[#allocation108_spill] sm:$0xff] %v6089_v42  ;;  %9130 = vst [vmem:[#allocation16_spill] sm:$0xff] %v6092_v4  ;;  %v6116_v2 = vadd.f32 %v1457_v50, %v9145_v60  ;;  %v6119_v27 = vadd.f32 %v1458_v61, %v9147_v16  ;;  %v6122_v57 = vadd.f32 %v1459_v24, %v9149_v15  ;;  %v9161_v29 = vld [vmem:[#allocation17_spill] sm:$0xff]  ;;  %v9163_v61 = vld [vmem:[#allocation118_spill] sm:$0xff] }
 0x1d1   :  { %9132 = vst [vmem:[#allocation110_spill] sm:$0xff] %v6095_v5  ;;  %9134 = vst [vmem:[#allocation111_spill] sm:$0xff] %v6098_v22  ;;  %v6125_v56 = vadd.f32 %v1460_v46, %v9151_v28  ;;  %v6128_v39 = vadd.f32 %v1461_v35, %v9153_v12  ;;  %v6131_v55 = vadd.f32 %v1462_v11, %v9155_v43  ;;  %v9165_v46 = vld [vmem:[#allocation119_spill] sm:$0xff]  ;;  %v9167_v35 = vld [vmem:[#allocation82_spill] sm:$0xff] }
 0x1d2   :  { %9136 = vst [vmem:[#allocation85_spill] sm:$0xff] %v6101_v1  ;;  %9138 = vst [vmem:[#allocation86_spill] sm:$0xff] %v6104_v31  ;;  %v6134_v9 = vadd.f32 %v1463_v38, %v9157_v52  ;;  %v6137_v21 = vadd.f32 %v1464_v26, %v9159_v34  ;;  %v6140_v50 = vadd.f32 %v1465_v45, %v9161_v29  ;;  %v9169_v11 = vld [vmem:[#allocation77_spill] sm:$0xff]  ;;  %v9171_v38 = vld [vmem:[#allocation136_spill] sm:$0xff] }
 0x1d3   :  { %9140 = vst [vmem:[#allocation112_spill] sm:$0xff] %v6107_v10  ;;  %9142 = vst [vmem:[#allocation87_spill] sm:$0xff] %v6110_v32  ;;  %v6143_v24 = vadd.f32 %v1466_v44, %v9163_v61  ;;  %v6146_v8 = vadd.f32 %v1467_v23, %v9165_v46  ;;  %v6149_v18 = vadd.f32 %v1468_v49, %v9167_v35  ;;  %v9173_v26 = vld [vmem:[#allocation101_spill] sm:$0xff]  ;;  %v9175_v45 = vld [vmem:[#allocation104_spill] sm:$0xff] }
 0x1d4   :  { %9144 = vst [vmem:[#allocation88_spill] sm:$0xff] %v6113_v62  ;;  %9146 = vst [vmem:[#allocation89_spill] sm:$0xff] %v6116_v2  ;;  %v6152_v63 = vadd.f32 %v1469_v14, %v9169_v11  ;;  %v6155_v48 = vadd.f32 %v1470_v0, %v9171_v38  ;;  %v6158_v58 = vadd.f32 %v1471_v37, %v9173_v26  ;;  %v9177_v44 = vld [vmem:[#allocation13_spill] sm:$0xff]  ;;  %v9179_v23 = vld [vmem:[#allocation35_spill] sm:$0xff] }
 0x1d5   :  { %9148 = vst [vmem:[#allocation90_spill] sm:$0xff] %v6119_v27  ;;  %9150 = vst [vmem:[#allocation91_spill] sm:$0xff] %v6122_v57  ;;  %v6161_v53 = vadd.f32 %v1472_v6, %v9175_v45  ;;  %v6164_v40 = vadd.f32 %v1473_v7, %v9177_v44  ;;  %v1524_v41 = vmul.f32 %v9180_v33, %v9179_v23  ;;  %v9181_v49 = vld [vmem:[#allocation37_spill] sm:$0xff]  ;;  %v9182_v14 = vld [vmem:[#allocation38_spill] sm:$0xff] }
 0x1d6   :  { %9152 = vst [vmem:[#allocation92_spill] sm:$0xff] %v6125_v56  ;;  %9154 = vst [vmem:[#allocation70_spill] sm:$0xff] %v6128_v39  ;;  %v1525_v30 = vmul.f32 %v9180_v33, %v9181_v49  ;;  %v1526_v3 = vmul.f32 %v9180_v33, %v9182_v14  ;;  %v9183_v0 = vld [vmem:[#allocation39_spill] sm:$0xff]  ;;  %v9184_v37 = vld [vmem:[#allocation40_spill] sm:$0xff] }
 0x1d7   :  { %9156 = vst [vmem:[#allocation71_spill] sm:$0xff] %v6131_v55  ;;  %9158 = vst [vmem:[#allocation146_spill] sm:$0xff] %v6134_v9  ;;  %v1527_v59 = vmul.f32 %v9180_v33, %v9183_v0  ;;  %v1528_v47 = vmul.f32 %v9180_v33, %v9184_v37  ;;  %v9185_v6 = vld [vmem:[#allocation41_spill] sm:$0xff]  ;;  %v9186_v7 = vld [vmem:[#allocation42_spill] sm:$0xff] }
 0x1d8   :  { %9160 = vst [vmem:[#allocation48_spill] sm:$0xff] %v6137_v21  ;;  %9162 = vst [vmem:[#allocation58_spill] sm:$0xff] %v6140_v50  ;;  %v1529_v17 = vmul.f32 %v9180_v33, %v9185_v6  ;;  %v1530_v13 = vmul.f32 %v9180_v33, %v9186_v7  ;;  %v9187_v60 = vld [vmem:[#allocation43_spill] sm:$0xff]  ;;  %v9188_v15 = vld [vmem:[#allocation45_spill] sm:$0xff] }
 0x1d9   :  { %9164 = vst [vmem:[#allocation120_spill] sm:$0xff] %v6143_v24  ;;  %9166 = vst [vmem:[#allocation19_spill] sm:$0xff] %v6146_v8  ;;  %v1531_v16 = vmul.f32 %v9180_v33, %v9187_v60  ;;  %v1532_v28 = vmul.f32 %v9180_v33, %v9188_v15  ;;  %v9189_v12 = vld [vmem:[#allocation46_spill] sm:$0xff]  ;;  %v9190_v52 = vld [vmem:[#allocation47_spill] sm:$0xff] }
 0x1da   :  { %9168 = vst [vmem:[#allocation121_spill] sm:$0xff] %v6149_v18  ;;  %9170 = vst [vmem:[#allocation20_spill] sm:$0xff] %v6152_v63  ;;  %v1533_v43 = vmul.f32 %v9180_v33, %v9189_v12  ;;  %v1534_v34 = vmul.f32 %v9180_v33, %v9190_v52  ;;  %v9191_v29 = vld [vmem:[#allocation75_spill] sm:$0xff]  ;;  %v9193_v35 = vld [vmem:[#allocation34_spill] sm:$0xff] }
 0x1db   :  { %9172 = vst [vmem:[#allocation69_spill] sm:$0xff] %v6155_v48  ;;  %9174 = vst [vmem:[#allocation122_spill] sm:$0xff] %v6158_v58  ;;  %v9192_v61 = vld [vmem:[#allocation63_spill] sm:$0xff]  ;;  %v9195_v24 = vld [vmem:[#allocation22_spill] sm:$0xff] }
 0x1dc   :  { %9176 = vst [vmem:[#allocation123_spill] sm:$0xff] %v6161_v53  ;;  %9178 = vst [vmem:[#allocation125_spill] sm:$0xff] %v6164_v40  ;;  %v1538_v46 = vmul.f32 %v9192_v61, %v9191_v29  ;;  %v1539_v11 = vmul.f32 %v9192_v61, %v9193_v35  ;;  %v1540_v38 = vmul.f32 %v9192_v61, %v9179_v23  ;;  %v9194_v8 = vld [vmem:[#allocation99_spill] sm:$0xff]  ;;  %v9199_v10 = vld [vmem:[#allocation72_spill] sm:$0xff] }
 0x1dd   :  { %v1541_v26 = vmul.f32 %v9192_v61, %v9181_v49  ;;  %v1542_v45 = vmul.f32 %v9192_v61, %v9182_v14  ;;  %v1543_v44 = vmul.f32 %v9192_v61, %v9183_v0  ;;  %v1544_v33 = vmul.f32 %v9192_v61, %v9184_v37  ;;  %v9196_v62 = vld [vmem:[#allocation135_spill] sm:$0xff]  ;;  %v9202_v1 = vld [vmem:[#allocation102_spill] sm:$0xff]  ;;  %v9205_v5 = vld [vmem:[#allocation73_spill] sm:$0xff] }
 0x1de   :  { %v1545_v40 = vmul.f32 %v9192_v61, %v9185_v6  ;;  %v1546_v53 = vmul.f32 %v9192_v61, %v9186_v7  ;;  %v1547_v58 = vmul.f32 %v9192_v61, %v9187_v60  ;;  %v1548_v48 = vmul.f32 %v9192_v61, %v9188_v15 }
 0x1df   :  { %v1549_v63 = vmul.f32 %v9192_v61, %v9189_v12  ;;  %v1550_v18 = vmul.f32 %v9192_v61, %v9190_v52  ;;  %v1563_v50 = vadd.f32 %v9195_v24, %v9194_v8  ;;  %v1564_v21 = vadd.f32 %v9195_v24, %v1524_v41 }
 0x1e0   :  { %v1565_v9 = vadd.f32 %v9195_v24, %v1525_v30  ;;  %v1566_v55 = vadd.f32 %v9195_v24, %v1526_v3  ;;  %v1567_v39 = vadd.f32 %v9195_v24, %v1527_v59  ;;  %v1568_v56 = vadd.f32 %v9195_v24, %v1528_v47  ;;  %v9197_v30 = vld [vmem:[#allocation79_spill] sm:$0xff]  ;;  %v9198_v3 = vld [vmem:[#allocation137_spill] sm:$0xff] }
 0x1e1   :  { %v1569_v57 = vadd.f32 %v9195_v24, %v1529_v17  ;;  %v1570_v27 = vadd.f32 %v9195_v24, %v1530_v13  ;;  %v1571_v2 = vadd.f32 %v9195_v24, %v1531_v16  ;;  %v1572_v61 = vadd.f32 %v9195_v24, %v1532_v28 }
 0x1e2   :  { %v1573_v8 = vadd.f32 %v9195_v24, %v1533_v43  ;;  %v1574_v41 = vadd.f32 %v9195_v24, %v1534_v34  ;;  %v1575_v32 = vadd.f32 %v9197_v30, %v9196_v62  ;;  %v1577_v59 = vadd.f32 %v9197_v30, %v9198_v3 }
 0x1e3   :  { %v1578_v47 = vadd.f32 %v9197_v30, %v1538_v46  ;;  %v1579_v17 = vadd.f32 %v9197_v30, %v1539_v11  ;;  %v1580_v13 = vadd.f32 %v9197_v30, %v1540_v38  ;;  %v1581_v16 = vadd.f32 %v9197_v30, %v1541_v26  ;;  %v9200_v26 = vld [vmem:[#allocation100_spill] sm:$0xff] }
 0x1e4   :  { %v1582_v28 = vadd.f32 %v9197_v30, %v1542_v45  ;;  %v1583_v43 = vadd.f32 %v9197_v30, %v1543_v44  ;;  %v1584_v24 = vadd.f32 %v9197_v30, %v1544_v33  ;;  %v1585_v34 = vadd.f32 %v9197_v30, %v1545_v40  ;;  %v9201_v45 = vld [vmem:[#allocation74_spill] sm:$0xff]  ;;  %v9203_v33 = vld [vmem:[#allocation103_spill] sm:$0xff] }
 0x1e5   :  { %v1586_v62 = vadd.f32 %v9197_v30, %v1546_v53  ;;  %v1587_v3 = vadd.f32 %v9197_v30, %v1547_v58  ;;  %v1588_v46 = vadd.f32 %v9197_v30, %v1548_v48  ;;  %v1589_v11 = vadd.f32 %v9197_v30, %v1549_v63  ;;  %v6254_v63 = vpop.permute.xlu1 %2150 }
 0x1e6   :  { %v1590_v38 = vadd.f32 %v9197_v30, %v1550_v18  ;;  %v1591_v31 = vmul.f32 %v9200_v26, %v9199_v10  ;;  %v1593_v44 = vmul.f32 %v9202_v1, %v9201_v45  ;;  %v1594_v22 = vmul.f32 %v9203_v33, %v9191_v29  ;;  %9204 = vst [vmem:[#allocation81_spill] sm:$0xff] %v6254_v63  ;;  %v9206_v63 = vld [vmem:[#allocation24_spill] sm:$0xff] }
 0x1e7   :  { %v1595_v40 = vmul.f32 %v1563_v50, %v9193_v35  ;;  %v1596_v53 = vmul.f32 %v1564_v21, %v9179_v23  ;;  %v1597_v58 = vmul.f32 %v1565_v9, %v9181_v49  ;;  %v1598_v48 = vmul.f32 %v1566_v55, %v9182_v14 }
 0x1e8   :  { %v1599_v18 = vmul.f32 %v1567_v39, %v9183_v0  ;;  %v1600_v30 = vmul.f32 %v1568_v56, %v9184_v37  ;;  %v1601_v26 = vmul.f32 %v1569_v57, %v9185_v6  ;;  %v1602_v1 = vmul.f32 %v1570_v27, %v9186_v7 }
 0x1e9   :  { %v1603_v33 = vmul.f32 %v1571_v2, %v9187_v60  ;;  %v1604_v50 = vmul.f32 %v1572_v61, %v9188_v15  ;;  %v1605_v21 = vmul.f32 %v1573_v8, %v9189_v12  ;;  %v1606_v9 = vmul.f32 %v1574_v41, %v9190_v52 }
 0x1ea   :  { %v1607_v55 = vmul.f32 %v1575_v32, %v9199_v10  ;;  %v1608_v4 = vmul.f32 %v9206_v63, %v9205_v5  ;;  %v1609_v39 = vmul.f32 %v1577_v59, %v9201_v45  ;;  %v1610_v56 = vmul.f32 %v1578_v47, %v9191_v29  ;;  %v1629_v5 = vpop.permute.xlu1 %1628 }
 0x1eb   :  { %v1611_v57 = vmul.f32 %v1579_v17, %v9193_v35  ;;  %v1612_v27 = vmul.f32 %v1580_v13, %v9179_v23  ;;  %v1613_v2 = vmul.f32 %v1581_v16, %v9181_v49  ;;  %v1614_v61 = vmul.f32 %v1582_v28, %v9182_v14  ;;  %v9207_v16 = vld [vmem:[#allocation44_spill] sm:$0xff] }
 0x1ec   :  { %v1615_v8 = vmul.f32 %v1583_v43, %v9183_v0  ;;  %v1616_v41 = vmul.f32 %v1584_v24, %v9184_v37  ;;  %v1617_v32 = vmul.f32 %v1585_v34, %v9185_v6  ;;  %v1618_v63 = vmul.f32 %v1586_v62, %v9186_v7  ;;  %v9208_v37 = vld [vmem:[#allocation25_spill] sm:$0xff] }
 0x1ed   :  { %v1619_v59 = vmul.f32 %v1587_v3, %v9187_v60  ;;  %v1620_v47 = vmul.f32 %v1588_v46, %v9188_v15  ;;  %v1621_v17 = vmul.f32 %v1589_v11, %v9189_v12  ;;  %v1622_v13 = vmul.f32 %v1590_v38, %v9190_v52 }
 0x1ee   :  { %v1631_v29 = vadd.f32 %v9207_v16, %v1591_v31  ;;  %v1633_v28 = vadd.f32 %v9207_v16, %v1593_v44  ;;  %v1634_v43 = vadd.f32 %v9207_v16, %v1594_v22  ;;  %v1635_v24 = vadd.f32 %v9207_v16, %v1595_v40 }
 0x1ef   :  { %v1636_v34 = vadd.f32 %v9207_v16, %v1596_v53  ;;  %v1637_v62 = vadd.f32 %v9207_v16, %v1597_v58  ;;  %v1638_v3 = vadd.f32 %v9207_v16, %v1598_v48  ;;  %v1639_v46 = vadd.f32 %v9207_v16, %v1599_v18 }
 0x1f0   :  { %v1640_v11 = vadd.f32 %v9207_v16, %v1600_v30  ;;  %v1641_v38 = vadd.f32 %v9207_v16, %v1601_v26  ;;  %v1642_v31 = vadd.f32 %v9207_v16, %v1602_v1  ;;  %v1643_v44 = vadd.f32 %v9207_v16, %v1603_v33 }
 0x1f1   :  { %v1644_v22 = vadd.f32 %v9207_v16, %v1604_v50  ;;  %v1645_v40 = vadd.f32 %v9207_v16, %v1605_v21  ;;  %v1646_v53 = vadd.f32 %v9207_v16, %v1606_v9  ;;  %v1647_v45 = vadd.f32 %v1629_v5, %v1607_v55  ;;  %v9209_v21 = vld [vmem:[#allocation93_spill] sm:$0xff]  ;;  %v9210_v9 = vld [vmem:[#allocation94_spill] sm:$0xff]  ;;  %v9211_v55 = vld [vmem:[#allocation95_spill] sm:$0xff] }
 0x1f2   :  { %v1648_v58 = vadd.f32 %v1629_v5, %v1608_v4  ;;  %v1649_v10 = vadd.f32 %v1629_v5, %v1609_v39  ;;  %v1650_v48 = vadd.f32 %v1629_v5, %v1610_v56  ;;  %v1651_v52 = vadd.f32 %v1629_v5, %v1611_v57  ;;  %v9212_v56 = vld [vmem:[#allocation96_spill] sm:$0xff] }
 0x1f3   :  { %v1652_v18 = vadd.f32 %v1629_v5, %v1612_v27  ;;  %v1653_v12 = vadd.f32 %v1629_v5, %v1613_v2  ;;  %v1654_v30 = vadd.f32 %v1629_v5, %v1614_v61  ;;  %v1655_v15 = vadd.f32 %v1629_v5, %v1615_v8  ;;  %v9213_v27 = vld [vmem:[#allocation97_spill] sm:$0xff]  ;;  %v9214_v61 = vld [vmem:[#allocation98_spill] sm:$0xff]  ;;  %v9219_v16 = vld [vmem:[#allocation144_spill] sm:$0xff] }
 0x1f4   :  { %v1656_v26 = vadd.f32 %v1629_v5, %v1616_v41  ;;  %v1657_v60 = vadd.f32 %v1629_v5, %v1617_v32  ;;  %v1658_v1 = vadd.f32 %v1629_v5, %v1618_v63  ;;  %v1659_v7 = vadd.f32 %v1629_v5, %v1619_v59  ;;  %v9216_v32 = vld [vmem:[#allocation140_spill] sm:$0xff]  ;;  %v9217_v59 = vld [vmem:[#allocation142_spill] sm:$0xff] }
 0x1f5   :  { %v1660_v33 = vadd.f32 %v1629_v5, %v1620_v47  ;;  %v1661_v6 = vadd.f32 %v1629_v5, %v1621_v17  ;;  %v1662_v50 = vadd.f32 %v1629_v5, %v1622_v13  ;;  %v1666_v0 = vrot.slane %v9209_v21, %v9208_v37  ;;  %v9215_v5 = vld [vmem:[#allocation139_spill] sm:$0xff] }
 0x1f6   :  { %v1670_v4 = vrot.slane %v9210_v9, %v9208_v37  ;;  %v1674_v39 = vrot.slane %v9211_v55, %v9208_v37  ;;  %v1678_v57 = vrot.slane %v9212_v56, %v9208_v37  ;;  %v1682_v2 = vrot.slane %v9213_v27, %v9208_v37  ;;  %v9218_v17 = vld [vmem:[#allocation143_spill] sm:$0xff]  ;;  %v9220_v9 = vld [vmem:[#allocation145_spill] sm:$0xff]  ;;  %v9221_v56 = vld [vmem:[#allocation76_spill] sm:$0xff] }
 0x1f7   :  { %v1686_v8 = vrot.slane %v9214_v61, %v9208_v37  ;;  %v1690_v41 = vrot.slane %v9215_v5, %v9208_v37  ;;  %v1694_v63 = vrot.slane %v9216_v32, %v9208_v37  ;;  %v1698_v47 = vrot.slane %v9217_v59, %v9208_v37  ;;  %v9222_v61 = vld [vmem:[#allocation51_spill] sm:$0xff]  ;;  %v9223_v32 = vld [vmem:[#allocation52_spill] sm:$0xff]  ;;  %v9224_v59 = vld [vmem:[#allocation78_spill] sm:$0xff] }
 0x1f8   :  { %v1702_v13 = vrot.slane %v9218_v17, %v9208_v37  ;;  %v1706_v21 = vrot.slane %v9219_v16, %v9208_v37  ;;  %v1710_v55 = vrot.slane %v9220_v9, %v9208_v37  ;;  %v1714_v27 = vrot.slane %v9221_v56, %v9208_v37  ;;  %v9225_v17 = vld [vmem:[#allocation130_spill] sm:$0xff] }
 0x1f9   :  { %v1718_v5 = vrot.slane %v9222_v61, %v9208_v37  ;;  %v1722_v14 = vrot.slane %v9223_v32, %v9208_v37  ;;  %v1726_v49 = vrot.slane %v9224_v59, %v9208_v37  ;;  %v1727_v23 = vsub.f32 %v1631_v29, %v1666_v0 }
 0x1fa   :  { %v1728_v35 = vsub.f32 %v9225_v17, %v1670_v4  ;;  %v1729_v42 = vsub.f32 %v1633_v28, %v1674_v39  ;;  %v1730_v16 = vsub.f32 %v1634_v43, %v1678_v57  ;;  %v1731_v51 = vsub.f32 %v1635_v24, %v1682_v2 }
 0x1fb   :  { %v1732_v54 = vsub.f32 %v1636_v34, %v1686_v8  ;;  %v1733_v9 = vsub.f32 %v1637_v62, %v1690_v41  ;;  %v1734_v25 = vsub.f32 %v1638_v3, %v1694_v63  ;;  %v1735_v19 = vsub.f32 %v1639_v46, %v1698_v47 }
 0x1fc   :  { %v1736_v56 = vsub.f32 %v1640_v11, %v1702_v13  ;;  %v1737_v20 = vsub.f32 %v1641_v38, %v1706_v21  ;;  %v1738_v36 = vsub.f32 %v1642_v31, %v1710_v55  ;;  %v1739_v61 = vsub.f32 %v1643_v44, %v1714_v27 }
 0x1fd   :  { %v1740_v32 = vsub.f32 %v1644_v22, %v1718_v5  ;;  %v1741_v37 = vsub.f32 %v1645_v40, %v1722_v14  ;;  %v1742_v59 = vsub.f32 %v1646_v53, %v1726_v49  ;;  %v1743_v29 = vsub.f32 %v1647_v45, %v1666_v0 }
 0x1fe   :  { %v1744_v17 = vsub.f32 %v1648_v58, %v1670_v4  ;;  %v1745_v28 = vsub.f32 %v1649_v10, %v1674_v39  ;;  %v1746_v43 = vsub.f32 %v1650_v48, %v1678_v57  ;;  %v1747_v24 = vsub.f32 %v1651_v52, %v1682_v2 }
 0x1ff   :  { %v1748_v34 = vsub.f32 %v1652_v18, %v1686_v8  ;;  %v1749_v62 = vsub.f32 %v1653_v12, %v1690_v41  ;;  %v1750_v3 = vsub.f32 %v1654_v30, %v1694_v63  ;;  %v1751_v46 = vsub.f32 %v1655_v15, %v1698_v47  ;;  %v9226_v8 = vld [vmem:[#allocation105_spill] sm:$0xff]  ;;  %v9230_v47 = vld [vmem:[#allocation106_spill] sm:$0xff] }
 0x200   :  { %v1752_v11 = vsub.f32 %v1656_v26, %v1702_v13  ;;  %v1753_v38 = vsub.f32 %v1657_v60, %v1706_v21  ;;  %v1754_v31 = vsub.f32 %v1658_v1, %v1710_v55  ;;  %v1755_v44 = vsub.f32 %v1659_v7, %v1714_v27  ;;  %v9232_v21 = vld [vmem:[#allocation107_spill] sm:$0xff] }
 0x201   :  { %v1756_v22 = vsub.f32 %v1660_v33, %v1718_v5  ;;  %v1757_v40 = vsub.f32 %v1661_v6, %v1722_v14  ;;  %v1758_v53 = vsub.f32 %v1662_v50, %v1726_v49  ;;  %v1759_v0 = vmul.f32 %v1727_v23, %v1727_v23  ;;  %v9234_v27 = vld [vmem:[#allocation59_spill] sm:$0xff] }
 0x202   :  { %v1760_v45 = vmul.f32 %v1728_v35, %v1728_v35  ;;  %v1761_v4 = vmul.f32 %v1729_v42, %v1729_v42  ;;  %v1762_v58 = vmul.f32 %v1730_v16, %v1730_v16  ;;  %v1763_v10 = vmul.f32 %v1731_v51, %v1731_v51  ;;  %v9236_v16 = vld [vmem:[#allocation66_spill] sm:$0xff] }
 0x203   :  { %v1764_v39 = vmul.f32 %v1732_v54, %v1732_v54  ;;  %v1765_v48 = vmul.f32 %v1733_v9, %v1733_v9  ;;  %v1766_v57 = vmul.f32 %v1734_v25, %v1734_v25  ;;  %v1767_v52 = vmul.f32 %v1735_v19, %v1735_v19 }
 0x204   :  { %v1768_v18 = vmul.f32 %v1736_v56, %v1736_v56  ;;  %v1769_v12 = vmul.f32 %v1737_v20, %v1737_v20  ;;  %v1770_v30 = vmul.f32 %v1738_v36, %v1738_v36  ;;  %v1771_v15 = vmul.f32 %v1739_v61, %v1739_v61  ;;  %v9238_v56 = vld [vmem:[#allocation108_spill] sm:$0xff] }
 0x205   :  { %v1772_v26 = vmul.f32 %v1740_v32, %v1740_v32  ;;  %v1773_v60 = vmul.f32 %v1741_v37, %v1741_v37  ;;  %v1774_v1 = vmul.f32 %v1742_v59, %v1742_v59  ;;  %v1775_v7 = vmul.f32 %v1743_v29, %v1743_v29  ;;  %v9228_v37 = vld [vmem:[#allocation109_spill] sm:$0xff]  ;;  %v9240_v32 = vld [vmem:[#allocation16_spill] sm:$0xff]  ;;  %v9242_v29 = vld [vmem:[#allocation110_spill] sm:$0xff] }
 0x206   :  { %v1776_v33 = vmul.f32 %v1744_v17, %v1744_v17  ;;  %v1777_v14 = vmul.f32 %v1745_v28, %v1745_v28  ;;  %v1778_v49 = vmul.f32 %v1746_v43, %v1746_v43  ;;  %v1779_v23 = vmul.f32 %v1747_v24, %v1747_v24  ;;  %v9244_v28 = vld [vmem:[#allocation111_spill] sm:$0xff]  ;;  %v9246_v24 = vld [vmem:[#allocation85_spill] sm:$0xff] }
 0x207   :  { %v1780_v6 = vmul.f32 %v1748_v34, %v1748_v34  ;;  %v1781_v42 = vmul.f32 %v1749_v62, %v1749_v62  ;;  %v1782_v35 = vmul.f32 %v1750_v3, %v1750_v3  ;;  %v1783_v51 = vmul.f32 %v1751_v46, %v1751_v46  ;;  %v9248_v62 = vld [vmem:[#allocation86_spill] sm:$0xff]  ;;  %v9250_v46 = vld [vmem:[#allocation112_spill] sm:$0xff] }
 0x208   :  { %v1784_v54 = vmul.f32 %v1752_v11, %v1752_v11  ;;  %v1785_v50 = vmul.f32 %v1753_v38, %v1753_v38  ;;  %v1786_v25 = vmul.f32 %v1754_v31, %v1754_v31  ;;  %v1787_v19 = vmul.f32 %v1755_v44, %v1755_v44  ;;  %v9252_v38 = vld [vmem:[#allocation87_spill] sm:$0xff]  ;;  %v9254_v44 = vld [vmem:[#allocation88_spill] sm:$0xff] }
 0x209   :  { %v1788_v2 = vmul.f32 %v1756_v22, %v1756_v22  ;;  %v1789_v20 = vmul.f32 %v1757_v40, %v1757_v40  ;;  %v1790_v36 = vmul.f32 %v1758_v53, %v1758_v53  ;;  %v6330_v41 = vadd.f32 %v1759_v0, %v9226_v8  ;;  %v9256_v40 = vld [vmem:[#allocation89_spill] sm:$0xff]  ;;  %v9258_v0 = vld [vmem:[#allocation90_spill] sm:$0xff] }
 0x20a   :  { %v6333_v63 = vadd.f32 %v1760_v45, %v9228_v37  ;;  %v6336_v13 = vadd.f32 %v1761_v4, %v9230_v47  ;;  %v6339_v55 = vadd.f32 %v1762_v58, %v9232_v21  ;;  %v6342_v5 = vadd.f32 %v1763_v10, %v9234_v27  ;;  %v9260_v4 = vld [vmem:[#allocation91_spill] sm:$0xff]  ;;  %v9262_v10 = vld [vmem:[#allocation92_spill] sm:$0xff] }
 0x20b   :  { %9227 = vst [vmem:[#allocation67_spill] sm:$0xff] %v6330_v41  ;;  %v6345_v9 = vadd.f32 %v1764_v39, %v9236_v16  ;;  %v6348_v61 = vadd.f32 %v1765_v48, %v9238_v56  ;;  %v6351_v59 = vadd.f32 %v1766_v57, %v9240_v32  ;;  %v6354_v17 = vadd.f32 %v1767_v52, %v9242_v29  ;;  %v9264_v48 = vld [vmem:[#allocation70_spill] sm:$0xff]  ;;  %v9266_v52 = vld [vmem:[#allocation71_spill] sm:$0xff] }
 0x20c   :  { %9229 = vst [vmem:[#allocation68_spill] sm:$0xff] %v6333_v63  ;;  %9231 = vst [vmem:[#allocation23_spill] sm:$0xff] %v6336_v13  ;;  %v6357_v43 = vadd.f32 %v1768_v18, %v9244_v28  ;;  %v6360_v34 = vadd.f32 %v1769_v12, %v9246_v24  ;;  %v6363_v3 = vadd.f32 %v1770_v30, %v9248_v62  ;;  %v9268_v12 = vld [vmem:[#allocation146_spill] sm:$0xff] }
 0x20d   :  { %9233 = vst [vmem:[#allocation127_spill] sm:$0xff] %v6339_v55  ;;  %9235 = vst [vmem:[#allocation55_spill] sm:$0xff] %v6342_v5  ;;  %v6366_v11 = vadd.f32 %v1771_v15, %v9250_v46  ;;  %v6369_v31 = vadd.f32 %v1772_v26, %v9252_v38  ;;  %v6372_v22 = vadd.f32 %v1773_v60, %v9254_v44  ;;  %v9270_v15 = vld [vmem:[#allocation48_spill] sm:$0xff]  ;;  %v9272_v60 = vld [vmem:[#allocation58_spill] sm:$0xff] }
 0x20e   :  { %9237 = vst [vmem:[#allocation56_spill] sm:$0xff] %v6345_v9  ;;  %9239 = vst [vmem:[#allocation80_spill] sm:$0xff] %v6348_v61  ;;  %v6375_v53 = vadd.f32 %v1774_v1, %v9256_v40  ;;  %v6378_v45 = vadd.f32 %v1775_v7, %v9258_v0  ;;  %v6381_v58 = vadd.f32 %v1776_v33, %v9260_v4  ;;  %v9274_v7 = vld [vmem:[#allocation120_spill] sm:$0xff]  ;;  %v9291_v32 = vld [vmem:[#allocation50_spill] sm:$0xff] }
 0x20f   :  { %9241 = vst [vmem:[#allocation57_spill] sm:$0xff] %v6351_v59  ;;  %9243 = vst [vmem:[#allocation147_spill] sm:$0xff] %v6354_v17  ;;  %v6384_v39 = vadd.f32 %v1777_v14, %v9262_v10  ;;  %v6387_v57 = vadd.f32 %v1778_v49, %v9264_v48  ;;  %v6390_v18 = vadd.f32 %v1779_v23, %v9266_v52  ;;  %v9276_v14 = vld [vmem:[#allocation19_spill] sm:$0xff]  ;;  %v9278_v49 = vld [vmem:[#allocation121_spill] sm:$0xff]  ;;  %v1874_v17 = vpop.permute.xlu0 %1873 }
 0x210   :  { %9245 = vst [vmem:[#allocation148_spill] sm:$0xff] %v6357_v43  ;;  %9247 = vst [vmem:[#allocation149_spill] sm:$0xff] %v6360_v34  ;;  %v6393_v30 = vadd.f32 %v1780_v6, %v9268_v12  ;;  %v6396_v26 = vadd.f32 %v1781_v42, %v9270_v15  ;;  %v6399_v1 = vadd.f32 %v1782_v35, %v9272_v60  ;;  %v9280_v23 = vld [vmem:[#allocation20_spill] sm:$0xff]  ;;  %v9282_v6 = vld [vmem:[#allocation69_spill] sm:$0xff] }
 0x211   :  { %9249 = vst [vmem:[#allocation150_spill] sm:$0xff] %v6363_v3  ;;  %9251 = vst [vmem:[#allocation151_spill] sm:$0xff] %v6366_v11  ;;  %v6402_v33 = vadd.f32 %v1783_v51, %v9274_v7  ;;  %v6405_v8 = vadd.f32 %v1784_v54, %v9276_v14  ;;  %v6408_v37 = vadd.f32 %v1785_v50, %v9278_v49  ;;  %v9284_v42 = vld [vmem:[#allocation122_spill] sm:$0xff]  ;;  %v9286_v35 = vld [vmem:[#allocation123_spill] sm:$0xff] }
 0x212   :  { %9253 = vst [vmem:[#allocation152_spill] sm:$0xff] %v6369_v31  ;;  %9255 = vst [vmem:[#allocation36_spill] sm:$0xff] %v6372_v22  ;;  %v6411_v47 = vadd.f32 %v1786_v25, %v9280_v23  ;;  %v6414_v21 = vadd.f32 %v1787_v19, %v9282_v6  ;;  %v6417_v27 = vadd.f32 %v1788_v2, %v9284_v42  ;;  %v9288_v51 = vld [vmem:[#allocation125_spill] sm:$0xff]  ;;  %v9290_v54 = vld [vmem:[#allocation34_spill] sm:$0xff] }
 0x213   :  { %9257 = vst [vmem:[#allocation141_spill] sm:$0xff] %v6375_v53  ;;  %9259 = vst [vmem:[#allocation113_spill] sm:$0xff] %v6378_v45  ;;  %v6420_v16 = vadd.f32 %v1789_v20, %v9286_v35  ;;  %v6423_v56 = vadd.f32 %v1790_v36, %v9288_v51  ;;  %v1840_v29 = vmul.f32 %v9291_v32, %v9290_v54  ;;  %v9292_v50 = vld [vmem:[#allocation35_spill] sm:$0xff]  ;;  %v9293_v25 = vld [vmem:[#allocation37_spill] sm:$0xff] }
 0x214   :  { %9261 = vst [vmem:[#allocation15_spill] sm:$0xff] %v6381_v58  ;;  %9263 = vst [vmem:[#allocation114_spill] sm:$0xff] %v6384_v39  ;;  %v1841_v28 = vmul.f32 %v9291_v32, %v9292_v50  ;;  %v1842_v24 = vmul.f32 %v9291_v32, %v9293_v25  ;;  %v9294_v19 = vld [vmem:[#allocation38_spill] sm:$0xff]  ;;  %v9295_v2 = vld [vmem:[#allocation39_spill] sm:$0xff] }
 0x215   :  { %9265 = vst [vmem:[#allocation60_spill] sm:$0xff] %v6387_v57  ;;  %9267 = vst [vmem:[#allocation83_spill] sm:$0xff] %v6390_v18  ;;  %v1843_v62 = vmul.f32 %v9291_v32, %v9294_v19  ;;  %v1844_v46 = vmul.f32 %v9291_v32, %v9295_v2  ;;  %v9296_v20 = vld [vmem:[#allocation40_spill] sm:$0xff]  ;;  %v9297_v36 = vld [vmem:[#allocation41_spill] sm:$0xff] }
 0x216   :  { %9269 = vst [vmem:[#allocation84_spill] sm:$0xff] %v6393_v30  ;;  %9271 = vst [vmem:[#allocation115_spill] sm:$0xff] %v6396_v26  ;;  %v1845_v38 = vmul.f32 %v9291_v32, %v9296_v20  ;;  %v1846_v44 = vmul.f32 %v9291_v32, %v9297_v36  ;;  %v9298_v40 = vld [vmem:[#allocation42_spill] sm:$0xff]  ;;  %v9299_v4 = vld [vmem:[#allocation43_spill] sm:$0xff] }
 0x217   :  { %9273 = vst [vmem:[#allocation116_spill] sm:$0xff] %v6399_v1  ;;  %9275 = vst [vmem:[#allocation61_spill] sm:$0xff] %v6402_v33  ;;  %v1847_v0 = vmul.f32 %v9291_v32, %v9298_v40  ;;  %v1848_v10 = vmul.f32 %v9291_v32, %v9299_v4  ;;  %v9300_v48 = vld [vmem:[#allocation45_spill] sm:$0xff]  ;;  %v9301_v12 = vld [vmem:[#allocation46_spill] sm:$0xff] }
 0x218   :  { %9277 = vst [vmem:[#allocation62_spill] sm:$0xff] %v6405_v8  ;;  %9279 = vst [vmem:[#allocation117_spill] sm:$0xff] %v6408_v37  ;;  %v1849_v52 = vmul.f32 %v9291_v32, %v9300_v48  ;;  %v1850_v15 = vmul.f32 %v9291_v32, %v9301_v12  ;;  %v9302_v60 = vld [vmem:[#allocation47_spill] sm:$0xff]  ;;  %v9303_v14 = vld [vmem:[#allocation72_spill] sm:$0xff] }
 0x219   :  { %9281 = vst [vmem:[#allocation17_spill] sm:$0xff] %v6411_v47  ;;  %9283 = vst [vmem:[#allocation118_spill] sm:$0xff] %v6414_v21  ;;  %v1851_v7 = vmul.f32 %v9291_v32, %v9302_v60  ;;  %v9304_v49 = vld [vmem:[#allocation65_spill] sm:$0xff]  ;;  %v9305_v6 = vld [vmem:[#allocation74_spill] sm:$0xff] }
 0x21a   :  { %9285 = vst [vmem:[#allocation119_spill] sm:$0xff] %v6417_v27  ;;  %9287 = vst [vmem:[#allocation82_spill] sm:$0xff] %v6420_v16  ;;  %v1852_v23 = vmul.f32 %v9304_v49, %v9303_v14  ;;  %v1854_v42 = vmul.f32 %v9304_v49, %v9305_v6  ;;  %v9306_v35 = vld [vmem:[#allocation75_spill] sm:$0xff]  ;;  %v1857_v16 = vmul.f32 %v9304_v49, %v9292_v50  ;;  %v9307_v18 = vld [vmem:[#allocation124_spill] sm:$0xff] }
 0x21b   :  { %9289 = vst [vmem:[#allocation77_spill] sm:$0xff] %v6423_v56  ;;  %v1855_v51 = vmul.f32 %v9304_v49, %v9306_v35  ;;  %v1856_v56 = vmul.f32 %v9304_v49, %v9290_v54  ;;  %v1858_v27 = vmul.f32 %v9304_v49, %v9293_v25  ;;  %v1859_v32 = vmul.f32 %v9304_v49, %v9294_v19  ;;  %v9308_v57 = vld [vmem:[#allocation32_spill] sm:$0xff]  ;;  %v9309_v58 = vld [vmem:[#allocation126_spill] sm:$0xff] }
 0x21c   :  { %v1860_v21 = vmul.f32 %v9304_v49, %v9295_v2  ;;  %v1861_v47 = vmul.f32 %v9304_v49, %v9296_v20  ;;  %v1862_v37 = vmul.f32 %v9304_v49, %v9297_v36  ;;  %v1863_v8 = vmul.f32 %v9304_v49, %v9298_v40  ;;  %v9310_v53 = vld [vmem:[#allocation128_spill] sm:$0xff]  ;;  %v9311_v61 = vld [vmem:[#allocation138_spill] sm:$0xff] }
 0x21d   :  { %v1864_v33 = vmul.f32 %v9304_v49, %v9299_v4  ;;  %v1865_v1 = vmul.f32 %v9304_v49, %v9300_v48  ;;  %v1866_v26 = vmul.f32 %v9304_v49, %v9301_v12  ;;  %v1867_v30 = vmul.f32 %v9304_v49, %v9302_v60 }
 0x21e   :  { %v1876_v39 = vadd.f32 %v9308_v57, %v9307_v18  ;;  %v1878_v45 = vadd.f32 %v9308_v57, %v9309_v58  ;;  %v1879_v22 = vadd.f32 %v9308_v57, %v9310_v53  ;;  %v1880_v31 = vadd.f32 %v9308_v57, %v1840_v29 }
 0x21f   :  { %v1881_v11 = vadd.f32 %v9308_v57, %v1841_v28  ;;  %v1882_v3 = vadd.f32 %v9308_v57, %v1842_v24  ;;  %v1883_v34 = vadd.f32 %v9308_v57, %v1843_v62  ;;  %v1884_v43 = vadd.f32 %v9308_v57, %v1844_v46 }
 0x220   :  { %v1885_v49 = vadd.f32 %v9308_v57, %v1845_v38  ;;  %v1886_v18 = vadd.f32 %v9308_v57, %v1846_v44  ;;  %v1887_v58 = vadd.f32 %v9308_v57, %v1847_v0  ;;  %v1888_v59 = vadd.f32 %v9308_v57, %v1848_v10 }
 0x221   :  { %v1889_v53 = vadd.f32 %v9308_v57, %v1849_v52  ;;  %v1890_v29 = vadd.f32 %v9308_v57, %v1850_v15  ;;  %v1891_v28 = vadd.f32 %v9308_v57, %v1851_v7  ;;  %v1892_v24 = vadd.f32 %v1874_v17, %v1852_v23  ;;  %v9312_v57 = vld [vmem:[#allocation73_spill] sm:$0xff] }
 0x222   :  { %v1893_v62 = vadd.f32 %v1874_v17, %v9311_v61  ;;  %v1894_v9 = vadd.f32 %v1874_v17, %v1854_v42  ;;  %v1895_v46 = vadd.f32 %v1874_v17, %v1855_v51  ;;  %v1896_v5 = vadd.f32 %v1874_v17, %v1856_v56  ;;  %v9313_v7 = vld [vmem:[#allocation129_spill] sm:$0xff] }
 0x223   :  { %v1897_v38 = vadd.f32 %v1874_v17, %v1857_v16  ;;  %v1898_v55 = vadd.f32 %v1874_v17, %v1858_v27  ;;  %v1899_v44 = vadd.f32 %v1874_v17, %v1859_v32  ;;  %v1900_v13 = vadd.f32 %v1874_v17, %v1860_v21 }
 0x224   :  { %v1901_v63 = vadd.f32 %v1874_v17, %v1861_v47  ;;  %v1902_v0 = vadd.f32 %v1874_v17, %v1862_v37  ;;  %v1903_v41 = vadd.f32 %v1874_v17, %v1863_v8  ;;  %v1904_v10 = vadd.f32 %v1874_v17, %v1864_v33  ;;  %v9316_v8 = vld [vmem:[#allocation47_spill] sm:$0xff] }
 0x225   :  { %v1905_v60 = vadd.f32 %v1874_v17, %v1865_v1  ;;  %v1906_v52 = vadd.f32 %v1874_v17, %v1866_v26  ;;  %v1907_v12 = vadd.f32 %v1874_v17, %v1867_v30  ;;  %v1908_v15 = vmul.f32 %v1876_v39, %v9303_v14  ;;  %v6510_v30 = vpop.permute.xlu1 %2467  ;;  %v9315_v1 = vld [vmem:[#allocation46_spill] sm:$0xff] }
 0x226   :  { %v1909_v23 = vmul.f32 %v9313_v7, %v9312_v57  ;;  %v1910_v61 = vmul.f32 %v1878_v45, %v9305_v6  ;;  %v1911_v56 = vmul.f32 %v1879_v22, %v9306_v35  ;;  %v1912_v27 = vmul.f32 %v1880_v31, %v9290_v54  ;;  %9314 = vst [vmem:[#allocation136_spill] sm:$0xff] %v6510_v30  ;;  %v6665_v30 = vld [vmem:[%s8301_s1 + $0x38] sm:$0xff] }
 0x227   :  { %v1913_v21 = vmul.f32 %v1881_v11, %v9292_v50  ;;  %v1914_v37 = vmul.f32 %v1882_v3, %v9293_v25  ;;  %v1915_v33 = vmul.f32 %v1883_v34, %v9294_v19  ;;  %v1916_v26 = vmul.f32 %v1884_v43, %v9295_v2  ;;  %9326 = vst [vmem:[#allocation135_spill] sm:$0xff] %v6665_v30 }
 0x228   :  { %v1917_v17 = vmul.f32 %v1885_v49, %v9296_v20  ;;  %v1918_v39 = vmul.f32 %v1886_v18, %v9297_v36  ;;  %v1919_v45 = vmul.f32 %v1887_v58, %v9298_v40  ;;  %v1920_v22 = vmul.f32 %v1888_v59, %v9299_v4 }
 0x229   :  { %v1921_v31 = vmul.f32 %v1889_v53, %v9300_v48  ;;  %v1922_v11 = vmul.f32 %v1890_v29, %v9315_v1  ;;  %v1923_v3 = vmul.f32 %v1891_v28, %v9316_v8  ;;  %v1924_v34 = vmul.f32 %v1892_v24, %v9303_v14  ;;  %v9317_v24 = vld [vmem:[#allocation54_spill] sm:$0xff] }
 0x22a   :  { %v1925_v43 = vmul.f32 %v1893_v62, %v9312_v57  ;;  %v1926_v47 = vmul.f32 %v1894_v9, %v9305_v6  ;;  %v1927_v16 = vmul.f32 %v1895_v46, %v9306_v35  ;;  %v1928_v42 = vmul.f32 %v1896_v5, %v9290_v54 }
 0x22b   :  { %v1929_v51 = vmul.f32 %v1897_v38, %v9292_v50  ;;  %v1930_v59 = vmul.f32 %v1898_v55, %v9293_v25  ;;  %v1931_v32 = vmul.f32 %v1899_v44, %v9294_v19  ;;  %v1932_v49 = vmul.f32 %v1900_v13, %v9295_v2  ;;  %v1946_v13 = vpop.permute.xlu1 %1945 }
 0x22c   :  { %v1933_v18 = vmul.f32 %v1901_v63, %v9296_v20  ;;  %v1934_v58 = vmul.f32 %v1902_v0, %v9297_v36  ;;  %v1935_v53 = vmul.f32 %v1903_v41, %v9298_v40  ;;  %v1936_v9 = vmul.f32 %v1904_v10, %v9299_v4 }
 0x22d   :  { %v1937_v29 = vmul.f32 %v1905_v60, %v9300_v48  ;;  %v1938_v5 = vmul.f32 %v1906_v52, %v9315_v1  ;;  %v1939_v28 = vmul.f32 %v1907_v12, %v9316_v8  ;;  %v6534_v55 = vadd.f32 %v9317_v24, %v1908_v15 }
 0x22e   :  { %v6537_v62 = vadd.f32 %v9317_v24, %v1909_v23  ;;  %v6540_v63 = vadd.f32 %v9317_v24, %v1910_v61  ;;  %v6543_v41 = vadd.f32 %v9317_v24, %v1911_v56  ;;  %v6546_v46 = vadd.f32 %v9317_v24, %v1912_v27 }
 0x22f   :  { %v6549_v60 = vadd.f32 %v9317_v24, %v1913_v21  ;;  %v6552_v12 = vadd.f32 %v9317_v24, %v1914_v37  ;;  %v6555_v38 = vadd.f32 %v9317_v24, %v1915_v33  ;;  %v6558_v44 = vadd.f32 %v9317_v24, %v1916_v26 }
 0x230   :  { %v6561_v0 = vadd.f32 %v9317_v24, %v1917_v17  ;;  %v6564_v10 = vadd.f32 %v9317_v24, %v1918_v39  ;;  %v6567_v52 = vadd.f32 %v9317_v24, %v1919_v45  ;;  %v6570_v15 = vadd.f32 %v9317_v24, %v1920_v22 }
 0x231   :  { %v6573_v7 = vadd.f32 %v9317_v24, %v1921_v31  ;;  %v6576_v23 = vadd.f32 %v9317_v24, %v1922_v11  ;;  %v6579_v61 = vadd.f32 %v9317_v24, %v1923_v3  ;;  %v6581_v56 = vadd.f32 %v1946_v13, %v1924_v34  ;;  %v6658_v24 = vld [vmem:[%s8301_s1 + $0x30] sm:$0xff] }
 0x232   :  { %v6583_v27 = vadd.f32 %v1946_v13, %v1925_v43  ;;  %v6585_v21 = vadd.f32 %v1946_v13, %v1926_v47  ;;  %v6587_v37 = vadd.f32 %v1946_v13, %v1927_v16  ;;  %v6589_v33 = vadd.f32 %v1946_v13, %v1928_v42  ;;  %v6616_v16 = vld [vmem:[%s8301_s1] sm:$0xff]  ;;  %9325 = vst [vmem:[#allocation22_spill] sm:$0xff] %v6658_v24 }
 0x233   :  { %v6591_v26 = vadd.f32 %v1946_v13, %v1929_v51  ;;  %v6593_v17 = vadd.f32 %v1946_v13, %v1930_v59  ;;  %v6595_v39 = vadd.f32 %v1946_v13, %v1931_v32  ;;  %v6597_v45 = vadd.f32 %v1946_v13, %v1932_v49  ;;  %9318 = vst [vmem:[#allocation101_spill] sm:$0xff] %v6616_v16  ;;  %v9319_v42 = vld [vmem:[#allocation26_spill] sm:$0xff]  ;;  %v6630_v49 = vld [vmem:[%s8301_s1 + $0x10] sm:$0xff] }
 0x234   :  { %v6599_v22 = vadd.f32 %v1946_v13, %v1933_v18  ;;  %v6601_v31 = vadd.f32 %v1946_v13, %v1934_v58  ;;  %v6603_v11 = vadd.f32 %v1946_v13, %v1935_v53  ;;  %v6605_v3 = vadd.f32 %v1946_v13, %v1936_v9  ;;  %v6623_v59 = vld [vmem:[%s8301_s1 + $0x8] sm:$0xff]  ;;  %9321 = vst [vmem:[#allocation13_spill] sm:$0xff] %v6630_v49  ;;  %v6637_v58 = vld [vmem:[%s8301_s1 + $0x18] sm:$0xff]  ;;  %v6644_v9 = vld [vmem:[%s8301_s1 + $0x20] sm:$0xff] }
 0x235   :  { %v6607_v34 = vadd.f32 %v1946_v13, %v1937_v29  ;;  %v6609_v43 = vadd.f32 %v1946_v13, %v1938_v5  ;;  %v6611_v47 = vadd.f32 %v1946_v13, %v1939_v28  ;;  %v1983_v51 = vrot.slane %v6616_v16, %v9319_v42  ;;  %9320 = vst [vmem:[#allocation104_spill] sm:$0xff] %v6623_v59  ;;  %v6651_v5 = vld [vmem:[%s8301_s1 + $0x28] sm:$0xff] }
 0x236   :  { %v1987_v32 = vrot.slane %v6623_v59, %v9319_v42  ;;  %v1991_v18 = vrot.slane %v6630_v49, %v9319_v42  ;;  %9322 = vst [vmem:[#allocation21_spill] sm:$0xff] %v6637_v58  ;;  %v1995_v53 = vrot.slane %v6637_v58, %v9319_v42  ;;  %9323 = vst [vmem:[#allocation63_spill] sm:$0xff] %v6644_v9 }
 0x237   :  { %v1999_v29 = vrot.slane %v6644_v9, %v9319_v42  ;;  %9324 = vst [vmem:[#allocation99_spill] sm:$0xff] %v6651_v5  ;;  %v2003_v28 = vrot.slane %v6651_v5, %v9319_v42  ;;  %v2007_v13 = vrot.slane %v6658_v24, %v9319_v42  ;;  %v2011_v9 = vrot.slane %v6665_v30, %v9319_v42  ;;  %v6672_v5 = vld [vmem:[%s8301_s1 + $0x40] sm:$0xff]  ;;  %v6679_v24 = vld [vmem:[%s8301_s1 + $0x48] sm:$0xff]  ;;  %v6686_v30 = vld [vmem:[%s8301_s1 + $0x50] sm:$0xff] }
 0x238   :  { %9327 = vst [vmem:[#allocation79_spill] sm:$0xff] %v6672_v5  ;;  %v2015_v58 = vrot.slane %v6672_v5, %v9319_v42  ;;  %9328 = vst [vmem:[#allocation137_spill] sm:$0xff] %v6679_v24  ;;  %v2019_v49 = vrot.slane %v6679_v24, %v9319_v42  ;;  %v2023_v59 = vrot.slane %v6686_v30, %v9319_v42  ;;  %v6693_v5 = vld [vmem:[%s8301_s1 + $0x58] sm:$0xff]  ;;  %v6700_v24 = vld [vmem:[%s8301_s1 + $0x60] sm:$0xff] }
 0x239   :  { %9329 = vst [vmem:[#allocation100_spill] sm:$0xff] %v6686_v30  ;;  %9330 = vst [vmem:[#allocation102_spill] sm:$0xff] %v6693_v5  ;;  %v2027_v16 = vrot.slane %v6693_v5, %v9319_v42  ;;  %v2031_v6 = vrot.slane %v6700_v24, %v9319_v42  ;;  %v6707_v30 = vld [vmem:[%s8301_s1 + $0x68] sm:$0xff]  ;;  %v6714_v5 = vld [vmem:[%s8301_s1 + $0x70] sm:$0xff]  ;;  %v2044_v1 = vsub.f32 %v6534_v55, %v1983_v51 }
 0x23a   :  { %9331 = vst [vmem:[#allocation103_spill] sm:$0xff] %v6700_v24  ;;  %9332 = vst [vmem:[#allocation24_spill] sm:$0xff] %v6707_v30  ;;  %v2035_v57 = vrot.slane %v6707_v30, %v9319_v42  ;;  %v2039_v14 = vrot.slane %v6714_v5, %v9319_v42  ;;  %v6721_v24 = vld [vmem:[%s8301_s1 + $0x78] sm:$0xff]  ;;  %v2045_v30 = vsub.f32 %v6537_v62, %v1987_v32  ;;  %s4162_s1 = smov [#allocation8]  }
 0x23b   :  { %9333 = vst [vmem:[#allocation44_spill] sm:$0xff] %v6714_v5  ;;  %9334 = vst [vmem:[#allocation93_spill] sm:$0xff] %v6721_v24  ;;  %v2043_v8 = vrot.slane %v6721_v24, %v9319_v42  ;;  %v2046_v48 = vsub.f32 %v6540_v63, %v1991_v18  ;;  %v2047_v4 = vsub.f32 %v6543_v41, %v1995_v53  ;;  %s3793_s27 = sshll.u32 %s4162_s1, 4  ;;  %s3794_s27 = int_to_ptr.vmem [resolvable:$true] %s3793_s27 }
 0x23c   :  { %v2048_v40 = vsub.f32 %v6546_v46, %v1999_v29  ;;  %v2049_v5 = vsub.f32 %v6549_v60, %v2003_v28  ;;  %v2050_v36 = vsub.f32 %v6552_v12, %v2007_v13  ;;  %v2051_v20 = vsub.f32 %v6555_v38, %v2011_v9  ;;  %s4129_s29 = scalar_lea.vmem %s3794_s27, 16  ;;  %s4133_s30 = scalar_lea.vmem %s3794_s27, 32 }
 0x23d   :  { %v2052_v2 = vsub.f32 %v6558_v44, %v2015_v58  ;;  %v2053_v42 = vsub.f32 %v6561_v0, %v2019_v49  ;;  %v2054_v55 = vsub.f32 %v6564_v10, %v2023_v59  ;;  %v2055_v62 = vsub.f32 %v6567_v52, %v2027_v16  ;;  %p4130_p10 = scmp.ne.s32.totalorder %s3794_s27, %s4129_s29  ;;  %p4134_p11 = scmp.lt.s32.totalorder %s3794_s27, %s3794_s27 }
 0x23e   :  { %v2056_v63 = vsub.f32 %v6570_v15, %v2031_v6  ;;  %v2057_v41 = vsub.f32 %v6573_v7, %v2035_v57  ;;  %v2058_v46 = vsub.f32 %v6576_v23, %v2039_v14  ;;  %v2059_v60 = vsub.f32 %v6579_v61, %v2043_v8  ;;  %p4135_p12 = scmp.lt.s32.totalorder %s4133_s30, %s4129_s29 }
 0x23f   :  { %v2060_v12 = vsub.f32 %v6581_v56, %v1983_v51  ;;  %v2061_v38 = vsub.f32 %v6583_v27, %v1987_v32  ;;  %v2062_v44 = vsub.f32 %v6585_v21, %v1991_v18  ;;  %v2063_v0 = vsub.f32 %v6587_v37, %v1995_v53 }
 0x240   :  { %v2064_v10 = vsub.f32 %v6589_v33, %v1999_v29  ;;  %v2065_v52 = vsub.f32 %v6591_v26, %v2003_v28  ;;  %v2066_v15 = vsub.f32 %v6593_v17, %v2007_v13  ;;  %v2067_v7 = vsub.f32 %v6595_v39, %v2011_v9  ;;  %v9335_v29 = vld [vmem:[#allocation67_spill] sm:$0xff]  ;;  %v9337_v28 = vld [vmem:[#allocation68_spill] sm:$0xff]  ;;  %p4136_p13 = por %p4135_p12, %p4134_p11 }
 0x241   :  { %v2068_v23 = vsub.f32 %v6597_v45, %v2015_v58  ;;  %v2069_v61 = vsub.f32 %v6599_v22, %v2019_v49  ;;  %v2070_v56 = vsub.f32 %v6601_v31, %v2023_v59  ;;  %v2071_v27 = vsub.f32 %v6603_v11, %v2027_v16 }
 0x242   :  { %v2072_v21 = vsub.f32 %v6605_v3, %v2031_v6  ;;  %v2073_v37 = vsub.f32 %v6607_v34, %v2035_v57  ;;  %v2074_v33 = vsub.f32 %v6609_v43, %v2039_v14  ;;  %v2075_v26 = vsub.f32 %v6611_v47, %v2043_v8  ;;  %p4137_p0 = pnand %p4136_p13, %p4130_p10 }
 0x243   :  { %v2076_v51 = vmul.f32 %v2044_v1, %v2044_v1  ;;  %v2077_v17 = vmul.f32 %v2045_v30, %v2045_v30  ;;  %v2078_v32 = vmul.f32 %v2046_v48, %v2046_v48  ;;  %v2079_v39 = vmul.f32 %v2047_v4, %v2047_v4 }
 0x244   :  { %v2080_v18 = vmul.f32 %v2048_v40, %v2048_v40  ;;  %v2081_v45 = vmul.f32 %v2049_v5, %v2049_v5  ;;  %v2082_v58 = vmul.f32 %v2050_v36, %v2050_v36  ;;  %v2083_v22 = vmul.f32 %v2051_v20, %v2051_v20 }
 0x245   :  { %v2084_v49 = vmul.f32 %v2052_v2, %v2052_v2  ;;  %v2085_v31 = vmul.f32 %v2053_v42, %v2053_v42  ;;  %v2086_v59 = vmul.f32 %v2054_v55, %v2054_v55  ;;  %v2087_v11 = vmul.f32 %v2055_v62, %v2055_v62  ;;  %v9339_v55 = vld [vmem:[#allocation23_spill] sm:$0xff] }
 0x246   :  { %v2088_v16 = vmul.f32 %v2056_v63, %v2056_v63  ;;  %v2089_v6 = vmul.f32 %v2057_v41, %v2057_v41  ;;  %v2090_v3 = vmul.f32 %v2058_v46, %v2058_v46  ;;  %v2091_v57 = vmul.f32 %v2059_v60, %v2059_v60  ;;  %v9341_v63 = vld [vmem:[#allocation127_spill] sm:$0xff] }
 0x247   :  { %v2092_v34 = vmul.f32 %v2060_v12, %v2060_v12  ;;  %v2093_v14 = vmul.f32 %v2061_v38, %v2061_v38  ;;  %v2094_v43 = vmul.f32 %v2062_v44, %v2062_v44  ;;  %v2095_v8 = vmul.f32 %v2063_v0, %v2063_v0  ;;  %v9343_v46 = vld [vmem:[#allocation55_spill] sm:$0xff]  ;;  %v9345_v12 = vld [vmem:[#allocation56_spill] sm:$0xff] }
 0x248   :  { %v2096_v1 = vmul.f32 %v2064_v10, %v2064_v10  ;;  %v2097_v30 = vmul.f32 %v2065_v52, %v2065_v52  ;;  %v2098_v48 = vmul.f32 %v2066_v15, %v2066_v15  ;;  %v2099_v4 = vmul.f32 %v2067_v7, %v2067_v7  ;;  %v9347_v44 = vld [vmem:[#allocation80_spill] sm:$0xff]  ;;  %v9349_v10 = vld [vmem:[#allocation57_spill] sm:$0xff]  ;;  %v9351_v15 = vld [vmem:[#allocation147_spill] sm:$0xff] }
 0x249   :  { %v2100_v40 = vmul.f32 %v2068_v23, %v2068_v23  ;;  %v2101_v47 = vmul.f32 %v2069_v61, %v2069_v61  ;;  %v2102_v36 = vmul.f32 %v2070_v56, %v2070_v56  ;;  %v2103_v20 = vmul.f32 %v2071_v27, %v2071_v27  ;;  %v9353_v23 = vld [vmem:[#allocation148_spill] sm:$0xff]  ;;  %v9355_v56 = vld [vmem:[#allocation149_spill] sm:$0xff] }
 0x24a   :  { %v2104_v2 = vmul.f32 %v2072_v21, %v2072_v21  ;;  %v2105_v42 = vmul.f32 %v2073_v37, %v2073_v37  ;;  %v2106_v53 = vmul.f32 %v2074_v33, %v2074_v33  ;;  %v2107_v9 = vmul.f32 %v2075_v26, %v2075_v26  ;;  %v9357_v21 = vld [vmem:[#allocation150_spill] sm:$0xff]  ;;  %v9359_v33 = vld [vmem:[#allocation151_spill] sm:$0xff] }
 0x24b   :  { %v6758_v5 = vadd.f32 %v2076_v51, %v9335_v29  ;;  %v6761_v13 = vadd.f32 %v2077_v17, %v9337_v28  ;;  %v6764_v62 = vadd.f32 %v2078_v32, %v9339_v55  ;;  %v6767_v41 = vadd.f32 %v2079_v39, %v9341_v63  ;;  %v9361_v51 = vld [vmem:[#allocation152_spill] sm:$0xff] }
 0x24c   :  { %v6770_v60 = vadd.f32 %v2080_v18, %v9343_v46  ;;  %v6773_v38 = vadd.f32 %v2081_v45, %v9345_v12  ;;  %v6776_v0 = vadd.f32 %v2082_v58, %v9347_v44  ;;  %v6779_v52 = vadd.f32 %v2083_v22, %v9349_v10  ;;  %v9363_v32 = vld [vmem:[#allocation36_spill] sm:$0xff]  ;;  %v9365_v18 = vld [vmem:[#allocation141_spill] sm:$0xff] }
 0x24d   :  { %9336 = vst [vmem:[#allocation94_spill] sm:$0xff] %v6758_v5  ;;  %9338 = vst [vmem:[#allocation95_spill] sm:$0xff] %v6761_v13  ;;  %v6782_v7 = vadd.f32 %v2084_v49, %v9351_v15  ;;  %v6785_v61 = vadd.f32 %v2085_v31, %v9353_v23  ;;  %v6788_v27 = vadd.f32 %v2086_v59, %v9355_v56  ;;  %v9367_v58 = vld [vmem:[#allocation113_spill] sm:$0xff]  ;;  %v9369_v49 = vld [vmem:[#allocation15_spill] sm:$0xff] }
 0x24e   :  { %9340 = vst [vmem:[#allocation96_spill] sm:$0xff] %v6764_v62  ;;  %9342 = vst [vmem:[#allocation97_spill] sm:$0xff] %v6767_v41  ;;  %v6791_v37 = vadd.f32 %v2087_v11, %v9357_v21  ;;  %v6794_v26 = vadd.f32 %v2088_v16, %v9359_v33  ;;  %v6797_v17 = vadd.f32 %v2089_v6, %v9361_v51  ;;  %v9371_v59 = vld [vmem:[#allocation114_spill] sm:$0xff]  ;;  %v9373_v16 = vld [vmem:[#allocation60_spill] sm:$0xff] }
 0x24f   :  { %9344 = vst [vmem:[#allocation98_spill] sm:$0xff] %v6770_v60  ;;  %9346 = vst [vmem:[#allocation139_spill] sm:$0xff] %v6773_v38  ;;  %v6800_v39 = vadd.f32 %v2090_v3, %v9363_v32  ;;  %v6803_v45 = vadd.f32 %v2091_v57, %v9365_v18  ;;  %v6806_v22 = vadd.f32 %v2092_v34, %v9367_v58  ;;  %v9375_v6 = vld [vmem:[#allocation83_spill] sm:$0xff]  ;;  %v9377_v3 = vld [vmem:[#allocation84_spill] sm:$0xff]  ;;  %v2191_v60 = vpop.permute.xlu0 %2190 }
 0x250   :  { %9348 = vst [vmem:[#allocation140_spill] sm:$0xff] %v6776_v0  ;;  %9350 = vst [vmem:[#allocation142_spill] sm:$0xff] %v6779_v52  ;;  %v6809_v31 = vadd.f32 %v2093_v14, %v9369_v49  ;;  %v6812_v11 = vadd.f32 %v2094_v43, %v9371_v59  ;;  %v6815_v29 = vadd.f32 %v2095_v8, %v9373_v16  ;;  %v9379_v57 = vld [vmem:[#allocation115_spill] sm:$0xff]  ;;  %v9381_v34 = vld [vmem:[#allocation116_spill] sm:$0xff] }
 0x251   :  { %9352 = vst [vmem:[#allocation143_spill] sm:$0xff] %v6782_v7  ;;  %9354 = vst [vmem:[#allocation144_spill] sm:$0xff] %v6785_v61  ;;  %v6818_v28 = vadd.f32 %v2096_v1, %v9375_v6  ;;  %v6821_v55 = vadd.f32 %v2097_v30, %v9377_v3  ;;  %v6824_v63 = vadd.f32 %v2098_v48, %v9379_v57  ;;  %v9383_v14 = vld [vmem:[#allocation61_spill] sm:$0xff]  ;;  %v9385_v43 = vld [vmem:[#allocation62_spill] sm:$0xff] }
 0x252   :  { %9356 = vst [vmem:[#allocation145_spill] sm:$0xff] %v6788_v27  ;;  %9358 = vst [vmem:[#allocation76_spill] sm:$0xff] %v6791_v37  ;;  %v6827_v46 = vadd.f32 %v2099_v4, %v9381_v34  ;;  %v6830_v12 = vadd.f32 %v2100_v40, %v9383_v14  ;;  %v6833_v44 = vadd.f32 %v2101_v47, %v9385_v43  ;;  %v9387_v8 = vld [vmem:[#allocation117_spill] sm:$0xff]  ;;  %v9391_v30 = vld [vmem:[#allocation118_spill] sm:$0xff] }
 0x253   :  { %9360 = vst [vmem:[#allocation51_spill] sm:$0xff] %v6794_v26  ;;  %9362 = vst [vmem:[#allocation52_spill] sm:$0xff] %v6797_v17  ;;  %v6836_v10 = vadd.f32 %v2102_v36, %v9387_v8  ;;  %v9389_v1 = vld [vmem:[#allocation17_spill] sm:$0xff]  ;;  %v6842_v23 = vadd.f32 %v2104_v2, %v9391_v30  ;;  %v9393_v48 = vld [vmem:[#allocation119_spill] sm:$0xff] }
 0x254   :  { %9364 = vst [vmem:[#allocation78_spill] sm:$0xff] %v6800_v39  ;;  %9366 = vst [vmem:[#allocation130_spill] sm:$0xff] %v6803_v45  ;;  %v6839_v15 = vadd.f32 %v2103_v20, %v9389_v1  ;;  %v6845_v56 = vadd.f32 %v2105_v42, %v9393_v48  ;;  %v9395_v4 = vld [vmem:[#allocation82_spill] sm:$0xff]  ;;  %v9397_v40 = vld [vmem:[#allocation77_spill] sm:$0xff] }
 0x255   :  { %9368 = vst [vmem:[#allocation105_spill] sm:$0xff] %v6806_v22  ;;  %9370 = vst [vmem:[#allocation109_spill] sm:$0xff] %v6809_v31  ;;  %v6848_v21 = vadd.f32 %v2106_v53, %v9395_v4  ;;  %v6851_v33 = vadd.f32 %v2107_v9, %v9397_v40  ;;  %v9399_v47 = vld [vmem:[#allocation53_spill] sm:$0xff]  ;;  %v9400_v53 = vld [vmem:[#allocation39_spill] sm:$0xff] }
 0x256   :  { %9372 = vst [vmem:[#allocation106_spill] sm:$0xff] %v6812_v11  ;;  %9374 = vst [vmem:[#allocation107_spill] sm:$0xff] %v6815_v29  ;;  %v2156_v51 = vmul.f32 %v9399_v47, %v9306_v35  ;;  %v2157_v36 = vmul.f32 %v9399_v47, %v9290_v54  ;;  %v2158_v20 = vmul.f32 %v9399_v47, %v9292_v50  ;;  %v9401_v9 = vld [vmem:[#allocation40_spill] sm:$0xff]  ;;  %v9402_v58 = vld [vmem:[#allocation41_spill] sm:$0xff] }
 0x257   :  { %9376 = vst [vmem:[#allocation59_spill] sm:$0xff] %v6818_v28  ;;  %9378 = vst [vmem:[#allocation66_spill] sm:$0xff] %v6821_v55  ;;  %v2159_v2 = vmul.f32 %v9399_v47, %v9293_v25  ;;  %v2160_v42 = vmul.f32 %v9399_v47, %v9294_v19  ;;  %v2161_v32 = vmul.f32 %v9399_v47, %v9400_v53  ;;  %v9403_v59 = vld [vmem:[#allocation42_spill] sm:$0xff]  ;;  %v9404_v6 = vld [vmem:[#allocation43_spill] sm:$0xff] }
 0x258   :  { %9380 = vst [vmem:[#allocation108_spill] sm:$0xff] %v6824_v63  ;;  %9382 = vst [vmem:[#allocation16_spill] sm:$0xff] %v6827_v46  ;;  %v2162_v18 = vmul.f32 %v9399_v47, %v9401_v9  ;;  %v2163_v49 = vmul.f32 %v9399_v47, %v9402_v58  ;;  %v2164_v16 = vmul.f32 %v9399_v47, %v9403_v59  ;;  %v9405_v57 = vld [vmem:[#allocation45_spill] sm:$0xff]  ;;  %v9406_v14 = vld [vmem:[#allocation46_spill] sm:$0xff] }
 0x259   :  { %9384 = vst [vmem:[#allocation110_spill] sm:$0xff] %v6830_v12  ;;  %9386 = vst [vmem:[#allocation111_spill] sm:$0xff] %v6833_v44  ;;  %v2165_v3 = vmul.f32 %v9399_v47, %v9404_v6  ;;  %v2166_v34 = vmul.f32 %v9399_v47, %v9405_v57  ;;  %v2167_v43 = vmul.f32 %v9399_v47, %v9406_v14  ;;  %v9407_v8 = vld [vmem:[#allocation47_spill] sm:$0xff]  ;;  %v9408_v30 = vld [vmem:[#allocation72_spill] sm:$0xff] }
 0x25a   :  { %9388 = vst [vmem:[#allocation85_spill] sm:$0xff] %v6836_v10  ;;  %9390 = vst [vmem:[#allocation86_spill] sm:$0xff] %v6839_v15  ;;  %v2168_v1 = vmul.f32 %v9399_v47, %v9407_v8  ;;  %v9409_v48 = vld [vmem:[#allocation81_spill] sm:$0xff]  ;;  %v9412_v22 = vld [vmem:[#allocation131_spill] sm:$0xff] }
 0x25b   :  { %9392 = vst [vmem:[#allocation112_spill] sm:$0xff] %v6842_v23  ;;  %9394 = vst [vmem:[#allocation87_spill] sm:$0xff] %v6845_v56  ;;  %v2169_v4 = vmul.f32 %v9409_v48, %v9408_v30  ;;  %v9410_v40 = vld [vmem:[#allocation73_spill] sm:$0xff]  ;;  %v2172_v23 = vmul.f32 %v9409_v48, %v9306_v35  ;;  %v2173_v15 = vmul.f32 %v9409_v48, %v9290_v54  ;;  %v9413_v45 = vld [vmem:[#allocation12_spill] sm:$0xff] }
 0x25c   :  { %9396 = vst [vmem:[#allocation88_spill] sm:$0xff] %v6848_v21  ;;  %9398 = vst [vmem:[#allocation89_spill] sm:$0xff] %v6851_v33  ;;  %v2170_v33 = vmul.f32 %v9409_v48, %v9410_v40  ;;  %v9411_v21 = vld [vmem:[#allocation74_spill] sm:$0xff]  ;;  %v2174_v10 = vmul.f32 %v9409_v48, %v9292_v50  ;;  %v2175_v47 = vmul.f32 %v9409_v48, %v9293_v25  ;;  %v9414_v17 = vld [vmem:[#allocation132_spill] sm:$0xff] }
 0x25d   :  { %v2171_v56 = vmul.f32 %v9409_v48, %v9411_v21  ;;  %v2176_v44 = vmul.f32 %v9409_v48, %v9294_v19  ;;  %v2177_v12 = vmul.f32 %v9409_v48, %v9400_v53  ;;  %v2178_v46 = vmul.f32 %v9409_v48, %v9401_v9  ;;  %v9415_v37 = vld [vmem:[#allocation134_spill] sm:$0xff] }
 0x25e   :  { %v2179_v63 = vmul.f32 %v9409_v48, %v9402_v58  ;;  %v2180_v55 = vmul.f32 %v9409_v48, %v9403_v59  ;;  %v2181_v28 = vmul.f32 %v9409_v48, %v9404_v6  ;;  %v2182_v29 = vmul.f32 %v9409_v48, %v9405_v57 }
 0x25f   :  { %v2183_v11 = vmul.f32 %v9409_v48, %v9406_v14  ;;  %v2184_v31 = vmul.f32 %v9409_v48, %v9407_v8  ;;  %v2193_v39 = vadd.f32 %v9413_v45, %v9412_v22  ;;  %v2194_v26 = vadd.f32 %v9413_v45, %v9414_v17 }
 0x260   :  { %v2195_v27 = vadd.f32 %v9413_v45, %v9415_v37  ;;  %v2196_v61 = vadd.f32 %v9413_v45, %v2156_v51  ;;  %v2197_v7 = vadd.f32 %v9413_v45, %v2157_v36  ;;  %v2198_v52 = vadd.f32 %v9413_v45, %v2158_v20 }
 0x261   :  { %v2199_v0 = vadd.f32 %v9413_v45, %v2159_v2  ;;  %v2200_v38 = vadd.f32 %v9413_v45, %v2160_v42  ;;  %v2201_v48 = vadd.f32 %v9413_v45, %v2161_v32  ;;  %v2202_v22 = vadd.f32 %v9413_v45, %v2162_v18 }
 0x262   :  { %v2203_v17 = vadd.f32 %v9413_v45, %v2163_v49  ;;  %v2204_v41 = vadd.f32 %v9413_v45, %v2164_v16  ;;  %v2205_v37 = vadd.f32 %v9413_v45, %v2165_v3  ;;  %v2206_v51 = vadd.f32 %v9413_v45, %v2166_v34 }
 0x263   :  { %v2207_v36 = vadd.f32 %v9413_v45, %v2167_v43  ;;  %v2208_v20 = vadd.f32 %v9413_v45, %v2168_v1  ;;  %v2209_v2 = vadd.f32 %v2191_v60, %v2169_v4  ;;  %v2210_v62 = vadd.f32 %v2191_v60, %v2170_v33  ;;  %v6952_v1 = vpop.permute.xlu0 %3004 }
 0x264   :  { %v2211_v42 = vadd.f32 %v2191_v60, %v2171_v56  ;;  %v2212_v13 = vadd.f32 %v2191_v60, %v2172_v23  ;;  %v2213_v32 = vadd.f32 %v2191_v60, %v2173_v15  ;;  %v2214_v5 = vadd.f32 %v2191_v60, %v2174_v10  ;;  %9420 = vst [vmem:[#allocation90_spill] sm:$0xff] %v6952_v1 }
 0x265   :  { %v2215_v18 = vadd.f32 %v2191_v60, %v2175_v47  ;;  %v2216_v24 = vadd.f32 %v2191_v60, %v2176_v44  ;;  %v2217_v8 = vadd.f32 %v2191_v60, %v2177_v12  ;;  %v2218_v49 = vadd.f32 %v2191_v60, %v2178_v46 }
 0x266   :  { %v2219_v14 = vadd.f32 %v2191_v60, %v2179_v63  ;;  %v2220_v16 = vadd.f32 %v2191_v60, %v2180_v55  ;;  %v2221_v57 = vadd.f32 %v2191_v60, %v2181_v28  ;;  %v2222_v3 = vadd.f32 %v2191_v60, %v2182_v29  ;;  %v9418_v28 = vld [vmem:[#allocation46_spill] sm:$0xff]  ;;  %v9419_v63 = vld [vmem:[#allocation47_spill] sm:$0xff] }
 0x267   :  { %v2223_v6 = vadd.f32 %v2191_v60, %v2183_v11  ;;  %v2224_v34 = vadd.f32 %v2191_v60, %v2184_v31  ;;  %v2225_v43 = vmul.f32 %v2193_v39, %v9408_v30  ;;  %v2226_v45 = vmul.f32 %v2194_v26, %v9410_v40  ;;  %v9416_v31 = vld [vmem:[#allocation43_spill] sm:$0xff]  ;;  %v9417_v11 = vld [vmem:[#allocation45_spill] sm:$0xff] }
 0x268   :  { %v2227_v33 = vmul.f32 %v2195_v27, %v9411_v21  ;;  %v2228_v23 = vmul.f32 %v2196_v61, %v9306_v35  ;;  %v2229_v10 = vmul.f32 %v2197_v7, %v9290_v54  ;;  %v2230_v44 = vmul.f32 %v2198_v52, %v9292_v50 }
 0x269   :  { %v2231_v46 = vmul.f32 %v2199_v0, %v9293_v25  ;;  %v2232_v55 = vmul.f32 %v2200_v38, %v9294_v19  ;;  %v2233_v29 = vmul.f32 %v2201_v48, %v9400_v53  ;;  %v2234_v60 = vmul.f32 %v2202_v22, %v9401_v9  ;;  %v9421_v22 = vld [vmem:[#allocation49_spill] sm:$0xff] }
 0x26a   :  { %v2235_v39 = vmul.f32 %v2203_v17, %v9402_v58  ;;  %v2236_v26 = vmul.f32 %v2204_v41, %v9403_v59  ;;  %v2237_v27 = vmul.f32 %v2205_v37, %v9416_v31  ;;  %v2238_v61 = vmul.f32 %v2206_v51, %v9417_v11 }
 0x26b   :  { %v2239_v7 = vmul.f32 %v2207_v36, %v9418_v28  ;;  %v2240_v52 = vmul.f32 %v2208_v20, %v9419_v63  ;;  %v2241_v0 = vmul.f32 %v2209_v2, %v9408_v30  ;;  %v2242_v38 = vmul.f32 %v2210_v62, %v9410_v40 }
 0x26c   :  { %v2243_v12 = vmul.f32 %v2211_v42, %v9411_v21  ;;  %v2244_v15 = vmul.f32 %v2212_v13, %v9306_v35  ;;  %v2245_v56 = vmul.f32 %v2213_v32, %v9290_v54  ;;  %v2246_v41 = vmul.f32 %v2214_v5, %v9292_v50 }
 0x26d   :  { %v2247_v4 = vmul.f32 %v2215_v18, %v9293_v25  ;;  %v2248_v47 = vmul.f32 %v2216_v24, %v9294_v19  ;;  %v2249_v48 = vmul.f32 %v2217_v8, %v9400_v53  ;;  %v2485_v17 = vmul.f32 %v9421_v22, %v9419_v63  ;;  %v9422_v24 = vld [vmem:[#allocation64_spill] sm:$0xff]  ;;  %v2263_v18 = vpop.permute.xlu0 %2262 }
 0x26e   :  { %v2250_v62 = vmul.f32 %v2218_v49, %v9401_v9  ;;  %v2251_v37 = vmul.f32 %v2219_v14, %v9402_v58  ;;  %v2252_v13 = vmul.f32 %v2220_v16, %v9403_v59  ;;  %v2253_v51 = vmul.f32 %v2221_v57, %v9416_v31  ;;  %v9424_v9 = vld [vmem:[#allocation28_spill] sm:$0xff] }
 0x26f   :  { %v2254_v5 = vmul.f32 %v2222_v3, %v9417_v11  ;;  %v2255_v36 = vmul.f32 %v2223_v6, %v9418_v28  ;;  %v2256_v20 = vmul.f32 %v2224_v34, %v9419_v63  ;;  %v2265_v2 = vadd.f32 %v9422_v24, %v2225_v43  ;;  %v9423_v6 = vld [vmem:[#allocation14_spill] sm:$0xff] }
 0x270   :  { %v2266_v8 = vadd.f32 %v9422_v24, %v2226_v45  ;;  %v2267_v42 = vadd.f32 %v9422_v24, %v2227_v33  ;;  %v2268_v32 = vadd.f32 %v9422_v24, %v2228_v23  ;;  %v2269_v14 = vadd.f32 %v9422_v24, %v2229_v10 }
 0x271   :  { %v2270_v49 = vadd.f32 %v9422_v24, %v2230_v44  ;;  %v2271_v57 = vadd.f32 %v9422_v24, %v2231_v46  ;;  %v2272_v16 = vadd.f32 %v9422_v24, %v2232_v55  ;;  %v2525_v3 = vadd.f32 %v9423_v6, %v2485_v17 }
 0x272   :  { %v2273_v34 = vadd.f32 %v9422_v24, %v2233_v29  ;;  %v2274_v43 = vadd.f32 %v9422_v24, %v2234_v60  ;;  %v2275_v45 = vadd.f32 %v9422_v24, %v2235_v39  ;;  %v2276_v33 = vadd.f32 %v9422_v24, %v2236_v26 }
 0x273   :  { %v2277_v23 = vadd.f32 %v9422_v24, %v2237_v27  ;;  %v2278_v10 = vadd.f32 %v9422_v24, %v2238_v61  ;;  %v2279_v44 = vadd.f32 %v9422_v24, %v2239_v7  ;;  %v2280_v46 = vadd.f32 %v9422_v24, %v2240_v52  ;;  %v9425_v52 = vld [vmem:[#allocation101_spill] sm:$0xff] }
 0x274   :  { %v2281_v1 = vadd.f32 %v2263_v18, %v2241_v0  ;;  %v2282_v55 = vadd.f32 %v2263_v18, %v2242_v38  ;;  %v2283_v40 = vadd.f32 %v2263_v18, %v2243_v12  ;;  %v2284_v17 = vadd.f32 %v2263_v18, %v2244_v15  ;;  %v9426_v38 = vld [vmem:[#allocation104_spill] sm:$0xff]  ;;  %v9427_v15 = vld [vmem:[#allocation13_spill] sm:$0xff] }
 0x275   :  { %v2285_v6 = vadd.f32 %v2263_v18, %v2245_v56  ;;  %v2286_v29 = vadd.f32 %v2263_v18, %v2246_v41  ;;  %v2287_v28 = vadd.f32 %v2263_v18, %v2247_v4  ;;  %v2557_v60 = vmul.f32 %v2525_v3, %v9419_v63  ;;  %v9428_v41 = vld [vmem:[#allocation21_spill] sm:$0xff] }
 0x276   :  { %v2288_v39 = vadd.f32 %v2263_v18, %v2248_v47  ;;  %v2289_v11 = vadd.f32 %v2263_v18, %v2249_v48  ;;  %v2290_v26 = vadd.f32 %v2263_v18, %v2250_v62  ;;  %v2291_v31 = vadd.f32 %v2263_v18, %v2251_v37  ;;  %v9429_v47 = vld [vmem:[#allocation63_spill] sm:$0xff] }
 0x277   :  { %v2292_v27 = vadd.f32 %v2263_v18, %v2252_v13  ;;  %v2293_v59 = vadd.f32 %v2263_v18, %v2253_v51  ;;  %v2294_v61 = vadd.f32 %v2263_v18, %v2254_v5  ;;  %v2295_v58 = vadd.f32 %v2263_v18, %v2255_v36  ;;  %v9430_v62 = vld [vmem:[#allocation99_spill] sm:$0xff]  ;;  %v9431_v13 = vld [vmem:[#allocation18_spill] sm:$0xff] }
 0x278   :  { %v2296_v7 = vadd.f32 %v2263_v18, %v2256_v20  ;;  %v2300_v0 = vrot.slane %v9425_v52, %v9424_v9  ;;  %v2304_v12 = vrot.slane %v9426_v38, %v9424_v9  ;;  %v2308_v56 = vrot.slane %v9427_v15, %v9424_v9  ;;  %v9433_v5 = vld [vmem:[#allocation22_spill] sm:$0xff]  ;;  %v9434_v20 = vld [vmem:[#allocation135_spill] sm:$0xff] }
 0x279   :  { %v2312_v4 = vrot.slane %v9428_v41, %v9424_v9  ;;  %v2316_v48 = vrot.slane %v9429_v47, %v9424_v9  ;;  %v2320_v37 = vrot.slane %v9430_v62, %v9424_v9  ;;  %v6997_v51 = vadd.f32 %v9431_v13, %v2557_v60  ;;  %v9435_v18 = vld [vmem:[#allocation79_spill] sm:$0xff]  ;;  %v9436_v41 = vld [vmem:[#allocation137_spill] sm:$0xff]  ;;  %v9437_v47 = vld [vmem:[#allocation100_spill] sm:$0xff] }
 0x27a   :  { %v2324_v36 = vrot.slane %v9433_v5, %v9424_v9  ;;  %v2328_v24 = vrot.slane %v9434_v20, %v9424_v9  ;;  %v2332_v3 = vrot.slane %v9435_v18, %v9424_v9  ;;  %v2336_v15 = vrot.slane %v9436_v41, %v9424_v9  ;;  %v9438_v62 = vld [vmem:[#allocation102_spill] sm:$0xff]  ;;  %v9439_v60 = vld [vmem:[#allocation103_spill] sm:$0xff]  ;;  %v9440_v5 = vld [vmem:[#allocation24_spill] sm:$0xff] }
 0x27b   :  { %9432 = vst [vmem:[#allocation91_spill] sm:$0xff] %v6997_v51  ;;  %v2340_v38 = vrot.slane %v9437_v47, %v9424_v9  ;;  %v2344_v52 = vrot.slane %v9438_v62, %v9424_v9  ;;  %v2348_v13 = vrot.slane %v9439_v60, %v9424_v9  ;;  %v2352_v63 = vrot.slane %v9440_v5, %v9424_v9  ;;  %v9441_v20 = vld [vmem:[#allocation44_spill] sm:$0xff]  ;;  %v9442_v18 = vld [vmem:[#allocation93_spill] sm:$0xff] }
 0x27c   :  { %v2356_v53 = vrot.slane %v9441_v20, %v9424_v9  ;;  %v2360_v19 = vrot.slane %v9442_v18, %v9424_v9  ;;  %v2361_v25 = vsub.f32 %v2265_v2, %v2300_v0  ;;  %v2362_v41 = vsub.f32 %v2266_v8, %v2304_v12 }
 0x27d   :  { %v2363_v50 = vsub.f32 %v2267_v42, %v2308_v56  ;;  %v2364_v54 = vsub.f32 %v2268_v32, %v2312_v4  ;;  %v2365_v47 = vsub.f32 %v2269_v14, %v2316_v48  ;;  %v2366_v35 = vsub.f32 %v2270_v49, %v2320_v37 }
 0x27e   :  { %v2367_v21 = vsub.f32 %v2271_v57, %v2324_v36  ;;  %v2368_v62 = vsub.f32 %v2272_v16, %v2328_v24  ;;  %v2369_v22 = vsub.f32 %v2273_v34, %v2332_v3  ;;  %v2370_v30 = vsub.f32 %v2274_v43, %v2336_v15 }
 0x27f   :  { %v2371_v60 = vsub.f32 %v2275_v45, %v2340_v38  ;;  %v2372_v51 = vsub.f32 %v2276_v33, %v2344_v52  ;;  %v2373_v5 = vsub.f32 %v2277_v23, %v2348_v13  ;;  %v2374_v20 = vsub.f32 %v2278_v10, %v2352_v63 }
 0x280   :  { %v2375_v9 = vsub.f32 %v2279_v44, %v2356_v53  ;;  %v2376_v18 = vsub.f32 %v2280_v46, %v2360_v19  ;;  %v2377_v2 = vsub.f32 %v2281_v1, %v2300_v0  ;;  %v2378_v8 = vsub.f32 %v2282_v55, %v2304_v12 }
 0x281   :  { %v2379_v42 = vsub.f32 %v2283_v40, %v2308_v56  ;;  %v2380_v32 = vsub.f32 %v2284_v17, %v2312_v4  ;;  %v2381_v14 = vsub.f32 %v2285_v6, %v2316_v48  ;;  %v2382_v49 = vsub.f32 %v2286_v29, %v2320_v37 }
 0x282   :  { %v2383_v57 = vsub.f32 %v2287_v28, %v2324_v36  ;;  %v2384_v16 = vsub.f32 %v2288_v39, %v2328_v24  ;;  %v2385_v34 = vsub.f32 %v2289_v11, %v2332_v3  ;;  %v2386_v43 = vsub.f32 %v2290_v26, %v2336_v15 }
 0x283   :  { %v2387_v45 = vsub.f32 %v2291_v31, %v2340_v38  ;;  %v2388_v33 = vsub.f32 %v2292_v27, %v2344_v52  ;;  %v2389_v23 = vsub.f32 %v2293_v59, %v2348_v13  ;;  %v2390_v10 = vsub.f32 %v2294_v61, %v2352_v63  ;;  %v9444_v52 = vld [vmem:[#allocation93_spill] sm:$0xff]  ;;  %v9450_v13 = vld [vmem:[#allocation96_spill] sm:$0xff] }
 0x284   :  { %v2391_v44 = vsub.f32 %v2295_v58, %v2356_v53  ;;  %v2392_v46 = vsub.f32 %v2296_v7, %v2360_v19  ;;  %v2393_v0 = vmul.f32 %v2361_v25, %v2361_v25  ;;  %v2394_v1 = vmul.f32 %v2362_v41, %v2362_v41 }
 0x285   :  { %v2395_v12 = vmul.f32 %v2363_v50, %v2363_v50  ;;  %v2396_v55 = vmul.f32 %v2364_v54, %v2364_v54  ;;  %v2397_v40 = vmul.f32 %v2365_v47, %v2365_v47  ;;  %v2398_v56 = vmul.f32 %v2366_v35, %v2366_v35  ;;  %v9446_v47 = vld [vmem:[#allocation94_spill] sm:$0xff] }
 0x286   :  { %v2399_v4 = vmul.f32 %v2367_v21, %v2367_v21  ;;  %v2400_v17 = vmul.f32 %v2368_v62, %v2368_v62  ;;  %v2401_v6 = vmul.f32 %v2369_v22, %v2369_v22  ;;  %v2402_v29 = vmul.f32 %v2370_v30, %v2370_v30  ;;  %v9443_v30 = vld [vmem:[#allocation29_spill] sm:$0xff]  ;;  %v9448_v62 = vld [vmem:[#allocation95_spill] sm:$0xff] }
 0x287   :  { %v2403_v28 = vmul.f32 %v2371_v60, %v2371_v60  ;;  %v2404_v39 = vmul.f32 %v2372_v51, %v2372_v51  ;;  %v2405_v11 = vmul.f32 %v2373_v5, %v2373_v5  ;;  %v2406_v26 = vmul.f32 %v2374_v20, %v2374_v20  ;;  %v9452_v5 = vld [vmem:[#allocation97_spill] sm:$0xff]  ;;  %v9454_v20 = vld [vmem:[#allocation98_spill] sm:$0xff]  ;;  %v9458_v60 = vld [vmem:[#allocation140_spill] sm:$0xff] }
 0x288   :  { %v2407_v31 = vmul.f32 %v2375_v9, %v2375_v9  ;;  %v2408_v27 = vmul.f32 %v2376_v18, %v2376_v18  ;;  %v2409_v59 = vmul.f32 %v2377_v2, %v2377_v2  ;;  %v2410_v63 = vmul.f32 %v2378_v8, %v2378_v8  ;;  %v9456_v18 = vld [vmem:[#allocation139_spill] sm:$0xff]  ;;  %v9460_v8 = vld [vmem:[#allocation142_spill] sm:$0xff] }
 0x289   :  { %v2411_v53 = vmul.f32 %v2379_v42, %v2379_v42  ;;  %v2412_v19 = vmul.f32 %v2380_v32, %v2380_v32  ;;  %v2413_v25 = vmul.f32 %v2381_v14, %v2381_v14  ;;  %v2414_v58 = vmul.f32 %v2382_v49, %v2382_v49  ;;  %v9462_v32 = vld [vmem:[#allocation143_spill] sm:$0xff]  ;;  %v9464_v49 = vld [vmem:[#allocation144_spill] sm:$0xff] }
 0x28a   :  { %v2415_v50 = vmul.f32 %v2383_v57, %v2383_v57  ;;  %v2416_v54 = vmul.f32 %v2384_v16, %v2384_v16  ;;  %v2417_v61 = vmul.f32 %v2385_v34, %v2385_v34  ;;  %v2418_v35 = vmul.f32 %v2386_v43, %v2386_v43  ;;  %v9466_v16 = vld [vmem:[#allocation145_spill] sm:$0xff]  ;;  %v9468_v43 = vld [vmem:[#allocation76_spill] sm:$0xff] }
 0x28b   :  { %v2419_v21 = vmul.f32 %v2387_v45, %v2387_v45  ;;  %v2420_v7 = vmul.f32 %v2388_v33, %v2388_v33  ;;  %v2421_v22 = vmul.f32 %v2389_v23, %v2389_v23  ;;  %v7021_v38 = vrot.slane %v9444_v52, %v9443_v30  ;;  %v9470_v33 = vld [vmem:[#allocation91_spill] sm:$0xff] }
 0x28c   :  { %v2422_v15 = vmul.f32 %v2390_v10, %v2390_v10  ;;  %v2423_v9 = vmul.f32 %v2391_v44, %v2391_v44  ;;  %v2424_v41 = vmul.f32 %v2392_v46, %v2392_v46  ;;  %v7024_v48 = vadd.f32 %v2393_v0, %v9446_v47  ;;  %v9471_v10 = vld [vmem:[#allocation51_spill] sm:$0xff]  ;;  %v9473_v46 = vld [vmem:[#allocation52_spill] sm:$0xff]  ;;  %v9488_v47 = vld [vmem:[#allocation66_spill] sm:$0xff] }
 0x28d   :  { %9445 = vst [vmem:[#allocation92_spill] sm:$0xff] %v7021_v38  ;;  %v7027_v37 = vadd.f32 %v2394_v1, %v9448_v62  ;;  %v7030_v51 = vadd.f32 %v2395_v12, %v9450_v13  ;;  %v7033_v36 = vadd.f32 %v2396_v55, %v9452_v5  ;;  %v7036_v24 = vadd.f32 %v2397_v40, %v9454_v20  ;;  %v9475_v1 = vld [vmem:[#allocation78_spill] sm:$0xff]  ;;  %v9486_v52 = vld [vmem:[#allocation59_spill] sm:$0xff]  ;;  %v9490_v62 = vld [vmem:[#allocation108_spill] sm:$0xff] }
 0x28e   :  { %9447 = vst [vmem:[#allocation70_spill] sm:$0xff] %v7024_v48  ;;  %v7039_v3 = vadd.f32 %v2398_v56, %v9456_v18  ;;  %v7042_v2 = vadd.f32 %v2399_v4, %v9458_v60  ;;  %v7045_v42 = vadd.f32 %v2400_v17, %v9460_v8  ;;  %v7048_v14 = vadd.f32 %v2401_v6, %v9462_v32  ;;  %v9477_v55 = vld [vmem:[#allocation130_spill] sm:$0xff]  ;;  %v9478_v56 = vld [vmem:[#allocation105_spill] sm:$0xff] }
 0x28f   :  { %9449 = vst [vmem:[#allocation71_spill] sm:$0xff] %v7027_v37  ;;  %9451 = vst [vmem:[#allocation146_spill] sm:$0xff] %v7030_v51  ;;  %v7051_v57 = vadd.f32 %v2402_v29, %v9464_v49  ;;  %v7054_v34 = vadd.f32 %v2403_v28, %v9466_v16  ;;  %v7057_v45 = vadd.f32 %v2404_v39, %v9468_v43  ;;  %v9480_v17 = vld [vmem:[#allocation109_spill] sm:$0xff]  ;;  %v9482_v29 = vld [vmem:[#allocation106_spill] sm:$0xff] }
 0x290   :  { %9453 = vst [vmem:[#allocation48_spill] sm:$0xff] %v7033_v36  ;;  %9455 = vst [vmem:[#allocation58_spill] sm:$0xff] %v7036_v24  ;;  %v2693_v23 = vsub.f32 %v9470_v33, %v7021_v38  ;;  %v7062_v44 = vadd.f32 %v2405_v11, %v9471_v10  ;;  %v7065_v0 = vadd.f32 %v2406_v26, %v9473_v46  ;;  %v9484_v39 = vld [vmem:[#allocation107_spill] sm:$0xff]  ;;  %v9500_v60 = vld [vmem:[#allocation86_spill] sm:$0xff] }
 0x291   :  { %9457 = vst [vmem:[#allocation120_spill] sm:$0xff] %v7039_v3  ;;  %9459 = vst [vmem:[#allocation19_spill] sm:$0xff] %v7042_v2  ;;  %v7068_v12 = vadd.f32 %v2407_v31, %v9475_v1  ;;  %v2440_v40 = vadd.f32 %v2408_v27, %v9477_v55  ;;  %v7072_v4 = vadd.f32 %v2409_v59, %v9478_v56  ;;  %v9492_v59 = vld [vmem:[#allocation16_spill] sm:$0xff]  ;;  %v9511_v33 = vld [vmem:[#allocation49_spill] sm:$0xff] }
 0x292   :  { %9461 = vst [vmem:[#allocation121_spill] sm:$0xff] %v7045_v42  ;;  %9463 = vst [vmem:[#allocation20_spill] sm:$0xff] %v7048_v14  ;;  %v7075_v6 = vadd.f32 %v2410_v63, %v9480_v17  ;;  %v7078_v28 = vadd.f32 %v2411_v53, %v9482_v29  ;;  %v7081_v11 = vadd.f32 %v2412_v19, %v9484_v39  ;;  %v9494_v63 = vld [vmem:[#allocation110_spill] sm:$0xff]  ;;  %v9496_v53 = vld [vmem:[#allocation111_spill] sm:$0xff] }
 0x293   :  { %9465 = vst [vmem:[#allocation69_spill] sm:$0xff] %v7051_v57  ;;  %9467 = vst [vmem:[#allocation122_spill] sm:$0xff] %v7054_v34  ;;  %v7084_v26 = vadd.f32 %v2413_v25, %v9486_v52  ;;  %v7087_v31 = vadd.f32 %v2414_v58, %v9488_v47  ;;  %v7090_v27 = vadd.f32 %v2415_v50, %v9490_v62  ;;  %v9498_v19 = vld [vmem:[#allocation85_spill] sm:$0xff]  ;;  %v9502_v58 = vld [vmem:[#allocation112_spill] sm:$0xff] }
 0x294   :  { %9469 = vst [vmem:[#allocation123_spill] sm:$0xff] %v7057_v45  ;;  %9472 = vst [vmem:[#allocation125_spill] sm:$0xff] %v7062_v44  ;;  %v7093_v13 = vadd.f32 %v2416_v54, %v9492_v59  ;;  %v7096_v5 = vadd.f32 %v2417_v61, %v9494_v63  ;;  %v7099_v20 = vadd.f32 %v2418_v35, %v9496_v53  ;;  %v9504_v50 = vld [vmem:[#allocation87_spill] sm:$0xff]  ;;  %v9506_v54 = vld [vmem:[#allocation88_spill] sm:$0xff] }
 0x295   :  { %9474 = vst [vmem:[#allocation50_spill] sm:$0xff] %v7065_v0  ;;  %9476 = vst [vmem:[#allocation65_spill] sm:$0xff] %v7068_v12  ;;  %v7102_v18 = vadd.f32 %v2419_v21, %v9498_v19  ;;  %v2725_v25 = vmul.f32 %v2693_v23, %v2693_v23  ;;  %v7105_v8 = vadd.f32 %v2420_v7, %v9500_v60  ;;  %v9508_v61 = vld [vmem:[#allocation89_spill] sm:$0xff]  ;;  %v9510_v35 = vld [vmem:[#allocation72_spill] sm:$0xff]  ;;  %v2508_v12 = vpop.permute.xlu1 %2507 }
 0x296   :  { %9479 = vst [vmem:[#allocation124_spill] sm:$0xff] %v7072_v4  ;;  %9481 = vst [vmem:[#allocation32_spill] sm:$0xff] %v7075_v6  ;;  %v7108_v32 = vadd.f32 %v2421_v22, %v9502_v58  ;;  %v7111_v49 = vadd.f32 %v2422_v15, %v9504_v50  ;;  %v7114_v16 = vadd.f32 %v2423_v9, %v9506_v54  ;;  %v9512_v10 = vld [vmem:[#allocation74_spill] sm:$0xff]  ;;  %v9514_v46 = vld [vmem:[#allocation75_spill] sm:$0xff] }
 0x297   :  { %9483 = vst [vmem:[#allocation126_spill] sm:$0xff] %v7078_v28  ;;  %9485 = vst [vmem:[#allocation128_spill] sm:$0xff] %v7081_v11  ;;  %v7117_v43 = vadd.f32 %v2424_v41, %v9508_v61  ;;  %v2470_v21 = vmul.f32 %v9511_v33, %v9510_v35  ;;  %v2472_v23 = vmul.f32 %v9511_v33, %v9512_v10  ;;  %v9515_v1 = vld [vmem:[#allocation34_spill] sm:$0xff]  ;;  %v9516_v55 = vld [vmem:[#allocation35_spill] sm:$0xff] }
 0x298   :  { %9487 = vst [vmem:[#allocation138_spill] sm:$0xff] %v7084_v26  ;;  %9489 = vst [vmem:[#allocation129_spill] sm:$0xff] %v7087_v31  ;;  %v7123_v7 = vadd.f32 %v2725_v25, %v2440_v40  ;;  %v2473_v22 = vmul.f32 %v9511_v33, %v9514_v46  ;;  %v2474_v15 = vmul.f32 %v9511_v33, %v9515_v1  ;;  %v9517_v56 = vld [vmem:[#allocation37_spill] sm:$0xff]  ;;  %v9518_v17 = vld [vmem:[#allocation38_spill] sm:$0xff] }
 0x299   :  { %9491 = vst [vmem:[#allocation54_spill] sm:$0xff] %v7090_v27  ;;  %9493 = vst [vmem:[#allocation67_spill] sm:$0xff] %v7093_v13  ;;  %v2475_v9 = vmul.f32 %v9511_v33, %v9516_v55  ;;  %v2476_v41 = vmul.f32 %v9511_v33, %v9517_v56  ;;  %v2477_v29 = vmul.f32 %v9511_v33, %v9518_v17  ;;  %v9519_v39 = vld [vmem:[#allocation39_spill] sm:$0xff]  ;;  %v9520_v40 = vld [vmem:[#allocation40_spill] sm:$0xff] }
 0x29a   :  { %9495 = vst [vmem:[#allocation68_spill] sm:$0xff] %v7096_v5  ;;  %9497 = vst [vmem:[#allocation23_spill] sm:$0xff] %v7099_v20  ;;  %v2478_v52 = vmul.f32 %v9511_v33, %v9519_v39  ;;  %v2479_v47 = vmul.f32 %v9511_v33, %v9520_v40  ;;  %v9521_v62 = vld [vmem:[#allocation41_spill] sm:$0xff]  ;;  %v9522_v63 = vld [vmem:[#allocation42_spill] sm:$0xff] }
 0x29b   :  { %9499 = vst [vmem:[#allocation127_spill] sm:$0xff] %v7102_v18  ;;  %9501 = vst [vmem:[#allocation55_spill] sm:$0xff] %v7105_v8  ;;  %v2480_v59 = vmul.f32 %v9511_v33, %v9521_v62  ;;  %v2481_v53 = vmul.f32 %v9511_v33, %v9522_v63  ;;  %v9523_v19 = vld [vmem:[#allocation43_spill] sm:$0xff]  ;;  %v9524_v60 = vld [vmem:[#allocation45_spill] sm:$0xff] }
 0x29c   :  { %9503 = vst [vmem:[#allocation56_spill] sm:$0xff] %v7108_v32  ;;  %9505 = vst [vmem:[#allocation80_spill] sm:$0xff] %v7111_v49  ;;  %v2482_v25 = vmul.f32 %v9511_v33, %v9523_v19  ;;  %v2483_v58 = vmul.f32 %v9511_v33, %v9524_v60  ;;  %v9525_v50 = vld [vmem:[#allocation46_spill] sm:$0xff]  ;;  %v9526_v61 = vld [vmem:[#allocation136_spill] sm:$0xff] }
 0x29d   :  { %9507 = vst [vmem:[#allocation57_spill] sm:$0xff] %v7114_v16  ;;  %9509 = vst [vmem:[#allocation147_spill] sm:$0xff] %v7117_v43  ;;  %v2484_v54 = vmul.f32 %v9511_v33, %v9525_v50  ;;  %v9527_v43 = vld [vmem:[#allocation73_spill] sm:$0xff]  ;;  %v2488_v49 = vmul.f32 %v9526_v61, %v9512_v10  ;;  %v2489_v32 = vmul.f32 %v9526_v61, %v9514_v46  ;;  %v9528_v6 = vld [vmem:[#allocation47_spill] sm:$0xff] }
 0x29e   :  { %9513 = vst [vmem:[#allocation148_spill] sm:$0xff] %v7123_v7  ;;  %v2486_v7 = vmul.f32 %v9526_v61, %v9510_v35  ;;  %v2487_v16 = vmul.f32 %v9526_v61, %v9527_v43  ;;  %v2490_v8 = vmul.f32 %v9526_v61, %v9515_v1  ;;  %v2491_v18 = vmul.f32 %v9526_v61, %v9516_v55  ;;  %v9529_v0 = vld [vmem:[#allocation14_spill] sm:$0xff]  ;;  %v9530_v45 = vld [vmem:[#allocation133_spill] sm:$0xff] }
 0x29f   :  { %v2492_v33 = vmul.f32 %v9526_v61, %v9517_v56  ;;  %v2493_v20 = vmul.f32 %v9526_v61, %v9518_v17  ;;  %v2494_v5 = vmul.f32 %v9526_v61, %v9519_v39  ;;  %v2495_v13 = vmul.f32 %v9526_v61, %v9520_v40 }
 0x2a0   :  { %v2496_v27 = vmul.f32 %v9526_v61, %v9521_v62  ;;  %v2497_v31 = vmul.f32 %v9526_v61, %v9522_v63  ;;  %v2498_v26 = vmul.f32 %v9526_v61, %v9523_v19  ;;  %v2499_v11 = vmul.f32 %v9526_v61, %v9524_v60 }
 0x2a1   :  { %v2500_v28 = vmul.f32 %v9526_v61, %v9525_v50  ;;  %v2501_v4 = vmul.f32 %v9526_v61, %v9528_v6  ;;  %v2510_v44 = vadd.f32 %v9529_v0, %v2470_v21  ;;  %v2511_v34 = vadd.f32 %v9529_v0, %v9530_v45 }
 0x2a2   :  { %v2512_v57 = vadd.f32 %v9529_v0, %v2472_v23  ;;  %v2513_v14 = vadd.f32 %v9529_v0, %v2473_v22  ;;  %v2514_v42 = vadd.f32 %v9529_v0, %v2474_v15  ;;  %v2515_v2 = vadd.f32 %v9529_v0, %v2475_v9 }
 0x2a3   :  { %v2516_v3 = vadd.f32 %v9529_v0, %v2476_v41  ;;  %v2517_v24 = vadd.f32 %v9529_v0, %v2477_v29  ;;  %v2518_v61 = vadd.f32 %v9529_v0, %v2478_v52  ;;  %v2519_v36 = vadd.f32 %v9529_v0, %v2479_v47 }
 0x2a4   :  { %v2520_v21 = vadd.f32 %v9529_v0, %v2480_v59  ;;  %v2521_v45 = vadd.f32 %v9529_v0, %v2481_v53  ;;  %v2522_v23 = vadd.f32 %v9529_v0, %v2482_v25  ;;  %v2523_v22 = vadd.f32 %v9529_v0, %v2483_v58 }
 0x2a5   :  { %v2524_v15 = vadd.f32 %v9529_v0, %v2484_v54  ;;  %v2526_v51 = vadd.f32 %v2508_v12, %v2486_v7  ;;  %v2527_v9 = vadd.f32 %v2508_v12, %v2487_v16  ;;  %v2528_v38 = vadd.f32 %v2508_v12, %v2488_v49 }
 0x2a6   :  { %v2529_v41 = vadd.f32 %v2508_v12, %v2489_v32  ;;  %v2530_v37 = vadd.f32 %v2508_v12, %v2490_v8  ;;  %v2531_v29 = vadd.f32 %v2508_v12, %v2491_v18  ;;  %v2532_v48 = vadd.f32 %v2508_v12, %v2492_v33 }
 0x2a7   :  { %v2533_v52 = vadd.f32 %v2508_v12, %v2493_v20  ;;  %v2534_v30 = vadd.f32 %v2508_v12, %v2494_v5  ;;  %v2535_v47 = vadd.f32 %v2508_v12, %v2495_v13  ;;  %v2536_v6 = vadd.f32 %v2508_v12, %v2496_v27 }
 0x2a8   :  { %v2537_v59 = vadd.f32 %v2508_v12, %v2497_v31  ;;  %v2538_v50 = vadd.f32 %v2508_v12, %v2498_v26  ;;  %v2539_v53 = vadd.f32 %v2508_v12, %v2499_v11  ;;  %v2540_v60 = vadd.f32 %v2508_v12, %v2500_v28  ;;  %v9532_v28 = vld [vmem:[#allocation46_spill] sm:$0xff] }
 0x2a9   :  { %v2541_v25 = vadd.f32 %v2508_v12, %v2501_v4  ;;  %v2542_v58 = vmul.f32 %v2510_v44, %v9510_v35  ;;  %v2543_v0 = vmul.f32 %v2511_v34, %v9527_v43  ;;  %v2544_v16 = vmul.f32 %v2512_v57, %v9512_v10  ;;  %v9531_v4 = vld [vmem:[#allocation45_spill] sm:$0xff] }
 0x2aa   :  { %v2545_v32 = vmul.f32 %v2513_v14, %v9514_v46  ;;  %v2546_v18 = vmul.f32 %v2514_v42, %v9515_v1  ;;  %v2547_v20 = vmul.f32 %v2515_v2, %v9516_v55  ;;  %v2548_v13 = vmul.f32 %v2516_v3, %v9517_v56 }
 0x2ab   :  { %v2549_v31 = vmul.f32 %v2517_v24, %v9518_v17  ;;  %v2550_v11 = vmul.f32 %v2518_v61, %v9519_v39  ;;  %v2551_v12 = vmul.f32 %v2519_v36, %v9520_v40  ;;  %v2552_v44 = vmul.f32 %v2520_v21, %v9521_v62 }
 0x2ac   :  { %v2553_v34 = vmul.f32 %v2521_v45, %v9522_v63  ;;  %v2554_v57 = vmul.f32 %v2522_v23, %v9523_v19  ;;  %v2555_v14 = vmul.f32 %v2523_v22, %v9531_v4  ;;  %v2556_v42 = vmul.f32 %v2524_v15, %v9532_v28 }
 0x2ad   :  { %v2558_v2 = vmul.f32 %v2526_v51, %v9510_v35  ;;  %v2559_v3 = vmul.f32 %v2527_v9, %v9527_v43  ;;  %v2560_v24 = vmul.f32 %v2528_v38, %v9512_v10  ;;  %v2561_v26 = vmul.f32 %v2529_v41, %v9514_v46  ;;  %v9533_v10 = vld [vmem:[#allocation47_spill] sm:$0xff] }
 0x2ae   :  { %v2562_v36 = vmul.f32 %v2530_v37, %v9515_v1  ;;  %v2563_v27 = vmul.f32 %v2531_v29, %v9516_v55  ;;  %v2564_v5 = vmul.f32 %v2532_v48, %v9517_v56  ;;  %v2565_v8 = vmul.f32 %v2533_v52, %v9518_v17  ;;  %v9534_v1 = vld [vmem:[#allocation18_spill] sm:$0xff]  ;;  %v2580_v56 = vpop.permute.xlu1 %2579 }
 0x2af   :  { %v2566_v49 = vmul.f32 %v2534_v30, %v9519_v39  ;;  %v2567_v7 = vmul.f32 %v2535_v47, %v9520_v40  ;;  %v2568_v51 = vmul.f32 %v2536_v6, %v9521_v62  ;;  %v2569_v43 = vmul.f32 %v2537_v59, %v9522_v63 }
 0x2b0   :  { %v2570_v38 = vmul.f32 %v2538_v50, %v9523_v19  ;;  %v2571_v35 = vmul.f32 %v2539_v53, %v9531_v4  ;;  %v2572_v37 = vmul.f32 %v2540_v60, %v9532_v28  ;;  %v2573_v46 = vmul.f32 %v2541_v25, %v9533_v10  ;;  %v9541_v4 = vld [vmem:[#allocation99_spill] sm:$0xff]  ;;  %v9542_v28 = vld [vmem:[#allocation22_spill] sm:$0xff]  ;;  %v9550_v10 = vld [vmem:[#allocation44_spill] sm:$0xff] }
 0x2b1   :  { %v2582_v48 = vadd.f32 %v9534_v1, %v2542_v58  ;;  %v2583_v55 = vadd.f32 %v9534_v1, %v2543_v0  ;;  %v2584_v30 = vadd.f32 %v9534_v1, %v2544_v16  ;;  %v2585_v17 = vadd.f32 %v9534_v1, %v2545_v32  ;;  %v9535_v16 = vld [vmem:[#allocation29_spill] sm:$0xff] }
 0x2b2   :  { %v2586_v6 = vadd.f32 %v9534_v1, %v2546_v18  ;;  %v2587_v39 = vadd.f32 %v9534_v1, %v2547_v20  ;;  %v2588_v40 = vadd.f32 %v9534_v1, %v2548_v13  ;;  %v2589_v62 = vadd.f32 %v9534_v1, %v2549_v31  ;;  %v9536_v32 = vld [vmem:[#allocation101_spill] sm:$0xff]  ;;  %v9537_v20 = vld [vmem:[#allocation104_spill] sm:$0xff] }
 0x2b3   :  { %v2590_v63 = vadd.f32 %v9534_v1, %v2550_v11  ;;  %v2591_v19 = vadd.f32 %v9534_v1, %v2551_v12  ;;  %v2592_v60 = vadd.f32 %v9534_v1, %v2552_v44  ;;  %v2593_v50 = vadd.f32 %v9534_v1, %v2553_v34  ;;  %v9538_v31 = vld [vmem:[#allocation13_spill] sm:$0xff]  ;;  %v9540_v34 = vld [vmem:[#allocation63_spill] sm:$0xff] }
 0x2b4   :  { %v2594_v54 = vadd.f32 %v9534_v1, %v2554_v57  ;;  %v2595_v33 = vadd.f32 %v9534_v1, %v2555_v14  ;;  %v2596_v61 = vadd.f32 %v9534_v1, %v2556_v42  ;;  %v2598_v21 = vadd.f32 %v2580_v56, %v2558_v2  ;;  %v9539_v12 = vld [vmem:[#allocation21_spill] sm:$0xff]  ;;  %v9543_v2 = vld [vmem:[#allocation135_spill] sm:$0xff] }
 0x2b5   :  { %v2599_v45 = vadd.f32 %v2580_v56, %v2559_v3  ;;  %v2600_v23 = vadd.f32 %v2580_v56, %v2560_v24  ;;  %v2601_v22 = vadd.f32 %v2580_v56, %v2561_v26  ;;  %v2602_v15 = vadd.f32 %v2580_v56, %v2562_v36  ;;  %v9544_v24 = vld [vmem:[#allocation79_spill] sm:$0xff]  ;;  %v9545_v36 = vld [vmem:[#allocation137_spill] sm:$0xff] }
 0x2b6   :  { %v2603_v9 = vadd.f32 %v2580_v56, %v2563_v27  ;;  %v2604_v41 = vadd.f32 %v2580_v56, %v2564_v5  ;;  %v2605_v29 = vadd.f32 %v2580_v56, %v2565_v8  ;;  %v2606_v52 = vadd.f32 %v2580_v56, %v2566_v49  ;;  %v9546_v5 = vld [vmem:[#allocation100_spill] sm:$0xff]  ;;  %v9547_v49 = vld [vmem:[#allocation102_spill] sm:$0xff] }
 0x2b7   :  { %v2607_v47 = vadd.f32 %v2580_v56, %v2567_v7  ;;  %v2608_v59 = vadd.f32 %v2580_v56, %v2568_v51  ;;  %v2609_v53 = vadd.f32 %v2580_v56, %v2569_v43  ;;  %v2610_v25 = vadd.f32 %v2580_v56, %v2570_v38  ;;  %v9548_v43 = vld [vmem:[#allocation103_spill] sm:$0xff] }
 0x2b8   :  { %v2611_v58 = vadd.f32 %v2580_v56, %v2571_v35  ;;  %v2612_v0 = vadd.f32 %v2580_v56, %v2572_v37  ;;  %v2617_v18 = vrot.slane %v9536_v32, %v9535_v16  ;;  %v2621_v13 = vrot.slane %v9537_v20, %v9535_v16  ;;  %v9549_v35 = vld [vmem:[#allocation24_spill] sm:$0xff] }
 0x2b9   :  { %v2625_v11 = vrot.slane %v9538_v31, %v9535_v16  ;;  %v2629_v44 = vrot.slane %v9539_v12, %v9535_v16  ;;  %v2633_v57 = vrot.slane %v9540_v34, %v9535_v16  ;;  %v2637_v14 = vrot.slane %v9541_v4, %v9535_v16 }
 0x2ba   :  { %v2641_v42 = vrot.slane %v9542_v28, %v9535_v16  ;;  %v2645_v3 = vrot.slane %v9543_v2, %v9535_v16  ;;  %v2649_v26 = vrot.slane %v9544_v24, %v9535_v16  ;;  %v2653_v27 = vrot.slane %v9545_v36, %v9535_v16 }
 0x2bb   :  { %v2657_v8 = vrot.slane %v9546_v5, %v9535_v16  ;;  %v2661_v7 = vrot.slane %v9547_v49, %v9535_v16  ;;  %v2613_v51 = vadd.f32 %v2580_v56, %v2573_v46  ;;  %v2665_v38 = vrot.slane %v9548_v43, %v9535_v16 }
 0x2bc   :  { %v2669_v37 = vrot.slane %v9549_v35, %v9535_v16  ;;  %v2673_v1 = vrot.slane %v9550_v10, %v9535_v16  ;;  %v2678_v32 = vsub.f32 %v2582_v48, %v2617_v18  ;;  %v2679_v20 = vsub.f32 %v2583_v55, %v2621_v13 }
 0x2bd   :  { %v2680_v31 = vsub.f32 %v2584_v30, %v2625_v11  ;;  %v2681_v12 = vsub.f32 %v2585_v17, %v2629_v44  ;;  %v2682_v34 = vsub.f32 %v2586_v6, %v2633_v57  ;;  %v2683_v4 = vsub.f32 %v2587_v39, %v2637_v14 }
 0x2be   :  { %v2684_v28 = vsub.f32 %v2588_v40, %v2641_v42  ;;  %v2685_v2 = vsub.f32 %v2589_v62, %v2645_v3  ;;  %v2686_v24 = vsub.f32 %v2590_v63, %v2649_v26  ;;  %v2687_v36 = vsub.f32 %v2591_v19, %v2653_v27 }
 0x2bf   :  { %v2688_v46 = vsub.f32 %v2592_v60, %v2657_v8  ;;  %v2689_v56 = vsub.f32 %v2593_v50, %v2661_v7  ;;  %v2690_v5 = vsub.f32 %v2594_v54, %v2665_v38  ;;  %v2691_v49 = vsub.f32 %v2595_v33, %v2669_v37  ;;  %v9551_v33 = vld [vmem:[#allocation70_spill] sm:$0xff] }
 0x2c0   :  { %v2692_v43 = vsub.f32 %v2596_v61, %v2673_v1  ;;  %v2694_v35 = vsub.f32 %v2598_v21, %v2617_v18  ;;  %v2695_v10 = vsub.f32 %v2599_v45, %v2621_v13  ;;  %v2696_v16 = vsub.f32 %v2600_v23, %v2625_v11  ;;  %v9552_v23 = vld [vmem:[#allocation71_spill] sm:$0xff]  ;;  %v9555_v13 = vld [vmem:[#allocation48_spill] sm:$0xff] }
 0x2c1   :  { %v2697_v48 = vsub.f32 %v2601_v22, %v2629_v44  ;;  %v2698_v55 = vsub.f32 %v2602_v15, %v2633_v57  ;;  %v2699_v30 = vsub.f32 %v2603_v9, %v2637_v14  ;;  %v2700_v17 = vsub.f32 %v2604_v41, %v2641_v42  ;;  %v9553_v15 = vld [vmem:[#allocation92_spill] sm:$0xff] }
 0x2c2   :  { %v2701_v6 = vsub.f32 %v2605_v29, %v2645_v3  ;;  %v2710_v39 = vmul.f32 %v2678_v32, %v2678_v32  ;;  %v2702_v40 = vsub.f32 %v2606_v52, %v2649_v26  ;;  %v2703_v62 = vsub.f32 %v2607_v47, %v2653_v27  ;;  %v9554_v52 = vld [vmem:[#allocation146_spill] sm:$0xff]  ;;  %v9557_v3 = vld [vmem:[#allocation120_spill] sm:$0xff] }
 0x2c3   :  { %v2704_v63 = vsub.f32 %v2608_v59, %v2657_v8  ;;  %v2711_v19 = vmul.f32 %v2679_v20, %v2679_v20  ;;  %v2705_v60 = vsub.f32 %v2609_v53, %v2661_v7  ;;  %v2706_v50 = vsub.f32 %v2610_v25, %v2665_v38  ;;  %v9558_v7 = vld [vmem:[#allocation19_spill] sm:$0xff] }
 0x2c4   :  { %v2712_v54 = vmul.f32 %v2680_v31, %v2680_v31  ;;  %v7274_v61 = vadd.f32 %v2710_v39, %v9551_v33  ;;  %v2707_v18 = vsub.f32 %v2611_v58, %v2669_v37  ;;  %v2708_v21 = vsub.f32 %v2612_v0, %v2673_v1  ;;  %v9556_v0 = vld [vmem:[#allocation58_spill] sm:$0xff]  ;;  %v9564_v39 = vld [vmem:[#allocation125_spill] sm:$0xff]  ;;  %v9568_v33 = vld [vmem:[#allocation32_spill] sm:$0xff] }
 0x2c5   :  { %v2713_v45 = vmul.f32 %v2681_v12, %v2681_v12  ;;  %v7277_v22 = vadd.f32 %v2711_v19, %v9552_v23  ;;  %v2709_v9 = vsub.f32 %v2613_v51, %v9553_v15  ;;  %v2714_v41 = vmul.f32 %v2682_v34, %v2682_v34  ;;  %v9570_v23 = vld [vmem:[#allocation128_spill] sm:$0xff] }
 0x2c6   :  { %v2715_v29 = vmul.f32 %v2683_v4, %v2683_v4  ;;  %v7281_v47 = vadd.f32 %v2712_v54, %v9554_v52  ;;  %v2716_v59 = vmul.f32 %v2684_v28, %v2684_v28  ;;  %v2717_v53 = vmul.f32 %v2685_v2, %v2685_v2  ;;  %v9559_v4 = vld [vmem:[#allocation121_spill] sm:$0xff] }
 0x2c7   :  { %v2718_v25 = vmul.f32 %v2686_v24, %v2686_v24  ;;  %v7284_v11 = vadd.f32 %v2713_v45, %v9555_v13  ;;  %v2719_v44 = vmul.f32 %v2687_v36, %v2687_v36  ;;  %v2720_v58 = vmul.f32 %v2688_v46, %v2688_v46  ;;  %v9560_v36 = vld [vmem:[#allocation20_spill] sm:$0xff] }
 0x2c8   :  { %v7287_v57 = vadd.f32 %v2714_v41, %v9556_v0  ;;  %3865 = vrsqrt.f32 %v7274_v61  ;;  %v2721_v14 = vmul.f32 %v2689_v56, %v2689_v56  ;;  %v2722_v42 = vmul.f32 %v2690_v5, %v2690_v5 }
 0x2c9   :  { %v7291_v26 = vadd.f32 %v2715_v29, %v9557_v3  ;;  %3867 = vrsqrt.f32 %v7277_v22  ;;  %v2723_v27 = vmul.f32 %v2691_v49, %v2691_v49  ;;  %v2724_v8 = vmul.f32 %v2692_v43, %v2692_v43  ;;  %v9561_v49 = vld [vmem:[#allocation69_spill] sm:$0xff]  ;;  %v9577_v3 = vld [vmem:[#allocation127_spill] sm:$0xff] }
 0x2ca   :  { %v7295_v51 = vadd.f32 %v2716_v59, %v9558_v7  ;;  %3869 = vrsqrt.f32 %v7281_v47  ;;  %v2726_v38 = vmul.f32 %v2694_v35, %v2694_v35  ;;  %v2727_v37 = vmul.f32 %v2695_v10, %v2695_v10  ;;  %v9572_v29 = vld [vmem:[#allocation129_spill] sm:$0xff]  ;;  %v9573_v59 = vld [vmem:[#allocation54_spill] sm:$0xff]  ;;  %v9578_v7 = vld [vmem:[#allocation55_spill] sm:$0xff] }
 0x2cb   :  { %v2728_v1 = vmul.f32 %v2696_v16, %v2696_v16  ;;  %3871 = vrsqrt.f32 %v7284_v11  ;;  %v2729_v32 = vmul.f32 %v2697_v48, %v2697_v48  ;;  %v2730_v20 = vmul.f32 %v2698_v55, %v2698_v55  ;;  %v9562_v55 = vld [vmem:[#allocation122_spill] sm:$0xff] }
 0x2cc   :  { %v2731_v31 = vmul.f32 %v2699_v30, %v2699_v30  ;;  %3873 = vrsqrt.f32 %v7287_v57  ;;  %v2732_v12 = vmul.f32 %v2700_v17, %v2700_v17  ;;  %v2733_v34 = vmul.f32 %v2701_v6, %v2701_v6  ;;  %v9563_v17 = vld [vmem:[#allocation123_spill] sm:$0xff] }
 0x2cd   :  { %v7301_v28 = vadd.f32 %v2717_v53, %v9559_v4  ;;  %3875 = vrsqrt.f32 %v7291_v26  ;;  %v2734_v2 = vmul.f32 %v2702_v40, %v2702_v40  ;;  %v2735_v24 = vmul.f32 %v2703_v62, %v2703_v62  ;;  %v9565_v62 = vld [vmem:[#allocation50_spill] sm:$0xff]  ;;  %v9582_v4 = vld [vmem:[#allocation147_spill] sm:$0xff] }
 0x2ce   :  { %v7305_v46 = vadd.f32 %v2718_v25, %v9560_v36  ;;  %3877 = vrsqrt.f32 %v7295_v51  ;;  %v2736_v16 = vmul.f32 %v2704_v63, %v2704_v63  ;;  %v2737_v56 = vmul.f32 %v2705_v60, %v2705_v60  ;;  %v9566_v63 = vld [vmem:[#allocation65_spill] sm:$0xff]  ;;  %v9574_v25 = vld [vmem:[#allocation67_spill] sm:$0xff] }
 0x2cf   :  { %v2738_v5 = vmul.f32 %v2706_v50, %v2706_v50  ;;  %v7309_v43 = vadd.f32 %v2719_v44, %v9561_v49  ;;  %v2739_v35 = vmul.f32 %v2707_v18, %v2707_v18  ;;  %v2740_v10 = vmul.f32 %v2708_v21, %v2708_v21  ;;  %v9567_v50 = vld [vmem:[#allocation124_spill] sm:$0xff]  ;;  %v9569_v21 = vld [vmem:[#allocation126_spill] sm:$0xff] }
 0x2d0   :  { %v2741_v48 = vmul.f32 %v2709_v9, %v2709_v9  ;;  %v7312_v30 = vadd.f32 %v2720_v58, %v9562_v55  ;;  %v7315_v6 = vadd.f32 %v2721_v14, %v9563_v17  ;;  %v7318_v40 = vadd.f32 %v2722_v42, %v9564_v39  ;;  %v9571_v9 = vld [vmem:[#allocation138_spill] sm:$0xff]  ;;  %v9575_v58 = vld [vmem:[#allocation68_spill] sm:$0xff]  ;;  %v9576_v14 = vld [vmem:[#allocation23_spill] sm:$0xff] }
 0x2d1   :  { %v7321_v19 = vadd.f32 %v2723_v27, %v9565_v62  ;;  %3879 = vrsqrt.f32 %v7301_v28  ;;  %v7325_v60 = vadd.f32 %v2724_v8, %v9566_v63  ;;  %v7328_v54 = vadd.f32 %v2726_v38, %v9567_v50  ;;  %v9583_v49 = vld [vmem:[#allocation148_spill] sm:$0xff] }
 0x2d2   :  { %v7331_v18 = vadd.f32 %v2727_v37, %v9568_v33  ;;  %3881 = vrsqrt.f32 %v7305_v46  ;;  %v7335_v45 = vadd.f32 %v2728_v1, %v9569_v21  ;;  %v7338_v15 = vadd.f32 %v2729_v32, %v9570_v23  ;;  %v9579_v37 = vld [vmem:[#allocation56_spill] sm:$0xff] }
 0x2d3   :  { %v7341_v41 = vadd.f32 %v2730_v20, %v9571_v9  ;;  %3883 = vrsqrt.f32 %v7309_v43  ;;  %v7345_v52 = vadd.f32 %v2731_v31, %v9572_v29  ;;  %v7348_v53 = vadd.f32 %v2732_v12, %v9573_v59  ;;  %v9580_v32 = vld [vmem:[#allocation80_spill] sm:$0xff]  ;;  %v9581_v12 = vld [vmem:[#allocation57_spill] sm:$0xff] }
 0x2d4   :  { %v7351_v13 = vadd.f32 %v2733_v34, %v9574_v25  ;;  %3885 = vrsqrt.f32 %v7312_v30  ;;  %v7355_v0 = vadd.f32 %v2734_v2, %v9575_v58  ;;  %v7358_v42 = vadd.f32 %v2735_v24, %v9576_v14 }
 0x2d5   :  { %v3866_v44 = vpop.eup %3865  ;;  %v7361_v27 = vadd.f32 %v2736_v16, %v9577_v3  ;;  %3887 = vrsqrt.f32 %v7315_v6  ;;  %v7365_v38 = vadd.f32 %v2737_v56, %v9578_v7  ;;  %v7368_v1 = vadd.f32 %v2738_v5, %v9579_v37 }
 0x2d6   :  { %v3868_v8 = vpop.eup %3867  ;;  %v7371_v20 = vadd.f32 %v2739_v35, %v9580_v32  ;;  %3889 = vrsqrt.f32 %v7318_v40  ;;  %v7375_v34 = vadd.f32 %v2740_v10, %v9581_v12  ;;  %v7378_v2 = vadd.f32 %v2741_v48, %v9582_v4 }
 0x2d7   :  { %v3870_v31 = vpop.eup %3869  ;;  %vm2776_vm0 = vcmp.eq.f32.partialorder %v7274_v61, inf  ;;  %3891 = vrsqrt.f32 %v7321_v19  ;;  %v2779_v36 = vand.u32 2147483648, %v7274_v61  ;;  %vm2783_vm1 = vcmp.eq.f32.partialorder %v7277_v22, inf }
 0x2d8   :  { %v3872_v24 = vpop.eup %3871  ;;  %v2786_v16 = vand.u32 2147483648, %v7277_v22  ;;  %3893 = vrsqrt.f32 %v7325_v60  ;;  %vm2790_vm2 = vcmp.eq.f32.partialorder %v7281_v47, inf  ;;  %v2793_v5 = vand.u32 2147483648, %v7281_v47 }
 0x2d9   :  { %v3874_v56 = vpop.eup %3873  ;;  %vm2797_vm3 = vcmp.eq.f32.partialorder %v7284_v11, inf  ;;  %3895 = vrsqrt.f32 %v9583_v49  ;;  %vm2778_vm4 = vcmp.eq.f32.partialorder %v7274_v61, 0.0  ;;  %vm2785_vm5 = vcmp.eq.f32.partialorder %v7277_v22, 0.0 }
 0x2da   :  { %v3876_v35 = vpop.eup %3875  ;;  %v2800_v10 = vand.u32 2147483648, %v7284_v11  ;;  %vm2804_vm6 = vcmp.eq.f32.partialorder %v7287_v57, inf  ;;  %v2807_v48 = vand.u32 2147483648, %v7287_v57  ;;  %vm2811_vm7 = vcmp.eq.f32.partialorder %v7291_v26, inf }
 0x2db   :  { %v3878_v55 = vpop.eup %3877  ;;  %vm2792_vm8 = vcmp.eq.f32.partialorder %v7281_v47, 0.0  ;;  %v2814_v17 = vand.u32 2147483648, %v7291_v26  ;;  %vm2818_vm9 = vcmp.eq.f32.partialorder %v7295_v51, inf  ;;  %v2821_v39 = vand.u32 2147483648, %v7295_v51 }
 0x2dc   :  { %v2828_v62 = vand.u32 2147483648, %v7301_v28  ;;  %v2775_v63 = vmul.f32 %v3866_v44, %v7274_v61  ;;  %v2782_v50 = vmul.f32 %v3868_v8, %v7277_v22  ;;  %v2789_v33 = vmul.f32 %v3870_v31, %v7281_v47 }
 0x2dd   :  { %vm2799_vm10 = vcmp.eq.f32.partialorder %v7284_v11, 0.0  ;;  %vm2806_vm11 = vcmp.eq.f32.partialorder %v7287_v57, 0.0  ;;  %3897 = vrsqrt.f32 %v7328_v54  ;;  %v2796_v21 = vmul.f32 %v3872_v24, %v7284_v11 }
 0x2de   :  { %v2803_v23 = vmul.f32 %v3874_v56, %v7287_v57  ;;  %v2810_v9 = vmul.f32 %v3876_v35, %v7291_v26  ;;  %vm2825_vm14 = vcmp.eq.f32.partialorder %v7301_v28, inf  ;;  %vm2832_vm15 = vcmp.eq.f32.partialorder %v7305_v46, inf  ;;  %v3880_v59 = vpop.eup %3879 }
 0x2df   :  { %v2835_v29 = vand.u32 2147483648, %v7305_v46  ;;  %v2817_v25 = vmul.f32 %v3878_v55, %v7295_v51  ;;  %v2842_v44 = vand.u32 2147483648, %v7309_v43  ;;  %v2849_v58 = vand.u32 2147483648, %v7312_v30  ;;  %v3882_v14 = vpop.eup %3881 }
 0x2e0   :  { %v2856_v3 = vand.u32 2147483648, %v7315_v6  ;;  %v2863_v8 = vand.u32 2147483648, %v7318_v40  ;;  %v2870_v7 = vand.u32 2147483648, %v7321_v19  ;;  %3899 = vrsqrt.f32 %v7331_v18  ;;  %v3884_v37 = vpop.eup %3883 }
 0x2e1   :  { %v2777_v32 = vsel %vm2776_vm0, %v7274_v61, %v2775_v63  ;;  %v2784_v31 = vsel %vm2783_vm1, %v7277_v22, %v2782_v50  ;;  %v2791_v12 = vsel %vm2790_vm2, %v7281_v47, %v2789_v33  ;;  %vm2827_vm13 = vcmp.eq.f32.partialorder %v7301_v28, 0.0  ;;  %v3886_v24 = vpop.eup %3885 }
 0x2e2   :  { %vm2834_vm12 = vcmp.eq.f32.partialorder %v7305_v46, 0.0  ;;  %v2877_v4 = vand.u32 2147483648, %v7325_v60  ;;  %v2798_v56 = vsel %vm2797_vm3, %v7284_v11, %v2796_v21  ;;  %v2805_v35 = vsel %vm2804_vm6, %v7287_v57, %v2803_v23  ;;  %v3888_v63 = vpop.eup %3887 }
 0x2e3   :  { %v2812_v55 = vsel %vm2811_vm7, %v7291_v26, %v2810_v9  ;;  %vm2841_vm0 = vcmp.eq.f32.partialorder %v7309_v43, 0.0  ;;  %vm2853_vm1 = vcmp.eq.f32.partialorder %v7315_v6, inf  ;;  %3901 = vrsqrt.f32 %v7335_v45  ;;  %v3890_v23 = vpop.eup %3889 }
 0x2e4   :  { %v2819_v50 = vsel %vm2818_vm9, %v7295_v51, %v2817_v25  ;;  %v2824_v33 = vmul.f32 %v3880_v59, %v7301_v28  ;;  %v2831_v21 = vmul.f32 %v3882_v14, %v7305_v46  ;;  %vm2848_vm2 = vcmp.eq.f32.partialorder %v7312_v30, 0.0  ;;  %v3892_v14 = vpop.eup %3891 }
 0x2e5   :  { %vm2860_vm3 = vcmp.eq.f32.partialorder %v7318_v40, inf  ;;  %vm2867_vm6 = vcmp.eq.f32.partialorder %v7321_v19, inf  ;;  %3903 = vrsqrt.f32 %v7338_v15  ;;  %v7461_v9 = vsel %vm2778_vm4, %v2779_v36, %v2777_v32 }
 0x2e6   :  { %v7467_v59 = vsel %vm2785_vm5, %v2786_v16, %v2784_v31  ;;  %v2838_v25 = vmul.f32 %v3884_v37, %v7309_v43  ;;  %vm2874_vm7 = vcmp.eq.f32.partialorder %v7325_v60, inf  ;;  %3905 = vrsqrt.f32 %v7341_v41  ;;  %v3894_v16 = vpop.eup %3893 }
 0x2e7   :  { %v7476_v61 = vsel %vm2792_vm8, %v2793_v5, %v2791_v12  ;;  %v2845_v36 = vmul.f32 %v3886_v24, %v7312_v30  ;;  %vm2855_vm4 = vcmp.eq.f32.partialorder %v7315_v6, 0.0  ;;  %v2884_v22 = vand.u32 2147483648, %v9583_v49  ;;  %v3896_v11 = vpop.eup %3895 }
 0x2e8   :  { %3907 = vrsqrt.f32 %v7345_v52  ;;  %v7487_v37 = vsel %vm2799_vm10, %v2800_v10, %v2798_v56  ;;  %v7493_v47 = vsel %vm2806_vm11, %v2807_v48, %v2805_v35  ;;  %vm9584_vm8 = vcmp.eq.f32.partialorder %v7291_v26, 0.0 }
 0x2e9   :  { %v7499_v5 = vsel %vm9584_vm8, %v2814_v17, %v2812_v55  ;;  %vm9585_vm9 = vcmp.eq.f32.partialorder %v7295_v51, 0.0  ;;  %vm2862_vm10 = vcmp.eq.f32.partialorder %v7318_v40, 0.0  ;;  %vm2869_vm5 = vcmp.eq.f32.partialorder %v7321_v19, 0.0 }
 0x2ea   :  { %v7505_v32 = vsel %vm9585_vm9, %v2821_v39, %v2819_v50  ;;  %v2826_v57 = vsel %vm2825_vm14, %v7301_v28, %v2824_v33  ;;  %v2833_v26 = vsel %vm2832_vm15, %v7305_v46, %v2831_v21  ;;  %v2852_v10 = vmul.f32 %v3888_v63, %v7315_v6  ;;  %v3898_v24 = vpop.eup %3897 }
 0x2eb   :  { %9586 = vst [vmem:[#allocation149_spill] sm:$0xff] %v7505_v32  ;;  %vm2876_vm11 = vcmp.eq.f32.partialorder %v7325_v60, 0.0  ;;  %3909 = vrsqrt.f32 %v7348_v53  ;;  %vm9587_vm8 = vcmp.eq.f32.partialorder %v7309_v43, inf  ;;  %v2859_v48 = vmul.f32 %v3890_v23, %v7318_v40 }
 0x2ec   :  { %v2840_v51 = vsel %vm9587_vm8, %v7309_v43, %v2838_v25  ;;  %v2866_v17 = vmul.f32 %v3892_v14, %v7321_v19  ;;  %vm2883_vm14 = vcmp.eq.f32.partialorder %v9583_v49, 0.0  ;;  %vm2888_vm9 = vcmp.eq.f32.partialorder %v7328_v54, inf }
 0x2ed   :  { %3911 = vrsqrt.f32 %v7351_v13  ;;  %vm9588_vm15 = vcmp.eq.f32.partialorder %v7312_v30, inf  ;;  %v2873_v31 = vmul.f32 %v3894_v16, %v7325_v60  ;;  %v2891_v12 = vand.u32 2147483648, %v7328_v54 }
 0x2ee   :  { %v2847_v39 = vsel %vm9588_vm15, %v7312_v30, %v2845_v36  ;;  %3913 = vrsqrt.f32 %v7355_v0  ;;  %v7536_v56 = vsel %vm2827_vm13, %v2828_v62, %v2826_v57  ;;  %v7542_v35 = vsel %vm2834_vm12, %v2835_v29, %v2833_v26  ;;  %v3900_v29 = vpop.eup %3899 }
 0x2ef   :  { %9589 = vst [vmem:[#allocation150_spill] sm:$0xff] %v7536_v56  ;;  %9590 = vst [vmem:[#allocation151_spill] sm:$0xff] %v7542_v35  ;;  %v2880_v55 = vmul.f32 %v3896_v11, %v9583_v49  ;;  %3915 = vrsqrt.f32 %v7358_v42  ;;  %v7550_v63 = vsel %vm2841_vm0, %v2842_v44, %v2840_v51  ;;  %v2854_v28 = vsel %vm2853_vm1, %v7315_v6, %v2852_v10 }
 0x2f0   :  { %9591 = vst [vmem:[#allocation152_spill] sm:$0xff] %v7550_v63  ;;  %vm2890_vm13 = vcmp.eq.f32.partialorder %v7328_v54, 0.0  ;;  %vm2895_vm8 = vcmp.eq.f32.partialorder %v7331_v18, inf  ;;  %3917 = vrsqrt.f32 %v7361_v27  ;;  %v7562_v46 = vsel %vm2848_vm2, %v2849_v58, %v2847_v39  ;;  %v3902_v21 = vpop.eup %3901 }
 0x2f1   :  { %9592 = vst [vmem:[#allocation36_spill] sm:$0xff] %v7562_v46  ;;  %v2861_v43 = vsel %vm2860_vm3, %v7318_v40, %v2859_v48  ;;  %v2868_v62 = vsel %vm2867_vm6, %v7321_v19, %v2866_v17  ;;  %3919 = vrsqrt.f32 %v7365_v38  ;;  %v2875_v44 = vsel %vm2874_vm7, %v7325_v60, %v2873_v31  ;;  %v9611_v31 = vld [vmem:[#allocation28_spill] sm:$0xff] }
 0x2f2   :  { %v2887_v50 = vmul.f32 %v3898_v24, %v7328_v54  ;;  %v2898_v30 = vand.u32 2147483648, %v7331_v18  ;;  %3921 = vrsqrt.f32 %v7368_v1  ;;  %v7581_v58 = vsel %vm2855_vm4, %v2856_v3, %v2854_v28  ;;  %v3904_v25 = vpop.eup %3903 }
 0x2f3   :  { %9593 = vst [vmem:[#allocation141_spill] sm:$0xff] %v7581_v58  ;;  %vm9594_vm12 = vcmp.eq.f32.partialorder %v9583_v49, inf  ;;  %vm2897_vm0 = vcmp.eq.f32.partialorder %v7331_v18, 0.0  ;;  %vm2902_vm1 = vcmp.eq.f32.partialorder %v7335_v45, inf  ;;  %3923 = vrsqrt.f32 %v7371_v20  ;;  %v3906_v19 = vpop.eup %3905 }
 0x2f4   :  { %v2882_v33 = vsel %vm9594_vm12, %v9583_v49, %v2880_v55  ;;  %v7593_v23 = vsel %vm2862_vm10, %v2863_v8, %v2861_v43  ;;  %v7599_v6 = vsel %vm2869_vm5, %v2870_v7, %v2868_v62  ;;  %v2905_v3 = vand.u32 2147483648, %v7335_v45 }
 0x2f5   :  { %9595 = vst [vmem:[#allocation113_spill] sm:$0xff] %v7593_v23  ;;  %9596 = vst [vmem:[#allocation15_spill] sm:$0xff] %v7599_v6  ;;  %vm2909_vm2 = vcmp.eq.f32.partialorder %v7338_v15, inf  ;;  %v7607_v14 = vsel %vm2876_vm11, %v2877_v4, %v2875_v44  ;;  %v2894_v40 = vmul.f32 %v3900_v29, %v7331_v18  ;;  %vm2904_vm3 = vcmp.eq.f32.partialorder %v7335_v45, 0.0  ;;  %v3908_v60 = vpop.eup %3907 }
 0x2f6   :  { %9597 = vst [vmem:[#allocation114_spill] sm:$0xff] %v7607_v14  ;;  %v2912_v8 = vand.u32 2147483648, %v7338_v15  ;;  %3925 = vrsqrt.f32 %v7375_v34  ;;  %v7615_v7 = vsel %vm2883_vm14, %v2884_v22, %v2882_v33  ;;  %v2889_v36 = vsel %vm2888_vm9, %v7328_v54, %v2887_v50  ;;  %v3000_v50 = vld [vmem:[#allocation3] sm:$0xff] }
 0x2f7   :  { %9598 = vst [vmem:[#allocation60_spill] sm:$0xff] %v7615_v7  ;;  %vm2911_vm6 = vcmp.eq.f32.partialorder %v7338_v15, 0.0  ;;  %vm2916_vm7 = vcmp.eq.f32.partialorder %v7341_v41, inf  ;;  %3927 = vrsqrt.f32 %v7378_v2  ;;  %v2901_v4 = vmul.f32 %v3902_v21, %v7335_v45 }
 0x2f8   :  { %vm2918_vm4 = vcmp.eq.f32.partialorder %v7341_v41, 0.0  ;;  %v2919_v16 = vand.u32 2147483648, %v7341_v41  ;;  %vm2923_vm5 = vcmp.eq.f32.partialorder %v7345_v52, inf  ;;  %v2926_v49 = vand.u32 2147483648, %v7345_v52  ;;  %v3910_v57 = vpop.eup %3909 }
 0x2f9   :  { %v2908_v22 = vmul.f32 %v3904_v25, %v7338_v15  ;;  %vm2925_vm10 = vcmp.eq.f32.partialorder %v7345_v52, 0.0  ;;  %vm2930_vm11 = vcmp.eq.f32.partialorder %v7348_v53, inf  ;;  %v2933_v11 = vand.u32 2147483648, %v7348_v53  ;;  %v9610_v25 = vld [vmem:[#allocation26_spill] sm:$0xff] }
 0x2fa   :  { %vm2937_vm14 = vcmp.eq.f32.partialorder %v7351_v13, inf  ;;  %v7635_v26 = vsel %vm2890_vm13, %v2891_v12, %v2889_v36  ;;  %v2896_v10 = vsel %vm2895_vm8, %v7331_v18, %v2894_v40  ;;  %v2915_v51 = vmul.f32 %v3906_v19, %v7341_v41  ;;  %v3912_v17 = vpop.eup %3911 }
 0x2fb   :  { %9599 = vst [vmem:[#allocation83_spill] sm:$0xff] %v7635_v26  ;;  %v2940_v48 = vand.u32 2147483648, %v7351_v13  ;;  %v2922_v39 = vmul.f32 %v3908_v60, %v7345_v52  ;;  %vm2944_vm9 = vcmp.eq.f32.partialorder %v7355_v0, inf  ;;  %vm2951_vm15 = vcmp.eq.f32.partialorder %v7358_v42, inf  ;;  %v3914_v54 = vpop.eup %3913 }
 0x2fc   :  { %v2903_v12 = vsel %vm2902_vm1, %v7335_v45, %v2901_v4  ;;  %vm2932_vm13 = vcmp.eq.f32.partialorder %v7348_v53, 0.0  ;;  %vm2939_vm8 = vcmp.eq.f32.partialorder %v7351_v13, 0.0  ;;  %vm2958_vm12 = vcmp.eq.f32.partialorder %v7361_v27, inf  ;;  %v3916_v28 = vpop.eup %3915 }
 0x2fd   :  { %v7656_v43 = vsel %vm2897_vm0, %v2898_v30, %v2896_v10  ;;  %v2910_v62 = vsel %vm2909_vm2, %v7338_v15, %v2908_v22  ;;  %v3918_v33 = vpop.eup %3917  ;;  %v2917_v21 = vsel %vm2916_vm7, %v7341_v41, %v2915_v51  ;;  %v2929_v18 = vmul.f32 %v3910_v57, %v7348_v53  ;;  %v9603_v10 = vld [vmem:[#allocation27_spill] sm:$0xff]  ;;  %v9605_v15 = vld [vmem:[#allocation30_spill] sm:$0xff] }
 0x2fe   :  { %9600 = vst [vmem:[#allocation84_spill] sm:$0xff] %v7656_v43  ;;  %v2936_v30 = vmul.f32 %v3912_v17, %v7351_v13  ;;  %vm2965_vm2 = vcmp.eq.f32.partialorder %v7365_v38, inf  ;;  %v3920_v40 = vpop.eup %3919  ;;  %v7674_v19 = vsel %vm2904_vm3, %v2905_v3, %v2903_v12  ;;  %v2924_v36 = vsel %vm2923_vm5, %v7345_v52, %v2922_v39  ;;  %v9606_v12 = vld [vmem:[#allocation31_spill] sm:$0xff] }
 0x2ff   :  { %9601 = vst [vmem:[#allocation115_spill] sm:$0xff] %v7674_v19  ;;  %v2943_v60 = vmul.f32 %v3914_v54, %v7355_v0  ;;  %vm2960_vm7 = vcmp.eq.f32.partialorder %v7361_v27, 0.0  ;;  %vm2972_vm1 = vcmp.eq.f32.partialorder %v7368_v1, inf  ;;  %vm2979_vm0 = vcmp.eq.f32.partialorder %v7371_v20, inf  ;;  %v3922_v22 = vpop.eup %3921 }
 0x300   :  { %v7686_v45 = vsel %vm2911_vm6, %v2912_v8, %v2910_v62  ;;  %v2950_v3 = vmul.f32 %v3916_v28, %v7358_v42  ;;  %v7691_v51 = vrot.slane %v3000_v50, %v9603_v10  ;;  %v3924_v17 = vpop.eup %3923  ;;  %v7695_v39 = vsel %vm2918_vm4, %v2919_v16, %v2917_v21 }
 0x301   :  { %9602 = vst [vmem:[#allocation116_spill] sm:$0xff] %v7686_v45  ;;  %9604 = vst [vmem:[#allocation61_spill] sm:$0xff] %v7695_v39  ;;  %v2957_v54 = vmul.f32 %v3918_v33, %v7361_v27  ;;  %vm2967_vm3 = vcmp.eq.f32.partialorder %v7365_v38, 0.0  ;;  %v7701_v8 = vrot.slane %v3000_v50, %v9605_v15  ;;  %v7704_v28 = vrot.slane %v3000_v50, %v9606_v12  ;;  %v9608_v33 = vld [vmem:[#allocation33_spill] sm:$0xff] }
 0x302   :  { %v7708_v62 = vsel %vm2925_vm10, %v2926_v49, %v2924_v36  ;;  %v2931_v41 = vsel %vm2930_vm11, %v7348_v53, %v2929_v18  ;;  %v2938_v16 = vsel %vm2937_vm14, %v7351_v13, %v2936_v30  ;;  %vm2974_vm6 = vcmp.eq.f32.partialorder %v7368_v1, 0.0  ;;  %v3001_v18 = vld [vmem:[#allocation3 + $0x8] sm:$0xff]  ;;  %v9609_v36 = vld [vmem:[#allocation25_spill] sm:$0xff] }
 0x303   :  { %9607 = vst [vmem:[#allocation62_spill] sm:$0xff] %v7708_v62  ;;  %vm2981_vm4 = vcmp.eq.f32.partialorder %v7371_v20, 0.0  ;;  %vm2993_vm5 = vcmp.eq.f32.partialorder %v7378_v2, inf  ;;  %v3029_v21 = vrot.slane %v3000_v50, %v9608_v33  ;;  %v3926_v57 = vpop.eup %3925  ;;  %v2945_v52 = vsel %vm2944_vm9, %v7355_v0, %v2943_v60 }
 0x304   :  { %v2964_v49 = vmul.f32 %v3920_v40, %v7365_v38  ;;  %v3033_v4 = vrot.slane %v3000_v50, %v9609_v36  ;;  %v3037_v30 = vrot.slane %v3000_v50, %v9610_v25  ;;  %v3928_v44 = vpop.eup %3927  ;;  %v2952_v29 = vsel %vm2951_vm15, %v7358_v42, %v2950_v3  ;;  %v9614_v3 = vld [vmem:[#allocation29_spill] sm:$0xff] }
 0x305   :  { %v2971_v55 = vmul.f32 %v3922_v22, %v7368_v1  ;;  %v2978_v24 = vmul.f32 %v3924_v17, %v7371_v20  ;;  %vm2988_vm10 = vcmp.eq.f32.partialorder %v7375_v34, 0.0  ;;  %v3041_v60 = vrot.slane %v3000_v50, %v9611_v31 }
 0x306   :  { %v7737_v40 = vsel %vm2932_vm13, %v2933_v11, %v2931_v41  ;;  %v7743_v62 = vsel %vm2939_vm8, %v2940_v48, %v2938_v16  ;;  %v2959_v22 = vsel %vm2958_vm12, %v7361_v27, %v2957_v54  ;;  %vm2995_vm11 = vcmp.eq.f32.partialorder %v7378_v2, 0.0 }
 0x307   :  { %9612 = vst [vmem:[#allocation117_spill] sm:$0xff] %v7737_v40  ;;  %9613 = vst [vmem:[#allocation17_spill] sm:$0xff] %v7743_v62  ;;  %v3045_v17 = vrot.slane %v3000_v50, %v9614_v3  ;;  %v9615_v39 = vand.u32 2147483648, %v7355_v0  ;;  %vm9616_vm14 = vcmp.eq.f32.partialorder %v7355_v0, 0.0  ;;  %v2985_v11 = vmul.f32 %v3926_v57, %v7375_v34 }
 0x308   :  { %v3049_v13 = vrot.slane %v3001_v18, %v9603_v10  ;;  %v3053_v48 = vrot.slane %v3001_v18, %v9605_v15  ;;  %v9618_v41 = vand.u32 2147483648, %v7358_v42  ;;  %vm9619_vm9 = vcmp.eq.f32.partialorder %v7358_v42, 0.0 }
 0x309   :  { %v7754_v53 = vsel %vm9616_vm14, %v9615_v39, %v2945_v52  ;;  %v2966_v50 = vsel %vm2965_vm2, %v7365_v38, %v2964_v49  ;;  %v2992_v0 = vmul.f32 %v3928_v44, %v7378_v2  ;;  %v3057_v39 = vrot.slane %v3001_v18, %v9606_v12 }
 0x30a   :  { %9617 = vst [vmem:[#allocation118_spill] sm:$0xff] %v7754_v53  ;;  %v7763_v54 = vsel %vm9619_vm9, %v9618_v41, %v2952_v29  ;;  %v9621_v57 = vand.u32 2147483648, %v7361_v27  ;;  %v2973_v42 = vsel %vm2972_vm1, %v7368_v1, %v2971_v55  ;;  %v2980_v29 = vsel %vm2979_vm0, %v7371_v20, %v2978_v24  ;;  %v9626_v55 = vld [vmem:[#allocation90_spill] sm:$0xff] }
 0x30b   :  { %9620 = vst [vmem:[#allocation119_spill] sm:$0xff] %v7763_v54  ;;  %v3061_v15 = vrot.slane %v3001_v18, %v9608_v33  ;;  %v3065_v44 = vrot.slane %v3001_v18, %v9609_v36  ;;  %v3069_v12 = vrot.slane %v3001_v18, %v9610_v25  ;;  %v3073_v16 = vrot.slane %v3001_v18, %v9611_v31 }
 0x30c   :  { %v7774_v10 = vsel %vm2960_vm7, %v9621_v57, %v2959_v22  ;;  %v3077_v27 = vrot.slane %v3001_v18, %v9614_v3  ;;  %v9623_v52 = vand.u32 2147483648, %v7365_v38  ;;  %vm9625_vm15 = vcmp.eq.f32.partialorder %v7375_v34, inf }
 0x30d   :  { %9622 = vst [vmem:[#allocation82_spill] sm:$0xff] %v7774_v10  ;;  %v2987_v24 = vsel %vm9625_vm15, %v7375_v34, %v2985_v11  ;;  %v7798_v33 = vadd.f32 %v7691_v51, %v9626_v55  ;;  %v7802_v25 = vadd.f32 %v7701_v8, %v9626_v55  ;;  %v9627_v31 = vand.u32 2147483648, %v7368_v1  ;;  %v3010_v11 = vpop.permute.xlu0 %3009 }
 0x30e   :  { %v7791_v49 = vsel %vm2967_vm3, %v9623_v52, %v2966_v50  ;;  %v9629_v38 = vand.u32 2147483648, %v7371_v20  ;;  %v2994_v22 = vsel %vm2993_vm5, %v7378_v2, %v2992_v0  ;;  %v7821_v3 = vadd.f32 %v7704_v28, %v9626_v55 }
 0x30f   :  { %9624 = vst [vmem:[#allocation77_spill] sm:$0xff] %v7791_v49  ;;  %v7808_v18 = vsel %vm2974_vm6, %v9627_v31, %v2973_v42  ;;  %v7824_v41 = vadd.f32 %v3029_v21, %v9626_v55  ;;  %v7827_v1 = vadd.f32 %v3033_v4, %v9626_v55  ;;  %v7830_v50 = vadd.f32 %v3037_v30, %v9626_v55 }
 0x310   :  { %9628 = vst [vmem:[#allocation53_spill] sm:$0xff] %v7808_v18  ;;  %v7814_v36 = vsel %vm2981_vm4, %v9629_v38, %v2980_v29  ;;  %v7833_v20 = vadd.f32 %v3041_v60, %v9626_v55  ;;  %v9632_v57 = vand.u32 2147483648, %v7375_v34  ;;  %v7842_v42 = vadd.f32 %v3045_v17, %v9626_v55 }
 0x311   :  { %9630 = vst [vmem:[#allocation81_spill] sm:$0xff] %v7814_v36  ;;  %v7845_v29 = vadd.f32 %v3049_v13, %v9626_v55  ;;  %v7848_v52 = vadd.f32 %v3053_v48, %v9626_v55  ;;  %v9637_v31 = vand.u32 2147483648, %v7378_v2  ;;  %v7857_v36 = vadd.f32 %v3057_v39, %v9626_v55 }
 0x312   :  { %9631 = vst [vmem:[#allocation131_spill] sm:$0xff] %v7833_v20  ;;  %v7839_v0 = vsel %vm2988_vm10, %v9632_v57, %v2987_v24  ;;  %9634 = vst [vmem:[#allocation132_spill] sm:$0xff] %v7842_v42  ;;  %v7860_v34 = vadd.f32 %v3061_v15, %v9626_v55  ;;  %v7863_v24 = vadd.f32 %v3065_v44, %v9626_v55 }
 0x313   :  { %9633 = vst [vmem:[#allocation12_spill] sm:$0xff] %v7839_v0  ;;  %9635 = vst [vmem:[#allocation134_spill] sm:$0xff] %v7845_v29  ;;  %v7854_v38 = vsel %vm2995_vm11, %v9637_v31, %v2994_v22  ;;  %v7866_v57 = vadd.f32 %v3069_v12, %v9626_v55  ;;  %v7869_v0 = vadd.f32 %v3073_v16, %v9626_v55 }
 0x314   :  { %9636 = vst [vmem:[#allocation64_spill] sm:$0xff] %v7848_v52  ;;  %9638 = vst [vmem:[#allocation93_spill] sm:$0xff] %v7854_v38  ;;  %v7872_v18 = vadd.f32 %v3077_v27, %v9626_v55  ;;  %v7875_v2 = vadd.f32 %v7691_v51, %v3010_v11  ;;  %v7878_v22 = vadd.f32 %v7701_v8, %v3010_v11 }
 0x315   :  { %9639 = vst [vmem:[#allocation94_spill] sm:$0xff] %v7857_v36  ;;  %9640 = vst [vmem:[#allocation95_spill] sm:$0xff] %v7860_v34  ;;  %v7881_v31 = vadd.f32 %v7704_v28, %v3010_v11  ;;  %v7883_v38 = vadd.f32 %v3029_v21, %v3010_v11  ;;  %v7885_v49 = vadd.f32 %v3033_v4, %v3010_v11 }
 0x316   :  { %9641 = vst [vmem:[#allocation96_spill] sm:$0xff] %v7863_v24  ;;  %9642 = vst [vmem:[#allocation97_spill] sm:$0xff] %v7866_v57  ;;  %v7887_v10 = vadd.f32 %v3037_v30, %v3010_v11  ;;  %v7889_v54 = vadd.f32 %v3041_v60, %v3010_v11  ;;  %v7891_v53 = vadd.f32 %v3045_v17, %v3010_v11 }
 0x317   :  { %9643 = vst [vmem:[#allocation98_spill] sm:$0xff] %v7869_v0  ;;  %9644 = vst [vmem:[#allocation139_spill] sm:$0xff] %v7872_v18  ;;  %v7893_v55 = vadd.f32 %v3049_v13, %v3010_v11  ;;  %v7895_v51 = vadd.f32 %v3053_v48, %v3010_v11  ;;  %v7897_v62 = vadd.f32 %v3057_v39, %v3010_v11  ;;  %v3158_v13 = vld [vmem:[#allocation6] sm:$0xff]  ;;  %v3159_v39 = vld [vmem:[#allocation6 + $0x8] sm:$0xff] }
 0x318   :  { %9645 = vst [vmem:[#allocation140_spill] sm:$0xff] %v7875_v2  ;;  %9646 = vst [vmem:[#allocation142_spill] sm:$0xff] %v7878_v22  ;;  %v7899_v8 = vadd.f32 %v3061_v15, %v3010_v11  ;;  %v7901_v28 = vadd.f32 %v3065_v44, %v3010_v11  ;;  %v7903_v21 = vadd.f32 %v3069_v12, %v3010_v11  ;;  %v3161_v15 = vld [vmem:[#allocation6 + $0x18] sm:$0xff]  ;;  %v3166_v19 = vunpack.c.0.s8 %v3158_v13  ;;  %v3163_v48 = vld [vmem:[#allocation6 + $0x28] sm:$0xff] }
 0x319   :  { %9647 = vst [vmem:[#allocation143_spill] sm:$0xff] %v7881_v31  ;;  %9648 = vst [vmem:[#allocation144_spill] sm:$0xff] %v7883_v38  ;;  %v7905_v4 = vadd.f32 %v3073_v16, %v3010_v11  ;;  %v7907_v30 = vadd.f32 %v3077_v27, %v3010_v11  ;;  %v3160_v16 = vld [vmem:[#allocation6 + $0x10] sm:$0xff]  ;;  %v3167_v44 = vunpack.c.1.s8 %v3158_v13  ;;  %v3168_v45 = vunpack.c.2.s8 %v3158_v13  ;;  %v3165_v27 = vld [vmem:[#allocation6 + $0x38] sm:$0xff] }
 0x31a   :  { %9649 = vst [vmem:[#allocation145_spill] sm:$0xff] %v7885_v49  ;;  %9650 = vst [vmem:[#allocation76_spill] sm:$0xff] %v7887_v10  ;;  %v3170_v49 = vunpack.c.0.s8 %v3159_v39  ;;  %v3172_v12 = vunpack.c.2.s8 %v3159_v39  ;;  %v3173_v17 = vunpack.c.3.s8 %v3159_v39  ;;  %v3175_v60 = vunpack.c.1.s8 %v3160_v16 }
 0x31b   :  { %9651 = vst [vmem:[#allocation91_spill] sm:$0xff] %v7889_v54  ;;  %9652 = vst [vmem:[#allocation51_spill] sm:$0xff] %v7891_v53  ;;  %v3164_v53 = vld [vmem:[#allocation6 + $0x30] sm:$0xff]  ;;  %v3176_v40 = vunpack.c.2.s8 %v3160_v16  ;;  %v3178_v43 = vunpack.c.0.s8 %v3161_v15  ;;  %v3181_v11 = vunpack.c.3.s8 %v3161_v15  ;;  %v3187_v31 = vunpack.c.1.s8 %v3163_v48 }
 0x31c   :  { %9653 = vst [vmem:[#allocation52_spill] sm:$0xff] %v7893_v55  ;;  %9654 = vst [vmem:[#allocation78_spill] sm:$0xff] %v7895_v51  ;;  %v3162_v51 = vld [vmem:[#allocation6 + $0x20] sm:$0xff]  ;;  %v3180_v55 = vunpack.c.2.s8 %v3161_v15  ;;  %v3188_v22 = vunpack.c.2.s8 %v3163_v48  ;;  %v3189_v26 = vunpack.c.3.s8 %v3163_v48  ;;  %v3190_v2 = vunpack.c.0.s8 %v3164_v53 }
 0x31d   :  { %9655 = vst [vmem:[#allocation130_spill] sm:$0xff] %v7897_v62  ;;  %9656 = vst [vmem:[#allocation105_spill] sm:$0xff] %v7899_v8  ;;  %v3169_v62 = vunpack.c.3.s8 %v3158_v13  ;;  %v3171_v8 = vunpack.c.1.s8 %v3159_v39  ;;  %v3183_v54 = vunpack.c.1.s8 %v3162_v51  ;;  %v3184_v10 = vunpack.c.2.s8 %v3162_v51 }
 0x31e   :  { %9657 = vst [vmem:[#allocation109_spill] sm:$0xff] %v7901_v28  ;;  %9658 = vst [vmem:[#allocation106_spill] sm:$0xff] %v7903_v21  ;;  %v3174_v28 = vunpack.c.0.s8 %v3160_v16  ;;  %v3177_v21 = vunpack.c.3.s8 %v3160_v16  ;;  %v3185_v38 = vunpack.c.3.s8 %v3162_v51  ;;  %v3186_v13 = vunpack.c.0.s8 %v3163_v48 }
 0x31f   :  { %9659 = vst [vmem:[#allocation107_spill] sm:$0xff] %v7905_v4  ;;  %9660 = vst [vmem:[#allocation59_spill] sm:$0xff] %v7907_v30  ;;  %v3179_v4 = vunpack.c.1.s8 %v3161_v15  ;;  %v3182_v30 = vunpack.c.0.s8 %v3162_v51  ;;  %v3191_v39 = vunpack.c.1.s8 %v3164_v53  ;;  %v3192_v7 = vunpack.c.2.s8 %v3164_v53 }
 0x320   :  { %v3193_v18 = vunpack.c.3.s8 %v3164_v53  ;;  %v3194_v14 = vunpack.c.0.s8 %v3165_v27  ;;  %v3195_v0 = vunpack.c.1.s8 %v3165_v27  ;;  %v3196_v16 = vunpack.c.2.s8 %v3165_v27 }
 0x321   :  { %v3197_v6 = vunpack.c.3.s8 %v3165_v27  ;;  %v3198_v57 = vcvt.s32.f32 %v3166_v19  ;;  %v3199_v23 = vcvt.s32.f32 %v3167_v44  ;;  %v3200_v24 = vcvt.s32.f32 %v3168_v45 }
 0x322   :  { %v3201_v15 = vcvt.s32.f32 %v3169_v62  ;;  %v3202_v58 = vcvt.s32.f32 %v3170_v49  ;;  %v3203_v34 = vcvt.s32.f32 %v3171_v8  ;;  %v3204_v46 = vcvt.s32.f32 %v3172_v12 }
 0x323   :  { %v3205_v51 = vcvt.s32.f32 %v3173_v17  ;;  %v3206_v36 = vcvt.s32.f32 %v3174_v28  ;;  %v3207_v63 = vcvt.s32.f32 %v3175_v60  ;;  %v3208_v52 = vcvt.s32.f32 %v3176_v40 }
 0x324   :  { %v3209_v48 = vcvt.s32.f32 %v3177_v21  ;;  %v3210_v35 = vcvt.s32.f32 %v3178_v43  ;;  %v3211_v29 = vcvt.s32.f32 %v3179_v4  ;;  %v3212_v56 = vcvt.s32.f32 %v3180_v55 }
 0x325   :  { %v3213_v53 = vcvt.s32.f32 %v3181_v11  ;;  %v3214_v42 = vcvt.s32.f32 %v3182_v30  ;;  %v3215_v32 = vcvt.s32.f32 %v3183_v54  ;;  %v3216_v20 = vcvt.s32.f32 %v3184_v10 }
 0x326   :  { %v3217_v27 = vcvt.s32.f32 %v3185_v38  ;;  %v3218_v19 = vcvt.s32.f32 %v3186_v13  ;;  %v3219_v44 = vcvt.s32.f32 %v3187_v31  ;;  %v3220_v45 = vcvt.s32.f32 %v3188_v22 }
 0x327   :  { %v3221_v62 = vcvt.s32.f32 %v3189_v26  ;;  %v3222_v49 = vcvt.s32.f32 %v3190_v2  ;;  %v3223_v8 = vcvt.s32.f32 %v3191_v39  ;;  %v3224_v12 = vcvt.s32.f32 %v3192_v7 }
 0x328   :  { %v3225_v17 = vcvt.s32.f32 %v3193_v18  ;;  %v3230_v28 = vmul.f32 2.0, %v3198_v57  ;;  %v3226_v60 = vcvt.s32.f32 %v3194_v14  ;;  %v3227_v40 = vcvt.s32.f32 %v3195_v0 }
 0x329   :  { %v3228_v21 = vcvt.s32.f32 %v3196_v16  ;;  %v3231_v43 = vmul.f32 2.0, %v3199_v23  ;;  %v3229_v4 = vcvt.s32.f32 %v3197_v6  ;;  %v3232_v55 = vmul.f32 2.0, %v3200_v24 }
 0x32a   :  { %v3233_v11 = vmul.f32 2.0, %v3201_v15  ;;  %v3234_v30 = vmul.f32 2.0, %v3202_v58  ;;  %v3235_v54 = vmul.f32 2.0, %v3203_v34  ;;  %v3236_v10 = vmul.f32 2.0, %v3204_v46 }
 0x32b   :  { %v3237_v38 = vmul.f32 2.0, %v3205_v51  ;;  %v7973_v13 = vmul.f32 2.0, %v3206_v36  ;;  %v7975_v22 = vmul.f32 2.0, %v3207_v63  ;;  %v7977_v26 = vmul.f32 2.0, %v3208_v52 }
 0x32c   :  { %v7979_v7 = vmul.f32 2.0, %v3209_v48  ;;  %v3262_v18 = vsub.f32 1.0, %v3230_v28  ;;  %v7981_v14 = vmul.f32 2.0, %v3210_v35  ;;  %v7983_v0 = vmul.f32 2.0, %v3211_v29 }
 0x32d   :  { %v7985_v23 = vmul.f32 2.0, %v3212_v56  ;;  %v3263_v6 = vsub.f32 1.0, %v3231_v43  ;;  %v7987_v58 = vmul.f32 2.0, %v3213_v53  ;;  %v7989_v46 = vmul.f32 2.0, %v3214_v42  ;;  %v9679_v43 = vld [vmem:[#allocation149_spill] sm:$0xff] }
 0x32e   :  { %v7991_v36 = vmul.f32 2.0, %v3215_v32  ;;  %v3264_v63 = vsub.f32 1.0, %v3232_v55  ;;  %v7993_v34 = vmul.f32 2.0, %v3216_v20  ;;  %v7995_v52 = vmul.f32 2.0, %v3217_v27 }
 0x32f   :  { %v7997_v24 = vmul.f32 2.0, %v3218_v19  ;;  %v3265_v35 = vsub.f32 1.0, %v3233_v11  ;;  %v7999_v57 = vmul.f32 2.0, %v3219_v44  ;;  %v8001_v29 = vmul.f32 2.0, %v3220_v45 }
 0x330   :  { %v3266_v56 = vsub.f32 1.0, %v3234_v30  ;;  %v9672_v2 = vsub.f32 %v7798_v33, %v7461_v9  ;;  %v8008_v32 = vmul.f32 2.0, %v3221_v62  ;;  %v8010_v31 = vmul.f32 2.0, %v3222_v49 }
 0x331   :  { %v3267_v20 = vsub.f32 1.0, %v3235_v54  ;;  %v9673_v39 = vsub.f32 %v7802_v25, %v7467_v59  ;;  %v8017_v15 = vmul.f32 2.0, %v3223_v8  ;;  %v8019_v51 = vmul.f32 2.0, %v3224_v12 }
 0x332   :  { %v8006_v42 = vmul.f32 %v3262_v18, %v9672_v2  ;;  %v8021_v48 = vmul.f32 2.0, %v3225_v17  ;;  %v9674_v9 = vsub.f32 %v7821_v3, %v7476_v61  ;;  %v8028_v53 = vmul.f32 2.0, %v3226_v60 }
 0x333   :  { %v8015_v16 = vmul.f32 %v3263_v6, %v9673_v39  ;;  %v8030_v27 = vmul.f32 2.0, %v3227_v40  ;;  %v3268_v19 = vsub.f32 1.0, %v3236_v10  ;;  %v9675_v59 = vsub.f32 %v7824_v41, %v7487_v37 }
 0x334   :  { %v8026_v33 = vmul.f32 %v3264_v63, %v9674_v9  ;;  %v8037_v44 = vmul.f32 2.0, %v3228_v21  ;;  %v8039_v45 = vmul.f32 2.0, %v3229_v4  ;;  %v9676_v62 = vsub.f32 %v7827_v1, %v7493_v47  ;;  %v9678_v21 = vld [vmem:[#allocation131_spill] sm:$0xff]  ;;  %v9684_v63 = vld [vmem:[#allocation134_spill] sm:$0xff]  ;;  %v9687_v9 = vld [vmem:[#allocation64_spill] sm:$0xff] }
 0x335   :  { %v8035_v25 = vmul.f32 %v3265_v35, %v9675_v59  ;;  %v3358_v3 = vand.u32 2147483647, %v8006_v42  ;;  %v3269_v49 = vsub.f32 1.0, %v3237_v38  ;;  %v3270_v8 = vsub.f32 1.0, %v7973_v13  ;;  %v9681_v38 = vld [vmem:[#allocation132_spill] sm:$0xff]  ;;  %v9682_v13 = vld [vmem:[#allocation150_spill] sm:$0xff] }
 0x336   :  { %v8044_v61 = vmul.f32 %v3266_v56, %v9676_v62  ;;  %v9677_v12 = vsub.f32 %v7830_v50, %v7499_v5  ;;  %v3359_v41 = vand.u32 2147483647, %v8015_v16  ;;  %v3271_v17 = vsub.f32 1.0, %v7975_v22  ;;  %v9685_v35 = vld [vmem:[#allocation151_spill] sm:$0xff] }
 0x337   :  { %v3272_v28 = vsub.f32 1.0, %v7977_v26  ;;  %v3273_v47 = vsub.f32 1.0, %v7979_v7  ;;  %v3360_v1 = vand.u32 2147483647, %v8026_v33  ;;  %v3274_v60 = vsub.f32 1.0, %v7981_v14 }
 0x338   :  { %v8051_v37 = vmul.f32 %v3267_v20, %v9677_v12  ;;  %v3275_v40 = vsub.f32 1.0, %v7983_v0  ;;  %v9680_v4 = vsub.f32 %v9678_v21, %v9679_v43  ;;  %v3361_v50 = vand.u32 2147483647, %v8035_v25  ;;  %v9690_v12 = vld [vmem:[#allocation94_spill] sm:$0xff] }
 0x339   :  { %v3276_v55 = vsub.f32 1.0, %v7985_v23  ;;  %v3277_v11 = vsub.f32 1.0, %v7987_v58  ;;  %v3362_v30 = vand.u32 2147483647, %v8044_v61  ;;  %v3390_v54 = vsub.f32 0.0, %v3358_v3 }
 0x33a   :  { %v8063_v5 = vmul.f32 %v3268_v19, %v9680_v4  ;;  %v3278_v10 = vsub.f32 1.0, %v7989_v46  ;;  %v9683_v22 = vsub.f32 %v9681_v38, %v9682_v13  ;;  %v3363_v7 = vand.u32 2147483647, %v8051_v37  ;;  %v9688_v19 = vld [vmem:[#allocation152_spill] sm:$0xff]  ;;  %v9693_v38 = vld [vmem:[#allocation95_spill] sm:$0xff]  ;;  %v9694_v13 = vld [vmem:[#allocation141_spill] sm:$0xff] }
 0x33b   :  { %v3391_v18 = vsub.f32 0.0, %v3359_v41  ;;  %v3279_v14 = vsub.f32 1.0, %v7991_v36  ;;  %v3280_v0 = vsub.f32 1.0, %v7993_v34  ;;  %v3281_v23 = vsub.f32 1.0, %v7995_v52  ;;  %v9691_v41 = vld [vmem:[#allocation36_spill] sm:$0xff] }
 0x33c   :  { %v8073_v26 = vmul.f32 %v3269_v49, %v9683_v22  ;;  %v3392_v6 = vsub.f32 0.0, %v3360_v1  ;;  %v3282_v58 = vsub.f32 1.0, %v7997_v24  ;;  %v9686_v46 = vsub.f32 %v9684_v63, %v9685_v35  ;;  %v9697_v35 = vld [vmem:[#allocation113_spill] sm:$0xff] }
 0x33d   :  { %v3364_v2 = vand.u32 2147483647, %v8063_v5  ;;  %v3393_v20 = vsub.f32 0.0, %v3361_v50  ;;  %v3283_v39 = vsub.f32 1.0, %v7999_v57  ;;  %v9689_v59 = vsub.f32 %v9687_v9, %v9688_v19  ;;  %v9699_v9 = vld [vmem:[#allocation97_spill] sm:$0xff] }
 0x33e   :  { %v8083_v56 = vmul.f32 %v3270_v8, %v9686_v46  ;;  %v3394_v3 = vsub.f32 0.0, %v3362_v30  ;;  %v3422_v49 = vmul.f32 1.442695, %v3390_v54  ;;  %v9692_v1 = vsub.f32 %v9690_v12, %v9691_v41  ;;  %v9702_v41 = vld [vmem:[#allocation98_spill] sm:$0xff] }
 0x33f   :  { %v8090_v62 = vmul.f32 %v3271_v17, %v9689_v59  ;;  %v3365_v8 = vand.u32 2147483647, %v8073_v26  ;;  %v3395_v43 = vsub.f32 0.0, %v3363_v7  ;;  %v3424_v4 = vmul.f32 1.442695, %v3391_v18  ;;  %v9696_v17 = vld [vmem:[#allocation96_spill] sm:$0xff] }
 0x340   :  { %v8095_v21 = vmul.f32 %v3272_v28, %v9692_v1  ;;  %v3284_v50 = vsub.f32 1.0, %v8001_v29  ;;  %v9695_v22 = vsub.f32 %v9693_v38, %v9694_v13  ;;  %v9698_v30 = vsub.f32 %v9696_v17, %v9697_v35  ;;  %v9700_v28 = vld [vmem:[#allocation15_spill] sm:$0xff]  ;;  %v9703_v1 = vld [vmem:[#allocation114_spill] sm:$0xff]  ;;  %v9706_v35 = vld [vmem:[#allocation60_spill] sm:$0xff] }
 0x341   :  { %v3426_v46 = vmul.f32 1.442695, %v3392_v6  ;;  %v9701_v19 = vsub.f32 %v9699_v9, %v9700_v28  ;;  %v3366_v7 = vand.u32 2147483647, %v8083_v56  ;;  %v3396_v18 = vsub.f32 0.0, %v3364_v2  ;;  %v9708_v2 = vld [vmem:[#allocation140_spill] sm:$0xff] }
 0x342   :  { %v8102_v63 = vmul.f32 %v3273_v47, %v9695_v22  ;;  %v8107_v54 = vmul.f32 %v3274_v60, %v9698_v30  ;;  %v3428_v12 = vmul.f32 1.442695, %v3393_v20  ;;  %v9704_v38 = vsub.f32 %v9702_v41, %v9703_v1  ;;  %v9709_v20 = vld [vmem:[#allocation83_spill] sm:$0xff] }
 0x343   :  { %v8112_v59 = vmul.f32 %v3275_v40, %v9701_v19  ;;  %v3367_v13 = vand.u32 2147483647, %v8090_v62  ;;  %3929 = vpow2.f32 %v3422_v49  ;;  %v3430_v60 = vmul.f32 1.442695, %v3394_v3  ;;  %v9705_v40 = vld [vmem:[#allocation139_spill] sm:$0xff] }
 0x344   :  { %v8118_v47 = vmul.f32 %v3276_v55, %v9704_v38  ;;  %v3368_v6 = vand.u32 2147483647, %v8095_v21  ;;  %v3397_v22 = vsub.f32 0.0, %v3365_v8  ;;  %3931 = vpow2.f32 %v3424_v4 }
 0x345   :  { %v3432_v17 = vmul.f32 1.442695, %v3395_v43  ;;  %v9707_v30 = vsub.f32 %v9705_v40, %v9706_v35  ;;  %v9710_v28 = vsub.f32 %v9708_v2, %v9709_v20  ;;  %v3369_v55 = vand.u32 2147483647, %v8102_v63  ;;  %v9712_v2 = vld [vmem:[#allocation84_spill] sm:$0xff] }
 0x346   :  { %3933 = vpow2.f32 %v3426_v46  ;;  %v3370_v3 = vand.u32 2147483647, %v8107_v54  ;;  %v3398_v49 = vsub.f32 0.0, %v3366_v7  ;;  %v3434_v8 = vmul.f32 1.442695, %v3396_v18 }
 0x347   :  { %v8125_v9 = vmul.f32 %v3277_v11, %v9707_v30  ;;  %v8130_v19 = vmul.f32 %v3278_v10, %v9710_v28  ;;  %3935 = vpow2.f32 %v3428_v12  ;;  %v3285_v43 = vsub.f32 1.0, %v8008_v32  ;;  %v9711_v30 = vld [vmem:[#allocation142_spill] sm:$0xff] }
 0x348   :  { %v3371_v4 = vand.u32 2147483647, %v8112_v59  ;;  %v3399_v41 = vsub.f32 0.0, %v3367_v13  ;;  %3937 = vpow2.f32 %v3430_v60  ;;  %v3372_v11 = vand.u32 2147483647, %v8118_v47 }
 0x349   :  { %v3400_v1 = vsub.f32 0.0, %v3368_v6  ;;  %3939 = vpow2.f32 %v3432_v17  ;;  %v3436_v10 = vmul.f32 1.442695, %v3397_v22  ;;  %v3286_v38 = vsub.f32 1.0, %v8010_v31 }
 0x34a   :  { %v3287_v46 = vsub.f32 1.0, %v8017_v15  ;;  %v3373_v40 = vand.u32 2147483647, %v8125_v9  ;;  %v3401_v7 = vsub.f32 0.0, %v3369_v55  ;;  %v3374_v18 = vand.u32 2147483647, %v8130_v19 }
 0x34b   :  { %v3402_v12 = vsub.f32 0.0, %v3370_v3  ;;  %3941 = vpow2.f32 %v3434_v8  ;;  %v3438_v32 = vmul.f32 1.442695, %v3398_v49  ;;  %v3288_v13 = vsub.f32 1.0, %v8019_v51  ;;  %v9714_v8 = vld [vmem:[#allocation143_spill] sm:$0xff] }
 0x34c   :  { %v3289_v60 = vsub.f32 1.0, %v8021_v48  ;;  %v3403_v35 = vsub.f32 0.0, %v3371_v4  ;;  %v3440_v6 = vmul.f32 1.442695, %v3399_v41  ;;  %v3290_v22 = vsub.f32 1.0, %v8028_v53  ;;  %v9715_v4 = vld [vmem:[#allocation115_spill] sm:$0xff] }
 0x34d   :  { %v3404_v17 = vsub.f32 0.0, %v3372_v11  ;;  %3943 = vpow2.f32 %v3436_v10  ;;  %v3442_v31 = vmul.f32 1.442695, %v3400_v1  ;;  %v3291_v15 = vsub.f32 1.0, %v8030_v27  ;;  %v9717_v11 = vld [vmem:[#allocation144_spill] sm:$0xff] }
 0x34e   :  { %v9713_v20 = vsub.f32 %v9711_v30, %v9712_v2  ;;  %v3405_v55 = vsub.f32 0.0, %v3373_v40  ;;  %v3444_v51 = vmul.f32 1.442695, %v3401_v7  ;;  %v3292_v48 = vsub.f32 1.0, %v8037_v44  ;;  %v9718_v1 = vld [vmem:[#allocation116_spill] sm:$0xff]  ;;  %v9720_v40 = vld [vmem:[#allocation145_spill] sm:$0xff] }
 0x34f   :  { %v3406_v3 = vsub.f32 0.0, %v3374_v18  ;;  %3945 = vpow2.f32 %v3438_v32  ;;  %v3446_v49 = vmul.f32 1.442695, %v3402_v12  ;;  %v3293_v53 = vsub.f32 1.0, %v8039_v45  ;;  %v9721_v7 = vld [vmem:[#allocation61_spill] sm:$0xff]  ;;  %v9723_v12 = vld [vmem:[#allocation76_spill] sm:$0xff] }
 0x350   :  { %v8150_v28 = vmul.f32 %v3279_v14, %v9713_v20  ;;  %v9716_v41 = vsub.f32 %v9714_v8, %v9715_v4  ;;  %3947 = vpow2.f32 %v3440_v6  ;;  %v3448_v36 = vmul.f32 1.442695, %v3403_v35  ;;  %v3930_v14 = vpop.eup %3929  ;;  %v9724_v32 = vld [vmem:[#allocation62_spill] sm:$0xff]  ;;  %v9726_v2 = vld [vmem:[#allocation91_spill] sm:$0xff]  ;;  %v9727_v20 = vld [vmem:[#allocation117_spill] sm:$0xff] }
 0x351   :  { %v9719_v10 = vsub.f32 %v9717_v11, %v9718_v1  ;;  %v9722_v45 = vsub.f32 %v9720_v40, %v9721_v7  ;;  %3949 = vpow2.f32 %v3442_v31  ;;  %v3450_v34 = vmul.f32 1.442695, %v3404_v17  ;;  %v9729_v17 = vld [vmem:[#allocation51_spill] sm:$0xff]  ;;  %v9730_v31 = vld [vmem:[#allocation17_spill] sm:$0xff]  ;;  %v9733_v11 = vld [vmem:[#allocation118_spill] sm:$0xff] }
 0x352   :  { %v8159_v27 = vmul.f32 %v3280_v0, %v9716_v41  ;;  %v3932_v0 = vpop.eup %3931  ;;  %v9725_v35 = vsub.f32 %v9723_v12, %v9724_v32  ;;  %v3375_v52 = vand.u32 2147483647, %v8150_v28  ;;  %3951 = vpow2.f32 %v3444_v51  ;;  %v9732_v41 = vld [vmem:[#allocation52_spill] sm:$0xff]  ;;  %v9736_v40 = vld [vmem:[#allocation119_spill] sm:$0xff]  ;;  %v9739_v12 = vld [vmem:[#allocation82_spill] sm:$0xff] }
 0x353   :  { %v8166_v44 = vmul.f32 %v3281_v23, %v9719_v10  ;;  %v8173_v18 = vmul.f32 %v3282_v58, %v9722_v45  ;;  %v3452_v23 = vmul.f32 1.442695, %v3405_v55  ;;  %v3934_v30 = vpop.eup %3933  ;;  %v9728_v24 = vsub.f32 %v9726_v2, %v9727_v20  ;;  %v9742_v20 = vld [vmem:[#allocation77_spill] sm:$0xff] }
 0x354   :  { %v8180_v6 = vmul.f32 %v3283_v39, %v9725_v35  ;;  %v9731_v8 = vsub.f32 %v9729_v17, %v9730_v31  ;;  %3953 = vpow2.f32 %v3446_v49  ;;  %v3454_v57 = vmul.f32 1.442695, %v3406_v3  ;;  %v3936_v39 = vpop.eup %3935  ;;  %v9745_v31 = vld [vmem:[#allocation53_spill] sm:$0xff] }
 0x355   :  { %v8188_v58 = vmul.f32 %v3284_v50, %v9728_v24  ;;  %v9734_v51 = vsub.f32 %v9732_v41, %v9733_v11  ;;  %v3376_v1 = vand.u32 2147483647, %v8159_v27  ;;  %3955 = vpow2.f32 %v3448_v36  ;;  %v3938_v29 = vpop.eup %3937  ;;  %v9735_v50 = vld [vmem:[#allocation78_spill] sm:$0xff] }
 0x356   :  { %v8193_v4 = vmul.f32 %v3285_v43, %v9731_v8  ;;  %v3486_v10 = vadd.f32 1.0, %v3930_v14  ;;  %v9737_v7 = vsub.f32 %v9735_v50, %v9736_v40  ;;  %v9738_v43 = vld [vmem:[#allocation130_spill] sm:$0xff]  ;;  %3957 = vpow2.f32 %v3450_v34  ;;  %v3940_v35 = vpop.eup %3939  ;;  %v9741_v14 = vld [vmem:[#allocation105_spill] sm:$0xff]  ;;  %v9752_v40 = vld [vmem:[#allocation12_spill] sm:$0xff] }
 0x357   :  { %v8198_v55 = vmul.f32 %v3286_v38, %v9734_v51  ;;  %v9740_v49 = vsub.f32 %v9738_v43, %v9739_v12  ;;  %v3487_v32 = vadd.f32 1.0, %v3932_v0  ;;  %v3377_v38 = vand.u32 2147483647, %v8166_v44 }
 0x358   :  { %v8204_v45 = vmul.f32 %v3287_v46, %v9737_v7  ;;  %v3407_v2 = vsub.f32 0.0, %v3375_v52  ;;  %3959 = vpow2.f32 %v3452_v23  ;;  %v3488_v36 = vadd.f32 1.0, %v3934_v30  ;;  %v9744_v46 = vld [vmem:[#allocation109_spill] sm:$0xff]  ;;  %v3942_v34 = vpop.eup %3941  ;;  %v9747_v52 = vld [vmem:[#allocation106_spill] sm:$0xff] }
 0x359   :  { %v8209_v3 = vmul.f32 %v3288_v13, %v9740_v49  ;;  %v9743_v24 = vsub.f32 %v9741_v14, %v9742_v20  ;;  %v9746_v8 = vsub.f32 %v9744_v46, %v9745_v31  ;;  %3961 = vpow2.f32 %v3454_v57  ;;  %v9748_v23 = vld [vmem:[#allocation81_spill] sm:$0xff] }
 0x35a   :  { %v3489_v13 = vadd.f32 1.0, %v3936_v39  ;;  %v3378_v0 = vand.u32 2147483647, %v8173_v18  ;;  %v3408_v11 = vsub.f32 0.0, %v3376_v1  ;;  %v3490_v51 = vadd.f32 1.0, %v3938_v29  ;;  %v3944_v57 = vpop.eup %3943  ;;  %v9755_v1 = vld [vmem:[#allocation59_spill] sm:$0xff] }
 0x35b   :  { %v8215_v17 = vmul.f32 %v3289_v60, %v9743_v24  ;;  %v8220_v41 = vmul.f32 %v3290_v22, %v9746_v8  ;;  %3963 = vlog2.f32 %v3486_v10  ;;  %v9749_v30 = vsub.f32 %v9747_v52, %v9748_v23  ;;  %v9751_v60 = vld [vmem:[#allocation107_spill] sm:$0xff]  ;;  %v9756_v10 = vld [vmem:[#allocation93_spill] sm:$0xff] }
 0x35c   :  { %v9753_v7 = vsub.f32 %v9751_v60, %v9752_v40  ;;  %v3491_v22 = vadd.f32 1.0, %v3940_v35  ;;  %3965 = vlog2.f32 %v3487_v32  ;;  %v3379_v39 = vand.u32 2147483647, %v8180_v6  ;;  %v3946_v24 = vpop.eup %3945 }
 0x35d   :  { %v8226_v50 = vmul.f32 %v3291_v15, %v9749_v30  ;;  %v3409_v12 = vsub.f32 0.0, %v3377_v38  ;;  %v3456_v49 = vmul.f32 1.442695, %v3407_v2  ;;  %3967 = vlog2.f32 %v3488_v36  ;;  %v3948_v46 = vpop.eup %3947 }
 0x35e   :  { %v8231_v43 = vmul.f32 %v3292_v48, %v9753_v7  ;;  %v9757_v29 = vsub.f32 %v9755_v1, %v9756_v10  ;;  %v3326_v15 = vmax.f32 %v8006_v42, 0.0  ;;  %v3492_v20 = vadd.f32 1.0, %v3942_v34  ;;  %v3950_v31 = vpop.eup %3949 }
 0x35f   :  { %9750 = vst [vmem:[#allocation66_spill] sm:$0xff] %v8226_v50  ;;  %3969 = vlog2.f32 %v3489_v13  ;;  %v3380_v48 = vand.u32 2147483647, %v8188_v58  ;;  %v3410_v35 = vsub.f32 0.0, %v3378_v0  ;;  %v3458_v32 = vmul.f32 1.442695, %v3408_v11  ;;  %v3952_v13 = vpop.eup %3951 }
 0x360   :  { %9754 = vst [vmem:[#allocation108_spill] sm:$0xff] %v8231_v43  ;;  %v8237_v14 = vmul.f32 %v3293_v53, %v9757_v29  ;;  %3971 = vlog2.f32 %v3490_v51  ;;  %v3493_v36 = vadd.f32 1.0, %v3944_v57  ;;  %v3381_v53 = vand.u32 2147483647, %v8193_v4 }
 0x361   :  { %3973 = vlog2.f32 %v3491_v22  ;;  %v3411_v8 = vsub.f32 0.0, %v3379_v39  ;;  %v3460_v34 = vmul.f32 1.442695, %v3409_v12  ;;  %v3494_v11 = vadd.f32 1.0, %v3946_v24  ;;  %v3954_v51 = vpop.eup %3953 }
 0x362   :  { %3975 = vpow2.f32 %v3456_v49  ;;  %v3382_v23 = vand.u32 2147483647, %v8198_v55  ;;  %v3412_v30 = vsub.f32 0.0, %v3380_v48  ;;  %v3462_v60 = vmul.f32 1.442695, %v3410_v35  ;;  %v3956_v40 = vpop.eup %3955 }
 0x363   :  { %3977 = vlog2.f32 %v3492_v20  ;;  %v3495_v57 = vadd.f32 1.0, %v3948_v46  ;;  %v3958_v39 = vpop.eup %3957  ;;  %v3383_v12 = vand.u32 2147483647, %v8204_v45  ;;  %v3413_v49 = vsub.f32 0.0, %v3381_v53 }
 0x364   :  { %3979 = vpow2.f32 %v3458_v32  ;;  %v3464_v1 = vmul.f32 1.442695, %v3411_v8  ;;  %v3384_v20 = vand.u32 2147483647, %v8209_v3  ;;  %v3496_v24 = vadd.f32 1.0, %v3950_v31 }
 0x365   :  { %3981 = vlog2.f32 %v3493_v36  ;;  %v3960_v10 = vpop.eup %3959  ;;  %v3385_v35 = vand.u32 2147483647, %v8215_v17  ;;  %v3414_v32 = vsub.f32 0.0, %v3382_v23  ;;  %v3466_v46 = vmul.f32 1.442695, %v3412_v30 }
 0x366   :  { %3983 = vpow2.f32 %v3460_v34  ;;  %v3962_v48 = vpop.eup %3961  ;;  %v3386_v22 = vand.u32 2147483647, %v8220_v41  ;;  %v3387_v53 = vand.u32 2147483647, %v8226_v50  ;;  %v3497_v34 = vadd.f32 1.0, %v3952_v13 }
 0x367   :  { %3985 = vlog2.f32 %v3494_v11  ;;  %v3415_v7 = vsub.f32 0.0, %v3383_v12  ;;  %v3468_v29 = vmul.f32 1.442695, %v3413_v49  ;;  %v3388_v11 = vand.u32 2147483647, %v8231_v43 }
 0x368   :  { %3987 = vpow2.f32 %v3462_v60  ;;  %v3964_v36 = vpop.eup %3963  ;;  %v3498_v52 = vadd.f32 1.0, %v3954_v51  ;;  %v3470_v30 = vmul.f32 1.442695, %v3414_v32  ;;  %v9758_v12 = vmax.f32 %v8015_v16, 0.0 }
 0x369   :  { %3989 = vlog2.f32 %v3495_v57  ;;  %v3966_v8 = vpop.eup %3965  ;;  %v3519_v0 = vmul.f32 0.6931472, %v3964_v36  ;;  %v3499_v57 = vadd.f32 1.0, %v3956_v40  ;;  %v3416_v36 = vsub.f32 0.0, %v3384_v20 }
 0x36a   :  { %3991 = vpow2.f32 %v3464_v1  ;;  %v3968_v31 = vpop.eup %3967  ;;  %v3521_v2 = vmul.f32 0.6931472, %v3966_v8  ;;  %v3472_v51 = vmul.f32 1.442695, %v3415_v7  ;;  %v3500_v8 = vadd.f32 1.0, %v3958_v39 }
 0x36b   :  { %3993 = vlog2.f32 %v3496_v24  ;;  %v3523_v60 = vmul.f32 0.6931472, %v3968_v31  ;;  %v3582_v38 = vadd.f32 %v3519_v0, %v3326_v15  ;;  %v9759_v32 = vmax.f32 %v8026_v33, 0.0 }
 0x36c   :  { %v3970_v23 = vpop.eup %3969  ;;  %3995 = vpow2.f32 %v3466_v46  ;;  %v3583_v49 = vadd.f32 %v3521_v2, %v9758_v12  ;;  %v3417_v0 = vsub.f32 0.0, %v3385_v35  ;;  %v3501_v40 = vadd.f32 1.0, %v3960_v10 }
 0x36d   :  { %v3972_v13 = vpop.eup %3971  ;;  %v3525_v50 = vmul.f32 0.6931472, %v3970_v23  ;;  %3997 = vlog2.f32 %v3497_v34  ;;  %v3584_v46 = vadd.f32 %v3523_v60, %v9759_v32  ;;  %v3502_v34 = vadd.f32 1.0, %v3962_v48 }
 0x36e   :  { %v3974_v1 = vpop.eup %3973  ;;  %3999 = vpow2.f32 %v3468_v29  ;;  %v3527_v43 = vmul.f32 0.6931472, %v3972_v13  ;;  %v3745_v42 = vadd.f32 %v3583_v49, %v3582_v38  ;;  %v9760_v2 = vmax.f32 %v8035_v25, 0.0 }
 0x36f   :  { %v3976_v24 = vpop.eup %3975  ;;  %4001 = vlog2.f32 %v3498_v52  ;;  %v3529_v16 = vmul.f32 0.6931472, %v3974_v1  ;;  %v3389_v20 = vand.u32 2147483647, %v8237_v14  ;;  %v3418_v52 = vsub.f32 0.0, %v3386_v22 }
 0x370   :  { %v3978_v15 = vpop.eup %3977  ;;  %4003 = vpow2.f32 %v3470_v30  ;;  %v3585_v29 = vadd.f32 %v3525_v50, %v9760_v2  ;;  %v3746_v7 = vadd.f32 %v3745_v42, %v3584_v46  ;;  %v3474_v33 = vmul.f32 1.442695, %v3416_v36 }
 0x371   :  { %v3980_v31 = vpop.eup %3979  ;;  %4005 = vlog2.f32 %v3499_v57  ;;  %v3531_v38 = vmul.f32 0.6931472, %v3978_v15  ;;  %v9761_v35 = vmax.f32 %v8044_v61, 0.0  ;;  %v3419_v60 = vsub.f32 0.0, %v3387_v53 }
 0x372   :  { %v3982_v39 = vpop.eup %3981  ;;  %4007 = vpow2.f32 %v3472_v51  ;;  %v3747_v48 = vadd.f32 %v3746_v7, %v3585_v29  ;;  %v3476_v13 = vmul.f32 1.442695, %v3417_v0  ;;  %v3503_v57 = vadd.f32 1.0, %v3976_v24 }
 0x373   :  { %v3984_v23 = vpop.eup %3983  ;;  %4009 = vlog2.f32 %v3500_v8  ;;  %v3586_v10 = vadd.f32 %v3527_v43, %v9761_v35  ;;  %v3533_v50 = vmul.f32 0.6931472, %v3982_v39  ;;  %v9762_v12 = vmax.f32 %v8051_v37, 0.0 }
 0x374   :  { %v3986_v30 = vpop.eup %3985  ;;  %4011 = vlog2.f32 %v3501_v40  ;;  %v3334_v36 = vmax.f32 %v8083_v56, 0.0  ;;  %v3420_v51 = vsub.f32 0.0, %v3388_v11  ;;  %v3478_v61 = vmul.f32 1.442695, %v3418_v52 }
 0x375   :  { %v3988_v25 = vpop.eup %3987  ;;  %4013 = vlog2.f32 %v3502_v34  ;;  %v3587_v22 = vadd.f32 %v3529_v16, %v9762_v12  ;;  %v3748_v49 = vadd.f32 %v3747_v48, %v3586_v10  ;;  %v3504_v8 = vadd.f32 1.0, %v3980_v31 }
 0x376   :  { %v3990_v1 = vpop.eup %3989  ;;  %4015 = vpow2.f32 %v3474_v33  ;;  %v3535_v32 = vmul.f32 0.6931472, %v3986_v30  ;;  %v9763_v53 = vmax.f32 %v8063_v5, 0.0  ;;  %v3421_v15 = vsub.f32 0.0, %v3389_v20 }
 0x377   :  { %v3992_v43 = vpop.eup %3991  ;;  %v3749_v46 = vadd.f32 %v3748_v49, %v3587_v22  ;;  %4017 = vpow2.f32 %v3476_v13  ;;  %v3480_v0 = vmul.f32 1.442695, %v3419_v60  ;;  %v3505_v37 = vadd.f32 1.0, %v3984_v23 }
 0x378   :  { %v3588_v24 = vadd.f32 %v3531_v38, %v9763_v53  ;;  %v3994_v42 = vpop.eup %3993  ;;  %v3537_v34 = vmul.f32 0.6931472, %v3990_v1  ;;  %4019 = vlog2.f32 %v3503_v57  ;;  %v9764_v56 = vmax.f32 %v8073_v26, 0.0 }
 0x379   :  { %v3996_v40 = vpop.eup %3995  ;;  %v3335_v31 = vmax.f32 %v8090_v62, 0.0  ;;  %4021 = vpow2.f32 %v3478_v61  ;;  %v3482_v29 = vmul.f32 1.442695, %v3420_v51  ;;  %v3506_v5 = vadd.f32 1.0, %v3988_v25 }
 0x37a   :  { %v3589_v11 = vadd.f32 %v3533_v50, %v9764_v56  ;;  %v3750_v16 = vadd.f32 %v3749_v46, %v3588_v24  ;;  %v3998_v2 = vpop.eup %3997  ;;  %v3539_v39 = vmul.f32 0.6931472, %v3994_v42  ;;  %4023 = vlog2.f32 %v3504_v8 }
 0x37b   :  { %v4000_v7 = vpop.eup %3999  ;;  %v3590_v20 = vadd.f32 %v3535_v32, %v3334_v36  ;;  %v3336_v23 = vmax.f32 %v8095_v21, 0.0  ;;  %4025 = vpow2.f32 %v3480_v0  ;;  %v3484_v38 = vmul.f32 1.442695, %v3421_v15 }
 0x37c   :  { %v3751_v52 = vadd.f32 %v3750_v16, %v3589_v11  ;;  %v4002_v33 = vpop.eup %4001  ;;  %v3507_v35 = vadd.f32 1.0, %v3992_v43  ;;  %v3541_v10 = vmul.f32 0.6931472, %v3998_v2  ;;  %4027 = vlog2.f32 %v3505_v37 }
 0x37d   :  { %v4004_v26 = vpop.eup %4003  ;;  %v3591_v48 = vadd.f32 %v3537_v34, %v3335_v31  ;;  %v3337_v60 = vmax.f32 %v8102_v63, 0.0  ;;  %4029 = vpow2.f32 %v3482_v29  ;;  %v3508_v13 = vadd.f32 1.0, %v3996_v40 }
 0x37e   :  { %v3752_v30 = vadd.f32 %v3751_v52, %v3590_v20  ;;  %v4006_v62 = vpop.eup %4005  ;;  %v3543_v25 = vmul.f32 0.6931472, %v4002_v33  ;;  %4031 = vlog2.f32 %v3506_v5  ;;  %v3592_v50 = vadd.f32 %v3539_v39, %v3336_v23 }
 0x37f   :  { %v4008_v57 = vpop.eup %4007  ;;  %v3338_v21 = vmax.f32 %v8107_v54, 0.0  ;;  %4033 = vpow2.f32 %v3484_v38  ;;  %v3509_v49 = vadd.f32 1.0, %v4000_v7  ;;  %v3545_v36 = vmul.f32 0.6931472, %v4006_v62 }
 0x380   :  { %v3753_v12 = vadd.f32 %v3752_v30, %v3591_v48  ;;  %v4010_v22 = vpop.eup %4009  ;;  %4035 = vlog2.f32 %v3507_v35  ;;  %v3593_v51 = vadd.f32 %v3541_v10, %v3337_v60  ;;  %v3339_v63 = vmax.f32 %v8112_v59, 0.0 }
 0x381   :  { %v4012_v1 = vpop.eup %4011  ;;  %v3510_v8 = vadd.f32 1.0, %v4004_v26  ;;  %v3547_v53 = vmul.f32 0.6931472, %v4010_v22  ;;  %4037 = vlog2.f32 %v3508_v13  ;;  %v3594_v24 = vadd.f32 %v3543_v25, %v3338_v21 }
 0x382   :  { %v3754_v61 = vadd.f32 %v3753_v12, %v3592_v50  ;;  %v4014_v43 = vpop.eup %4013  ;;  %v3340_v42 = vmax.f32 %v8118_v47, 0.0  ;;  %v3511_v15 = vadd.f32 1.0, %v4008_v57  ;;  %4039 = vlog2.f32 %v3509_v49 }
 0x383   :  { %v4016_v32 = vpop.eup %4015  ;;  %v3549_v0 = vmul.f32 0.6931472, %v4012_v1  ;;  %v3551_v37 = vmul.f32 0.6931472, %v4014_v43  ;;  %v3595_v40 = vadd.f32 %v3545_v36, %v3339_v63  ;;  %v3341_v11 = vmax.f32 %v8125_v9, 0.0 }
 0x384   :  { %v3755_v46 = vadd.f32 %v3754_v61, %v3593_v51  ;;  %v4018_v54 = vpop.eup %4017  ;;  %v3342_v59 = vmax.f32 %v8130_v19, 0.0  ;;  %v3512_v2 = vadd.f32 1.0, %v4016_v32  ;;  %4041 = vlog2.f32 %v3510_v8 }
 0x385   :  { %v4020_v56 = vpop.eup %4019  ;;  %v3596_v31 = vadd.f32 %v3547_v53, %v3340_v42  ;;  %v3513_v7 = vadd.f32 1.0, %v4018_v54  ;;  %4043 = vlog2.f32 %v3511_v15  ;;  %v3597_v20 = vadd.f32 %v3549_v0, %v3341_v11 }
 0x386   :  { %v3756_v34 = vadd.f32 %v3755_v46, %v3594_v24  ;;  %v4022_v16 = vpop.eup %4021  ;;  %v3553_v39 = vmul.f32 0.6931472, %v4020_v56  ;;  %v3598_v52 = vadd.f32 %v3551_v37, %v3342_v59  ;;  %v3343_v38 = vmax.f32 %v8150_v28, 0.0 }
 0x387   :  { %v4024_v5 = vpop.eup %4023  ;;  %v3514_v9 = vadd.f32 1.0, %v4022_v16  ;;  %4045 = vlog2.f32 %v3512_v2  ;;  %v3344_v48 = vmax.f32 %v8159_v27, 0.0  ;;  %v3345_v50 = vmax.f32 %v8166_v44, 0.0 }
 0x388   :  { %v3757_v29 = vadd.f32 %v3756_v34, %v3595_v40  ;;  %v4026_v47 = vpop.eup %4025  ;;  %v3555_v26 = vmul.f32 0.6931472, %v4024_v5  ;;  %4047 = vlog2.f32 %v3513_v7  ;;  %v3599_v13 = vadd.f32 %v3553_v39, %v3343_v38 }
 0x389   :  { %v4028_v23 = vpop.eup %4027  ;;  %v3515_v30 = vadd.f32 1.0, %v4026_v47  ;;  %4049 = vlog2.f32 %v3514_v9  ;;  %v3346_v1 = vmax.f32 %v8173_v18, 0.0  ;;  %v3347_v63 = vmax.f32 %v8180_v6, 0.0 }
 0x38a   :  { %v3758_v33 = vadd.f32 %v3757_v29, %v3596_v31  ;;  %v4030_v35 = vpop.eup %4029  ;;  %v3557_v60 = vmul.f32 0.6931472, %v4028_v23  ;;  %v3600_v28 = vadd.f32 %v3555_v26, %v3344_v48  ;;  %v3348_v24 = vmax.f32 %v8188_v58, 0.0 }
 0x38b   :  { %v4032_v10 = vpop.eup %4031  ;;  %v3516_v12 = vadd.f32 1.0, %v4030_v35  ;;  %4051 = vlog2.f32 %v3515_v30  ;;  %v3349_v54 = vmax.f32 %v8193_v4, 0.0  ;;  %v3350_v6 = vmax.f32 %v8198_v55, 0.0 }
 0x38c   :  { %v3759_v19 = vadd.f32 %v3758_v33, %v3597_v20  ;;  %v4034_v62 = vpop.eup %4033  ;;  %v3559_v22 = vmul.f32 0.6931472, %v4032_v10  ;;  %v3601_v61 = vadd.f32 %v3557_v60, %v3345_v50  ;;  %v3351_v2 = vmax.f32 %v8204_v45, 0.0  ;;  %v9765_v10 = vld [vmem:[#allocation66_spill] sm:$0xff]  ;;  %v9766_v60 = vld [vmem:[#allocation108_spill] sm:$0xff] }
 0x38d   :  { %v4036_v25 = vpop.eup %4035  ;;  %v3517_v36 = vadd.f32 1.0, %v4034_v62  ;;  %4053 = vlog2.f32 %v3516_v12  ;;  %v3352_v7 = vmax.f32 %v8209_v3, 0.0  ;;  %v3354_v35 = vmax.f32 %v8220_v41, 0.0 }
 0x38e   :  { %v3760_v57 = vadd.f32 %v3759_v19, %v3598_v52  ;;  %v4038_v49 = vpop.eup %4037  ;;  %v3561_v27 = vmul.f32 0.6931472, %v4036_v25  ;;  %v3602_v32 = vadd.f32 %v3559_v22, %v3346_v1  ;;  %v3353_v52 = vmax.f32 %v8215_v17, 0.0 }
 0x38f   :  { %v4040_v51 = vpop.eup %4039  ;;  %v3563_v8 = vmul.f32 0.6931472, %v4038_v49  ;;  %4055 = vlog2.f32 %v3517_v36  ;;  %v3355_v48 = vmax.f32 %v9765_v10, 0.0  ;;  %v3357_v50 = vmax.f32 %v8237_v14, 0.0 }
 0x390   :  { %v3761_v21 = vadd.f32 %v3760_v57, %v3599_v13  ;;  %v3565_v42 = vmul.f32 0.6931472, %v4040_v51  ;;  %v3603_v15 = vadd.f32 %v3561_v27, %v3347_v63  ;;  %v3356_v13 = vmax.f32 %v9766_v60, 0.0 }
 0x391   :  { %v4042_v53 = vpop.eup %4041  ;;  %v3604_v37 = vadd.f32 %v3563_v8, %v3348_v24 }
 0x392   :  { %v3762_v43 = vadd.f32 %v3761_v21, %v3600_v28  ;;  %v4044_v46 = vpop.eup %4043  ;;  %v3567_v0 = vmul.f32 0.6931472, %v4042_v53  ;;  %v3605_v11 = vadd.f32 %v3565_v42, %v3349_v54 }
 0x393   :  { %v3569_v56 = vmul.f32 0.6931472, %v4044_v46 }
 0x394   :  { %v3763_v44 = vadd.f32 %v3762_v43, %v3601_v61  ;;  %v4046_v34 = vpop.eup %4045  ;;  %v3606_v31 = vadd.f32 %v3567_v0, %v3350_v6 }
 0x395   :  { %v4048_v16 = vpop.eup %4047  ;;  %v3571_v58 = vmul.f32 0.6931472, %v4046_v34  ;;  %v3607_v4 = vadd.f32 %v3569_v56, %v3351_v2 }
 0x396   :  { %v3764_v18 = vadd.f32 %v3763_v44, %v3602_v32  ;;  %v4050_v5 = vpop.eup %4049  ;;  %v3573_v47 = vmul.f32 0.6931472, %v4048_v16 }
 0x397   :  { %v3575_v33 = vmul.f32 0.6931472, %v4050_v5  ;;  %v3608_v55 = vadd.f32 %v3571_v58, %v3352_v7 }
 0x398   :  { %v3765_v40 = vadd.f32 %v3764_v18, %v3603_v15  ;;  %v4052_v20 = vpop.eup %4051  ;;  %v3609_v45 = vadd.f32 %v3573_v47, %v3353_v52 }
 0x399   :  { %v3577_v9 = vmul.f32 0.6931472, %v4052_v20  ;;  %v3610_v3 = vadd.f32 %v3575_v33, %v3354_v35 }
 0x39a   :  { %v3766_v59 = vadd.f32 %v3765_v40, %v3604_v37  ;;  %v4054_v38 = vpop.eup %4053 }
 0x39b   :  { %v3579_v30 = vmul.f32 0.6931472, %v4054_v38  ;;  %v3611_v25 = vadd.f32 %v3577_v9, %v3355_v48 }
 0x39c   :  { %v3767_v29 = vadd.f32 %v3766_v59, %v3605_v11  ;;  %v4056_v19 = vpop.eup %4055 }
 0x39d   :  { %v3581_v57 = vmul.f32 0.6931472, %v4056_v19  ;;  %v3612_v12 = vadd.f32 %v3579_v30, %v3356_v13 }
 0x39e   :  { %v3768_v39 = vadd.f32 %v3767_v29, %v3606_v31 }
 0x39f   :  { %v3613_v28 = vadd.f32 %v3581_v57, %v3357_v50 }
 0x3a0   :  { %v3769_v23 = vadd.f32 %v3768_v39, %v3607_v4 }
 0x3a2   :  { %v3770_v26 = vadd.f32 %v3769_v23, %v3608_v55 }
 0x3a4   :  { %v3771_v62 = vadd.f32 %v3770_v26, %v3609_v45 }
 0x3a6   :  { %v3772_v17 = vadd.f32 %v3771_v62, %v3610_v3 }
 0x3a8   :  { %v3773_v22 = vadd.f32 %v3772_v17, %v3611_v25 }
 0x3aa   :  { %v3774_v41 = vadd.f32 %v3773_v22, %v3612_v12 }
 0x3ac   :  { %v3775_v21 = vadd.f32 %v3774_v41, %v3613_v28 }
 0x3ae   :  { %3776 = vadd.xlane.f32.xlu1 %v3775_v21 }
 0x437   :  { %v3777_v49 = vpop.xlane.xlu1 %3776 }
 0x438   :  { %v3778_v1 = vrot.slane %v3777_v49, 4 }
 0x43a   :  { %v3779_v36 = vadd.f32 %v3778_v1, %v3777_v49 }
 0x43c   :  { %v3780_v51 = vrot.slane %v3779_v36, 2 }
 0x43e   :  { %v3781_v27 = vadd.f32 %v3780_v51, %v3779_v36 }
 0x440   :  { %v3782_v61 = vrot.slane %v3781_v27, 1 }
 0x442   :  { %v3783_v43 = vadd.f32 %v3782_v61, %v3781_v27 }
 0x444   :  { %3826 = vpush %v3783_v43 }
 0x475   :  { %s3827_s28 = spop %3826 }
 0x476   :  { %v3785_v63 = vstv %s3827_s28 }
 0x477   :  { %3786 = vst [vmem:[#allocation8] sm:$0x1] %v3785_v63 }
 0x478   :  { %4140 = shalt.err (!%p4137_p0)
}
 0x479   :  { %3796 = dma.vmem_to_hbm [thread:$0]  %s3794_s27, 16, %s8306_s6, [#allocation5]  }
 0x47a   :  { %4153 = dma.done.wait [#allocation5], 16  }
 0x47b   :  { %4154 = vsyncadd [#allocation5], 4294967280 }
 0x47c   :  { %3800 = vsyncpa [#allocation4], 1 }
 0x47d   :  { %3801 = vsyncpa [#allocation7], 1 }
 0x47e   :  { %3802 = vsyncpa [#allocation5], 1 }

</bundles_post_ra>
